<compile_context>
chip_gen: v7x
topology: tpu7x:2x2x1
jax: 0.10.0
libtpu: 0.0.40
codegen_flags: <defaults>
</compile_context>

<pallas_src>
import functools

import jax
import jax.numpy as jnp
from jax.experimental import pallas as pl
from jax.experimental.pallas import tpu as pltpu

# ---------------- small synthetic config ----------------
HIDDEN = 128
N_HEADS = 4
HEAD_DIM = HIDDEN // N_HEADS
FFN = 256
VOCAB = 32
N_LAYERS = 2
# (c_in, c_out, kernel, stride) — scaled-down version of the 7-layer wav2vec2 conv stack
CONV_LAYERS = [(1, 64, 10, 5), (64, 64, 3, 2), (64, 64, 3, 2)]
CONV_DIM = CONV_LAYERS[-1][1]
NEG_INF = -1e30
K0_PAD = 16          # conv0 kernel 10 padded to 16 so conv0 is one aligned MXU pass


def _conv_out_len(length):
    t = length
    for _, _, k, s in CONV_LAYERS:
        t = (t - k) // s + 1
    return t


def _round_up(x, m):
    return ((x + m - 1) // m) * m


# ---------------- in-kernel helpers ----------------
def _mm(a, b):
    # bf16 operands, f32 accumulation (MXU-native on every listed generation)
    return jnp.dot(a.astype(jnp.bfloat16), b.astype(jnp.bfloat16),
                   preferred_element_type=jnp.float32)


def _gelu(x):
    return jax.nn.gelu(x, approximate=True)


def _ln(x, g, b, eps=1e-5):
    mean = jnp.mean(x, axis=-1, keepdims=True)
    var = jnp.mean((x - mean) ** 2, axis=-1, keepdims=True)
    return (x - mean) * jax.lax.rsqrt(var + eps) * g + b


def _pick_rows(y, t_out, stride, offset):
    # rows offset, offset+stride, ... of y via a tiny 0/1 selection matmul (MXU);
    # avoids strided sublane loads / relayouts and never indexes out of range.
    t_in = y.shape[0]
    out_i = jax.lax.broadcasted_iota(jnp.int32, (t_out, t_in), 0)
    in_i = jax.lax.broadcasted_iota(jnp.int32, (t_out, t_in), 1)
    sel = (in_i == stride * out_i + offset).astype(jnp.float32)
    return _mm(sel, y)


# ---------------- the single fused kernel (one batch element per grid step) ----------------
def _wav2vec2_kernel(p0_ref, w0_ref, gng_ref, gnb_ref, w1c_ref, w2c_ref,
                     fplng_ref, fplnb_ref, fpw_ref, fpb_ref, posw_ref, posb_ref,
                     elng_ref, elnb_ref,
                     wqkv_ref, bqkv_ref, wo_ref, bo_ref, l1g_ref, l1b_ref,
                     wf1_ref, bf1_ref, wf2_ref, bf2_ref, l2g_ref, l2b_ref,
                     lmw_ref, lmb_ref,
                     z_ref, tok_ref, *, t0, t1, t2):
    C = CONV_DIM
    H = HIDDEN
    t_pad = z_ref.shape[0]

    # ---- conv0 (single MXU pass) + GroupNorm(num_groups=C, over time) + GELU ----
    y0 = _mm(p0_ref[...], w0_ref[...])                          # (T0_PAD, C)
    r0 = jax.lax.broadcasted_iota(jnp.int32, y0.shape, 0)
    valid0 = r0 < t0
    y0m = jnp.where(valid0, y0, 0.0)
    mean0 = jnp.sum(y0m, axis=0, keepdims=True) * (1.0 / t0)
    dev0 = jnp.where(valid0, y0 - mean0, 0.0)
    var0 = jnp.sum(dev0 * dev0, axis=0, keepdims=True) * (1.0 / t0)
    y0 = dev0 * jax.lax.rsqrt(var0 + 1e-5) * gng_ref[...] + gnb_ref[...]
    y0 = jnp.where(valid0, _gelu(y0), 0.0)                      # pad rows exactly zero

    # ---- conv1 (k=3, s=2) + GELU ----
    w1c = w1c_ref[...]
    acc1 = jnp.zeros((t1, C), jnp.float32)
    for j in range(3):                                          # static unroll
        acc1 = acc1 + _mm(_pick_rows(y0, t1, 2, j), w1c[j * C:(j + 1) * C, :])
    y1 = _gelu(acc1)                                            # (t1, C)

    # ---- conv2 (k=3, s=2) + GELU ----
    w2c = w2c_ref[...]
    acc2 = jnp.zeros((t_pad, C), jnp.float32)
    for j in range(3):
        acc2 = acc2 + _mm(_pick_rows(y1, t_pad, 2, j), w2c[j * C:(j + 1) * C, :])
    r2 = jax.lax.broadcasted_iota(jnp.int32, (t_pad, C), 0)
    feat = jnp.where(r2 < t2, _gelu(acc2), 0.0)                 # (T_PAD, C), pad rows zero

    # ---- feature projection: LN + Linear ----
    x = _ln(feat, fplng_ref[...], fplnb_ref[...])
    h = _mm(x, fpw_ref[...]) + fpb_ref[...]                     # (T_PAD, H)
    rows_h = jax.lax.broadcasted_iota(jnp.int32, h.shape, 0)
    h = jnp.where(rows_h < t2, h, 0.0)                          # zero pad rows before pos-conv

    # ---- positional conv (k=3, zero "same" pad) + GELU, residual, encoder LN ----
    pw = posw_ref[...]                                          # (3H, H)
    zero_row = jnp.zeros((1, H), jnp.float32)
    left = jnp.concatenate([zero_row, h[:-1, :]], axis=0)       # x[t-1]
    right = jnp.concatenate([h[1:, :], zero_row], axis=0)       # x[t+1]
    pos = (_mm(left, pw[0:H, :]) + _mm(h, pw[H:2 * H, :])
           + _mm(right, pw[2 * H:3 * H, :]) + posb_ref[...])
    hid = _ln(h + _gelu(pos), elng_ref[...], elnb_ref[...])     # (T_PAD, H)

    # ---- transformer encoder layers (post-norm), everything VMEM-resident ----
    scale = 1.0 / (HEAD_DIM ** 0.5)
    col = jax.lax.broadcasted_iota(jnp.int32, (1, t_pad), 1)
    att_bias = jnp.where(col < t2, 0.0, NEG_INF)                # additive pad-key mask

    for l in range(N_LAYERS):                                   # static unroll (2 layers)
        qkv = _mm(hid, wqkv_ref[l]) + bqkv_ref[l]               # fused QKV (T_PAD, 3H)
        ctx_heads = []
        for hh in range(N_HEADS):                               # static unroll over heads
            q = qkv[:, hh * HEAD_DIM:(hh + 1) * HEAD_DIM]
            k = qkv[:, H + hh * HEAD_DIM:H + (hh + 1) * HEAD_DIM]
            v = qkv[:, 2 * H + hh * HEAD_DIM:2 * H + (hh + 1) * HEAD_DIM]
            s = jax.lax.dot_general(q.astype(jnp.bfloat16), k.astype(jnp.bfloat16),
                                    (((1,), (1,)), ((), ())),
                                    preferred_element_type=jnp.float32)   # (T_PAD, T_PAD)
            s = s * scale + att_bias
            m = jnp.max(s, axis=-1, keepdims=True)
            p = jnp.exp(s - m)
            denom = jnp.sum(p, axis=-1, keepdims=True)
            p = p * pl.reciprocal(denom, approx=True)           # divide on the EUP slot
            ctx_heads.append(_mm(p, v))
        ctx = jnp.concatenate(ctx_heads, axis=-1)               # lane-dense (T_PAD, H)

        attn = _mm(ctx, wo_ref[l]) + bo_ref[l]
        h1 = _ln(attn + hid, l1g_ref[l], l1b_ref[l])
        ff = _gelu(_mm(h1, wf1_ref[l]) + bf1_ref[l])
        ff = _mm(ff, wf2_ref[l]) + bf2_ref[l]
        hid = _ln(ff + h1, l2g_ref[l], l2b_ref[l])

    # ---- lm_head + argmax (logits never leave VMEM) ----
    logits = _mm(hid, lmw_ref[...]) + lmb_ref[...]              # (T_PAD, VOCAB)
    mx = jnp.max(logits, axis=-1, keepdims=True)
    idx = jax.lax.broadcasted_iota(jnp.int32, logits.shape, 1)
    cand = jnp.where(logits == mx, idx, jnp.int32(2 ** 31 - 1))
    tok_ref[...] = jnp.min(cand, axis=-1, keepdims=True)        # first index on ties
    z_ref[...] = hid


# ---------------- conv0 patch extraction (XLA strided slices — no gather) ----------------
def frame_conv0(x):
    # conv0 has C_in=1, kernel=10, stride=5 (kernel == 2*stride): reshape-to-frames + concat.
    B, L = x.shape
    _, _, k, s = CONV_LAYERS[0]
    assert k == 2 * s
    t_out = (L - k) // s + 1
    n_frames = L // s
    frames = x[:, :n_frames * s].reshape(B, n_frames, s)
    return jnp.concatenate([frames[:, :t_out, :], frames[:, 1:t_out + 1, :]], axis=-1)


# ---------------- forward pass: one pallas_call for the whole network ----------------
def wav2vec2_forward(params, x):
    B, L = x.shape

    # feature-extractor zero_mean_unit_var_norm (tiny; XLA prologue, no extra pallas_call)
    mean = jnp.mean(x, axis=-1, keepdims=True)
    var = jnp.mean((x - mean) ** 2, axis=-1, keepdims=True)
    xn = (x - mean) * jax.lax.rsqrt(var + 1e-7)

    # conv0 patches, padded to (B, T0_PAD, 16) (sublane multiple of 8, MXU-friendly K)
    p0 = frame_conv0(xn)                                        # (B, T0, 10)
    T0 = p0.shape[1]
    T0_PAD = _round_up(T0, 8)
    p0 = jnp.pad(p0, ((0, 0), (0, T0_PAD - T0), (0, K0_PAD - p0.shape[2])))

    _, _, k1, s1 = CONV_LAYERS[1]
    _, _, k2, s2 = CONV_LAYERS[2]
    T1 = (T0 - k1) // s1 + 1
    T2 = (T1 - k2) // s2 + 1
    T_PAD = _round_up(T2, 8)

    kernel = functools.partial(_wav2vec2_kernel, t0=T0, t1=T1, t2=T2)

    def wspec(a):
        return pl.BlockSpec(a.shape, lambda i, n=a.ndim: (0,) * n)

    weights = [params[k] for k in (
        "w0", "gn_g", "gn_b", "w1c", "w2c",
        "fp_ln_g", "fp_ln_b", "fp_w", "fp_b", "pos_w", "pos_b", "enc_ln_g", "enc_ln_b",
        "wqkv", "bqkv", "wo", "bo", "ln1_g", "ln1_b",
        "w1", "b1", "w2", "b2", "ln2_g", "ln2_b",
        "lm_w", "lm_b")]

    z_pad, tok_pad = pl.pallas_call(
        kernel,
        grid=(B,),
        in_specs=[pl.BlockSpec((None, T0_PAD, K0_PAD), lambda i: (i, 0, 0))]
                 + [wspec(w) for w in weights],
        out_specs=(pl.BlockSpec((None, T_PAD, HIDDEN), lambda i: (i, 0, 0)),
                   pl.BlockSpec((None, T_PAD, 1), lambda i: (i, 0, 0))),
        out_shape=(jax.ShapeDtypeStruct((B, T_PAD, HIDDEN), jnp.float32),
                   jax.ShapeDtypeStruct((B, T_PAD, 1), jnp.int32)),
        compiler_params=pltpu.CompilerParams(dimension_semantics=("parallel",)),
    )(p0, *weights)

    return z_pad[:, :T2, :], tok_pad[:, :T2, 0]


# ---------------- deterministic parameter init (packed for the fused kernel) ----------------
def init_params(key):
    def nxt():
        nonlocal key
        key, sub = jax.random.split(key)
        return sub

    def w(shape, scale=0.02):
        return jax.random.normal(nxt(), shape, jnp.float32) * scale

    p = {}
    # conv feature encoder (conv_bias=False like wav2vec2-base); conv0 K padded 10->16
    c0in, c0out, k0, _ = CONV_LAYERS[0]
    w0 = w((k0 * c0in, c0out))
    p["w0"] = jnp.pad(w0, ((0, K0_PAD - k0 * c0in), (0, 0))).astype(jnp.bfloat16)
    p["gn_g"] = jnp.ones((1, c0out), jnp.float32)
    p["gn_b"] = jnp.zeros((1, c0out), jnp.float32)
    p["w1c"] = w((CONV_LAYERS[1][2] * CONV_LAYERS[1][0], CONV_LAYERS[1][1])).astype(jnp.bfloat16)
    p["w2c"] = w((CONV_LAYERS[2][2] * CONV_LAYERS[2][0], CONV_LAYERS[2][1])).astype(jnp.bfloat16)

    # feature projection
    p["fp_ln_g"] = jnp.ones((1, CONV_DIM), jnp.float32)
    p["fp_ln_b"] = jnp.zeros((1, CONV_DIM), jnp.float32)
    p["fp_w"] = w((CONV_DIM, HIDDEN)).astype(jnp.bfloat16)
    p["fp_b"] = jnp.zeros((1, HIDDEN), jnp.float32)

    # positional conv (simplified k=3) + encoder LayerNorm
    p["pos_w"] = w((3 * HIDDEN, HIDDEN)).astype(jnp.bfloat16)
    p["pos_b"] = jnp.zeros((1, HIDDEN), jnp.float32)
    p["enc_ln_g"] = jnp.ones((1, HIDDEN), jnp.float32)
    p["enc_ln_b"] = jnp.zeros((1, HIDDEN), jnp.float32)

    # transformer layers, stacked along a leading layer axis (one ref per tensor kind)
    p["wqkv"] = jnp.stack([jnp.concatenate([w((HIDDEN, HIDDEN)) for _ in range(3)], axis=1)
                           for _ in range(N_LAYERS)]).astype(jnp.bfloat16)
    p["bqkv"] = jnp.zeros((N_LAYERS, 1, 3 * HIDDEN), jnp.float32)
    p["wo"] = jnp.stack([w((HIDDEN, HIDDEN)) for _ in range(N_LAYERS)]).astype(jnp.bfloat16)
    p["bo"] = jnp.zeros((N_LAYERS, 1, HIDDEN), jnp.float32)
    p["ln1_g"] = jnp.ones((N_LAYERS, 1, HIDDEN), jnp.float32)
    p["ln1_b"] = jnp.zeros((N_LAYERS, 1, HIDDEN), jnp.float32)
    p["w1"] = jnp.stack([w((HIDDEN, FFN)) for _ in range(N_LAYERS)]).astype(jnp.bfloat16)
    p["b1"] = jnp.zeros((N_LAYERS, 1, FFN), jnp.float32)
    p["w2"] = jnp.stack([w((FFN, HIDDEN)) for _ in range(N_LAYERS)]).astype(jnp.bfloat16)
    p["b2"] = jnp.zeros((N_LAYERS, 1, HIDDEN), jnp.float32)
    p["ln2_g"] = jnp.ones((N_LAYERS, 1, HIDDEN), jnp.float32)
    p["ln2_b"] = jnp.zeros((N_LAYERS, 1, HIDDEN), jnp.float32)

    # lm head
    p["lm_w"] = w((HIDDEN, VOCAB)).astype(jnp.bfloat16)
    p["lm_b"] = jnp.zeros((1, VOCAB), jnp.float32)
    return p


if __name__ == "__main__":
    key = jax.random.PRNGKey(0)
    pkey, xkey = jax.random.split(key)
    params = init_params(pkey)

    B, L = 2, 800
    x = jax.random.normal(xkey, (B, L), jnp.float32)

    fwd = jax.jit(wav2vec2_forward)
    z, t = fwd(params, x)
    jax.block_until_ready(z)
    jax.block_until_ready(t)

    T = _conv_out_len(L)                                        # 39 for L=800
    assert z.shape == (B, T, HIDDEN) and z.dtype == jnp.float32
    assert t.shape == (B, T) and t.dtype == jnp.int32
    print("KERNEL_OK")
</pallas_src>

<mosaic_0001>
module attributes {stable_mosaic.version = 11 : i64} {
  func.func @_wav2vec2_kernel(%arg0: i32, %arg1: memref<1x160x16xf32, #tpu.memory_space<vmem>>, %arg2: memref<16x64xbf16, #tpu.memory_space<vmem>>, %arg3: memref<1x64xf32, #tpu.memory_space<vmem>>, %arg4: memref<1x64xf32, #tpu.memory_space<vmem>>, %arg5: memref<192x64xbf16, #tpu.memory_space<vmem>>, %arg6: memref<192x64xbf16, #tpu.memory_space<vmem>>, %arg7: memref<1x64xf32, #tpu.memory_space<vmem>>, %arg8: memref<1x64xf32, #tpu.memory_space<vmem>>, %arg9: memref<64x128xbf16, #tpu.memory_space<vmem>>, %arg10: memref<1x128xf32, #tpu.memory_space<vmem>>, %arg11: memref<384x128xbf16, #tpu.memory_space<vmem>>, %arg12: memref<1x128xf32, #tpu.memory_space<vmem>>, %arg13: memref<1x128xf32, #tpu.memory_space<vmem>>, %arg14: memref<1x128xf32, #tpu.memory_space<vmem>>, %arg15: memref<2x128x384xbf16, #tpu.memory_space<vmem>>, %arg16: memref<2x1x384xf32, #tpu.memory_space<vmem>>, %arg17: memref<2x128x128xbf16, #tpu.memory_space<vmem>>, %arg18: memref<2x1x128xf32, #tpu.memory_space<vmem>>, %arg19: memref<2x1x128xf32, #tpu.memory_space<vmem>>, %arg20: memref<2x1x128xf32, #tpu.memory_space<vmem>>, %arg21: memref<2x128x256xbf16, #tpu.memory_space<vmem>>, %arg22: memref<2x1x256xf32, #tpu.memory_space<vmem>>, %arg23: memref<2x256x128xbf16, #tpu.memory_space<vmem>>, %arg24: memref<2x1x128xf32, #tpu.memory_space<vmem>>, %arg25: memref<2x1x128xf32, #tpu.memory_space<vmem>>, %arg26: memref<2x1x128xf32, #tpu.memory_space<vmem>>, %arg27: memref<128x32xbf16, #tpu.memory_space<vmem>>, %arg28: memref<1x32xf32, #tpu.memory_space<vmem>>, %arg29: memref<1x40x128xf32, #tpu.memory_space<vmem>>, %arg30: memref<1x40x1xi32, #tpu.memory_space<vmem>>) attributes {dimension_semantics = [#tpu.dimension_semantics<parallel>], iteration_bounds = array<i64: 2>, scalar_prefetch = 0 : i64, scratch_operands = 0 : i64, tpu.core_type = #tpu.core_type<tc>, window_params = [{transform_indices = @transform_0, window_bounds = array<i64: 1, 160, 16>}, {pipeline_mode = #tpu.pipeline_mode<synchronous>, transform_indices = @transform_1, window_bounds = array<i64: 16, 64>}, {pipeline_mode = #tpu.pipeline_mode<synchronous>, transform_indices = @transform_2, window_bounds = array<i64: 1, 64>}, {pipeline_mode = #tpu.pipeline_mode<synchronous>, transform_indices = @transform_3, window_bounds = array<i64: 1, 64>}, {pipeline_mode = #tpu.pipeline_mode<synchronous>, transform_indices = @transform_4, window_bounds = array<i64: 192, 64>}, {pipeline_mode = #tpu.pipeline_mode<synchronous>, transform_indices = @transform_5, window_bounds = array<i64: 192, 64>}, {pipeline_mode = #tpu.pipeline_mode<synchronous>, transform_indices = @transform_6, window_bounds = array<i64: 1, 64>}, {pipeline_mode = #tpu.pipeline_mode<synchronous>, transform_indices = @transform_7, window_bounds = array<i64: 1, 64>}, {pipeline_mode = #tpu.pipeline_mode<synchronous>, transform_indices = @transform_8, window_bounds = array<i64: 64, 128>}, {pipeline_mode = #tpu.pipeline_mode<synchronous>, transform_indices = @transform_9, window_bounds = array<i64: 1, 128>}, {pipeline_mode = #tpu.pipeline_mode<synchronous>, transform_indices = @transform_10, window_bounds = array<i64: 384, 128>}, {pipeline_mode = #tpu.pipeline_mode<synchronous>, transform_indices = @transform_11, window_bounds = array<i64: 1, 128>}, {pipeline_mode = #tpu.pipeline_mode<synchronous>, transform_indices = @transform_12, window_bounds = array<i64: 1, 128>}, {pipeline_mode = #tpu.pipeline_mode<synchronous>, transform_indices = @transform_13, window_bounds = array<i64: 1, 128>}, {pipeline_mode = #tpu.pipeline_mode<synchronous>, transform_indices = @transform_14, window_bounds = array<i64: 2, 128, 384>}, {pipeline_mode = #tpu.pipeline_mode<synchronous>, transform_indices = @transform_15, window_bounds = array<i64: 2, 1, 384>}, {pipeline_mode = #tpu.pipeline_mode<synchronous>, transform_indices = @transform_16, window_bounds = array<i64: 2, 128, 128>}, {pipeline_mode = #tpu.pipeline_mode<synchronous>, transform_indices = @transform_17, window_bounds = array<i64: 2, 1, 128>}, {pipeline_mode = #tpu.pipeline_mode<synchronous>, transform_indices = @transform_18, window_bounds = array<i64: 2, 1, 128>}, {pipeline_mode = #tpu.pipeline_mode<synchronous>, transform_indices = @transform_19, window_bounds = array<i64: 2, 1, 128>}, {pipeline_mode = #tpu.pipeline_mode<synchronous>, transform_indices = @transform_20, window_bounds = array<i64: 2, 128, 256>}, {pipeline_mode = #tpu.pipeline_mode<synchronous>, transform_indices = @transform_21, window_bounds = array<i64: 2, 1, 256>}, {pipeline_mode = #tpu.pipeline_mode<synchronous>, transform_indices = @transform_22, window_bounds = array<i64: 2, 256, 128>}, {pipeline_mode = #tpu.pipeline_mode<synchronous>, transform_indices = @transform_23, window_bounds = array<i64: 2, 1, 128>}, {pipeline_mode = #tpu.pipeline_mode<synchronous>, transform_indices = @transform_24, window_bounds = array<i64: 2, 1, 128>}, {pipeline_mode = #tpu.pipeline_mode<synchronous>, transform_indices = @transform_25, window_bounds = array<i64: 2, 1, 128>}, {pipeline_mode = #tpu.pipeline_mode<synchronous>, transform_indices = @transform_26, window_bounds = array<i64: 128, 32>}, {pipeline_mode = #tpu.pipeline_mode<synchronous>, transform_indices = @transform_27, window_bounds = array<i64: 1, 32>}, {transform_indices = @transform_28, window_bounds = array<i64: 1, 40, 128>}, {transform_indices = @transform_29, window_bounds = array<i64: 1, 40, 1>}]} {
    %c0 = arith.constant 0 : index
    %c0_0 = arith.constant 0 : index
    %c0_1 = arith.constant 0 : index
    %0 = vector.load %arg1[%c0, %c0_0, %c0_1] : memref<1x160x16xf32, #tpu.memory_space<vmem>>, vector<1x160x16xf32>
    %1 = vector.shape_cast %0 : vector<1x160x16xf32> to vector<160x16xf32>
    %c0_2 = arith.constant 0 : index
    %c0_3 = arith.constant 0 : index
    %2 = vector.load %arg2[%c0_2, %c0_3] : memref<16x64xbf16, #tpu.memory_space<vmem>>, vector<16x64xbf16>
    %3 = arith.truncf %1 : vector<160x16xf32> to vector<160x16xbf16>
    %cst = arith.constant dense<0.000000e+00> : vector<160x64xf32>
    %4 = tpu.matmul %3, %2, %cst {dimension_numbers = #tpu.dot_dimension_numbers<[1], [0], [0], [1], [0, 0, 1, 1], [], []>} : vector<160x16xbf16>, vector<16x64xbf16>, vector<160x64xf32> -> vector<160x64xf32>
    %5 = tpu.iota {dimensions = array<i32: 0>} : vector<160x64xi32>
    %c159_i32 = arith.constant 159 : i32
    %6 = vector.broadcast %c159_i32 : i32 to vector<160x64xi32>
    %7 = arith.cmpi slt, %5, %6 : vector<160x64xi32>
    %cst_4 = arith.constant 0.000000e+00 : f32
    %8 = vector.broadcast %cst_4 : f32 to vector<160x64xf32>
    %9 = arith.select %7, %4, %8 : vector<160x64xi1>, vector<160x64xf32>
    %cst_5 = arith.constant dense<0.000000e+00> : vector<64xf32>
    %10 = vector.multi_reduction <add>, %9, %cst_5 [0] : vector<160x64xf32> to vector<64xf32>
    %11 = vector.shape_cast %10 : vector<64xf32> to vector<1x64xf32>
    %cst_6 = arith.constant 0.00628930796 : f32
    %12 = vector.broadcast %cst_6 : f32 to vector<1x64xf32>
    %13 = arith.mulf %11, %12 : vector<1x64xf32>
    %14 = vector.broadcast %13 : vector<1x64xf32> to vector<160x64xf32>
    %15 = arith.subf %4, %14 : vector<160x64xf32>
    %cst_7 = arith.constant 0.000000e+00 : f32
    %16 = vector.broadcast %cst_7 : f32 to vector<160x64xf32>
    %17 = arith.select %7, %15, %16 : vector<160x64xi1>, vector<160x64xf32>
    %18 = arith.mulf %17, %17 : vector<160x64xf32>
    %cst_8 = arith.constant dense<0.000000e+00> : vector<64xf32>
    %19 = vector.multi_reduction <add>, %18, %cst_8 [0] : vector<160x64xf32> to vector<64xf32>
    %20 = vector.shape_cast %19 : vector<64xf32> to vector<1x64xf32>
    %cst_9 = arith.constant 0.00628930796 : f32
    %21 = vector.broadcast %cst_9 : f32 to vector<1x64xf32>
    %22 = arith.mulf %20, %21 : vector<1x64xf32>
    %cst_10 = arith.constant 9.99999974E-6 : f32
    %23 = vector.broadcast %cst_10 : f32 to vector<1x64xf32>
    %24 = arith.addf %22, %23 : vector<1x64xf32>
    %25 = math.rsqrt %24 : vector<1x64xf32>
    %26 = vector.broadcast %25 : vector<1x64xf32> to vector<160x64xf32>
    %27 = arith.mulf %17, %26 : vector<160x64xf32>
    %c0_11 = arith.constant 0 : index
    %c0_12 = arith.constant 0 : index
    %28 = vector.load %arg3[%c0_11, %c0_12] : memref<1x64xf32, #tpu.memory_space<vmem>>, vector<1x64xf32>
    %29 = vector.broadcast %28 : vector<1x64xf32> to vector<160x64xf32>
    %30 = arith.mulf %27, %29 : vector<160x64xf32>
    %c0_13 = arith.constant 0 : index
    %c0_14 = arith.constant 0 : index
    %31 = vector.load %arg4[%c0_13, %c0_14] : memref<1x64xf32, #tpu.memory_space<vmem>>, vector<1x64xf32>
    %32 = vector.broadcast %31 : vector<1x64xf32> to vector<160x64xf32>
    %33 = arith.addf %30, %32 : vector<160x64xf32>
    %34 = arith.mulf %33, %33 : vector<160x64xf32>
    %35 = arith.mulf %33, %34 : vector<160x64xf32>
    %cst_15 = arith.constant 4.471500e-02 : f32
    %36 = vector.broadcast %cst_15 : f32 to vector<160x64xf32>
    %37 = arith.mulf %36, %35 : vector<160x64xf32>
    %38 = arith.addf %33, %37 : vector<160x64xf32>
    %cst_16 = arith.constant 0.797884583 : f32
    %39 = vector.broadcast %cst_16 : f32 to vector<160x64xf32>
    %40 = arith.mulf %39, %38 : vector<160x64xf32>
    %41 = math.tanh %40 : vector<160x64xf32>
    %cst_17 = arith.constant 1.000000e+00 : f32
    %42 = vector.broadcast %cst_17 : f32 to vector<160x64xf32>
    %43 = arith.addf %42, %41 : vector<160x64xf32>
    %cst_18 = arith.constant 5.000000e-01 : f32
    %44 = vector.broadcast %cst_18 : f32 to vector<160x64xf32>
    %45 = arith.mulf %44, %43 : vector<160x64xf32>
    %46 = arith.mulf %33, %45 : vector<160x64xf32>
    %cst_19 = arith.constant 0.000000e+00 : f32
    %47 = vector.broadcast %cst_19 : f32 to vector<160x64xf32>
    %48 = arith.select %7, %46, %47 : vector<160x64xi1>, vector<160x64xf32>
    %c0_20 = arith.constant 0 : index
    %c0_21 = arith.constant 0 : index
    %49 = vector.load %arg5[%c0_20, %c0_21] : memref<192x64xbf16, #tpu.memory_space<vmem>>, vector<192x64xbf16>
    %cst_22 = arith.constant 0.000000e+00 : f32
    %50 = vector.broadcast %cst_22 : f32 to vector<79x64xf32>
    %51 = tpu.iota {dimensions = array<i32: 0>} : vector<79x160xi32>
    %52 = tpu.iota {dimensions = array<i32: 1>} : vector<79x160xi32>
    %c2_i32 = arith.constant 2 : i32
    %53 = vector.broadcast %c2_i32 : i32 to vector<79x160xi32>
    %54 = arith.muli %53, %51 : vector<79x160xi32>
    %c0_i32 = arith.constant 0 : i32
    %55 = vector.broadcast %c0_i32 : i32 to vector<79x160xi32>
    %56 = arith.addi %54, %55 : vector<79x160xi32>
    %57 = arith.cmpi eq, %52, %56 : vector<79x160xi32>
    %58 = arith.extui %57 : vector<79x160xi1> to vector<79x160xi32>
    %59 = arith.sitofp %58 : vector<79x160xi32> to vector<79x160xf32>
    %60 = arith.truncf %59 : vector<79x160xf32> to vector<79x160xbf16>
    %61 = arith.truncf %48 : vector<160x64xf32> to vector<160x64xbf16>
    %cst_23 = arith.constant dense<0.000000e+00> : vector<79x64xf32>
    %62 = tpu.matmul %60, %61, %cst_23 {dimension_numbers = #tpu.dot_dimension_numbers<[1], [0], [0], [1], [0, 0, 1, 1], [], []>} : vector<79x160xbf16>, vector<160x64xbf16>, vector<79x64xf32> -> vector<79x64xf32>
    %63 = vector.extract_strided_slice %49 {offsets = [0, 0], sizes = [64, 64], strides = [1, 1]} : vector<192x64xbf16> to vector<64x64xbf16>
    %64 = arith.truncf %62 : vector<79x64xf32> to vector<79x64xbf16>
    %cst_24 = arith.constant dense<0.000000e+00> : vector<79x64xf32>
    %65 = tpu.matmul %64, %63, %cst_24 {dimension_numbers = #tpu.dot_dimension_numbers<[1], [0], [0], [1], [0, 0, 1, 1], [], []>} : vector<79x64xbf16>, vector<64x64xbf16>, vector<79x64xf32> -> vector<79x64xf32>
    %66 = arith.addf %50, %65 : vector<79x64xf32>
    %67 = tpu.iota {dimensions = array<i32: 0>} : vector<79x160xi32>
    %68 = tpu.iota {dimensions = array<i32: 1>} : vector<79x160xi32>
    %c2_i32_25 = arith.constant 2 : i32
    %69 = vector.broadcast %c2_i32_25 : i32 to vector<79x160xi32>
    %70 = arith.muli %69, %67 : vector<79x160xi32>
    %c1_i32 = arith.constant 1 : i32
    %71 = vector.broadcast %c1_i32 : i32 to vector<79x160xi32>
    %72 = arith.addi %70, %71 : vector<79x160xi32>
    %73 = arith.cmpi eq, %68, %72 : vector<79x160xi32>
    %74 = arith.extui %73 : vector<79x160xi1> to vector<79x160xi32>
    %75 = arith.sitofp %74 : vector<79x160xi32> to vector<79x160xf32>
    %76 = arith.truncf %75 : vector<79x160xf32> to vector<79x160xbf16>
    %77 = arith.truncf %48 : vector<160x64xf32> to vector<160x64xbf16>
    %cst_26 = arith.constant dense<0.000000e+00> : vector<79x64xf32>
    %78 = tpu.matmul %76, %77, %cst_26 {dimension_numbers = #tpu.dot_dimension_numbers<[1], [0], [0], [1], [0, 0, 1, 1], [], []>} : vector<79x160xbf16>, vector<160x64xbf16>, vector<79x64xf32> -> vector<79x64xf32>
    %79 = vector.extract_strided_slice %49 {offsets = [64, 0], sizes = [64, 64], strides = [1, 1]} : vector<192x64xbf16> to vector<64x64xbf16>
    %80 = arith.truncf %78 : vector<79x64xf32> to vector<79x64xbf16>
    %cst_27 = arith.constant dense<0.000000e+00> : vector<79x64xf32>
    %81 = tpu.matmul %80, %79, %cst_27 {dimension_numbers = #tpu.dot_dimension_numbers<[1], [0], [0], [1], [0, 0, 1, 1], [], []>} : vector<79x64xbf16>, vector<64x64xbf16>, vector<79x64xf32> -> vector<79x64xf32>
    %82 = arith.addf %66, %81 : vector<79x64xf32>
    %83 = tpu.iota {dimensions = array<i32: 0>} : vector<79x160xi32>
    %84 = tpu.iota {dimensions = array<i32: 1>} : vector<79x160xi32>
    %c2_i32_28 = arith.constant 2 : i32
    %85 = vector.broadcast %c2_i32_28 : i32 to vector<79x160xi32>
    %86 = arith.muli %85, %83 : vector<79x160xi32>
    %c2_i32_29 = arith.constant 2 : i32
    %87 = vector.broadcast %c2_i32_29 : i32 to vector<79x160xi32>
    %88 = arith.addi %86, %87 : vector<79x160xi32>
    %89 = arith.cmpi eq, %84, %88 : vector<79x160xi32>
    %90 = arith.extui %89 : vector<79x160xi1> to vector<79x160xi32>
    %91 = arith.sitofp %90 : vector<79x160xi32> to vector<79x160xf32>
    %92 = arith.truncf %91 : vector<79x160xf32> to vector<79x160xbf16>
    %93 = arith.truncf %48 : vector<160x64xf32> to vector<160x64xbf16>
    %cst_30 = arith.constant dense<0.000000e+00> : vector<79x64xf32>
    %94 = tpu.matmul %92, %93, %cst_30 {dimension_numbers = #tpu.dot_dimension_numbers<[1], [0], [0], [1], [0, 0, 1, 1], [], []>} : vector<79x160xbf16>, vector<160x64xbf16>, vector<79x64xf32> -> vector<79x64xf32>
    %95 = vector.extract_strided_slice %49 {offsets = [128, 0], sizes = [64, 64], strides = [1, 1]} : vector<192x64xbf16> to vector<64x64xbf16>
    %96 = arith.truncf %94 : vector<79x64xf32> to vector<79x64xbf16>
    %cst_31 = arith.constant dense<0.000000e+00> : vector<79x64xf32>
    %97 = tpu.matmul %96, %95, %cst_31 {dimension_numbers = #tpu.dot_dimension_numbers<[1], [0], [0], [1], [0, 0, 1, 1], [], []>} : vector<79x64xbf16>, vector<64x64xbf16>, vector<79x64xf32> -> vector<79x64xf32>
    %98 = arith.addf %82, %97 : vector<79x64xf32>
    %99 = arith.mulf %98, %98 : vector<79x64xf32>
    %100 = arith.mulf %98, %99 : vector<79x64xf32>
    %cst_32 = arith.constant 4.471500e-02 : f32
    %101 = vector.broadcast %cst_32 : f32 to vector<79x64xf32>
    %102 = arith.mulf %101, %100 : vector<79x64xf32>
    %103 = arith.addf %98, %102 : vector<79x64xf32>
    %cst_33 = arith.constant 0.797884583 : f32
    %104 = vector.broadcast %cst_33 : f32 to vector<79x64xf32>
    %105 = arith.mulf %104, %103 : vector<79x64xf32>
    %106 = math.tanh %105 : vector<79x64xf32>
    %cst_34 = arith.constant 1.000000e+00 : f32
    %107 = vector.broadcast %cst_34 : f32 to vector<79x64xf32>
    %108 = arith.addf %107, %106 : vector<79x64xf32>
    %cst_35 = arith.constant 5.000000e-01 : f32
    %109 = vector.broadcast %cst_35 : f32 to vector<79x64xf32>
    %110 = arith.mulf %109, %108 : vector<79x64xf32>
    %111 = arith.mulf %98, %110 : vector<79x64xf32>
    %c0_36 = arith.constant 0 : index
    %c0_37 = arith.constant 0 : index
    %112 = vector.load %arg6[%c0_36, %c0_37] : memref<192x64xbf16, #tpu.memory_space<vmem>>, vector<192x64xbf16>
    %cst_38 = arith.constant 0.000000e+00 : f32
    %113 = vector.broadcast %cst_38 : f32 to vector<40x64xf32>
    %114 = tpu.iota {dimensions = array<i32: 0>} : vector<40x79xi32>
    %115 = tpu.iota {dimensions = array<i32: 1>} : vector<40x79xi32>
    %c2_i32_39 = arith.constant 2 : i32
    %116 = vector.broadcast %c2_i32_39 : i32 to vector<40x79xi32>
    %117 = arith.muli %116, %114 : vector<40x79xi32>
    %c0_i32_40 = arith.constant 0 : i32
    %118 = vector.broadcast %c0_i32_40 : i32 to vector<40x79xi32>
    %119 = arith.addi %117, %118 : vector<40x79xi32>
    %120 = arith.cmpi eq, %115, %119 : vector<40x79xi32>
    %121 = arith.extui %120 : vector<40x79xi1> to vector<40x79xi32>
    %122 = arith.sitofp %121 : vector<40x79xi32> to vector<40x79xf32>
    %123 = arith.truncf %122 : vector<40x79xf32> to vector<40x79xbf16>
    %124 = arith.truncf %111 : vector<79x64xf32> to vector<79x64xbf16>
    %cst_41 = arith.constant dense<0.000000e+00> : vector<40x64xf32>
    %125 = tpu.matmul %123, %124, %cst_41 {dimension_numbers = #tpu.dot_dimension_numbers<[1], [0], [0], [1], [0, 0, 1, 1], [], []>} : vector<40x79xbf16>, vector<79x64xbf16>, vector<40x64xf32> -> vector<40x64xf32>
    %126 = vector.extract_strided_slice %112 {offsets = [0, 0], sizes = [64, 64], strides = [1, 1]} : vector<192x64xbf16> to vector<64x64xbf16>
    %127 = arith.truncf %125 : vector<40x64xf32> to vector<40x64xbf16>
    %cst_42 = arith.constant dense<0.000000e+00> : vector<40x64xf32>
    %128 = tpu.matmul %127, %126, %cst_42 {dimension_numbers = #tpu.dot_dimension_numbers<[1], [0], [0], [1], [0, 0, 1, 1], [], []>} : vector<40x64xbf16>, vector<64x64xbf16>, vector<40x64xf32> -> vector<40x64xf32>
    %129 = arith.addf %113, %128 : vector<40x64xf32>
    %130 = tpu.iota {dimensions = array<i32: 0>} : vector<40x79xi32>
    %131 = tpu.iota {dimensions = array<i32: 1>} : vector<40x79xi32>
    %c2_i32_43 = arith.constant 2 : i32
    %132 = vector.broadcast %c2_i32_43 : i32 to vector<40x79xi32>
    %133 = arith.muli %132, %130 : vector<40x79xi32>
    %c1_i32_44 = arith.constant 1 : i32
    %134 = vector.broadcast %c1_i32_44 : i32 to vector<40x79xi32>
    %135 = arith.addi %133, %134 : vector<40x79xi32>
    %136 = arith.cmpi eq, %131, %135 : vector<40x79xi32>
    %137 = arith.extui %136 : vector<40x79xi1> to vector<40x79xi32>
    %138 = arith.sitofp %137 : vector<40x79xi32> to vector<40x79xf32>
    %139 = arith.truncf %138 : vector<40x79xf32> to vector<40x79xbf16>
    %140 = arith.truncf %111 : vector<79x64xf32> to vector<79x64xbf16>
    %cst_45 = arith.constant dense<0.000000e+00> : vector<40x64xf32>
    %141 = tpu.matmul %139, %140, %cst_45 {dimension_numbers = #tpu.dot_dimension_numbers<[1], [0], [0], [1], [0, 0, 1, 1], [], []>} : vector<40x79xbf16>, vector<79x64xbf16>, vector<40x64xf32> -> vector<40x64xf32>
    %142 = vector.extract_strided_slice %112 {offsets = [64, 0], sizes = [64, 64], strides = [1, 1]} : vector<192x64xbf16> to vector<64x64xbf16>
    %143 = arith.truncf %141 : vector<40x64xf32> to vector<40x64xbf16>
    %cst_46 = arith.constant dense<0.000000e+00> : vector<40x64xf32>
    %144 = tpu.matmul %143, %142, %cst_46 {dimension_numbers = #tpu.dot_dimension_numbers<[1], [0], [0], [1], [0, 0, 1, 1], [], []>} : vector<40x64xbf16>, vector<64x64xbf16>, vector<40x64xf32> -> vector<40x64xf32>
    %145 = arith.addf %129, %144 : vector<40x64xf32>
    %146 = tpu.iota {dimensions = array<i32: 0>} : vector<40x79xi32>
    %147 = tpu.iota {dimensions = array<i32: 1>} : vector<40x79xi32>
    %c2_i32_47 = arith.constant 2 : i32
    %148 = vector.broadcast %c2_i32_47 : i32 to vector<40x79xi32>
    %149 = arith.muli %148, %146 : vector<40x79xi32>
    %c2_i32_48 = arith.constant 2 : i32
    %150 = vector.broadcast %c2_i32_48 : i32 to vector<40x79xi32>
    %151 = arith.addi %149, %150 : vector<40x79xi32>
    %152 = arith.cmpi eq, %147, %151 : vector<40x79xi32>
    %153 = arith.extui %152 : vector<40x79xi1> to vector<40x79xi32>
    %154 = arith.sitofp %153 : vector<40x79xi32> to vector<40x79xf32>
    %155 = arith.truncf %154 : vector<40x79xf32> to vector<40x79xbf16>
    %156 = arith.truncf %111 : vector<79x64xf32> to vector<79x64xbf16>
    %cst_49 = arith.constant dense<0.000000e+00> : vector<40x64xf32>
    %157 = tpu.matmul %155, %156, %cst_49 {dimension_numbers = #tpu.dot_dimension_numbers<[1], [0], [0], [1], [0, 0, 1, 1], [], []>} : vector<40x79xbf16>, vector<79x64xbf16>, vector<40x64xf32> -> vector<40x64xf32>
    %158 = vector.extract_strided_slice %112 {offsets = [128, 0], sizes = [64, 64], strides = [1, 1]} : vector<192x64xbf16> to vector<64x64xbf16>
    %159 = arith.truncf %157 : vector<40x64xf32> to vector<40x64xbf16>
    %cst_50 = arith.constant dense<0.000000e+00> : vector<40x64xf32>
    %160 = tpu.matmul %159, %158, %cst_50 {dimension_numbers = #tpu.dot_dimension_numbers<[1], [0], [0], [1], [0, 0, 1, 1], [], []>} : vector<40x64xbf16>, vector<64x64xbf16>, vector<40x64xf32> -> vector<40x64xf32>
    %161 = arith.addf %145, %160 : vector<40x64xf32>
    %162 = tpu.iota {dimensions = array<i32: 0>} : vector<40x64xi32>
    %c39_i32 = arith.constant 39 : i32
    %163 = vector.broadcast %c39_i32 : i32 to vector<40x64xi32>
    %164 = arith.cmpi slt, %162, %163 : vector<40x64xi32>
    %165 = arith.mulf %161, %161 : vector<40x64xf32>
    %166 = arith.mulf %161, %165 : vector<40x64xf32>
    %cst_51 = arith.constant 4.471500e-02 : f32
    %167 = vector.broadcast %cst_51 : f32 to vector<40x64xf32>
    %168 = arith.mulf %167, %166 : vector<40x64xf32>
    %169 = arith.addf %161, %168 : vector<40x64xf32>
    %cst_52 = arith.constant 0.797884583 : f32
    %170 = vector.broadcast %cst_52 : f32 to vector<40x64xf32>
    %171 = arith.mulf %170, %169 : vector<40x64xf32>
    %172 = math.tanh %171 : vector<40x64xf32>
    %cst_53 = arith.constant 1.000000e+00 : f32
    %173 = vector.broadcast %cst_53 : f32 to vector<40x64xf32>
    %174 = arith.addf %173, %172 : vector<40x64xf32>
    %cst_54 = arith.constant 5.000000e-01 : f32
    %175 = vector.broadcast %cst_54 : f32 to vector<40x64xf32>
    %176 = arith.mulf %175, %174 : vector<40x64xf32>
    %177 = arith.mulf %161, %176 : vector<40x64xf32>
    %cst_55 = arith.constant 0.000000e+00 : f32
    %178 = vector.broadcast %cst_55 : f32 to vector<40x64xf32>
    %179 = arith.select %164, %177, %178 : vector<40x64xi1>, vector<40x64xf32>
    %c0_56 = arith.constant 0 : index
    %c0_57 = arith.constant 0 : index
    %180 = vector.load %arg7[%c0_56, %c0_57] : memref<1x64xf32, #tpu.memory_space<vmem>>, vector<1x64xf32>
    %c0_58 = arith.constant 0 : index
    %c0_59 = arith.constant 0 : index
    %181 = vector.load %arg8[%c0_58, %c0_59] : memref<1x64xf32, #tpu.memory_space<vmem>>, vector<1x64xf32>
    %cst_60 = arith.constant dense<0.000000e+00> : vector<40xf32>
    %182 = vector.multi_reduction <add>, %179, %cst_60 [1] : vector<40x64xf32> to vector<40xf32>
    %183 = vector.shape_cast %182 : vector<40xf32> to vector<40x1xf32>
    %cst_61 = arith.constant 6.400000e+01 : f32
    %184 = vector.broadcast %cst_61 : f32 to vector<40x1xf32>
    %185 = arith.divf %183, %184 : vector<40x1xf32>
    %186 = vector.broadcast %185 : vector<40x1xf32> to vector<40x64xf32>
    %187 = arith.subf %179, %186 : vector<40x64xf32>
    %188 = arith.mulf %187, %187 : vector<40x64xf32>
    %cst_62 = arith.constant dense<0.000000e+00> : vector<40xf32>
    %189 = vector.multi_reduction <add>, %188, %cst_62 [1] : vector<40x64xf32> to vector<40xf32>
    %190 = vector.shape_cast %189 : vector<40xf32> to vector<40x1xf32>
    %cst_63 = arith.constant 6.400000e+01 : f32
    %191 = vector.broadcast %cst_63 : f32 to vector<40x1xf32>
    %192 = arith.divf %190, %191 : vector<40x1xf32>
    %193 = vector.broadcast %185 : vector<40x1xf32> to vector<40x64xf32>
    %194 = arith.subf %179, %193 : vector<40x64xf32>
    %cst_64 = arith.constant 9.99999974E-6 : f32
    %195 = vector.broadcast %cst_64 : f32 to vector<40x1xf32>
    %196 = arith.addf %192, %195 : vector<40x1xf32>
    %197 = math.rsqrt %196 : vector<40x1xf32>
    %198 = vector.broadcast %197 : vector<40x1xf32> to vector<40x64xf32>
    %199 = arith.mulf %194, %198 : vector<40x64xf32>
    %200 = vector.broadcast %180 : vector<1x64xf32> to vector<40x64xf32>
    %201 = arith.mulf %199, %200 : vector<40x64xf32>
    %202 = vector.broadcast %181 : vector<1x64xf32> to vector<40x64xf32>
    %203 = arith.addf %201, %202 : vector<40x64xf32>
    %c0_65 = arith.constant 0 : index
    %c0_66 = arith.constant 0 : index
    %204 = vector.load %arg9[%c0_65, %c0_66] : memref<64x128xbf16, #tpu.memory_space<vmem>>, vector<64x128xbf16>
    %205 = arith.truncf %203 : vector<40x64xf32> to vector<40x64xbf16>
    %cst_67 = arith.constant dense<0.000000e+00> : vector<40x128xf32>
    %206 = tpu.matmul %205, %204, %cst_67 {dimension_numbers = #tpu.dot_dimension_numbers<[1], [0], [0], [1], [0, 0, 1, 1], [], []>} : vector<40x64xbf16>, vector<64x128xbf16>, vector<40x128xf32> -> vector<40x128xf32>
    %c0_68 = arith.constant 0 : index
    %c0_69 = arith.constant 0 : index
    %207 = vector.load %arg10[%c0_68, %c0_69] : memref<1x128xf32, #tpu.memory_space<vmem>>, vector<1x128xf32>
    %208 = vector.broadcast %207 : vector<1x128xf32> to vector<40x128xf32>
    %209 = arith.addf %206, %208 : vector<40x128xf32>
    %210 = tpu.iota {dimensions = array<i32: 0>} : vector<40x128xi32>
    %c39_i32_70 = arith.constant 39 : i32
    %211 = vector.broadcast %c39_i32_70 : i32 to vector<40x128xi32>
    %212 = arith.cmpi slt, %210, %211 : vector<40x128xi32>
    %cst_71 = arith.constant 0.000000e+00 : f32
    %213 = vector.broadcast %cst_71 : f32 to vector<40x128xf32>
    %214 = arith.select %212, %209, %213 : vector<40x128xi1>, vector<40x128xf32>
    %c0_72 = arith.constant 0 : index
    %c0_73 = arith.constant 0 : index
    %215 = vector.load %arg11[%c0_72, %c0_73] : memref<384x128xbf16, #tpu.memory_space<vmem>>, vector<384x128xbf16>
    %cst_74 = arith.constant 0.000000e+00 : f32
    %216 = vector.broadcast %cst_74 : f32 to vector<1x128xf32>
    %217 = vector.extract_strided_slice %214 {offsets = [0, 0], sizes = [39, 128], strides = [1, 1]} : vector<40x128xf32> to vector<39x128xf32>
    %218 = tpu.concatenate %216, %217 in 0 : vector<1x128xf32>, vector<39x128xf32> -> vector<40x128xf32>
    %219 = vector.extract_strided_slice %214 {offsets = [1, 0], sizes = [39, 128], strides = [1, 1]} : vector<40x128xf32> to vector<39x128xf32>
    %220 = tpu.concatenate %219, %216 in 0 : vector<39x128xf32>, vector<1x128xf32> -> vector<40x128xf32>
    %221 = vector.extract_strided_slice %215 {offsets = [0, 0], sizes = [128, 128], strides = [1, 1]} : vector<384x128xbf16> to vector<128x128xbf16>
    %222 = arith.truncf %218 : vector<40x128xf32> to vector<40x128xbf16>
    %cst_75 = arith.constant dense<0.000000e+00> : vector<40x128xf32>
    %223 = tpu.matmul %222, %221, %cst_75 {dimension_numbers = #tpu.dot_dimension_numbers<[1], [0], [0], [1], [0, 0, 1, 1], [], []>} : vector<40x128xbf16>, vector<128x128xbf16>, vector<40x128xf32> -> vector<40x128xf32>
    %224 = vector.extract_strided_slice %215 {offsets = [128, 0], sizes = [128, 128], strides = [1, 1]} : vector<384x128xbf16> to vector<128x128xbf16>
    %225 = arith.truncf %214 : vector<40x128xf32> to vector<40x128xbf16>
    %cst_76 = arith.constant dense<0.000000e+00> : vector<40x128xf32>
    %226 = tpu.matmul %225, %224, %cst_76 {dimension_numbers = #tpu.dot_dimension_numbers<[1], [0], [0], [1], [0, 0, 1, 1], [], []>} : vector<40x128xbf16>, vector<128x128xbf16>, vector<40x128xf32> -> vector<40x128xf32>
    %227 = arith.addf %223, %226 : vector<40x128xf32>
    %228 = vector.extract_strided_slice %215 {offsets = [256, 0], sizes = [128, 128], strides = [1, 1]} : vector<384x128xbf16> to vector<128x128xbf16>
    %229 = arith.truncf %220 : vector<40x128xf32> to vector<40x128xbf16>
    %cst_77 = arith.constant dense<0.000000e+00> : vector<40x128xf32>
    %230 = tpu.matmul %229, %228, %cst_77 {dimension_numbers = #tpu.dot_dimension_numbers<[1], [0], [0], [1], [0, 0, 1, 1], [], []>} : vector<40x128xbf16>, vector<128x128xbf16>, vector<40x128xf32> -> vector<40x128xf32>
    %231 = arith.addf %227, %230 : vector<40x128xf32>
    %c0_78 = arith.constant 0 : index
    %c0_79 = arith.constant 0 : index
    %232 = vector.load %arg12[%c0_78, %c0_79] : memref<1x128xf32, #tpu.memory_space<vmem>>, vector<1x128xf32>
    %233 = vector.broadcast %232 : vector<1x128xf32> to vector<40x128xf32>
    %234 = arith.addf %231, %233 : vector<40x128xf32>
    %235 = arith.mulf %234, %234 : vector<40x128xf32>
    %236 = arith.mulf %234, %235 : vector<40x128xf32>
    %cst_80 = arith.constant 4.471500e-02 : f32
    %237 = vector.broadcast %cst_80 : f32 to vector<40x128xf32>
    %238 = arith.mulf %237, %236 : vector<40x128xf32>
    %239 = arith.addf %234, %238 : vector<40x128xf32>
    %cst_81 = arith.constant 0.797884583 : f32
    %240 = vector.broadcast %cst_81 : f32 to vector<40x128xf32>
    %241 = arith.mulf %240, %239 : vector<40x128xf32>
    %242 = math.tanh %241 : vector<40x128xf32>
    %cst_82 = arith.constant 1.000000e+00 : f32
    %243 = vector.broadcast %cst_82 : f32 to vector<40x128xf32>
    %244 = arith.addf %243, %242 : vector<40x128xf32>
    %cst_83 = arith.constant 5.000000e-01 : f32
    %245 = vector.broadcast %cst_83 : f32 to vector<40x128xf32>
    %246 = arith.mulf %245, %244 : vector<40x128xf32>
    %247 = arith.mulf %234, %246 : vector<40x128xf32>
    %248 = arith.addf %214, %247 : vector<40x128xf32>
    %c0_84 = arith.constant 0 : index
    %c0_85 = arith.constant 0 : index
    %249 = vector.load %arg13[%c0_84, %c0_85] : memref<1x128xf32, #tpu.memory_space<vmem>>, vector<1x128xf32>
    %c0_86 = arith.constant 0 : index
    %c0_87 = arith.constant 0 : index
    %250 = vector.load %arg14[%c0_86, %c0_87] : memref<1x128xf32, #tpu.memory_space<vmem>>, vector<1x128xf32>
    %cst_88 = arith.constant dense<0.000000e+00> : vector<40xf32>
    %251 = vector.multi_reduction <add>, %248, %cst_88 [1] : vector<40x128xf32> to vector<40xf32>
    %252 = vector.shape_cast %251 : vector<40xf32> to vector<40x1xf32>
    %cst_89 = arith.constant 1.280000e+02 : f32
    %253 = vector.broadcast %cst_89 : f32 to vector<40x1xf32>
    %254 = arith.divf %252, %253 : vector<40x1xf32>
    %255 = vector.broadcast %254 : vector<40x1xf32> to vector<40x128xf32>
    %256 = arith.subf %248, %255 : vector<40x128xf32>
    %257 = arith.mulf %256, %256 : vector<40x128xf32>
    %cst_90 = arith.constant dense<0.000000e+00> : vector<40xf32>
    %258 = vector.multi_reduction <add>, %257, %cst_90 [1] : vector<40x128xf32> to vector<40xf32>
    %259 = vector.shape_cast %258 : vector<40xf32> to vector<40x1xf32>
    %cst_91 = arith.constant 1.280000e+02 : f32
    %260 = vector.broadcast %cst_91 : f32 to vector<40x1xf32>
    %261 = arith.divf %259, %260 : vector<40x1xf32>
    %262 = vector.broadcast %254 : vector<40x1xf32> to vector<40x128xf32>
    %263 = arith.subf %248, %262 : vector<40x128xf32>
    %cst_92 = arith.constant 9.99999974E-6 : f32
    %264 = vector.broadcast %cst_92 : f32 to vector<40x1xf32>
    %265 = arith.addf %261, %264 : vector<40x1xf32>
    %266 = math.rsqrt %265 : vector<40x1xf32>
    %267 = vector.broadcast %266 : vector<40x1xf32> to vector<40x128xf32>
    %268 = arith.mulf %263, %267 : vector<40x128xf32>
    %269 = vector.broadcast %249 : vector<1x128xf32> to vector<40x128xf32>
    %270 = arith.mulf %268, %269 : vector<40x128xf32>
    %271 = vector.broadcast %250 : vector<1x128xf32> to vector<40x128xf32>
    %272 = arith.addf %270, %271 : vector<40x128xf32>
    %273 = tpu.iota {dimensions = array<i32: 1>} : vector<1x40xi32>
    %c39_i32_93 = arith.constant 39 : i32
    %274 = vector.broadcast %c39_i32_93 : i32 to vector<1x40xi32>
    %275 = arith.cmpi slt, %273, %274 : vector<1x40xi32>
    %cst_94 = arith.constant 0.000000e+00 : f32
    %cst_95 = arith.constant -1.000000e+30 : f32
    %276 = vector.broadcast %cst_94 : f32 to vector<1x40xf32>
    %277 = vector.broadcast %cst_95 : f32 to vector<1x40xf32>
    %278 = arith.select %275, %276, %277 : vector<1x40xi1>, vector<1x40xf32>
    %c0_96 = arith.constant 0 : index
    %c0_97 = arith.constant 0 : index
    %c0_98 = arith.constant 0 : index
    %279 = vector.load %arg15[%c0_96, %c0_97, %c0_98] : memref<2x128x384xbf16, #tpu.memory_space<vmem>>, vector<1x128x384xbf16>
    %280 = vector.shape_cast %279 : vector<1x128x384xbf16> to vector<128x384xbf16>
    %281 = arith.truncf %272 : vector<40x128xf32> to vector<40x128xbf16>
    %cst_99 = arith.constant dense<0.000000e+00> : vector<40x384xf32>
    %282 = tpu.matmul %281, %280, %cst_99 {dimension_numbers = #tpu.dot_dimension_numbers<[1], [0], [0], [1], [0, 0, 1, 1], [], []>} : vector<40x128xbf16>, vector<128x384xbf16>, vector<40x384xf32> -> vector<40x384xf32>
    %c0_100 = arith.constant 0 : index
    %c0_101 = arith.constant 0 : index
    %c0_102 = arith.constant 0 : index
    %283 = vector.load %arg16[%c0_100, %c0_101, %c0_102] : memref<2x1x384xf32, #tpu.memory_space<vmem>>, vector<1x1x384xf32>
    %284 = vector.shape_cast %283 : vector<1x1x384xf32> to vector<1x384xf32>
    %285 = vector.broadcast %284 : vector<1x384xf32> to vector<40x384xf32>
    %286 = arith.addf %282, %285 : vector<40x384xf32>
    %287 = vector.extract_strided_slice %286 {offsets = [0, 0], sizes = [40, 32], strides = [1, 1]} : vector<40x384xf32> to vector<40x32xf32>
    %288 = vector.extract_strided_slice %286 {offsets = [0, 128], sizes = [40, 32], strides = [1, 1]} : vector<40x384xf32> to vector<40x32xf32>
    %289 = vector.extract_strided_slice %286 {offsets = [0, 256], sizes = [40, 32], strides = [1, 1]} : vector<40x384xf32> to vector<40x32xf32>
    %290 = arith.truncf %287 : vector<40x32xf32> to vector<40x32xbf16>
    %291 = arith.truncf %288 : vector<40x32xf32> to vector<40x32xbf16>
    %cst_103 = arith.constant dense<0.000000e+00> : vector<40x40xf32>
    %292 = tpu.matmul %290, %291, %cst_103 {dimension_numbers = #tpu.dot_dimension_numbers<[1], [1], [0], [0], [0, 0, 1, 0], [], []>} : vector<40x32xbf16>, vector<40x32xbf16>, vector<40x40xf32> -> vector<40x40xf32>
    %cst_104 = arith.constant 0.176776692 : f32
    %293 = vector.broadcast %cst_104 : f32 to vector<40x40xf32>
    %294 = arith.mulf %292, %293 : vector<40x40xf32>
    %295 = vector.broadcast %278 : vector<1x40xf32> to vector<40x40xf32>
    %296 = arith.addf %294, %295 : vector<40x40xf32>
    %cst_105 = arith.constant dense<0xFF800000> : vector<40xf32>
    %297 = vector.multi_reduction <maximumf>, %296, %cst_105 [1] : vector<40x40xf32> to vector<40xf32>
    %298 = vector.shape_cast %297 : vector<40xf32> to vector<40x1xf32>
    %299 = vector.broadcast %298 : vector<40x1xf32> to vector<40x40xf32>
    %300 = arith.subf %296, %299 : vector<40x40xf32>
    %301 = math.exp %300 : vector<40x40xf32>
    %cst_106 = arith.constant dense<0.000000e+00> : vector<40xf32>
    %302 = vector.multi_reduction <add>, %301, %cst_106 [1] : vector<40x40xf32> to vector<40xf32>
    %303 = vector.shape_cast %302 : vector<40xf32> to vector<40x1xf32>
    %304 = tpu.reciprocal %303 {approx = true} : vector<40x1xf32> -> vector<40x1xf32>
    %305 = vector.broadcast %304 : vector<40x1xf32> to vector<40x40xf32>
    %306 = arith.mulf %301, %305 : vector<40x40xf32>
    %307 = arith.truncf %306 : vector<40x40xf32> to vector<40x40xbf16>
    %308 = arith.truncf %289 : vector<40x32xf32> to vector<40x32xbf16>
    %cst_107 = arith.constant dense<0.000000e+00> : vector<40x32xf32>
    %309 = tpu.matmul %307, %308, %cst_107 {dimension_numbers = #tpu.dot_dimension_numbers<[1], [0], [0], [1], [0, 0, 1, 1], [], []>} : vector<40x40xbf16>, vector<40x32xbf16>, vector<40x32xf32> -> vector<40x32xf32>
    %310 = vector.extract_strided_slice %286 {offsets = [0, 32], sizes = [40, 32], strides = [1, 1]} : vector<40x384xf32> to vector<40x32xf32>
    %311 = vector.extract_strided_slice %286 {offsets = [0, 160], sizes = [40, 32], strides = [1, 1]} : vector<40x384xf32> to vector<40x32xf32>
    %312 = vector.extract_strided_slice %286 {offsets = [0, 288], sizes = [40, 32], strides = [1, 1]} : vector<40x384xf32> to vector<40x32xf32>
    %313 = arith.truncf %310 : vector<40x32xf32> to vector<40x32xbf16>
    %314 = arith.truncf %311 : vector<40x32xf32> to vector<40x32xbf16>
    %cst_108 = arith.constant dense<0.000000e+00> : vector<40x40xf32>
    %315 = tpu.matmul %313, %314, %cst_108 {dimension_numbers = #tpu.dot_dimension_numbers<[1], [1], [0], [0], [0, 0, 1, 0], [], []>} : vector<40x32xbf16>, vector<40x32xbf16>, vector<40x40xf32> -> vector<40x40xf32>
    %cst_109 = arith.constant 0.176776692 : f32
    %316 = vector.broadcast %cst_109 : f32 to vector<40x40xf32>
    %317 = arith.mulf %315, %316 : vector<40x40xf32>
    %318 = vector.broadcast %278 : vector<1x40xf32> to vector<40x40xf32>
    %319 = arith.addf %317, %318 : vector<40x40xf32>
    %cst_110 = arith.constant dense<0xFF800000> : vector<40xf32>
    %320 = vector.multi_reduction <maximumf>, %319, %cst_110 [1] : vector<40x40xf32> to vector<40xf32>
    %321 = vector.shape_cast %320 : vector<40xf32> to vector<40x1xf32>
    %322 = vector.broadcast %321 : vector<40x1xf32> to vector<40x40xf32>
    %323 = arith.subf %319, %322 : vector<40x40xf32>
    %324 = math.exp %323 : vector<40x40xf32>
    %cst_111 = arith.constant dense<0.000000e+00> : vector<40xf32>
    %325 = vector.multi_reduction <add>, %324, %cst_111 [1] : vector<40x40xf32> to vector<40xf32>
    %326 = vector.shape_cast %325 : vector<40xf32> to vector<40x1xf32>
    %327 = tpu.reciprocal %326 {approx = true} : vector<40x1xf32> -> vector<40x1xf32>
    %328 = vector.broadcast %327 : vector<40x1xf32> to vector<40x40xf32>
    %329 = arith.mulf %324, %328 : vector<40x40xf32>
    %330 = arith.truncf %329 : vector<40x40xf32> to vector<40x40xbf16>
    %331 = arith.truncf %312 : vector<40x32xf32> to vector<40x32xbf16>
    %cst_112 = arith.constant dense<0.000000e+00> : vector<40x32xf32>
    %332 = tpu.matmul %330, %331, %cst_112 {dimension_numbers = #tpu.dot_dimension_numbers<[1], [0], [0], [1], [0, 0, 1, 1], [], []>} : vector<40x40xbf16>, vector<40x32xbf16>, vector<40x32xf32> -> vector<40x32xf32>
    %333 = vector.extract_strided_slice %286 {offsets = [0, 64], sizes = [40, 32], strides = [1, 1]} : vector<40x384xf32> to vector<40x32xf32>
    %334 = vector.extract_strided_slice %286 {offsets = [0, 192], sizes = [40, 32], strides = [1, 1]} : vector<40x384xf32> to vector<40x32xf32>
    %335 = vector.extract_strided_slice %286 {offsets = [0, 320], sizes = [40, 32], strides = [1, 1]} : vector<40x384xf32> to vector<40x32xf32>
    %336 = arith.truncf %333 : vector<40x32xf32> to vector<40x32xbf16>
    %337 = arith.truncf %334 : vector<40x32xf32> to vector<40x32xbf16>
    %cst_113 = arith.constant dense<0.000000e+00> : vector<40x40xf32>
    %338 = tpu.matmul %336, %337, %cst_113 {dimension_numbers = #tpu.dot_dimension_numbers<[1], [1], [0], [0], [0, 0, 1, 0], [], []>} : vector<40x32xbf16>, vector<40x32xbf16>, vector<40x40xf32> -> vector<40x40xf32>
    %cst_114 = arith.constant 0.176776692 : f32
    %339 = vector.broadcast %cst_114 : f32 to vector<40x40xf32>
    %340 = arith.mulf %338, %339 : vector<40x40xf32>
    %341 = vector.broadcast %278 : vector<1x40xf32> to vector<40x40xf32>
    %342 = arith.addf %340, %341 : vector<40x40xf32>
    %cst_115 = arith.constant dense<0xFF800000> : vector<40xf32>
    %343 = vector.multi_reduction <maximumf>, %342, %cst_115 [1] : vector<40x40xf32> to vector<40xf32>
    %344 = vector.shape_cast %343 : vector<40xf32> to vector<40x1xf32>
    %345 = vector.broadcast %344 : vector<40x1xf32> to vector<40x40xf32>
    %346 = arith.subf %342, %345 : vector<40x40xf32>
    %347 = math.exp %346 : vector<40x40xf32>
    %cst_116 = arith.constant dense<0.000000e+00> : vector<40xf32>
    %348 = vector.multi_reduction <add>, %347, %cst_116 [1] : vector<40x40xf32> to vector<40xf32>
    %349 = vector.shape_cast %348 : vector<40xf32> to vector<40x1xf32>
    %350 = tpu.reciprocal %349 {approx = true} : vector<40x1xf32> -> vector<40x1xf32>
    %351 = vector.broadcast %350 : vector<40x1xf32> to vector<40x40xf32>
    %352 = arith.mulf %347, %351 : vector<40x40xf32>
    %353 = arith.truncf %352 : vector<40x40xf32> to vector<40x40xbf16>
    %354 = arith.truncf %335 : vector<40x32xf32> to vector<40x32xbf16>
    %cst_117 = arith.constant dense<0.000000e+00> : vector<40x32xf32>
    %355 = tpu.matmul %353, %354, %cst_117 {dimension_numbers = #tpu.dot_dimension_numbers<[1], [0], [0], [1], [0, 0, 1, 1], [], []>} : vector<40x40xbf16>, vector<40x32xbf16>, vector<40x32xf32> -> vector<40x32xf32>
    %356 = vector.extract_strided_slice %286 {offsets = [0, 96], sizes = [40, 32], strides = [1, 1]} : vector<40x384xf32> to vector<40x32xf32>
    %357 = vector.extract_strided_slice %286 {offsets = [0, 224], sizes = [40, 32], strides = [1, 1]} : vector<40x384xf32> to vector<40x32xf32>
    %358 = vector.extract_strided_slice %286 {offsets = [0, 352], sizes = [40, 32], strides = [1, 1]} : vector<40x384xf32> to vector<40x32xf32>
    %359 = arith.truncf %356 : vector<40x32xf32> to vector<40x32xbf16>
    %360 = arith.truncf %357 : vector<40x32xf32> to vector<40x32xbf16>
    %cst_118 = arith.constant dense<0.000000e+00> : vector<40x40xf32>
    %361 = tpu.matmul %359, %360, %cst_118 {dimension_numbers = #tpu.dot_dimension_numbers<[1], [1], [0], [0], [0, 0, 1, 0], [], []>} : vector<40x32xbf16>, vector<40x32xbf16>, vector<40x40xf32> -> vector<40x40xf32>
    %cst_119 = arith.constant 0.176776692 : f32
    %362 = vector.broadcast %cst_119 : f32 to vector<40x40xf32>
    %363 = arith.mulf %361, %362 : vector<40x40xf32>
    %364 = vector.broadcast %278 : vector<1x40xf32> to vector<40x40xf32>
    %365 = arith.addf %363, %364 : vector<40x40xf32>
    %cst_120 = arith.constant dense<0xFF800000> : vector<40xf32>
    %366 = vector.multi_reduction <maximumf>, %365, %cst_120 [1] : vector<40x40xf32> to vector<40xf32>
    %367 = vector.shape_cast %366 : vector<40xf32> to vector<40x1xf32>
    %368 = vector.broadcast %367 : vector<40x1xf32> to vector<40x40xf32>
    %369 = arith.subf %365, %368 : vector<40x40xf32>
    %370 = math.exp %369 : vector<40x40xf32>
    %cst_121 = arith.constant dense<0.000000e+00> : vector<40xf32>
    %371 = vector.multi_reduction <add>, %370, %cst_121 [1] : vector<40x40xf32> to vector<40xf32>
    %372 = vector.shape_cast %371 : vector<40xf32> to vector<40x1xf32>
    %373 = tpu.reciprocal %372 {approx = true} : vector<40x1xf32> -> vector<40x1xf32>
    %374 = vector.broadcast %373 : vector<40x1xf32> to vector<40x40xf32>
    %375 = arith.mulf %370, %374 : vector<40x40xf32>
    %376 = arith.truncf %375 : vector<40x40xf32> to vector<40x40xbf16>
    %377 = arith.truncf %358 : vector<40x32xf32> to vector<40x32xbf16>
    %cst_122 = arith.constant dense<0.000000e+00> : vector<40x32xf32>
    %378 = tpu.matmul %376, %377, %cst_122 {dimension_numbers = #tpu.dot_dimension_numbers<[1], [0], [0], [1], [0, 0, 1, 1], [], []>} : vector<40x40xbf16>, vector<40x32xbf16>, vector<40x32xf32> -> vector<40x32xf32>
    %379 = tpu.concatenate %309, %332, %355, %378 in 1 : vector<40x32xf32>, vector<40x32xf32>, vector<40x32xf32>, vector<40x32xf32> -> vector<40x128xf32>
    %c0_123 = arith.constant 0 : index
    %c0_124 = arith.constant 0 : index
    %c0_125 = arith.constant 0 : index
    %380 = vector.load %arg17[%c0_123, %c0_124, %c0_125] : memref<2x128x128xbf16, #tpu.memory_space<vmem>>, vector<1x128x128xbf16>
    %381 = vector.shape_cast %380 : vector<1x128x128xbf16> to vector<128x128xbf16>
    %382 = arith.truncf %379 : vector<40x128xf32> to vector<40x128xbf16>
    %cst_126 = arith.constant dense<0.000000e+00> : vector<40x128xf32>
    %383 = tpu.matmul %382, %381, %cst_126 {dimension_numbers = #tpu.dot_dimension_numbers<[1], [0], [0], [1], [0, 0, 1, 1], [], []>} : vector<40x128xbf16>, vector<128x128xbf16>, vector<40x128xf32> -> vector<40x128xf32>
    %c0_127 = arith.constant 0 : index
    %c0_128 = arith.constant 0 : index
    %c0_129 = arith.constant 0 : index
    %384 = vector.load %arg18[%c0_127, %c0_128, %c0_129] : memref<2x1x128xf32, #tpu.memory_space<vmem>>, vector<1x1x128xf32>
    %385 = vector.shape_cast %384 : vector<1x1x128xf32> to vector<1x128xf32>
    %386 = vector.broadcast %385 : vector<1x128xf32> to vector<40x128xf32>
    %387 = arith.addf %383, %386 : vector<40x128xf32>
    %388 = arith.addf %387, %272 : vector<40x128xf32>
    %c0_130 = arith.constant 0 : index
    %c0_131 = arith.constant 0 : index
    %c0_132 = arith.constant 0 : index
    %389 = vector.load %arg19[%c0_130, %c0_131, %c0_132] : memref<2x1x128xf32, #tpu.memory_space<vmem>>, vector<1x1x128xf32>
    %390 = vector.shape_cast %389 : vector<1x1x128xf32> to vector<1x128xf32>
    %c0_133 = arith.constant 0 : index
    %c0_134 = arith.constant 0 : index
    %c0_135 = arith.constant 0 : index
    %391 = vector.load %arg20[%c0_133, %c0_134, %c0_135] : memref<2x1x128xf32, #tpu.memory_space<vmem>>, vector<1x1x128xf32>
    %392 = vector.shape_cast %391 : vector<1x1x128xf32> to vector<1x128xf32>
    %cst_136 = arith.constant dense<0.000000e+00> : vector<40xf32>
    %393 = vector.multi_reduction <add>, %388, %cst_136 [1] : vector<40x128xf32> to vector<40xf32>
    %394 = vector.shape_cast %393 : vector<40xf32> to vector<40x1xf32>
    %cst_137 = arith.constant 1.280000e+02 : f32
    %395 = vector.broadcast %cst_137 : f32 to vector<40x1xf32>
    %396 = arith.divf %394, %395 : vector<40x1xf32>
    %397 = vector.broadcast %396 : vector<40x1xf32> to vector<40x128xf32>
    %398 = arith.subf %388, %397 : vector<40x128xf32>
    %399 = arith.mulf %398, %398 : vector<40x128xf32>
    %cst_138 = arith.constant dense<0.000000e+00> : vector<40xf32>
    %400 = vector.multi_reduction <add>, %399, %cst_138 [1] : vector<40x128xf32> to vector<40xf32>
    %401 = vector.shape_cast %400 : vector<40xf32> to vector<40x1xf32>
    %cst_139 = arith.constant 1.280000e+02 : f32
    %402 = vector.broadcast %cst_139 : f32 to vector<40x1xf32>
    %403 = arith.divf %401, %402 : vector<40x1xf32>
    %404 = vector.broadcast %396 : vector<40x1xf32> to vector<40x128xf32>
    %405 = arith.subf %388, %404 : vector<40x128xf32>
    %cst_140 = arith.constant 9.99999974E-6 : f32
    %406 = vector.broadcast %cst_140 : f32 to vector<40x1xf32>
    %407 = arith.addf %403, %406 : vector<40x1xf32>
    %408 = math.rsqrt %407 : vector<40x1xf32>
    %409 = vector.broadcast %408 : vector<40x1xf32> to vector<40x128xf32>
    %410 = arith.mulf %405, %409 : vector<40x128xf32>
    %411 = vector.broadcast %390 : vector<1x128xf32> to vector<40x128xf32>
    %412 = arith.mulf %410, %411 : vector<40x128xf32>
    %413 = vector.broadcast %392 : vector<1x128xf32> to vector<40x128xf32>
    %414 = arith.addf %412, %413 : vector<40x128xf32>
    %c0_141 = arith.constant 0 : index
    %c0_142 = arith.constant 0 : index
    %c0_143 = arith.constant 0 : index
    %415 = vector.load %arg21[%c0_141, %c0_142, %c0_143] : memref<2x128x256xbf16, #tpu.memory_space<vmem>>, vector<1x128x256xbf16>
    %416 = vector.shape_cast %415 : vector<1x128x256xbf16> to vector<128x256xbf16>
    %417 = arith.truncf %414 : vector<40x128xf32> to vector<40x128xbf16>
    %cst_144 = arith.constant dense<0.000000e+00> : vector<40x256xf32>
    %418 = tpu.matmul %417, %416, %cst_144 {dimension_numbers = #tpu.dot_dimension_numbers<[1], [0], [0], [1], [0, 0, 1, 1], [], []>} : vector<40x128xbf16>, vector<128x256xbf16>, vector<40x256xf32> -> vector<40x256xf32>
    %c0_145 = arith.constant 0 : index
    %c0_146 = arith.constant 0 : index
    %c0_147 = arith.constant 0 : index
    %419 = vector.load %arg22[%c0_145, %c0_146, %c0_147] : memref<2x1x256xf32, #tpu.memory_space<vmem>>, vector<1x1x256xf32>
    %420 = vector.shape_cast %419 : vector<1x1x256xf32> to vector<1x256xf32>
    %421 = vector.broadcast %420 : vector<1x256xf32> to vector<40x256xf32>
    %422 = arith.addf %418, %421 : vector<40x256xf32>
    %423 = arith.mulf %422, %422 : vector<40x256xf32>
    %424 = arith.mulf %422, %423 : vector<40x256xf32>
    %cst_148 = arith.constant 4.471500e-02 : f32
    %425 = vector.broadcast %cst_148 : f32 to vector<40x256xf32>
    %426 = arith.mulf %425, %424 : vector<40x256xf32>
    %427 = arith.addf %422, %426 : vector<40x256xf32>
    %cst_149 = arith.constant 0.797884583 : f32
    %428 = vector.broadcast %cst_149 : f32 to vector<40x256xf32>
    %429 = arith.mulf %428, %427 : vector<40x256xf32>
    %430 = math.tanh %429 : vector<40x256xf32>
    %cst_150 = arith.constant 1.000000e+00 : f32
    %431 = vector.broadcast %cst_150 : f32 to vector<40x256xf32>
    %432 = arith.addf %431, %430 : vector<40x256xf32>
    %cst_151 = arith.constant 5.000000e-01 : f32
    %433 = vector.broadcast %cst_151 : f32 to vector<40x256xf32>
    %434 = arith.mulf %433, %432 : vector<40x256xf32>
    %435 = arith.mulf %422, %434 : vector<40x256xf32>
    %c0_152 = arith.constant 0 : index
    %c0_153 = arith.constant 0 : index
    %c0_154 = arith.constant 0 : index
    %436 = vector.load %arg23[%c0_152, %c0_153, %c0_154] : memref<2x256x128xbf16, #tpu.memory_space<vmem>>, vector<1x256x128xbf16>
    %437 = vector.shape_cast %436 : vector<1x256x128xbf16> to vector<256x128xbf16>
    %438 = arith.truncf %435 : vector<40x256xf32> to vector<40x256xbf16>
    %cst_155 = arith.constant dense<0.000000e+00> : vector<40x128xf32>
    %439 = tpu.matmul %438, %437, %cst_155 {dimension_numbers = #tpu.dot_dimension_numbers<[1], [0], [0], [1], [0, 0, 1, 1], [], []>} : vector<40x256xbf16>, vector<256x128xbf16>, vector<40x128xf32> -> vector<40x128xf32>
    %c0_156 = arith.constant 0 : index
    %c0_157 = arith.constant 0 : index
    %c0_158 = arith.constant 0 : index
    %440 = vector.load %arg24[%c0_156, %c0_157, %c0_158] : memref<2x1x128xf32, #tpu.memory_space<vmem>>, vector<1x1x128xf32>
    %441 = vector.shape_cast %440 : vector<1x1x128xf32> to vector<1x128xf32>
    %442 = vector.broadcast %441 : vector<1x128xf32> to vector<40x128xf32>
    %443 = arith.addf %439, %442 : vector<40x128xf32>
    %444 = arith.addf %443, %414 : vector<40x128xf32>
    %c0_159 = arith.constant 0 : index
    %c0_160 = arith.constant 0 : index
    %c0_161 = arith.constant 0 : index
    %445 = vector.load %arg25[%c0_159, %c0_160, %c0_161] : memref<2x1x128xf32, #tpu.memory_space<vmem>>, vector<1x1x128xf32>
    %446 = vector.shape_cast %445 : vector<1x1x128xf32> to vector<1x128xf32>
    %c0_162 = arith.constant 0 : index
    %c0_163 = arith.constant 0 : index
    %c0_164 = arith.constant 0 : index
    %447 = vector.load %arg26[%c0_162, %c0_163, %c0_164] : memref<2x1x128xf32, #tpu.memory_space<vmem>>, vector<1x1x128xf32>
    %448 = vector.shape_cast %447 : vector<1x1x128xf32> to vector<1x128xf32>
    %cst_165 = arith.constant dense<0.000000e+00> : vector<40xf32>
    %449 = vector.multi_reduction <add>, %444, %cst_165 [1] : vector<40x128xf32> to vector<40xf32>
    %450 = vector.shape_cast %449 : vector<40xf32> to vector<40x1xf32>
    %cst_166 = arith.constant 1.280000e+02 : f32
    %451 = vector.broadcast %cst_166 : f32 to vector<40x1xf32>
    %452 = arith.divf %450, %451 : vector<40x1xf32>
    %453 = vector.broadcast %452 : vector<40x1xf32> to vector<40x128xf32>
    %454 = arith.subf %444, %453 : vector<40x128xf32>
    %455 = arith.mulf %454, %454 : vector<40x128xf32>
    %cst_167 = arith.constant dense<0.000000e+00> : vector<40xf32>
    %456 = vector.multi_reduction <add>, %455, %cst_167 [1] : vector<40x128xf32> to vector<40xf32>
    %457 = vector.shape_cast %456 : vector<40xf32> to vector<40x1xf32>
    %cst_168 = arith.constant 1.280000e+02 : f32
    %458 = vector.broadcast %cst_168 : f32 to vector<40x1xf32>
    %459 = arith.divf %457, %458 : vector<40x1xf32>
    %460 = vector.broadcast %452 : vector<40x1xf32> to vector<40x128xf32>
    %461 = arith.subf %444, %460 : vector<40x128xf32>
    %cst_169 = arith.constant 9.99999974E-6 : f32
    %462 = vector.broadcast %cst_169 : f32 to vector<40x1xf32>
    %463 = arith.addf %459, %462 : vector<40x1xf32>
    %464 = math.rsqrt %463 : vector<40x1xf32>
    %465 = vector.broadcast %464 : vector<40x1xf32> to vector<40x128xf32>
    %466 = arith.mulf %461, %465 : vector<40x128xf32>
    %467 = vector.broadcast %446 : vector<1x128xf32> to vector<40x128xf32>
    %468 = arith.mulf %466, %467 : vector<40x128xf32>
    %469 = vector.broadcast %448 : vector<1x128xf32> to vector<40x128xf32>
    %470 = arith.addf %468, %469 : vector<40x128xf32>
    %c1 = arith.constant 1 : index
    %c0_170 = arith.constant 0 : index
    %c0_171 = arith.constant 0 : index
    %471 = vector.load %arg15[%c1, %c0_170, %c0_171] : memref<2x128x384xbf16, #tpu.memory_space<vmem>>, vector<1x128x384xbf16>
    %472 = vector.shape_cast %471 : vector<1x128x384xbf16> to vector<128x384xbf16>
    %473 = arith.truncf %470 : vector<40x128xf32> to vector<40x128xbf16>
    %cst_172 = arith.constant dense<0.000000e+00> : vector<40x384xf32>
    %474 = tpu.matmul %473, %472, %cst_172 {dimension_numbers = #tpu.dot_dimension_numbers<[1], [0], [0], [1], [0, 0, 1, 1], [], []>} : vector<40x128xbf16>, vector<128x384xbf16>, vector<40x384xf32> -> vector<40x384xf32>
    %c1_173 = arith.constant 1 : index
    %c0_174 = arith.constant 0 : index
    %c0_175 = arith.constant 0 : index
    %475 = vector.load %arg16[%c1_173, %c0_174, %c0_175] : memref<2x1x384xf32, #tpu.memory_space<vmem>>, vector<1x1x384xf32>
    %476 = vector.shape_cast %475 : vector<1x1x384xf32> to vector<1x384xf32>
    %477 = vector.broadcast %476 : vector<1x384xf32> to vector<40x384xf32>
    %478 = arith.addf %474, %477 : vector<40x384xf32>
    %479 = vector.extract_strided_slice %478 {offsets = [0, 0], sizes = [40, 32], strides = [1, 1]} : vector<40x384xf32> to vector<40x32xf32>
    %480 = vector.extract_strided_slice %478 {offsets = [0, 128], sizes = [40, 32], strides = [1, 1]} : vector<40x384xf32> to vector<40x32xf32>
    %481 = vector.extract_strided_slice %478 {offsets = [0, 256], sizes = [40, 32], strides = [1, 1]} : vector<40x384xf32> to vector<40x32xf32>
    %482 = arith.truncf %479 : vector<40x32xf32> to vector<40x32xbf16>
    %483 = arith.truncf %480 : vector<40x32xf32> to vector<40x32xbf16>
    %cst_176 = arith.constant dense<0.000000e+00> : vector<40x40xf32>
    %484 = tpu.matmul %482, %483, %cst_176 {dimension_numbers = #tpu.dot_dimension_numbers<[1], [1], [0], [0], [0, 0, 1, 0], [], []>} : vector<40x32xbf16>, vector<40x32xbf16>, vector<40x40xf32> -> vector<40x40xf32>
    %cst_177 = arith.constant 0.176776692 : f32
    %485 = vector.broadcast %cst_177 : f32 to vector<40x40xf32>
    %486 = arith.mulf %484, %485 : vector<40x40xf32>
    %487 = vector.broadcast %278 : vector<1x40xf32> to vector<40x40xf32>
    %488 = arith.addf %486, %487 : vector<40x40xf32>
    %cst_178 = arith.constant dense<0xFF800000> : vector<40xf32>
    %489 = vector.multi_reduction <maximumf>, %488, %cst_178 [1] : vector<40x40xf32> to vector<40xf32>
    %490 = vector.shape_cast %489 : vector<40xf32> to vector<40x1xf32>
    %491 = vector.broadcast %490 : vector<40x1xf32> to vector<40x40xf32>
    %492 = arith.subf %488, %491 : vector<40x40xf32>
    %493 = math.exp %492 : vector<40x40xf32>
    %cst_179 = arith.constant dense<0.000000e+00> : vector<40xf32>
    %494 = vector.multi_reduction <add>, %493, %cst_179 [1] : vector<40x40xf32> to vector<40xf32>
    %495 = vector.shape_cast %494 : vector<40xf32> to vector<40x1xf32>
    %496 = tpu.reciprocal %495 {approx = true} : vector<40x1xf32> -> vector<40x1xf32>
    %497 = vector.broadcast %496 : vector<40x1xf32> to vector<40x40xf32>
    %498 = arith.mulf %493, %497 : vector<40x40xf32>
    %499 = arith.truncf %498 : vector<40x40xf32> to vector<40x40xbf16>
    %500 = arith.truncf %481 : vector<40x32xf32> to vector<40x32xbf16>
    %cst_180 = arith.constant dense<0.000000e+00> : vector<40x32xf32>
    %501 = tpu.matmul %499, %500, %cst_180 {dimension_numbers = #tpu.dot_dimension_numbers<[1], [0], [0], [1], [0, 0, 1, 1], [], []>} : vector<40x40xbf16>, vector<40x32xbf16>, vector<40x32xf32> -> vector<40x32xf32>
    %502 = vector.extract_strided_slice %478 {offsets = [0, 32], sizes = [40, 32], strides = [1, 1]} : vector<40x384xf32> to vector<40x32xf32>
    %503 = vector.extract_strided_slice %478 {offsets = [0, 160], sizes = [40, 32], strides = [1, 1]} : vector<40x384xf32> to vector<40x32xf32>
    %504 = vector.extract_strided_slice %478 {offsets = [0, 288], sizes = [40, 32], strides = [1, 1]} : vector<40x384xf32> to vector<40x32xf32>
    %505 = arith.truncf %502 : vector<40x32xf32> to vector<40x32xbf16>
    %506 = arith.truncf %503 : vector<40x32xf32> to vector<40x32xbf16>
    %cst_181 = arith.constant dense<0.000000e+00> : vector<40x40xf32>
    %507 = tpu.matmul %505, %506, %cst_181 {dimension_numbers = #tpu.dot_dimension_numbers<[1], [1], [0], [0], [0, 0, 1, 0], [], []>} : vector<40x32xbf16>, vector<40x32xbf16>, vector<40x40xf32> -> vector<40x40xf32>
    %cst_182 = arith.constant 0.176776692 : f32
    %508 = vector.broadcast %cst_182 : f32 to vector<40x40xf32>
    %509 = arith.mulf %507, %508 : vector<40x40xf32>
    %510 = vector.broadcast %278 : vector<1x40xf32> to vector<40x40xf32>
    %511 = arith.addf %509, %510 : vector<40x40xf32>
    %cst_183 = arith.constant dense<0xFF800000> : vector<40xf32>
    %512 = vector.multi_reduction <maximumf>, %511, %cst_183 [1] : vector<40x40xf32> to vector<40xf32>
    %513 = vector.shape_cast %512 : vector<40xf32> to vector<40x1xf32>
    %514 = vector.broadcast %513 : vector<40x1xf32> to vector<40x40xf32>
    %515 = arith.subf %511, %514 : vector<40x40xf32>
    %516 = math.exp %515 : vector<40x40xf32>
    %cst_184 = arith.constant dense<0.000000e+00> : vector<40xf32>
    %517 = vector.multi_reduction <add>, %516, %cst_184 [1] : vector<40x40xf32> to vector<40xf32>
    %518 = vector.shape_cast %517 : vector<40xf32> to vector<40x1xf32>
    %519 = tpu.reciprocal %518 {approx = true} : vector<40x1xf32> -> vector<40x1xf32>
    %520 = vector.broadcast %519 : vector<40x1xf32> to vector<40x40xf32>
    %521 = arith.mulf %516, %520 : vector<40x40xf32>
    %522 = arith.truncf %521 : vector<40x40xf32> to vector<40x40xbf16>
    %523 = arith.truncf %504 : vector<40x32xf32> to vector<40x32xbf16>
    %cst_185 = arith.constant dense<0.000000e+00> : vector<40x32xf32>
    %524 = tpu.matmul %522, %523, %cst_185 {dimension_numbers = #tpu.dot_dimension_numbers<[1], [0], [0], [1], [0, 0, 1, 1], [], []>} : vector<40x40xbf16>, vector<40x32xbf16>, vector<40x32xf32> -> vector<40x32xf32>
    %525 = vector.extract_strided_slice %478 {offsets = [0, 64], sizes = [40, 32], strides = [1, 1]} : vector<40x384xf32> to vector<40x32xf32>
    %526 = vector.extract_strided_slice %478 {offsets = [0, 192], sizes = [40, 32], strides = [1, 1]} : vector<40x384xf32> to vector<40x32xf32>
    %527 = vector.extract_strided_slice %478 {offsets = [0, 320], sizes = [40, 32], strides = [1, 1]} : vector<40x384xf32> to vector<40x32xf32>
    %528 = arith.truncf %525 : vector<40x32xf32> to vector<40x32xbf16>
    %529 = arith.truncf %526 : vector<40x32xf32> to vector<40x32xbf16>
    %cst_186 = arith.constant dense<0.000000e+00> : vector<40x40xf32>
    %530 = tpu.matmul %528, %529, %cst_186 {dimension_numbers = #tpu.dot_dimension_numbers<[1], [1], [0], [0], [0, 0, 1, 0], [], []>} : vector<40x32xbf16>, vector<40x32xbf16>, vector<40x40xf32> -> vector<40x40xf32>
    %cst_187 = arith.constant 0.176776692 : f32
    %531 = vector.broadcast %cst_187 : f32 to vector<40x40xf32>
    %532 = arith.mulf %530, %531 : vector<40x40xf32>
    %533 = vector.broadcast %278 : vector<1x40xf32> to vector<40x40xf32>
    %534 = arith.addf %532, %533 : vector<40x40xf32>
    %cst_188 = arith.constant dense<0xFF800000> : vector<40xf32>
    %535 = vector.multi_reduction <maximumf>, %534, %cst_188 [1] : vector<40x40xf32> to vector<40xf32>
    %536 = vector.shape_cast %535 : vector<40xf32> to vector<40x1xf32>
    %537 = vector.broadcast %536 : vector<40x1xf32> to vector<40x40xf32>
    %538 = arith.subf %534, %537 : vector<40x40xf32>
    %539 = math.exp %538 : vector<40x40xf32>
    %cst_189 = arith.constant dense<0.000000e+00> : vector<40xf32>
    %540 = vector.multi_reduction <add>, %539, %cst_189 [1] : vector<40x40xf32> to vector<40xf32>
    %541 = vector.shape_cast %540 : vector<40xf32> to vector<40x1xf32>
    %542 = tpu.reciprocal %541 {approx = true} : vector<40x1xf32> -> vector<40x1xf32>
    %543 = vector.broadcast %542 : vector<40x1xf32> to vector<40x40xf32>
    %544 = arith.mulf %539, %543 : vector<40x40xf32>
    %545 = arith.truncf %544 : vector<40x40xf32> to vector<40x40xbf16>
    %546 = arith.truncf %527 : vector<40x32xf32> to vector<40x32xbf16>
    %cst_190 = arith.constant dense<0.000000e+00> : vector<40x32xf32>
    %547 = tpu.matmul %545, %546, %cst_190 {dimension_numbers = #tpu.dot_dimension_numbers<[1], [0], [0], [1], [0, 0, 1, 1], [], []>} : vector<40x40xbf16>, vector<40x32xbf16>, vector<40x32xf32> -> vector<40x32xf32>
    %548 = vector.extract_strided_slice %478 {offsets = [0, 96], sizes = [40, 32], strides = [1, 1]} : vector<40x384xf32> to vector<40x32xf32>
    %549 = vector.extract_strided_slice %478 {offsets = [0, 224], sizes = [40, 32], strides = [1, 1]} : vector<40x384xf32> to vector<40x32xf32>
    %550 = vector.extract_strided_slice %478 {offsets = [0, 352], sizes = [40, 32], strides = [1, 1]} : vector<40x384xf32> to vector<40x32xf32>
    %551 = arith.truncf %548 : vector<40x32xf32> to vector<40x32xbf16>
    %552 = arith.truncf %549 : vector<40x32xf32> to vector<40x32xbf16>
    %cst_191 = arith.constant dense<0.000000e+00> : vector<40x40xf32>
    %553 = tpu.matmul %551, %552, %cst_191 {dimension_numbers = #tpu.dot_dimension_numbers<[1], [1], [0], [0], [0, 0, 1, 0], [], []>} : vector<40x32xbf16>, vector<40x32xbf16>, vector<40x40xf32> -> vector<40x40xf32>
    %cst_192 = arith.constant 0.176776692 : f32
    %554 = vector.broadcast %cst_192 : f32 to vector<40x40xf32>
    %555 = arith.mulf %553, %554 : vector<40x40xf32>
    %556 = vector.broadcast %278 : vector<1x40xf32> to vector<40x40xf32>
    %557 = arith.addf %555, %556 : vector<40x40xf32>
    %cst_193 = arith.constant dense<0xFF800000> : vector<40xf32>
    %558 = vector.multi_reduction <maximumf>, %557, %cst_193 [1] : vector<40x40xf32> to vector<40xf32>
    %559 = vector.shape_cast %558 : vector<40xf32> to vector<40x1xf32>
    %560 = vector.broadcast %559 : vector<40x1xf32> to vector<40x40xf32>
    %561 = arith.subf %557, %560 : vector<40x40xf32>
    %562 = math.exp %561 : vector<40x40xf32>
    %cst_194 = arith.constant dense<0.000000e+00> : vector<40xf32>
    %563 = vector.multi_reduction <add>, %562, %cst_194 [1] : vector<40x40xf32> to vector<40xf32>
    %564 = vector.shape_cast %563 : vector<40xf32> to vector<40x1xf32>
    %565 = tpu.reciprocal %564 {approx = true} : vector<40x1xf32> -> vector<40x1xf32>
    %566 = vector.broadcast %565 : vector<40x1xf32> to vector<40x40xf32>
    %567 = arith.mulf %562, %566 : vector<40x40xf32>
    %568 = arith.truncf %567 : vector<40x40xf32> to vector<40x40xbf16>
    %569 = arith.truncf %550 : vector<40x32xf32> to vector<40x32xbf16>
    %cst_195 = arith.constant dense<0.000000e+00> : vector<40x32xf32>
    %570 = tpu.matmul %568, %569, %cst_195 {dimension_numbers = #tpu.dot_dimension_numbers<[1], [0], [0], [1], [0, 0, 1, 1], [], []>} : vector<40x40xbf16>, vector<40x32xbf16>, vector<40x32xf32> -> vector<40x32xf32>
    %571 = tpu.concatenate %501, %524, %547, %570 in 1 : vector<40x32xf32>, vector<40x32xf32>, vector<40x32xf32>, vector<40x32xf32> -> vector<40x128xf32>
    %c1_196 = arith.constant 1 : index
    %c0_197 = arith.constant 0 : index
    %c0_198 = arith.constant 0 : index
    %572 = vector.load %arg17[%c1_196, %c0_197, %c0_198] : memref<2x128x128xbf16, #tpu.memory_space<vmem>>, vector<1x128x128xbf16>
    %573 = vector.shape_cast %572 : vector<1x128x128xbf16> to vector<128x128xbf16>
    %574 = arith.truncf %571 : vector<40x128xf32> to vector<40x128xbf16>
    %cst_199 = arith.constant dense<0.000000e+00> : vector<40x128xf32>
    %575 = tpu.matmul %574, %573, %cst_199 {dimension_numbers = #tpu.dot_dimension_numbers<[1], [0], [0], [1], [0, 0, 1, 1], [], []>} : vector<40x128xbf16>, vector<128x128xbf16>, vector<40x128xf32> -> vector<40x128xf32>
    %c1_200 = arith.constant 1 : index
    %c0_201 = arith.constant 0 : index
    %c0_202 = arith.constant 0 : index
    %576 = vector.load %arg18[%c1_200, %c0_201, %c0_202] : memref<2x1x128xf32, #tpu.memory_space<vmem>>, vector<1x1x128xf32>
    %577 = vector.shape_cast %576 : vector<1x1x128xf32> to vector<1x128xf32>
    %578 = vector.broadcast %577 : vector<1x128xf32> to vector<40x128xf32>
    %579 = arith.addf %575, %578 : vector<40x128xf32>
    %580 = arith.addf %579, %470 : vector<40x128xf32>
    %c1_203 = arith.constant 1 : index
    %c0_204 = arith.constant 0 : index
    %c0_205 = arith.constant 0 : index
    %581 = vector.load %arg19[%c1_203, %c0_204, %c0_205] : memref<2x1x128xf32, #tpu.memory_space<vmem>>, vector<1x1x128xf32>
    %582 = vector.shape_cast %581 : vector<1x1x128xf32> to vector<1x128xf32>
    %c1_206 = arith.constant 1 : index
    %c0_207 = arith.constant 0 : index
    %c0_208 = arith.constant 0 : index
    %583 = vector.load %arg20[%c1_206, %c0_207, %c0_208] : memref<2x1x128xf32, #tpu.memory_space<vmem>>, vector<1x1x128xf32>
    %584 = vector.shape_cast %583 : vector<1x1x128xf32> to vector<1x128xf32>
    %cst_209 = arith.constant dense<0.000000e+00> : vector<40xf32>
    %585 = vector.multi_reduction <add>, %580, %cst_209 [1] : vector<40x128xf32> to vector<40xf32>
    %586 = vector.shape_cast %585 : vector<40xf32> to vector<40x1xf32>
    %cst_210 = arith.constant 1.280000e+02 : f32
    %587 = vector.broadcast %cst_210 : f32 to vector<40x1xf32>
    %588 = arith.divf %586, %587 : vector<40x1xf32>
    %589 = vector.broadcast %588 : vector<40x1xf32> to vector<40x128xf32>
    %590 = arith.subf %580, %589 : vector<40x128xf32>
    %591 = arith.mulf %590, %590 : vector<40x128xf32>
    %cst_211 = arith.constant dense<0.000000e+00> : vector<40xf32>
    %592 = vector.multi_reduction <add>, %591, %cst_211 [1] : vector<40x128xf32> to vector<40xf32>
    %593 = vector.shape_cast %592 : vector<40xf32> to vector<40x1xf32>
    %cst_212 = arith.constant 1.280000e+02 : f32
    %594 = vector.broadcast %cst_212 : f32 to vector<40x1xf32>
    %595 = arith.divf %593, %594 : vector<40x1xf32>
    %596 = vector.broadcast %588 : vector<40x1xf32> to vector<40x128xf32>
    %597 = arith.subf %580, %596 : vector<40x128xf32>
    %cst_213 = arith.constant 9.99999974E-6 : f32
    %598 = vector.broadcast %cst_213 : f32 to vector<40x1xf32>
    %599 = arith.addf %595, %598 : vector<40x1xf32>
    %600 = math.rsqrt %599 : vector<40x1xf32>
    %601 = vector.broadcast %600 : vector<40x1xf32> to vector<40x128xf32>
    %602 = arith.mulf %597, %601 : vector<40x128xf32>
    %603 = vector.broadcast %582 : vector<1x128xf32> to vector<40x128xf32>
    %604 = arith.mulf %602, %603 : vector<40x128xf32>
    %605 = vector.broadcast %584 : vector<1x128xf32> to vector<40x128xf32>
    %606 = arith.addf %604, %605 : vector<40x128xf32>
    %c1_214 = arith.constant 1 : index
    %c0_215 = arith.constant 0 : index
    %c0_216 = arith.constant 0 : index
    %607 = vector.load %arg21[%c1_214, %c0_215, %c0_216] : memref<2x128x256xbf16, #tpu.memory_space<vmem>>, vector<1x128x256xbf16>
    %608 = vector.shape_cast %607 : vector<1x128x256xbf16> to vector<128x256xbf16>
    %609 = arith.truncf %606 : vector<40x128xf32> to vector<40x128xbf16>
    %cst_217 = arith.constant dense<0.000000e+00> : vector<40x256xf32>
    %610 = tpu.matmul %609, %608, %cst_217 {dimension_numbers = #tpu.dot_dimension_numbers<[1], [0], [0], [1], [0, 0, 1, 1], [], []>} : vector<40x128xbf16>, vector<128x256xbf16>, vector<40x256xf32> -> vector<40x256xf32>
    %c1_218 = arith.constant 1 : index
    %c0_219 = arith.constant 0 : index
    %c0_220 = arith.constant 0 : index
    %611 = vector.load %arg22[%c1_218, %c0_219, %c0_220] : memref<2x1x256xf32, #tpu.memory_space<vmem>>, vector<1x1x256xf32>
    %612 = vector.shape_cast %611 : vector<1x1x256xf32> to vector<1x256xf32>
    %613 = vector.broadcast %612 : vector<1x256xf32> to vector<40x256xf32>
    %614 = arith.addf %610, %613 : vector<40x256xf32>
    %615 = arith.mulf %614, %614 : vector<40x256xf32>
    %616 = arith.mulf %614, %615 : vector<40x256xf32>
    %cst_221 = arith.constant 4.471500e-02 : f32
    %617 = vector.broadcast %cst_221 : f32 to vector<40x256xf32>
    %618 = arith.mulf %617, %616 : vector<40x256xf32>
    %619 = arith.addf %614, %618 : vector<40x256xf32>
    %cst_222 = arith.constant 0.797884583 : f32
    %620 = vector.broadcast %cst_222 : f32 to vector<40x256xf32>
    %621 = arith.mulf %620, %619 : vector<40x256xf32>
    %622 = math.tanh %621 : vector<40x256xf32>
    %cst_223 = arith.constant 1.000000e+00 : f32
    %623 = vector.broadcast %cst_223 : f32 to vector<40x256xf32>
    %624 = arith.addf %623, %622 : vector<40x256xf32>
    %cst_224 = arith.constant 5.000000e-01 : f32
    %625 = vector.broadcast %cst_224 : f32 to vector<40x256xf32>
    %626 = arith.mulf %625, %624 : vector<40x256xf32>
    %627 = arith.mulf %614, %626 : vector<40x256xf32>
    %c1_225 = arith.constant 1 : index
    %c0_226 = arith.constant 0 : index
    %c0_227 = arith.constant 0 : index
    %628 = vector.load %arg23[%c1_225, %c0_226, %c0_227] : memref<2x256x128xbf16, #tpu.memory_space<vmem>>, vector<1x256x128xbf16>
    %629 = vector.shape_cast %628 : vector<1x256x128xbf16> to vector<256x128xbf16>
    %630 = arith.truncf %627 : vector<40x256xf32> to vector<40x256xbf16>
    %cst_228 = arith.constant dense<0.000000e+00> : vector<40x128xf32>
    %631 = tpu.matmul %630, %629, %cst_228 {dimension_numbers = #tpu.dot_dimension_numbers<[1], [0], [0], [1], [0, 0, 1, 1], [], []>} : vector<40x256xbf16>, vector<256x128xbf16>, vector<40x128xf32> -> vector<40x128xf32>
    %c1_229 = arith.constant 1 : index
    %c0_230 = arith.constant 0 : index
    %c0_231 = arith.constant 0 : index
    %632 = vector.load %arg24[%c1_229, %c0_230, %c0_231] : memref<2x1x128xf32, #tpu.memory_space<vmem>>, vector<1x1x128xf32>
    %633 = vector.shape_cast %632 : vector<1x1x128xf32> to vector<1x128xf32>
    %634 = vector.broadcast %633 : vector<1x128xf32> to vector<40x128xf32>
    %635 = arith.addf %631, %634 : vector<40x128xf32>
    %636 = arith.addf %635, %606 : vector<40x128xf32>
    %c1_232 = arith.constant 1 : index
    %c0_233 = arith.constant 0 : index
    %c0_234 = arith.constant 0 : index
    %637 = vector.load %arg25[%c1_232, %c0_233, %c0_234] : memref<2x1x128xf32, #tpu.memory_space<vmem>>, vector<1x1x128xf32>
    %638 = vector.shape_cast %637 : vector<1x1x128xf32> to vector<1x128xf32>
    %c1_235 = arith.constant 1 : index
    %c0_236 = arith.constant 0 : index
    %c0_237 = arith.constant 0 : index
    %639 = vector.load %arg26[%c1_235, %c0_236, %c0_237] : memref<2x1x128xf32, #tpu.memory_space<vmem>>, vector<1x1x128xf32>
    %640 = vector.shape_cast %639 : vector<1x1x128xf32> to vector<1x128xf32>
    %cst_238 = arith.constant dense<0.000000e+00> : vector<40xf32>
    %641 = vector.multi_reduction <add>, %636, %cst_238 [1] : vector<40x128xf32> to vector<40xf32>
    %642 = vector.shape_cast %641 : vector<40xf32> to vector<40x1xf32>
    %cst_239 = arith.constant 1.280000e+02 : f32
    %643 = vector.broadcast %cst_239 : f32 to vector<40x1xf32>
    %644 = arith.divf %642, %643 : vector<40x1xf32>
    %645 = vector.broadcast %644 : vector<40x1xf32> to vector<40x128xf32>
    %646 = arith.subf %636, %645 : vector<40x128xf32>
    %647 = arith.mulf %646, %646 : vector<40x128xf32>
    %cst_240 = arith.constant dense<0.000000e+00> : vector<40xf32>
    %648 = vector.multi_reduction <add>, %647, %cst_240 [1] : vector<40x128xf32> to vector<40xf32>
    %649 = vector.shape_cast %648 : vector<40xf32> to vector<40x1xf32>
    %cst_241 = arith.constant 1.280000e+02 : f32
    %650 = vector.broadcast %cst_241 : f32 to vector<40x1xf32>
    %651 = arith.divf %649, %650 : vector<40x1xf32>
    %652 = vector.broadcast %644 : vector<40x1xf32> to vector<40x128xf32>
    %653 = arith.subf %636, %652 : vector<40x128xf32>
    %cst_242 = arith.constant 9.99999974E-6 : f32
    %654 = vector.broadcast %cst_242 : f32 to vector<40x1xf32>
    %655 = arith.addf %651, %654 : vector<40x1xf32>
    %656 = math.rsqrt %655 : vector<40x1xf32>
    %657 = vector.broadcast %656 : vector<40x1xf32> to vector<40x128xf32>
    %658 = arith.mulf %653, %657 : vector<40x128xf32>
    %659 = vector.broadcast %638 : vector<1x128xf32> to vector<40x128xf32>
    %660 = arith.mulf %658, %659 : vector<40x128xf32>
    %661 = vector.broadcast %640 : vector<1x128xf32> to vector<40x128xf32>
    %662 = arith.addf %660, %661 : vector<40x128xf32>
    %c0_243 = arith.constant 0 : index
    %c0_244 = arith.constant 0 : index
    %663 = vector.load %arg27[%c0_243, %c0_244] : memref<128x32xbf16, #tpu.memory_space<vmem>>, vector<128x32xbf16>
    %664 = arith.truncf %662 : vector<40x128xf32> to vector<40x128xbf16>
    %cst_245 = arith.constant dense<0.000000e+00> : vector<40x32xf32>
    %665 = tpu.matmul %664, %663, %cst_245 {dimension_numbers = #tpu.dot_dimension_numbers<[1], [0], [0], [1], [0, 0, 1, 1], [], []>} : vector<40x128xbf16>, vector<128x32xbf16>, vector<40x32xf32> -> vector<40x32xf32>
    %c0_246 = arith.constant 0 : index
    %c0_247 = arith.constant 0 : index
    %666 = vector.load %arg28[%c0_246, %c0_247] : memref<1x32xf32, #tpu.memory_space<vmem>>, vector<1x32xf32>
    %667 = vector.broadcast %666 : vector<1x32xf32> to vector<40x32xf32>
    %668 = arith.addf %665, %667 : vector<40x32xf32>
    %cst_248 = arith.constant dense<0xFF800000> : vector<40xf32>
    %669 = vector.multi_reduction <maximumf>, %668, %cst_248 [1] : vector<40x32xf32> to vector<40xf32>
    %670 = vector.shape_cast %669 : vector<40xf32> to vector<40x1xf32>
    %671 = tpu.iota {dimensions = array<i32: 1>} : vector<40x32xi32>
    %672 = vector.broadcast %670 : vector<40x1xf32> to vector<40x32xf32>
    %673 = arith.cmpf oeq, %668, %672 : vector<40x32xf32>
    %c2147483647_i32 = arith.constant 2147483647 : i32
    %674 = vector.broadcast %c2147483647_i32 : i32 to vector<40x32xi32>
    %675 = arith.select %673, %671, %674 : vector<40x32xi1>, vector<40x32xi32>
    %cst_249 = arith.constant dense<2147483647> : vector<40xi32>
    %676 = vector.multi_reduction <minsi>, %675, %cst_249 [1] : vector<40x32xi32> to vector<40xi32>
    %677 = vector.shape_cast %676 : vector<40xi32> to vector<40x1xi32>
    %c0_250 = arith.constant 0 : index
    %c0_251 = arith.constant 0 : index
    %c0_252 = arith.constant 0 : index
    %678 = vector.load %arg30[%c0_250, %c0_251, %c0_252] : memref<1x40x1xi32, #tpu.memory_space<vmem>>, vector<1x40x1xi32>
    %679 = vector.shape_cast %678 : vector<1x40x1xi32> to vector<40x1xi32>
    %680 = vector.shape_cast %677 : vector<40x1xi32> to vector<1x40x1xi32>
    tpu.vector_store %arg30[%c0_250, %c0_251, %c0_252], %680 {strides = array<i32>} : memref<1x40x1xi32, #tpu.memory_space<vmem>>, vector<1x40x1xi32>,
    %c0_253 = arith.constant 0 : index
    %c0_254 = arith.constant 0 : index
    %c0_255 = arith.constant 0 : index
    %681 = vector.load %arg29[%c0_253, %c0_254, %c0_255] : memref<1x40x128xf32, #tpu.memory_space<vmem>>, vector<1x40x128xf32>
    %682 = vector.shape_cast %681 : vector<1x40x128xf32> to vector<40x128xf32>
    %683 = vector.shape_cast %662 : vector<40x128xf32> to vector<1x40x128xf32>
    tpu.vector_store %arg29[%c0_253, %c0_254, %c0_255], %683 {strides = array<i32>} : memref<1x40x128xf32, #tpu.memory_space<vmem>>, vector<1x40x128xf32>,
    return
  }
  func.func @transform_0(%arg0: i32) -> (i32, i32, i32) {
    %c0_i32 = arith.constant 0 : i32
    %c0_i32_0 = arith.constant 0 : i32
    %c0_i32_1 = arith.constant 0 : i32
    return %arg0, %c0_i32, %c0_i32_0 : i32, i32, i32
  }
  func.func @transform_1(%arg0: i32) -> (i32, i32) {
    %c0_i32 = arith.constant 0 : i32
    %c0_i32_0 = arith.constant 0 : i32
    %c0_i32_1 = arith.constant 0 : i32
    return %c0_i32, %c0_i32_0 : i32, i32
  }
  func.func @transform_2(%arg0: i32) -> (i32, i32) {
    %c0_i32 = arith.constant 0 : i32
    %c0_i32_0 = arith.constant 0 : i32
    %c0_i32_1 = arith.constant 0 : i32
    return %c0_i32, %c0_i32_0 : i32, i32
  }
  func.func @transform_3(%arg0: i32) -> (i32, i32) {
    %c0_i32 = arith.constant 0 : i32
    %c0_i32_0 = arith.constant 0 : i32
    %c0_i32_1 = arith.constant 0 : i32
    return %c0_i32, %c0_i32_0 : i32, i32
  }
  func.func @transform_4(%arg0: i32) -> (i32, i32) {
    %c0_i32 = arith.constant 0 : i32
    %c0_i32_0 = arith.constant 0 : i32
    %c0_i32_1 = arith.constant 0 : i32
    return %c0_i32, %c0_i32_0 : i32, i32
  }
  func.func @transform_5(%arg0: i32) -> (i32, i32) {
    %c0_i32 = arith.constant 0 : i32
    %c0_i32_0 = arith.constant 0 : i32
    %c0_i32_1 = arith.constant 0 : i32
    return %c0_i32, %c0_i32_0 : i32, i32
  }
  func.func @transform_6(%arg0: i32) -> (i32, i32) {
    %c0_i32 = arith.constant 0 : i32
    %c0_i32_0 = arith.constant 0 : i32
    %c0_i32_1 = arith.constant 0 : i32
    return %c0_i32, %c0_i32_0 : i32, i32
  }
  func.func @transform_7(%arg0: i32) -> (i32, i32) {
    %c0_i32 = arith.constant 0 : i32
    %c0_i32_0 = arith.constant 0 : i32
    %c0_i32_1 = arith.constant 0 : i32
    return %c0_i32, %c0_i32_0 : i32, i32
  }
  func.func @transform_8(%arg0: i32) -> (i32, i32) {
    %c0_i32 = arith.constant 0 : i32
    %c0_i32_0 = arith.constant 0 : i32
    %c0_i32_1 = arith.constant 0 : i32
    return %c0_i32, %c0_i32_0 : i32, i32
  }
  func.func @transform_9(%arg0: i32) -> (i32, i32) {
    %c0_i32 = arith.constant 0 : i32
    %c0_i32_0 = arith.constant 0 : i32
    %c0_i32_1 = arith.constant 0 : i32
    return %c0_i32, %c0_i32_0 : i32, i32
  }
  func.func @transform_10(%arg0: i32) -> (i32, i32) {
    %c0_i32 = arith.constant 0 : i32
    %c0_i32_0 = arith.constant 0 : i32
    %c0_i32_1 = arith.constant 0 : i32
    return %c0_i32, %c0_i32_0 : i32, i32
  }
  func.func @transform_11(%arg0: i32) -> (i32, i32) {
    %c0_i32 = arith.constant 0 : i32
    %c0_i32_0 = arith.constant 0 : i32
    %c0_i32_1 = arith.constant 0 : i32
    return %c0_i32, %c0_i32_0 : i32, i32
  }
  func.func @transform_12(%arg0: i32) -> (i32, i32) {
    %c0_i32 = arith.constant 0 : i32
    %c0_i32_0 = arith.constant 0 : i32
    %c0_i32_1 = arith.constant 0 : i32
    return %c0_i32, %c0_i32_0 : i32, i32
  }
  func.func @transform_13(%arg0: i32) -> (i32, i32) {
    %c0_i32 = arith.constant 0 : i32
    %c0_i32_0 = arith.constant 0 : i32
    %c0_i32_1 = arith.constant 0 : i32
    return %c0_i32, %c0_i32_0 : i32, i32
  }
  func.func @transform_14(%arg0: i32) -> (i32, i32, i32) {
    %c0_i32 = arith.constant 0 : i32
    %c0_i32_0 = arith.constant 0 : i32
    %c0_i32_1 = arith.constant 0 : i32
    %c0_i32_2 = arith.constant 0 : i32
    return %c0_i32, %c0_i32_0, %c0_i32_1 : i32, i32, i32
  }
  func.func @transform_15(%arg0: i32) -> (i32, i32, i32) {
    %c0_i32 = arith.constant 0 : i32
    %c0_i32_0 = arith.constant 0 : i32
    %c0_i32_1 = arith.constant 0 : i32
    %c0_i32_2 = arith.constant 0 : i32
    return %c0_i32, %c0_i32_0, %c0_i32_1 : i32, i32, i32
  }
  func.func @transform_16(%arg0: i32) -> (i32, i32, i32) {
    %c0_i32 = arith.constant 0 : i32
    %c0_i32_0 = arith.constant 0 : i32
    %c0_i32_1 = arith.constant 0 : i32
    %c0_i32_2 = arith.constant 0 : i32
    return %c0_i32, %c0_i32_0, %c0_i32_1 : i32, i32, i32
  }
  func.func @transform_17(%arg0: i32) -> (i32, i32, i32) {
    %c0_i32 = arith.constant 0 : i32
    %c0_i32_0 = arith.constant 0 : i32
    %c0_i32_1 = arith.constant 0 : i32
    %c0_i32_2 = arith.constant 0 : i32
    return %c0_i32, %c0_i32_0, %c0_i32_1 : i32, i32, i32
  }
  func.func @transform_18(%arg0: i32) -> (i32, i32, i32) {
    %c0_i32 = arith.constant 0 : i32
    %c0_i32_0 = arith.constant 0 : i32
    %c0_i32_1 = arith.constant 0 : i32
    %c0_i32_2 = arith.constant 0 : i32
    return %c0_i32, %c0_i32_0, %c0_i32_1 : i32, i32, i32
  }
  func.func @transform_19(%arg0: i32) -> (i32, i32, i32) {
    %c0_i32 = arith.constant 0 : i32
    %c0_i32_0 = arith.constant 0 : i32
    %c0_i32_1 = arith.constant 0 : i32
    %c0_i32_2 = arith.constant 0 : i32
    return %c0_i32, %c0_i32_0, %c0_i32_1 : i32, i32, i32
  }
  func.func @transform_20(%arg0: i32) -> (i32, i32, i32) {
    %c0_i32 = arith.constant 0 : i32
    %c0_i32_0 = arith.constant 0 : i32
    %c0_i32_1 = arith.constant 0 : i32
    %c0_i32_2 = arith.constant 0 : i32
    return %c0_i32, %c0_i32_0, %c0_i32_1 : i32, i32, i32
  }
  func.func @transform_21(%arg0: i32) -> (i32, i32, i32) {
    %c0_i32 = arith.constant 0 : i32
    %c0_i32_0 = arith.constant 0 : i32
    %c0_i32_1 = arith.constant 0 : i32
    %c0_i32_2 = arith.constant 0 : i32
    return %c0_i32, %c0_i32_0, %c0_i32_1 : i32, i32, i32
  }
  func.func @transform_22(%arg0: i32) -> (i32, i32, i32) {
    %c0_i32 = arith.constant 0 : i32
    %c0_i32_0 = arith.constant 0 : i32
    %c0_i32_1 = arith.constant 0 : i32
    %c0_i32_2 = arith.constant 0 : i32
    return %c0_i32, %c0_i32_0, %c0_i32_1 : i32, i32, i32
  }
  func.func @transform_23(%arg0: i32) -> (i32, i32, i32) {
    %c0_i32 = arith.constant 0 : i32
    %c0_i32_0 = arith.constant 0 : i32
    %c0_i32_1 = arith.constant 0 : i32
    %c0_i32_2 = arith.constant 0 : i32
    return %c0_i32, %c0_i32_0, %c0_i32_1 : i32, i32, i32
  }
  func.func @transform_24(%arg0: i32) -> (i32, i32, i32) {
    %c0_i32 = arith.constant 0 : i32
    %c0_i32_0 = arith.constant 0 : i32
    %c0_i32_1 = arith.constant 0 : i32
    %c0_i32_2 = arith.constant 0 : i32
    return %c0_i32, %c0_i32_0, %c0_i32_1 : i32, i32, i32
  }
  func.func @transform_25(%arg0: i32) -> (i32, i32, i32) {
    %c0_i32 = arith.constant 0 : i32
    %c0_i32_0 = arith.constant 0 : i32
    %c0_i32_1 = arith.constant 0 : i32
    %c0_i32_2 = arith.constant 0 : i32
    return %c0_i32, %c0_i32_0, %c0_i32_1 : i32, i32, i32
  }
  func.func @transform_26(%arg0: i32) -> (i32, i32) {
    %c0_i32 = arith.constant 0 : i32
    %c0_i32_0 = arith.constant 0 : i32
    %c0_i32_1 = arith.constant 0 : i32
    return %c0_i32, %c0_i32_0 : i32, i32
  }
  func.func @transform_27(%arg0: i32) -> (i32, i32) {
    %c0_i32 = arith.constant 0 : i32
    %c0_i32_0 = arith.constant 0 : i32
    %c0_i32_1 = arith.constant 0 : i32
    return %c0_i32, %c0_i32_0 : i32, i32
  }
  func.func @transform_28(%arg0: i32) -> (i32, i32, i32) {
    %c0_i32 = arith.constant 0 : i32
    %c0_i32_0 = arith.constant 0 : i32
    %c0_i32_1 = arith.constant 0 : i32
    return %arg0, %c0_i32, %c0_i32_0 : i32, i32, i32
  }
  func.func @transform_29(%arg0: i32) -> (i32, i32, i32) {
    %c0_i32 = arith.constant 0 : i32
    %c0_i32_0 = arith.constant 0 : i32
    %c0_i32_1 = arith.constant 0 : i32
    return %arg0, %c0_i32, %c0_i32_0 : i32, i32, i32
  }
}

</mosaic_0001>

<bundles_post_ra>
// kernel: wav2vec2_forward.1
= control target key start
LH: loop header
LB: loop body
LE: loop exit
PB: predicated region body
PF: predicated region fallthrough
CT: control target
= control target key end

     0   :  { %s10768_s6 = smov 1   ;;  %s10769_s10 = smov 2   ;;  %s13880_s0 = inlined_call_operand.smem [shape: u32[30], index: -1, kind: input, shape index: {}] }
   0x1   :  { %s10815_s5 = sld [smem:[%s13880_s0]]   ;;  %s10770_s14 = smov 3  }
   0x2   :  { %s10820_s9 = sld [smem:[%s13880_s0 + %s10768_s6]]   ;;  %s10771_s18 = smov 4  }
   0x3   :  { %s10825_s13 = sld [smem:[%s13880_s0 + %s10769_s10]]   ;;  %s10772_s22 = smov 5  }
   0x4   :  { %s10830_s17 = sld [smem:[%s13880_s0 + %s10770_s14]]   ;;  %s10773_s26 = smov 6  }
   0x5   :  { %s10835_s21 = sld [smem:[%s13880_s0 + %s10771_s18]]   ;;  %s10774_s30 = smov 7  }
   0x6   :  { %s10840_s25 = sld [smem:[%s13880_s0 + %s10772_s22]]   ;;  %s10775_s4 = smov 8  }
   0x7   :  { %13910 = sst [smem:[#allocation2_spill]] %s10815_s5  ;;  %s10776_s10 = smov 9  }
   0x8   :  { %s10845_s29 = sld [smem:[%s13880_s0 + %s10773_s26]]   ;;  %s10777_s15 = smov 10  }
   0x9   :  { %s10850_s3 = sld [smem:[%s13880_s0 + %s10774_s30]]   ;;  %s10778_s20 = smov 11  }
   0xa   :  { %s10855_s8 = sld [smem:[%s13880_s0 + %s10775_s4]]   ;;  %s10779_s26 = smov 12  }
   0xb   :  { %s10860_s14 = sld [smem:[%s13880_s0 + %s10776_s10]]   ;;  %s10780_s1 = smov 13  }
   0xc   :  { %s10865_s19 = sld [smem:[%s13880_s0 + %s10777_s15]]   ;;  %s10781_s7 = smov 14  }
   0xd   :  { %s10870_s24 = sld [smem:[%s13880_s0 + %s10778_s20]]   ;;  %s10782_s15 = smov 15  }
   0xe   :  { %s10875_s30 = sld [smem:[%s13880_s0 + %s10779_s26]]   ;;  %s10783_s22 = smov 16  }
   0xf   :  { %13911 = sst [smem:[#allocation3_spill]] %s10850_s3  ;;  %s10784_s28 = smov 17  }
  0x10   :  { %13912 = sst [smem:[#allocation4_spill]] %s10855_s8 }
  0x11   :  { %s10880_s6 = sld [smem:[%s13880_s0 + %s10780_s1]]  }
  0x12   :  { %s10885_s12 = sld [smem:[%s13880_s0 + %s10781_s7]]   ;;  %s10785_s7 = smov 18  }
  0x13   :  { %s10890_s20 = sld [smem:[%s13880_s0 + %s10782_s15]]   ;;  %s10786_s15 = smov 19  }
  0x14   :  { %s10895_s27 = sld [smem:[%s13880_s0 + %s10783_s22]]   ;;  %s10787_s22 = smov 20  }
  0x15   :  { %s10900_s4 = sld [smem:[%s13880_s0 + %s10784_s28]]   ;;  %s10788_s28 = smov 21  }
  0x17   :  { %13913 = sst [smem:[#allocation5_spill]] %s10880_s6 }
  0x18   :  { %s10905_s6 = sld [smem:[%s13880_s0 + %s10785_s7]]   ;;  %s10789_s7 = smov 22  }
  0x19   :  { %13914 = sst [smem:[#allocation6_spill]] %s10890_s20 }
  0x1a   :  { %13915 = sst [smem:[#allocation7_spill]] %s10895_s27 }
  0x1b   :  { %13916 = sst [smem:[#allocation8_spill]] %s10900_s4 }
  0x1c   :  { %s10910_s20 = sld [smem:[%s13880_s0 + %s10786_s15]]   ;;  %s10790_s15 = smov 23  }
  0x1d   :  { %s10915_s27 = sld [smem:[%s13880_s0 + %s10787_s22]]   ;;  %s10791_s22 = smov 24  }
  0x1e   :  { %13917 = sst [smem:[#allocation9_spill]] %s10905_s6 }
  0x1f   :  { %s10920_s4 = sld [smem:[%s13880_s0 + %s10788_s28]]   ;;  %s10792_s28 = smov 25  }
  0x20   :  { %s10925_s6 = sld [smem:[%s13880_s0 + %s10789_s7]]   ;;  %s10793_s7 = smov 26  }
  0x22   :  { %13918 = sst [smem:[#allocation10_spill]] %s10910_s20 }
  0x23   :  { %13919 = sst [smem:[#allocation11_spill]] %s10915_s27 }
  0x24   :  { %s10930_s20 = sld [smem:[%s13880_s0 + %s10790_s15]]   ;;  %s10794_s15 = smov 27  }
  0x25   :  { %13920 = sst [smem:[#allocation12_spill]] %s10920_s4 }
  0x26   :  { %13921 = sst [smem:[#allocation13_spill]] %s10925_s6 }
  0x27   :  { %s10935_s27 = sld [smem:[%s13880_s0 + %s10791_s22]]   ;;  %s10795_s22 = smov 28  }
  0x28   :  { %s10940_s4 = sld [smem:[%s13880_s0 + %s10792_s28]]   ;;  %s10796_s28 = smov 29  }
  0x29   :  { %s10945_s6 = sld [smem:[%s13880_s0 + %s10793_s7]]   ;;  %s10962_s7 = smov 0  }
  0x2a   :  { %13922 = sst [smem:[#allocation14_spill]] %s10930_s20 }
  0x2b   :  { %s10950_s20 = sld [smem:[%s13880_s0 + %s10794_s15]]  }
  0x2d   :  { %13923 = sst [smem:[#allocation15_spill]] %s10935_s27 }
  0x2e   :  { %13924 = sst [smem:[#allocation16_spill]] %s10940_s4 }
  0x2f   :  { %s10955_s27 = sld [smem:[%s13880_s0 + %s10795_s22]]  }
  0x30   :  { %s10960_s4 = sld [smem:[%s13880_s0 + %s10796_s28]]  }
  0x31 LB: > { %s13925_s8 = sld [smem:[#allocation4_spill]]  ;;  %s8376_s10 = sadd.s32 4294967295, %s10766_s7   ;;  %s10766_s7 = sphi %s10962_s7, %s70_s7  }
  0x32   : > { %p8380_p0 = scmp.ge.s32.totalorder %s10766_s7, 1  ;;  %p820_p1 = scmp.lt.s32.totalorder %s10766_s7, 3 }
  0x34   : > { %p821_p2 = pnand %p8380_p0, %p820_p1 }
  0x36   : > { %824 = sbr.rel (%p821_p2) target bundleno = 8676 (0x21e4), region = 132 }
  0x3d   : > { %s13926_s5 = sld [smem:[#allocation2_spill]]  ;;  %v10197_v0 = vld [vmem:[%s10820_s9] sm:$0xff]   ;;  %p901_p3 = scmp.lt.s32.totalorder %s8376_s10, 1  ;;  %vm955_vm0 = vcmask 130048   ;;  %vm13899_vm1 = vcmask 523264   ;;  %v13894_v54 = vmov 0  }
  0x3e   : > { %9260 = vmatprep.subr.bf16.mxu1 %v10197_v0  ;;  %1895 = vmatprep.subr.bf16.mxu0 %v13894_v54  ;;  %vm1706_vm7 = vcmask 261120   ;;  %s13979_s3 = sld [smem:[#allocation3_spill]]  ;;  %s13983_s15 = sld [smem:[#allocation5_spill]] }
  0x3f   : > { %s14008_s10 = smov (!%p901_p3, %s8376_s10), 1  ;;  %9261 = vmatpush3.bf16.msra.mxu1 %v10197_v0  ;;  %v1099_v0 = vlaneseq  ;;  %s13984_s16 = sld [smem:[#allocation6_spill]] }
  0x40   : > { %s10088_s0 = smul.u32 160, %s14008_s10  ;;  %1722 = vmatprep.subr.bf16.mxu1 %v13894_v54  ;;  %s13907_s18 = smov 96  }
  0x41   : > { %s13905_s22 = smov 64   ;;  %s13903_s23 = smov 32  }
  0x42   : > { %s13985_s26 = sld [smem:[#allocation7_spill]]  ;;  %s13989_s28 = sld [smem:[#allocation8_spill]] }
  0x43   : > { %s10975_s11 = scalar_lea.vmem %s13926_s5, %s10088_s0  ;;  %s13991_s1 = sld [smem:[#allocation11_spill]] }
  0x44   : > { %v917_v1 = vld [vmem:[%s10975_s11] sm:$0xff]  ;;  %v918_v2 = vld [vmem:[%s10975_s11 + $0x8] sm:$0xff]  ;;  %v919_v3 = vld [vmem:[%s10975_s11 + $0x10] sm:$0xff]  ;;  %s13992_s2 = sld [smem:[#allocation9_spill]]  ;;  %s13993_s0 = sld [smem:[#allocation10_spill]] }
  0x45   : > { %v939_v4 = vpack.c.bf16 %v918_v2, %v917_v1  ;;  %v920_v5 = vld [vmem:[%s10975_s11 + $0x18] sm:$0xff]  ;;  %v921_v6 = vld [vmem:[%s10975_s11 + $0x20] sm:$0xff]  ;;  %v922_v7 = vld [vmem:[%s10975_s11 + $0x28] sm:$0xff]  ;;  %s14000_s5 = smov 64  }
  0x46   : > { %v940_v8 = vpack.c.bf16 %v920_v5, %v919_v3  ;;  %v941_v9 = vpack.c.bf16 %v922_v7, %v921_v6  ;;  %v923_v10 = vld [vmem:[%s10975_s11 + $0x30] sm:$0xff]  ;;  %v924_v11 = vld [vmem:[%s10975_s11 + $0x38] sm:$0xff]  ;;  %v925_v12 = vld [vmem:[%s10975_s11 + $0x40] sm:$0xff] }
  0x47   : > { %9262 = vmatprep.mubr.msk.bf16.mxu1 %vm955_vm0, %v939_v4  ;;  %v926_v13 = vld [vmem:[%s10975_s11 + $0x48] sm:$0xff]  ;;  %v942_v14 = vpack.c.bf16 %v924_v11, %v923_v10  ;;  %v927_v16 = vld [vmem:[%s10975_s11 + $0x50] sm:$0xff]  ;;  %v928_v17 = vld [vmem:[%s10975_s11 + $0x58] sm:$0xff] }
  0x48   : > { %9263 = vmatmul.mubr.msk.bf16.vlgmr.msra.gmra.mrb[0].mxu1 %vm955_vm0, %v940_v8  ;;  %v943_v15 = vpack.c.bf16 %v926_v13, %v925_v12  ;;  %v929_v18 = vld [vmem:[%s10975_s11 + $0x60] sm:$0xff]  ;;  %v930_v19 = vld [vmem:[%s10975_s11 + $0x68] sm:$0xff]  ;;  %v944_v20 = vpack.c.bf16 %v928_v17, %v927_v16  ;;  %v931_v22 = vld [vmem:[%s10975_s11 + $0x70] sm:$0xff]  ;;  %v11050_v8 = vshrl.u32 %v1099_v0, 7 }
  0x49   : > { %9266 = vmatprep.mubr.msk.bf16.mxu1 %vm955_vm0, %v941_v9  ;;  %v945_v21 = vpack.c.bf16 %v930_v19, %v929_v18  ;;  %v932_v23 = vld [vmem:[%s10975_s11 + $0x78] sm:$0xff]  ;;  %v933_v24 = vld [vmem:[%s10975_s11 + $0x80] sm:$0xff]  ;;  %v934_v25 = vld [vmem:[%s10975_s11 + $0x88] sm:$0xff] }
  0x4a   : > { %v946_v26 = vpack.c.bf16 %v932_v23, %v931_v22  ;;  %v947_v27 = vpack.c.bf16 %v934_v25, %v933_v24  ;;  %v935_v28 = vld [vmem:[%s10975_s11 + $0x90] sm:$0xff]  ;;  %v936_v29 = vld [vmem:[%s10975_s11 + $0x98] sm:$0xff]  ;;  %s13994_s11 = sld [smem:[#allocation13_spill]] }
  0x4b   : > { %v948_v30 = vpack.c.bf16 %v936_v29, %v935_v28 }
  0x50   : > { %9267 = vmatmul.mubr.msk.bf16.gmra.mrb[4].mxu1 %vm955_vm0, %v942_v14  ;;  %v11055_v14 = vadd.s32 152, %v11050_v8 }
  0x51   : > { %9270 = vmatprep.mubr.msk.bf16.mxu1 %vm955_vm0, %v943_v15 }
  0x52   : > { %vm1139_vm2 = vcmp.lt.s32.totalorder %v11055_v14, 159 }
  0x58   : > { %9271 = vmatmul.mubr.msk.bf16.gmra.mrb[8].mxu1 %vm955_vm0, %v944_v20 }
  0x59   : > { %9274 = vmatprep.mubr.msk.bf16.mxu1 %vm955_vm0, %v945_v21 }
  0x60   : > { %9275 = vmatmul.mubr.msk.bf16.gmra.mrb[12].mxu1 %vm955_vm0, %v946_v26 }
  0x61   : > { %9278 = vmatprep.mubr.msk.bf16.mxu1 %vm955_vm0, %v947_v27 }
  0x68   : > { %9279 = vmatmul.mubr.msk.bf16.gmra.mrb[16].mxu1 %vm955_vm0, %v948_v30 }
 0x11b   : > { %v11007_v31 = vpop.f32.mrb[0].mxu1 }
 0x11c   : > { %v11009_v32 = vpop.f32.mrb[1].mxu1  ;;  %v1164_v38 = vsel %vm13899_vm1, %v11007_v31, 0.0 }
 0x11d   : > { %v11011_v33 = vpop.f32.mrb[2].mxu1  ;;  %v1161_v35 = vsel %vm13899_vm1, %v11009_v32, 0.0 }
 0x11e   : > { %v11013_v34 = vpop.f32.mrb[3].mxu1  ;;  %v1166_v40 = vsel %vm13899_vm1, %v11011_v33, 0.0 }
 0x11f   : > { %v1162_v36 = vsel %vm13899_vm1, %v11013_v34, 0.0 }
 0x120   : > { %v1163_v37 = vadd.f32 %v1162_v36, %v1161_v35 }
 0x122   : > { %v1165_v39 = vadd.f32 %v1164_v38, %v1163_v37 }
 0x123   : > { %v11023_v41 = vpop.f32.mrb[4].mxu1 }
 0x124   : > { %v11025_v42 = vpop.f32.mrb[5].mxu1  ;;  %v1167_v43 = vadd.f32 %v1166_v40, %v1165_v39  ;;  %v1172_v50 = vsel %vm13899_vm1, %v11023_v41, 0.0 }
 0x125   : > { %v1168_v44 = vsel %vm13899_vm1, %v11025_v42, 0.0  ;;  %v11029_v45 = vpop.f32.mrb[6].mxu1 }
 0x126   : > { %v1169_v46 = vadd.f32 %v1168_v44, %v1167_v43  ;;  %v11031_v47 = vpop.f32.mrb[7].mxu1  ;;  %v1174_v53 = vsel %vm13899_vm1, %v11029_v45, 0.0 }
 0x127   : > { %v1170_v48 = vsel %vm13899_vm1, %v11031_v47, 0.0 }
 0x128   : > { %v1171_v49 = vadd.f32 %v1170_v48, %v1169_v46 }
 0x12a   : > { %v1173_v51 = vadd.f32 %v1172_v50, %v1171_v49 }
 0x12b   : > { %v11037_v52 = vpop.f32.mrb[8].mxu1 }
 0x12c   : > { %v1052_v55 = vpop.f32.mrb[9].mxu1  ;;  %v1175_v56 = vadd.f32 %v1174_v53, %v1173_v51  ;;  %v1180_v63 = vsel %vm13899_vm1, %v11037_v52, 0.0 }
 0x12d   : > { %v1176_v57 = vsel %vm13899_vm1, %v1052_v55, 0.0  ;;  %v9273_v58 = vpop.f32.mrb[10].mxu1 }
 0x12e   : > { %v1177_v59 = vadd.f32 %v1176_v57, %v1175_v56  ;;  %v1055_v60 = vpop.f32.mrb[11].mxu1  ;;  %v1182_v2 = vsel %vm13899_vm1, %v9273_v58, 0.0 }
 0x12f   : > { %v1178_v61 = vsel %vm13899_vm1, %v1055_v60, 0.0 }
 0x130   : > { %v1179_v62 = vadd.f32 %v1178_v61, %v1177_v59 }
 0x132   : > { %v1181_v1 = vadd.f32 %v1180_v63, %v1179_v62 }
 0x133   : > { %v9276_v3 = vpop.f32.mrb[12].mxu1 }
 0x134   : > { %v1068_v4 = vpop.f32.mrb[13].mxu1  ;;  %v1183_v5 = vadd.f32 %v1182_v2, %v1181_v1  ;;  %v1188_v13 = vsel %vm13899_vm1, %v9276_v3, 0.0 }
 0x135   : > { %v1184_v6 = vsel %vm13899_vm1, %v1068_v4, 0.0  ;;  %v9277_v7 = vpop.f32.mrb[14].mxu1 }
 0x136   : > { %v1185_v9 = vadd.f32 %v1184_v6, %v1183_v5  ;;  %v1071_v10 = vpop.f32.mrb[15].mxu1  ;;  %v1190_v16 = vsel %vm13899_vm1, %v9277_v7, 0.0 }
 0x137   : > { %v1186_v11 = vsel %vm13899_vm1, %v1071_v10, 0.0 }
 0x138   : > { %v1187_v12 = vadd.f32 %v1186_v11, %v1185_v9 }
 0x13a   : > { %v1189_v15 = vadd.f32 %v1188_v13, %v1187_v12 }
 0x13b   : > { %v9280_v17 = vpop.f32.mrb[16].mxu1 }
 0x13c   : > { %v1084_v18 = vpop.f32.mrb[17].mxu1  ;;  %v1191_v19 = vadd.f32 %v1190_v16, %v1189_v15  ;;  %v1196_v27 = vsel %vm13899_vm1, %v9280_v17, 0.0 }
 0x13d   : > { %v1192_v20 = vsel %vm13899_vm1, %v1084_v18, 0.0  ;;  %v11059_v21 = vpop.f32.mrb[18].mxu1 }
 0x13e   : > { %v1193_v22 = vadd.f32 %v1192_v20, %v1191_v19  ;;  %v1087_v23 = vpop.f32.mrb[19].mxu1  ;;  %v1159_v25 = vsel %vm1139_vm2, %v11059_v21, 0.0 }
 0x13f   : > { %v1194_v24 = vsel %vm13899_vm1, %v1087_v23, 0.0  ;;  %v1198_v29 = vsel %vm13899_vm1, %v1159_v25, 0.0 }
 0x140   : > { %v1195_v26 = vadd.f32 %v1194_v24, %v1193_v22 }
 0x142   : > { %v1197_v28 = vadd.f32 %v1196_v27, %v1195_v26  ;;  %v11170_v27 = vand.u32 127, %v1099_v0 }
 0x144   : > { %v1199_v30 = vadd.f32 %v1198_v29, %v1197_v28 }
 0x146   : > { %v1200_v35 = vrot.slane %v1199_v30, 4 }
 0x148   : > { %v1201_v36 = vadd.f32 %v1200_v35, %v1199_v30 }
 0x14a   : > { %v1202_v37 = vrot.slane %v1201_v36, 2 }
 0x14c   : > { %v1203_v38 = vadd.f32 %v1202_v37, %v1201_v36 }
 0x14e   : > { %v1204_v39 = vrot.slane %v1203_v38, 1 }
 0x150   : > { %v1205_v40 = vadd.f32 %v1204_v39, %v1203_v38  ;;  %v1101_v39 = vadd.s32 8, %v11050_v8 }
 0x152   : > { %v11068_v43 = vmul.f32 0.006289308, %v1205_v40 }
 0x154   : > { %v11072_v44 = vsub.f32 %v11009_v32, %v11068_v43  ;;  %v11076_v46 = vsub.f32 %v11013_v34, %v11068_v43  ;;  %v11080_v48 = vsub.f32 %v11007_v31, %v11068_v43  ;;  %v11084_v49 = vsub.f32 %v11011_v33, %v11068_v43 }
 0x155   : > { %v11088_v50 = vsub.f32 %v11025_v42, %v11068_v43  ;;  %v11092_v32 = vsub.f32 %v11031_v47, %v11068_v43  ;;  %v11096_v34 = vsub.f32 %v11023_v41, %v11068_v43  ;;  %v11100_v31 = vsub.f32 %v11029_v45, %v11068_v43 }
 0x156   : > { %v11103_v51 = vsub.f32 %v1052_v55, %v11068_v43  ;;  %v11106_v33 = vsub.f32 %v1055_v60, %v11068_v43  ;;  %v11110_v42 = vsub.f32 %v11037_v52, %v11068_v43  ;;  %v11113_v47 = vsub.f32 %v9273_v58, %v11068_v43 }
 0x157   : > { %v11116_v41 = vsub.f32 %v1068_v4, %v11068_v43  ;;  %v11119_v53 = vsub.f32 %v1071_v10, %v11068_v43  ;;  %v11122_v45 = vsub.f32 %v9276_v3, %v11068_v43  ;;  %v11125_v55 = vsub.f32 %v9277_v7, %v11068_v43 }
 0x158   : > { %v11128_v56 = vsub.f32 %v1084_v18, %v11068_v43  ;;  %v11131_v52 = vsub.f32 %v1087_v23, %v11068_v43  ;;  %v11134_v57 = vsub.f32 %v9280_v17, %v11068_v43  ;;  %v1226_v58 = vsub.f32 %v11059_v21, %v11068_v43 }
 0x159   : > { %v1247_v59 = vmul.f32 %v11072_v44, %v11072_v44  ;;  %v1248_v60 = vmul.f32 %v11076_v46, %v11076_v46  ;;  %v1249_v61 = vmul.f32 %v11080_v48, %v11080_v48  ;;  %v1250_v62 = vmul.f32 %v11084_v49, %v11084_v49 }
 0x15a   : > { %v1251_v3 = vmul.f32 %v11088_v50, %v11088_v50  ;;  %v1252_v6 = vmul.f32 %v11092_v32, %v11092_v32  ;;  %v1253_v10 = vmul.f32 %v11096_v34, %v11096_v34  ;;  %v1254_v13 = vmul.f32 %v11100_v31, %v11100_v31 }
 0x15b   : > { %v1267_v63 = vsel %vm13899_vm1, %v1247_v59, 0.0  ;;  %v1268_v1 = vsel %vm13899_vm1, %v1248_v60, 0.0  ;;  %v1270_v4 = vsel %vm13899_vm1, %v1249_v61, 0.0  ;;  %v1272_v7 = vsel %vm13899_vm1, %v1250_v62, 0.0 }
 0x15c   : > { %v1269_v2 = vadd.f32 %v1268_v1, %v1267_v63  ;;  %v1274_v11 = vsel %vm13899_vm1, %v1251_v3, 0.0  ;;  %v1276_v15 = vsel %vm13899_vm1, %v1252_v6, 0.0  ;;  %v1255_v17 = vmul.f32 %v11103_v51, %v11103_v51 }
 0x15d   : > { %v1278_v18 = vsel %vm13899_vm1, %v1253_v10, 0.0  ;;  %v1256_v20 = vmul.f32 %v11106_v33, %v11106_v33  ;;  %v1280_v22 = vsel %vm13899_vm1, %v1254_v13, 0.0  ;;  %v1257_v24 = vmul.f32 %v11110_v42, %v11110_v42 }
 0x15e   : > { %v1271_v5 = vadd.f32 %v1270_v4, %v1269_v2  ;;  %v1282_v25 = vsel %vm13899_vm1, %v1255_v17, 0.0  ;;  %v1258_v28 = vmul.f32 %v11113_v47, %v11113_v47  ;;  %v1259_v35 = vmul.f32 %v11116_v41, %v11116_v41 }
 0x15f   : > { %v1284_v29 = vsel %vm13899_vm1, %v1256_v20, 0.0  ;;  %v1286_v36 = vsel %vm13899_vm1, %v1257_v24, 0.0  ;;  %v1260_v37 = vmul.f32 %v11119_v53, %v11119_v53  ;;  %v1261_v0 = vmul.f32 %v11122_v45, %v11122_v45 }
 0x160   : > { %v1273_v9 = vadd.f32 %v1272_v7, %v1271_v5  ;;  %v1288_v40 = vsel %vm13899_vm1, %v1258_v28, 0.0  ;;  %v11185_v59 = vadd.s32 128, %v11170_v27  ;;  %v11188_v60 = vmul.u32 2, %v11050_v8 }
 0x161   : > { %v11190_v62 = vmul.u32 2, %v1101_v39  ;;  %v1290_v63 = vsel %vm13899_vm1, %v1259_v35, 0.0  ;;  %v1262_v2 = vmul.f32 %v11125_v55, %v11125_v55  ;;  %v1263_v3 = vmul.f32 %v11128_v56, %v11128_v56 }
 0x162   : > { %v1275_v12 = vadd.f32 %v1274_v11, %v1273_v9  ;;  %v1800_v1 = vadd.s32 1, %v11188_v60  ;;  %v1292_v6 = vsel %vm13899_vm1, %v1260_v37, 0.0  ;;  %v1294_v7 = vsel %vm13899_vm1, %v1261_v0, 0.0 }
 0x163   : > { %v1801_v5 = vadd.s32 1, %v11190_v62  ;;  %v13892_v10 = vmov 0.0   ;;  %v1102_v20 = vadd.s32 16, %v11050_v8  ;;  %v1103_v24 = vadd.s32 24, %v11050_v8 }
 0x164   : > { %v1277_v16 = vadd.f32 %v1276_v15, %v1275_v12  ;;  %vm1811_vm3 = vcmp.eq.s32.totalorder %v11185_v59, %v1800_v1  ;;  %vm1810_vm4 = vcmp.eq.s32.totalorder %v11170_v27, %v1800_v1  ;;  %vm1627_vm11 = vcmp.eq.s32.totalorder %v11185_v59, %v11188_v60 }
 0x165   : > { %vm1813_vm5 = vcmp.eq.s32.totalorder %v11185_v59, %v1801_v5  ;;  %v8436_v11 = vsel %vm1811_vm3, 1.0, %v13892_v10  ;;  %vm1812_vm6 = vcmp.eq.s32.totalorder %v11170_v27, %v1801_v5  ;;  %v11208_v13 = vsel %vm1810_vm4, 1.0, %v13892_v10 }
 0x166   : > { %v1279_v19 = vadd.f32 %v1278_v18, %v1277_v16  ;;  %v8438_v12 = vsel %vm1813_vm5, 1.0, %v13892_v10  ;;  %13927 = vst [vmem:[#allocation17_spill] sm:$0xff] %v11208_v13  ;;  %v11211_v15 = vsel %vm1812_vm6, 1.0, %v13892_v10  ;;  %vm11213_vm8 = vmpackc.low %vm1812_vm6, %vm1810_vm4  ;;  %v11230_v28 = vmul.u32 2, %v1102_v20 }
 0x167   : > { %v1871_v18 = vpack.c.bf16 %v8438_v12, %v8436_v11  ;;  %v11235_v35 = vmul.u32 2, %v1103_v24  ;;  %vm1629_vm12 = vcmp.eq.s32.totalorder %v11185_v59, %v11190_v62  ;;  %vm1626_vm13 = vcmp.eq.s32.totalorder %v11170_v27, %v11188_v60 }
 0x168   : > { %v1281_v23 = vadd.f32 %v1280_v22, %v1279_v19  ;;  %v1264_v22 = vmul.f32 %v11131_v52, %v11131_v52  ;;  %v11238_v37 = vadd.s32 1, %v11230_v28  ;;  %vm1628_vm14 = vcmp.eq.s32.totalorder %v11170_v27, %v11190_v62 }
 0x169   : > { %8458 = vmatprep.mubr.msk.bf16.mxu0 %vm1706_vm7, %v1871_v18  ;;  %v8400_v18 = vsel %vm1629_vm12, 1.0, %v13892_v10  ;;  %v11278_v20 = vsel %vm1626_vm13, 1.0, %v13892_v10  ;;  %vm1630_vm15 = vcmp.eq.s32.totalorder %v11170_v27, %v11230_v28  ;;  %vm1632_vm0 = vcmp.eq.s32.totalorder %v11170_v27, %v11235_v35 }
 0x16a   : > { %v1283_v26 = vadd.f32 %v1282_v25, %v1281_v23  ;;  %v1296_v23 = vsel %vm13899_vm1, %v1262_v2, 0.0  ;;  %v1246_v25 = vsel %vm1139_vm2, %v1226_v58, 0.0  ;;  %v1300_v43 = vsel %vm13899_vm1, %v1264_v22, 0.0 }
 0x16b   : > { %v1266_v21 = vmul.f32 %v1246_v25, %v1246_v25  ;;  %v11242_v58 = vadd.s32 1, %v11235_v35  ;;  %vm1814_vm9 = vcmp.eq.s32.totalorder %v11170_v27, %v11238_v37 }
 0x16c   : > { %v1285_v30 = vadd.f32 %v1284_v29, %v1283_v26  ;;  %v1265_v29 = vmul.f32 %v11134_v57, %v11134_v57  ;;  %v11253_v0 = vsel %vm1814_vm9, 1.0, %v13892_v10 }
 0x16d   : > { %vm1816_vm10 = vcmp.eq.s32.totalorder %v11170_v27, %v11242_v58  ;;  %13930 = vst [vmem:[#allocation18_spill] sm:$0xff] %v11253_v0  ;;  %vm1817_vm12 = vcmp.eq.s32.totalorder %v11185_v59, %v11242_v58 }
 0x16e   : > { %v1287_v38 = vadd.f32 %v1286_v36, %v1285_v30  ;;  %v1298_v30 = vsel %vm13899_vm1, %v1263_v3, 0.0  ;;  %v1302_v39 = vsel %vm13899_vm1, %v1265_v29, 0.0  ;;  %v11303_v29 = vsel %vm1632_vm0, 1.0, %v13892_v10 }
 0x170   : > { %v1289_v61 = vadd.f32 %v1288_v40, %v1287_v38 }
 0x172   : > { %v1291_v4 = vadd.f32 %v1290_v63, %v1289_v61  ;;  %v11259_v61 = vsel %vm1816_vm10, 1.0, %v13892_v10  ;;  %v1304_v63 = vsel %vm13899_vm1, %v1266_v21, 0.0  ;;  %v11310_v21 = vld [vmem:[%s10825_s13] ss:$0 sm:$0xff]  ;;  %vm1631_vm1 = vcmp.eq.s32.totalorder %v11185_v59, %v11230_v28 }
 0x173   : > { %13931 = vst [vmem:[#allocation19_spill] sm:$0xff] %v11259_v61 }
 0x174   : > { %v1293_v9 = vadd.f32 %v1292_v6, %v1291_v4 }
 0x176   : > { %v1295_v17 = vadd.f32 %v1294_v7, %v1293_v9 }
 0x178   : > { %v1297_v26 = vadd.f32 %v1296_v23, %v1295_v17  ;;  %v8398_v17 = vsel %vm1627_vm11, 1.0, %v13892_v10  ;;  %v11284_v23 = vsel %vm1628_vm14, 1.0, %v13892_v10  ;;  %vm1815_vm11 = vcmp.eq.s32.totalorder %v11185_v59, %v11238_v37 }
 0x179   : > { %v1687_v22 = vpack.c.bf16 %v8400_v18, %v8398_v17 }
 0x17a   : > { %v1299_v36 = vadd.f32 %v1298_v30, %v1297_v26  ;;  %v11297_v26 = vsel %vm1630_vm15, 1.0, %v13892_v10 }
 0x17b   : > { %8420 = vmatprep.mubr.msk.bf16.mxu1 %vm1706_vm7, %v1687_v22 }
 0x17c   : > { %v1301_v38 = vadd.f32 %v1300_v43, %v1299_v36 }
 0x17e   : > { %v1303_v40 = vadd.f32 %v1302_v39, %v1301_v38 }
 0x180   : > { %v1305_v2 = vadd.f32 %v1304_v63, %v1303_v40 }
 0x182   : > { %v1306_v3 = vrot.slane %v1305_v2, 4 }
 0x184   : > { %v1307_v4 = vadd.f32 %v1306_v3, %v1305_v2  ;;  %v11328_v3 = vld [vmem:[%s10830_s17] ss:$0 sm:$0xff] }
 0x186   : > { %v1308_v5 = vrot.slane %v1307_v4, 2 }
 0x188   : > { %v1309_v6 = vadd.f32 %v1308_v5, %v1307_v4 }
 0x18a   : > { %v1310_v7 = vrot.slane %v1309_v6, 1 }
 0x18c   : > { %v1311_v9 = vadd.f32 %v1310_v7, %v1309_v6 }
 0x18e   : > { %v1312_v11 = vmul.f32 0.006289308, %v1311_v9 }
 0x190   : > { %v1313_v12 = vadd.f32 1e-05, %v1312_v11 }
 0x192   : > { %10418 = vrsqrt.f32 %v1313_v12 }
 0x19c   : > { %v11307_v36 = vpop.eup %10418 }
 0x19d   : > { %v11314_v43 = vmul.f32 %v11307_v36, %v11122_v45  ;;  %v11318_v38 = vmul.f32 %v11307_v36, %v11125_v55  ;;  %v1331_v39 = vmul.f32 %v11307_v36, %v11128_v56  ;;  %v1332_v40 = vmul.f32 %v11307_v36, %v11131_v52 }
 0x19e   : > { %v1333_v63 = vmul.f32 %v11307_v36, %v11134_v57  ;;  %v1334_v2 = vmul.f32 %v11307_v36, %v1246_v25  ;;  %v1315_v45 = vmul.f32 %v11307_v36, %v11072_v44  ;;  %v1316_v55 = vmul.f32 %v11307_v36, %v11076_v46 }
 0x19f   : > { %v11335_v4 = vmul.f32 %v11310_v21, %v1331_v39  ;;  %v1359_v56 = vmul.f32 %v11310_v21, %v1332_v40  ;;  %v1317_v52 = vmul.f32 %v11307_v36, %v11080_v48  ;;  %v1318_v57 = vmul.f32 %v11307_v36, %v11084_v49 }
 0x1a0   : > { %v1360_v25 = vmul.f32 %v11310_v21, %v1333_v63  ;;  %v1361_v5 = vmul.f32 %v11310_v21, %v1334_v2  ;;  %v1342_v44 = vmul.f32 %v11310_v21, %v1315_v45  ;;  %v1343_v6 = vmul.f32 %v11310_v21, %v1316_v55 }
 0x1a1   : > { %v11347_v46 = vadd.f32 %v11328_v3, %v1359_v56  ;;  %v1344_v7 = vmul.f32 %v11310_v21, %v1317_v52  ;;  %v1345_v9 = vmul.f32 %v11310_v21, %v1318_v57  ;;  %v1319_v48 = vmul.f32 %v11307_v36, %v11088_v50 }
 0x1a2   : > { %v11354_v49 = vadd.f32 %v11328_v3, %v1360_v25  ;;  %v11357_v11 = vadd.f32 %v11328_v3, %v1361_v5  ;;  %v11360_v12 = vadd.f32 %v11328_v3, %v1342_v44  ;;  %v11363_v17 = vadd.f32 %v11328_v3, %v1343_v6 }
 0x1a3   : > { %v1406_v18 = vmul.f32 %v11347_v46, %v11347_v46  ;;  %v11368_v22 = vadd.f32 %v11328_v3, %v1344_v7  ;;  %v11371_v50 = vadd.f32 %v11328_v3, %v1345_v9  ;;  %v1320_v39 = vmul.f32 %v11307_v36, %v11092_v32 }
 0x1a4   : > { %v1389_v40 = vmul.f32 %v11360_v12, %v11360_v12  ;;  %v1390_v63 = vmul.f32 %v11363_v17, %v11363_v17  ;;  %v1346_v2 = vmul.f32 %v11310_v21, %v1319_v48  ;;  %v1321_v45 = vmul.f32 %v11307_v36, %v11096_v34 }
 0x1a5   : > { %v1426_v55 = vmul.f32 %v1406_v18, %v11347_v46  ;;  %v1391_v56 = vmul.f32 %v11368_v22, %v11368_v22  ;;  %v1392_v52 = vmul.f32 %v11371_v50, %v11371_v50  ;;  %v1347_v32 = vmul.f32 %v11310_v21, %v1320_v39 }
 0x1a6   : > { %v1409_v57 = vmul.f32 %v1389_v40, %v11360_v12  ;;  %v1410_v25 = vmul.f32 %v1390_v63, %v11363_v17  ;;  %v11391_v5 = vadd.f32 %v11328_v3, %v1346_v2  ;;  %v1322_v34 = vmul.f32 %v11307_v36, %v11100_v31 }
 0x1a7   : > { %v11395_v44 = vmul.f32 0.044715, %v1426_v55  ;;  %v1411_v6 = vmul.f32 %v1391_v56, %v11368_v22  ;;  %v1412_v7 = vmul.f32 %v1392_v52, %v11371_v50  ;;  %v11400_v9 = vadd.f32 %v11328_v3, %v1347_v32 }
 0x1a8   : > { %v1429_v48 = vmul.f32 0.044715, %v1409_v57  ;;  %v1430_v18 = vmul.f32 0.044715, %v1410_v25  ;;  %v1393_v39 = vmul.f32 %v11391_v5, %v11391_v5  ;;  %v1348_v40 = vmul.f32 %v11310_v21, %v1321_v45 }
 0x1a9   : > { %v1431_v63 = vmul.f32 0.044715, %v1411_v6  ;;  %v1432_v2 = vmul.f32 0.044715, %v1412_v7  ;;  %v1394_v31 = vmul.f32 %v11400_v9, %v11400_v9  ;;  %v1349_v55 = vmul.f32 %v11310_v21, %v1322_v34 }
 0x1aa   : > { %v1449_v56 = vadd.f32 %v1429_v48, %v11360_v12  ;;  %v1450_v52 = vadd.f32 %v1430_v18, %v11363_v17  ;;  %v1413_v32 = vmul.f32 %v1393_v39, %v11391_v5  ;;  %v11412_v57 = vadd.f32 %v11328_v3, %v1348_v40 }
 0x1ab   : > { %v1451_v25 = vadd.f32 %v1431_v63, %v11368_v22  ;;  %v1452_v45 = vadd.f32 %v1432_v2, %v11371_v50  ;;  %v1414_v6 = vmul.f32 %v1394_v31, %v11400_v9  ;;  %v11418_v7 = vadd.f32 %v11328_v3, %v1349_v55 }
 0x1ac   : > { %v1469_v1 = vmul.f32 0.7978846, %v1449_v56  ;;  %v1470_v34 = vmul.f32 0.7978846, %v1450_v52  ;;  %v1433_v19 = vmul.f32 0.044715, %v1413_v32  ;;  %v1395_v48 = vmul.f32 %v11412_v57, %v11412_v57 }
 0x1ad   : > { %v1471_v18 = vmul.f32 0.7978846, %v1451_v25  ;;  %v1472_v39 = vmul.f32 0.7978846, %v1452_v45  ;;  %v1434_v30 = vmul.f32 0.044715, %v1414_v6  ;;  %v1396_v40 = vmul.f32 %v11418_v7, %v11418_v7 }
 0x1ae   : > { %10420 = vtanh.f32 %v1469_v1  ;;  %v1453_v63 = vadd.f32 %v1433_v19, %v11391_v5  ;;  %v1415_v2 = vmul.f32 %v1395_v48, %v11412_v57  ;;  %v1323_v31 = vmul.f32 %v11307_v36, %v11103_v51 }
 0x1af   : > { %10422 = vtanh.f32 %v1470_v34  ;;  %v1454_v55 = vadd.f32 %v1434_v30, %v11400_v9  ;;  %v1416_v56 = vmul.f32 %v1396_v40, %v11418_v7  ;;  %v1324_v52 = vmul.f32 %v11307_v36, %v11106_v33 }
 0x1b0   : > { %10424 = vtanh.f32 %v1471_v18  ;;  %v1473_v32 = vmul.f32 0.7978846, %v1453_v63  ;;  %v1435_v25 = vmul.f32 0.044715, %v1415_v2  ;;  %v1350_v1 = vmul.f32 %v11310_v21, %v1323_v31 }
 0x1b1   : > { %10426 = vtanh.f32 %v1472_v39  ;;  %v1474_v19 = vmul.f32 0.7978846, %v1454_v55  ;;  %v1436_v45 = vmul.f32 0.044715, %v1416_v56  ;;  %v1351_v6 = vmul.f32 %v11310_v21, %v1324_v52 }
 0x1b2   : > { %10428 = vtanh.f32 %v1473_v32  ;;  %v1455_v51 = vadd.f32 %v1435_v25, %v11412_v57  ;;  %v11436_v30 = vadd.f32 %v11328_v3, %v1350_v1  ;;  %v1325_v34 = vmul.f32 %v11307_v36, %v11110_v42 }
 0x1b3   : > { %10430 = vtanh.f32 %v1474_v19  ;;  %v1456_v33 = vadd.f32 %v1436_v45, %v11418_v7  ;;  %v11442_v48 = vadd.f32 %v11328_v3, %v1351_v6  ;;  %v1326_v18 = vmul.f32 %v11307_v36, %v11113_v47 }
 0x1b4   : > { %v1475_v39 = vmul.f32 0.7978846, %v1455_v51  ;;  %v1397_v40 = vmul.f32 %v11436_v30, %v11436_v30  ;;  %v1352_v63 = vmul.f32 %v11310_v21, %v1325_v34  ;;  %v1327_v2 = vmul.f32 %v11307_v36, %v11116_v41 }
 0x1b5   : > { %v1476_v31 = vmul.f32 0.7978846, %v1456_v33  ;;  %v1398_v42 = vmul.f32 %v11442_v48, %v11442_v48  ;;  %v1353_v55 = vmul.f32 %v11310_v21, %v1326_v18  ;;  %v1328_v56 = vmul.f32 %v11307_v36, %v11119_v53 }
 0x1b6   : > { %10432 = vtanh.f32 %v1475_v39  ;;  %v1417_v47 = vmul.f32 %v1397_v40, %v11436_v30  ;;  %v11458_v52 = vadd.f32 %v11328_v3, %v1352_v63  ;;  %v1354_v32 = vmul.f32 %v11310_v21, %v1327_v2 }
 0x1b7   : > { %10434 = vtanh.f32 %v1476_v31  ;;  %v1418_v41 = vmul.f32 %v1398_v42, %v11442_v48  ;;  %v11463_v25 = vadd.f32 %v11328_v3, %v1353_v55  ;;  %v1355_v1 = vmul.f32 %v11310_v21, %v1328_v56 }
 0x1b8   : > { %v10421_v19 = vpop.eup %10420  ;;  %v1437_v45 = vmul.f32 0.044715, %v1417_v47  ;;  %v1399_v53 = vmul.f32 %v11458_v52, %v11458_v52  ;;  %v11469_v36 = vadd.f32 %v11328_v3, %v1354_v32  ;;  %v11473_v6 = vmul.f32 %v11310_v21, %v11314_v43 }
 0x1b9   : > { %v10423_v51 = vpop.eup %10422  ;;  %v1509_v34 = vadd.f32 1.0, %v10421_v19  ;;  %v1438_v33 = vmul.f32 0.044715, %v1418_v41  ;;  %v1400_v18 = vmul.f32 %v11463_v25, %v11463_v25  ;;  %v11478_v39 = vadd.f32 %v11328_v3, %v1355_v1 }
 0x1ba   : > { %v10425_v40 = vpop.eup %10424  ;;  %v1510_v63 = vadd.f32 1.0, %v10423_v51  ;;  %v1457_v2 = vadd.f32 %v1437_v45, %v11436_v30  ;;  %v1419_v31 = vmul.f32 %v1399_v53, %v11458_v52  ;;  %v1401_v42 = vmul.f32 %v11469_v36, %v11469_v36 }
 0x1bb   : > { %v10427_v43 = vpop.eup %10426  ;;  %v1529_v55 = vmul.f32 0.5, %v1509_v34  ;;  %v1511_v56 = vadd.f32 1.0, %v10425_v40  ;;  %v1458_v47 = vadd.f32 %v1438_v33, %v11442_v48  ;;  %v1420_v32 = vmul.f32 %v1400_v18, %v11463_v25 }
 0x1bc   : > { %v10429_v41 = vpop.eup %10428  ;;  %v1530_v19 = vmul.f32 0.5, %v1510_v63  ;;  %v1512_v1 = vadd.f32 1.0, %v10427_v43  ;;  %v1477_v24 = vmul.f32 0.7978846, %v1457_v2  ;;  %v1439_v10 = vmul.f32 0.044715, %v1419_v31 }
 0x1bd   : > { %v10431_v51 = vpop.eup %10430  ;;  %v1549_v45 = vmul.f32 %v1529_v55, %v11360_v12  ;;  %v1531_v54 = vmul.f32 0.5, %v1511_v56  ;;  %v1513_v53 = vadd.f32 1.0, %v10429_v41  ;;  %v1478_v0 = vmul.f32 0.7978846, %v1458_v47 }
 0x1be   : > { %v1550_v61 = vmul.f32 %v1530_v19, %v11363_v17  ;;  %v1532_v13 = vmul.f32 0.5, %v1512_v1  ;;  %v1514_v34 = vadd.f32 1.0, %v10431_v51  ;;  %10436 = vtanh.f32 %v1477_v24 }
 0x1bf   : > { %v1551_v33 = vmul.f32 %v1531_v54, %v11368_v22  ;;  %v1533_v40 = vmul.f32 0.5, %v1513_v53  ;;  %10438 = vtanh.f32 %v1478_v0  ;;  %v1440_v18 = vmul.f32 0.044715, %v1420_v32 }
 0x1c0   : > { %v10433_v63 = vpop.eup %10432  ;;  %v11489_v43 = vpack.c.bf16 %v1550_v61, %v1549_v45  ;;  %v1552_v2 = vmul.f32 %v1532_v13, %v11371_v50  ;;  %v1534_v31 = vmul.f32 0.5, %v1514_v34  ;;  %v1459_v12 = vadd.f32 %v1439_v10, %v11458_v52 }
 0x1c1   : > { %v10435_v55 = vpop.eup %10434  ;;  %v1553_v56 = vmul.f32 %v1533_v40, %v11391_v5  ;;  %v1515_v17 = vadd.f32 1.0, %v10433_v63  ;;  %v1460_v47 = vadd.f32 %v1440_v18, %v11463_v25  ;;  %v1402_v54 = vmul.f32 %v11478_v39, %v11478_v39 }
 0x1c2   : > { %1723 = vmatpush1.bf16.msra.mxu1 %v11489_v43  ;;  %1896 = vmatpush1.bf16.msra.mxu0 %v11489_v43  ;;  %v11499_v0 = vpack.c.bf16 %v1552_v2, %v1551_v33  ;;  %v1554_v13 = vmul.f32 %v1534_v31, %v11400_v9  ;;  %v1516_v61 = vadd.f32 1.0, %v10435_v55  ;;  %v1479_v24 = vmul.f32 0.7978846, %v1459_v12 }
 0x1c3   : > { %v13932_v10 = vmov 0   ;;  %v1535_v22 = vmul.f32 0.5, %v1515_v17  ;;  %v1480_v50 = vmul.f32 0.7978846, %v1460_v47  ;;  %v1421_v5 = vmul.f32 %v1401_v42, %v11469_v36 }
 0x1c4   : > { %1724 = vmatprep.subr.bf16.mxu1 %v13932_v10  ;;  %1897 = vmatprep.subr.bf16.mxu0 %v13932_v10  ;;  %v1422_v32 = vmul.f32 %v1402_v54, %v11478_v39  ;;  %v11506_v41 = vpack.c.bf16 %v1554_v13, %v1553_v56  ;;  %v1536_v19 = vmul.f32 0.5, %v1516_v61  ;;  %10440 = vtanh.f32 %v1479_v24 }
 0x1c5   : > { %v1357_v1 = vmul.f32 %v11310_v21, %v11318_v38  ;;  %v1555_v9 = vmul.f32 %v1535_v22, %v11412_v57  ;;  %10442 = vtanh.f32 %v1480_v50  ;;  %v1441_v51 = vmul.f32 0.044715, %v1421_v5 }
 0x1c6   : > { %v1442_v45 = vmul.f32 0.044715, %v1422_v32  ;;  %1725 = vmatpush1.bf16.msra.mxu1 %v11499_v0  ;;  %1898 = vmatpush1.bf16.msra.mxu0 %v11499_v0  ;;  %v1556_v42 = vmul.f32 %v1536_v19, %v11418_v7  ;;  %v11516_v53 = vadd.f32 %v11328_v3, %v11473_v6  ;;  %v11527_v57 = vadd.f32 %v11328_v3, %v11335_v4 }
 0x1c7   : > { %v11519_v34 = vadd.f32 %v11328_v3, %v1357_v1  ;;  %1726 = vmatprep.subr.bf16.mxu1 %v13932_v10  ;;  %1899 = vmatprep.subr.bf16.mxu0 %v13932_v10  ;;  %v1461_v21 = vadd.f32 %v1441_v51, %v11469_v36  ;;  %v1466_v18 = vadd.f32 %v11395_v44, %v11347_v46 }
 0x1c8   : > { %v1462_v38 = vadd.f32 %v1442_v45, %v11478_v39  ;;  %v10437_v7 = vpop.eup %10436  ;;  %v11529_v33 = vpack.c.bf16 %v1556_v42, %v1555_v9  ;;  %v1403_v6 = vmul.f32 %v11516_v53, %v11516_v53  ;;  %v1405_v3 = vmul.f32 %v11527_v57, %v11527_v57 }
 0x1c9   : > { %v1404_v40 = vmul.f32 %v11519_v34, %v11519_v34  ;;  %v10439_v63 = vpop.eup %10438  ;;  %v1517_v2 = vadd.f32 1.0, %v10437_v7  ;;  %v1481_v31 = vmul.f32 0.7978846, %v1461_v21  ;;  %v1486_v17 = vmul.f32 0.7978846, %v1466_v18 }
 0x1ca   : > { %v1482_v12 = vmul.f32 0.7978846, %v1462_v38  ;;  %1727 = vmatpush1.bf16.msra.mxu1 %v11506_v41  ;;  %1900 = vmatpush1.bf16.msra.mxu0 %v11506_v41  ;;  %v1518_v4 = vadd.f32 1.0, %v10439_v63  ;;  %v1423_v55 = vmul.f32 %v1403_v6, %v11516_v53  ;;  %v1425_v47 = vmul.f32 %v1405_v3, %v11527_v57 }
 0x1cb   : > { %v1424_v56 = vmul.f32 %v1404_v40, %v11519_v34  ;;  %1728 = vmatprep.subr.bf16.mxu1 %v13932_v10  ;;  %1901 = vmatprep.subr.bf16.mxu0 %v13932_v10  ;;  %v1537_v44 = vmul.f32 0.5, %v1517_v2  ;;  %10444 = vtanh.f32 %v1481_v31  ;;  %v1407_v54 = vmul.f32 %v11354_v49, %v11354_v49 }
 0x1cc   : > { %v1538_v13 = vmul.f32 0.5, %v1518_v4  ;;  %10446 = vtanh.f32 %v1482_v12  ;;  %v1443_v61 = vmul.f32 0.044715, %v1423_v55  ;;  %v1445_v50 = vmul.f32 0.044715, %v1425_v47 }
 0x1cd   : > { %v1444_v24 = vmul.f32 0.044715, %v1424_v56  ;;  %v1557_v22 = vmul.f32 %v1537_v44, %v11436_v30  ;;  %v1408_v5 = vmul.f32 %v11357_v11, %v11357_v11  ;;  %10448 = vtanh.f32 %v1486_v17 }
 0x1ce   : > { %v10441_v32 = vpop.eup %10440  ;;  %1729 = vmatpush1.bf16.msra.mxu1 %v11529_v33  ;;  %1902 = vmatpush1.bf16.msra.mxu0 %v11529_v33  ;;  %v1558_v19 = vmul.f32 %v1538_v13, %v11442_v48  ;;  %v1463_v1 = vadd.f32 %v1443_v61, %v11516_v53  ;;  %v1465_v45 = vadd.f32 %v1445_v50, %v11527_v57 }
 0x1cf   : > { %v1464_v9 = vadd.f32 %v1444_v24, %v11519_v34  ;;  %v10443_v51 = vpop.eup %10442  ;;  %1730 = vmatprep.subr.bf16.mxu1 %v13932_v10  ;;  %1903 = vmatprep.subr.bf16.mxu0 %v13932_v10  ;;  %v1519_v30 = vadd.f32 1.0, %v10441_v32  ;;  %v1427_v42 = vmul.f32 %v1407_v54, %v11354_v49  ;;  %v1428_v21 = vmul.f32 %v1408_v5, %v11357_v11 }
 0x1d0   : > { %v11561_v38 = vpack.c.bf16 %v1558_v19, %v1557_v22  ;;  %v1520_v48 = vadd.f32 1.0, %v10443_v51  ;;  %v1483_v7 = vmul.f32 0.7978846, %v1463_v1  ;;  %v1485_v18 = vmul.f32 0.7978846, %v1465_v45 }
 0x1d1   : > { %v1484_v6 = vmul.f32 0.7978846, %v1464_v9  ;;  %v1539_v40 = vmul.f32 0.5, %v1519_v30  ;;  %v1447_v63 = vmul.f32 0.044715, %v1427_v42  ;;  %v11579_v22 = vadd.s32 2, %v11190_v62 }
 0x1d2   : > { %1731 = vmatpush1.bf16.msra.mxu1 %v11561_v38  ;;  %1904 = vmatpush1.bf16.msra.mxu0 %v11561_v38  ;;  %v1540_v2 = vmul.f32 0.5, %v1520_v48  ;;  %10450 = vtanh.f32 %v1483_v7  ;;  %v1448_v31 = vmul.f32 0.044715, %v1428_v21  ;;  %v13933_v19 = vmov 0.0  }
 0x1d3   : > { %1732 = vmatprep.subr.bf16.mxu1 %v13932_v10  ;;  %1905 = vmatprep.subr.bf16.mxu0 %v13932_v10  ;;  %v1559_v12 = vmul.f32 %v1539_v40, %v11458_v52  ;;  %10452 = vtanh.f32 %v1484_v6  ;;  %v1467_v3 = vadd.f32 %v1447_v63, %v11354_v49  ;;  %vm13902_vm4 = vcmp.eq.s32.totalorder %v11170_v27, %v11579_v22 }
 0x1d4   : > { %v1560_v4 = vmul.f32 %v1540_v2, %v11463_v25  ;;  %10454 = vtanh.f32 %v1485_v18  ;;  %v1468_v55 = vadd.f32 %v1448_v31, %v11357_v11  ;;  %v11576_v25 = vadd.s32 2, %v11188_v60  ;;  %v10198_v60 = vld [vmem:[%s10835_s21 + $0x20] sm:$0xff]  }
 0x1d5   : > { %v10445_v56 = vpop.eup %10444  ;;  %v1487_v17 = vmul.f32 0.7978846, %v1467_v3  ;;  %v11599_v9 = vsel %vm13902_vm4, 1.0, %v13933_v19  ;;  %v11607_v45 = vadd.s32 2, %v11235_v35 }
 0x1d6   : > { %v10447_v44 = vpop.eup %10446  ;;  %v11571_v47 = vpack.c.bf16 %v1560_v4, %v1559_v12  ;;  %v1521_v54 = vadd.f32 1.0, %v10445_v56  ;;  %v1488_v13 = vmul.f32 0.7978846, %v1468_v55  ;;  %vm2207_vm3 = vcmp.eq.s32.totalorder %v11170_v27, %v11576_v25 }
 0x1d7   : > { %v1522_v61 = vadd.f32 1.0, %v10447_v44  ;;  %10456 = vtanh.f32 %v1487_v17  ;;  %v10449_v24 = vpop.eup %10448  ;;  %v11593_v1 = vsel %vm2207_vm3, 1.0, %v13933_v19  ;;  %vm13900_vm6 = vcmp.eq.s32.totalorder %v11170_v27, %v11607_v45 }
 0x1d8   : > { %1733 = vmatpush1.bf16.msra.mxu1 %v11571_v47  ;;  %1906 = vmatpush1.bf16.msra.mxu0 %v11571_v47  ;;  %v1541_v52 = vmul.f32 0.5, %v1521_v54  ;;  %10458 = vtanh.f32 %v1488_v13  ;;  %v1526_v30 = vadd.f32 1.0, %v10449_v24  ;;  %v11627_v2 = vsel %vm13900_vm6, 1.0, %v13933_v19 }
 0x1d9   : > { %1734 = vmatprep.subr.bf16.mxu1 %v13932_v10  ;;  %1907 = vmatprep.subr.bf16.mxu0 %v13932_v10  ;;  %v1542_v50 = vmul.f32 0.5, %v1522_v61  ;;  %v11636_v61 = vadd.s32 32, %v11050_v8  ;;  %v1105_v24 = vadd.s32 40, %v11050_v8  ;;  %vm1633_vm6 = vcmp.eq.s32.totalorder %v11185_v59, %v11235_v35 }
 0x1da   : > { %v1561_v5 = vmul.f32 %v1541_v52, %v11469_v36  ;;  %v11602_v36 = vadd.s32 2, %v11230_v28  ;;  %v1546_v12 = vmul.f32 0.5, %v1526_v30  ;;  %v10200_v28 = vld [vmem:[%s10835_s21 + $0x30] sm:$0xff]  }
 0x1db   : > { %v1562_v32 = vmul.f32 %v1542_v50, %v11478_v39  ;;  %v2267_v39 = vpack.c.bf16 %v11599_v9, %v11593_v1  ;;  %v11658_v30 = vmul.u32 2, %v1105_v24  ;;  %v13956_v9 = vld [vmem:[#allocation17_spill] sm:$0xff] }
 0x1dc   : > { %v10451_v51 = vpop.eup %10450  ;;  %vm13901_vm5 = vcmp.eq.s32.totalorder %v11170_v27, %v11602_v36 }
 0x1dd   : > { %v10453_v42 = vpop.eup %10452  ;;  %v11609_v21 = vpack.c.bf16 %v1562_v32, %v1561_v5  ;;  %v1523_v48 = vadd.f32 1.0, %v10451_v51  ;;  %v11619_v40 = vsel %vm13901_vm5, 1.0, %v13933_v19  ;;  %v1566_v5 = vmul.f32 %v1546_v12, %v11347_v46 }
 0x1de   : > { %v10455_v7 = vpop.eup %10454  ;;  %v1524_v6 = vadd.f32 1.0, %v10453_v42  ;;  %v2269_v3 = vpack.c.bf16 %v11627_v2, %v11619_v40  ;;  %v8440_v42 = vsel %vm1815_vm11, 1.0, %v13933_v19  ;;  %vm10799_vm5 = vmmov 1   ;;  %vm8424_vm11 = vmpackc.low %vm1632_vm0, %vm1630_vm15  ;;  %v13958_v40 = vld [vmem:[#allocation19_spill] sm:$0xff]  ;;  %v13959_v2 = vld [vmem:[#allocation18_spill] sm:$0xff] }
 0x1df   : > { %1735 = vmatpush1.bf16.msra.mxu1 %v11609_v21  ;;  %1908 = vmatpush1.bf16.msra.mxu0 %v11609_v21  ;;  %v1543_v18 = vmul.f32 0.5, %v1523_v48  ;;  %v1525_v63 = vadd.f32 1.0, %v10455_v7  ;;  %vm11672_vm4 = vmpackc.low %vm1139_vm2, %vm10799_vm5  ;;  %v1106_v7 = vadd.s32 48, %v11050_v8  ;;  %v11688_v14 = vadd.s32 1, %v11658_v30 }
 0x1e0   : > { %1736 = vmatprep.subr.bf16.mxu1 %v13932_v10  ;;  %1909 = vmatprep.subr.bf16.mxu0 %v13932_v10  ;;  %v1544_v31 = vmul.f32 0.5, %v1524_v6  ;;  %v1107_v6 = vadd.s32 56, %v11050_v8  ;;  %vm8421_vm2 = vmpackc.low %vm1628_vm14, %vm1626_vm13  ;;  %vm1637_vm14 = vcmp.eq.s32.totalorder %v11185_v59, %v11658_v30 }
 0x1e1   : > { %v10457_v4 = vpop.eup %10456  ;;  %v1563_v55 = vmul.f32 %v1543_v18, %v11516_v53  ;;  %v1545_v56 = vmul.f32 0.5, %v1525_v63  ;;  %v11652_v53 = vmul.u32 2, %v11636_v61  ;;  %v8402_v63 = vsel %vm1631_vm1, 1.0, %v13933_v19 }
 0x1e2   : > { %v10459_v17 = vpop.eup %10458  ;;  %v1564_v44 = vmul.f32 %v1544_v31, %v11519_v34  ;;  %v1527_v54 = vadd.f32 1.0, %v10457_v4  ;;  %v8404_v31 = vsel %vm1633_vm6, 1.0, %v13933_v19  ;;  %v11705_v4 = vmul.u32 2, %v1106_v7 }
 0x1e3   : > { %v1528_v13 = vadd.f32 1.0, %v10459_v17  ;;  %v1565_v50 = vmul.f32 %v1545_v56, %v11527_v57  ;;  %v11681_v48 = vadd.s32 1, %v11652_v53  ;;  %v1689_v56 = vpack.c.bf16 %v8404_v31, %v8402_v63 }
 0x1e4   : > { %v11639_v52 = vpack.c.bf16 %v1564_v44, %v1563_v55  ;;  %v1547_v32 = vmul.f32 0.5, %v1527_v54  ;;  %v11707_v55 = vmul.u32 2, %v1107_v6  ;;  %vm1821_vm6 = vcmp.eq.s32.totalorder %v11185_v59, %v11688_v14 }
 0x1e5   : > { %v1548_v51 = vmul.f32 0.5, %v1528_v13  ;;  %v11654_v46 = vpack.c.bf16 %v1566_v5, %v1565_v50  ;;  %vm1819_vm1 = vcmp.eq.s32.totalorder %v11185_v59, %v11681_v48  ;;  %v10800_v17 = vmov 1.0|1.0   ;;  %v10199_v5 = vld [vmem:[%s10835_s21 + $0x28] sm:$0xff]  }
 0x1e6   : > { %1737 = vmatpush1.bf16.msra.mxu1 %v11639_v52  ;;  %1910 = vmatpush1.bf16.msra.mxu0 %v11639_v52  ;;  %v1567_v34 = vmul.f32 %v1547_v32, %v11354_v49  ;;  %vm1635_vm13 = vcmp.eq.s32.totalorder %v11185_v59, %v11652_v53  ;;  %v8444_v62 = vsel %vm1819_vm1, 1.0, %v13933_v19  ;;  %v8446_v16 = vsel %vm1821_vm6, 1.0, %v13933_v19 }
 0x1e7   : > { %1738 = vmatprep.subr.bf16.mxu1 %v13932_v10  ;;  %1911 = vmatprep.subr.bf16.mxu0 %v13932_v10  ;;  %v1568_v57 = vmul.f32 %v1548_v51, %v11357_v11  ;;  %v8442_v11 = vsel %vm1817_vm12, 1.0, %v13933_v19  ;;  %v11729_v44 = vadd.s32 1, %v11705_v4  ;;  %v11732_v54 = vadd.s32 1, %v11707_v55 }
 0x1e8   : > { %v1873_v12 = vpack.c.bf16 %v8442_v11, %v8440_v42  ;;  %v1108_v13 = vadd.s32 64, %v11050_v8  ;;  %v8406_v24 = vsel %vm1635_vm13, 1.0, %v13933_v19  ;;  %v8408_v50 = vsel %vm1637_vm14, 1.0, %v13933_v19 }
 0x1e9   : > { %v11685_v18 = vpack.c.bf16 %v1568_v57, %v1567_v34  ;;  %v1875_v32 = vpack.c.bf16 %v8446_v16, %v8444_v62  ;;  %v1691_v37 = vpack.c.bf16 %v8408_v50, %v8406_v24  ;;  %vm1823_vm12 = vcmp.eq.s32.totalorder %v11185_v59, %v11729_v44 }
 0x1ea   : > { %1739 = vmatpush1.bf16.msra.mxu1 %v11654_v46  ;;  %1912 = vmatpush1.bf16.msra.mxu0 %v11654_v46  ;;  %v11759_v58 = vmul.u32 2, %v1108_v13  ;;  %vm1641_vm15 = vcmp.eq.s32.totalorder %v11185_v59, %v11707_v55  ;;  %vm1818_vm0 = vcmp.eq.s32.totalorder %v11170_v27, %v11681_v48  ;;  %v8448_v35 = vsel %vm1823_vm12, 1.0, %v13933_v19  ;;  %v10213_v48 = vld [vmem:[%s10840_s25 + $0x38] sm:$0xff]  }
 0x1eb   : > { %1740 = vmatprep.subr.bf16.mxu1 %v13932_v10  ;;  %1913 = vmatprep.subr.bf16.mxu0 %v13932_v10  ;;  %vm1634_vm1 = vcmp.eq.s32.totalorder %v11170_v27, %v11652_v53  ;;  %vm1636_vm6 = vcmp.eq.s32.totalorder %v11170_v27, %v11658_v30  ;;  %v8412_v42 = vsel %vm1641_vm15, 1.0, %v13933_v19  ;;  %vm1824_vm15 = vcmp.eq.s32.totalorder %v11170_v27, %v11732_v54 }
 0x1ec   : > { %vm8427_vm14 = vmpackc.low %vm1636_vm6, %vm1634_vm1  ;;  %vm1643_vm12 = vcmp.eq.s32.totalorder %v11185_v59, %v11759_v58  ;;  %vm1640_vm6 = vcmp.eq.s32.totalorder %v11170_v27, %v11707_v55  ;;  %v2202_v62 = vadd.s32 2, %v11658_v30  ;;  %v2203_v49 = vadd.s32 2, %v11705_v4 }
 0x1ee   : > { %8419 = vmatpush1.bf16.msk.msra.mxu1 %vm11672_vm4, %v11685_v18  ;;  %8457 = vmatpush1.bf16.msk.msra.mxu0 %vm11672_vm4, %v11685_v18 }
 0x1ef   : > { %2292 = vmatprep.subr.bf16.mxu0 %v13932_v10  ;;  %9282 = vmatprep.subr.bf16.mxu1 %v13933_v19 }
 0x1f1   : > { %8460 = vmatmul.mubr.msk.bf16.vlgmr.msra.gmra.mrb[0].mxu0 %vm11213_vm8, %v10800_v17  ;;  %8422 = vmatmul.mubr.msk.bf16.vlgmr.msra.gmra.mrb[20].mxu1 %vm8421_vm2, %v10800_v17  ;;  %vm8462_vm8 = vmpackc.low %vm1816_vm10, %vm1814_vm9  ;;  %vm1825_vm9 = vcmp.eq.s32.totalorder %v11185_v59, %v11732_v54  ;;  %vm1639_vm10 = vcmp.eq.s32.totalorder %v11185_v59, %v11705_v4  ;;  %vm1820_vm2 = vcmp.eq.s32.totalorder %v11170_v27, %v11688_v14 }
 0x1f2   : > { %2293 = vmatpush1.bf16.msra.mxu0 %v11489_v43  ;;  %8461 = vmatprep.mubr.msk.bf16.mxu0 %vm1706_vm7, %v1873_v12  ;;  %v1109_v43 = vadd.s32 72, %v11050_v8  ;;  %v8450_v51 = vsel %vm1825_vm9, 1.0, %v13933_v19  ;;  %v8410_v57 = vsel %vm1639_vm10, 1.0, %v13933_v19  ;;  %vm8465_vm13 = vmpackc.low %vm1820_vm2, %vm1818_vm0  ;;  %vm1822_vm10 = vcmp.eq.s32.totalorder %v11170_v27, %v11729_v44 }
 0x1f3   : > { %2294 = vmatprep.subr.bf16.mxu0 %v13932_v10  ;;  %8423 = vmatprep.mubr.msk.bf16.mxu1 %vm1706_vm7, %v1689_v56  ;;  %v1877_v11 = vpack.c.bf16 %v8450_v51, %v8448_v35  ;;  %v1693_v7 = vpack.c.bf16 %v8412_v42, %v8410_v57  ;;  %vm1638_vm2 = vcmp.eq.s32.totalorder %v11170_v27, %v11705_v4  ;;  %v10203_v51 = vld [vmem:[%s10835_s21 + $0x8] sm:$0xff]  }
 0x1f4   : > { %9283 = vmatpush3.bf16.msra.mxu1 %v10198_v60  ;;  %v11856_v60 = vadd.s32 2, %v11652_v53  ;;  %v8443_v53 = vsel %vm1818_vm0, 1.0, %v13933_v19 }
 0x1f5   : > { %9284 = vmatprep.subr.bf16.mxu1 %v13933_v19 }
 0x1f6   : > { %2295 = vmatpush1.bf16.msra.mxu0 %v11499_v0  ;;  %v11761_v0 = vmul.u32 2, %v1109_v43 }
 0x1f7   : > { %2296 = vmatprep.subr.bf16.mxu0 %v13932_v10 }
 0x1f8   : > { %9285 = vmatpush3.bf16.msra.mxu1 %v10199_v5  ;;  %v1809_v34 = vadd.s32 1, %v11761_v0  ;;  %vm1645_vm9 = vcmp.eq.s32.totalorder %v11185_v59, %v11761_v0 }
 0x1f9   : > { %8463 = vmatmul.mubr.msk.bf16.gmra.mrb[4].mxu0 %vm8462_vm8, %v10800_v17  ;;  %8425 = vmatmul.mubr.msk.bf16.gmra.mrb[24].mxu1 %vm8424_vm11, %v10800_v17  ;;  %v8416_v14 = vsel %vm1645_vm9, 1.0, %v13933_v19 }
 0x1fa   : > { %2297 = vmatpush1.bf16.msra.mxu0 %v11506_v41  ;;  %8464 = vmatprep.mubr.msk.bf16.mxu0 %vm1706_vm7, %v1875_v32  ;;  %v1808_v41 = vadd.s32 1, %v11759_v58  ;;  %vm1829_vm11 = vcmp.eq.s32.totalorder %v11185_v59, %v1809_v34  ;;  %vm1828_vm9 = vcmp.eq.s32.totalorder %v11170_v27, %v1809_v34 }
 0x1fb   : > { %2298 = vmatprep.subr.bf16.mxu0 %v13932_v10  ;;  %8426 = vmatprep.mubr.msk.bf16.mxu1 %vm1706_vm7, %v1691_v37  ;;  %v8454_v6 = vsel %vm1829_vm11, 1.0, %v13933_v19  ;;  %vm2210_vm11 = vcmp.eq.s32.totalorder %v11185_v59, %v11579_v22  ;;  %v10202_v37 = vld [vmem:[%s10835_s21] sm:$0xff]  }
 0x1fc   : > { %9286 = vmatprep.subr.bf16.mxu1 %v13933_v19  ;;  %vm1827_vm8 = vcmp.eq.s32.totalorder %v11185_v59, %v1808_v41 }
 0x1fd   : > { %9287 = vmatpush3.bf16.msra.mxu1 %v10200_v28 }
 0x1fe   : > { %2299 = vmatpush1.bf16.msra.mxu0 %v11529_v33  ;;  %9288 = vmatprep.subr.bf16.mxu1 %v13933_v19  ;;  %v8452_v33 = vsel %vm1827_vm8, 1.0, %v13933_v19  ;;  %vm2208_vm8 = vcmp.eq.s32.totalorder %v11185_v59, %v11576_v25 }
 0x1ff   : > { %2300 = vmatprep.subr.bf16.mxu0 %v13932_v10  ;;  %v1879_v63 = vpack.c.bf16 %v8454_v6, %v8452_v33 }
 0x201   : > { %8466 = vmatmul.mubr.msk.bf16.gmra.mrb[8].mxu0 %vm8465_vm13, %v10800_v17  ;;  %8428 = vmatmul.mubr.msk.bf16.gmra.mrb[28].mxu1 %vm8427_vm14, %v10800_v17  ;;  %vm8468_vm13 = vmpackc.low %vm1824_vm15, %vm1822_vm10  ;;  %vm1642_vm10 = vcmp.eq.s32.totalorder %v11170_v27, %v11759_v58  ;;  %vm1644_vm15 = vcmp.eq.s32.totalorder %v11170_v27, %v11761_v0 }
 0x202   : > { %2301 = vmatpush1.bf16.msra.mxu0 %v11561_v38  ;;  %8467 = vmatprep.mubr.msk.bf16.mxu0 %vm1706_vm7, %v1877_v11  ;;  %v8414_v38 = vsel %vm1643_vm12, 1.0, %v13933_v19  ;;  %vm8430_vm14 = vmpackc.low %vm1640_vm6, %vm1638_vm2  ;;  %vm1826_vm12 = vcmp.eq.s32.totalorder %v11170_v27, %v1808_v41 }
 0x203   : > { %2302 = vmatprep.subr.bf16.mxu0 %v13932_v10  ;;  %8429 = vmatprep.mubr.msk.bf16.mxu1 %vm1706_vm7, %v1693_v7  ;;  %v1695_v31 = vpack.c.bf16 %v8416_v14, %v8414_v38  ;;  %vm8471_vm2 = vmpackc.low %vm1828_vm9, %vm1826_vm12  ;;  %vm2216_vm12 = vcmp.eq.s32.totalorder %v11185_v59, %v11856_v60  ;;  %vm2218_vm9 = vcmp.eq.s32.totalorder %v11185_v59, %v2202_v62  ;;  %v10204_v7 = vld [vmem:[%s10835_s21 + $0x10] sm:$0xff]  }
 0x204   : > { %vm8433_vm6 = vmpackc.low %vm1644_vm15, %vm1642_vm10  ;;  %v8500_v30 = vsel %vm2216_vm12, 1.0, %v13933_v19  ;;  %v8502_v25 = vsel %vm2218_vm9, 1.0, %v13933_v19  ;;  %vm2220_vm15 = vcmp.eq.s32.totalorder %v11185_v59, %v2203_v49  ;;  %vm2219_vm12 = vcmp.eq.s32.totalorder %v11170_v27, %v2203_v49 }
 0x206   : > { %2303 = vmatpush1.bf16.msra.mxu0 %v11571_v47  ;;  %v8492_v47 = vsel %vm2208_vm8, 1.0, %v13933_v19  ;;  %vm13936_vm8 = vcmp.eq.s32.totalorder %v11170_v27, %v11579_v22  ;;  %v2204_v22 = vadd.s32 2, %v11707_v55  ;;  %v2206_v55 = vadd.s32 2, %v11761_v0 }
 0x207   : > { %2304 = vmatprep.subr.bf16.mxu0 %v13932_v10 }
 0x208   : > { %vm2221_vm9 = vcmp.eq.s32.totalorder %v11170_v27, %v2204_v22 }
 0x209   : > { %8469 = vmatmul.mubr.msk.bf16.gmra.mrb[12].mxu0 %vm8468_vm13, %v10800_v17  ;;  %8431 = vmatmul.mubr.msk.bf16.gmra.mrb[32].mxu1 %vm8430_vm14, %v10800_v17  ;;  %vm2212_vm13 = vcmp.eq.s32.totalorder %v11185_v59, %v11602_v36  ;;  %vm2214_vm14 = vcmp.eq.s32.totalorder %v11185_v59, %v11607_v45 }
 0x20a   : > { %2305 = vmatpush1.bf16.msra.mxu0 %v11609_v21  ;;  %8470 = vmatprep.mubr.msk.bf16.mxu0 %vm1706_vm7, %v1879_v63  ;;  %v8494_v21 = vsel %vm2210_vm11, 1.0, %v13933_v19  ;;  %v8498_v56 = vsel %vm2214_vm14, 1.0, %v13933_v19  ;;  %vm8515_vm11 = vmpackc.low %vm13936_vm8, %vm2207_vm3  ;;  %vm13937_vm3 = vcmp.eq.s32.totalorder %v11170_v27, %v11602_v36  ;;  %v8504_v36 = vsel %vm2220_vm15, 1.0, %v13933_v19 }
 0x20b   : > { %2306 = vmatprep.subr.bf16.mxu0 %v13932_v10  ;;  %8432 = vmatprep.mubr.msk.bf16.mxu1 %vm1706_vm7, %v1695_v31  ;;  %v2268_v12 = vpack.c.bf16 %v8494_v21, %v8492_v47  ;;  %v10205_v31 = vld [vmem:[%s10835_s21 + $0x18] sm:$0xff]  }
 0x20e   : > { %2307 = vmatpush1.bf16.msra.mxu0 %v11639_v52  ;;  %v8496_v52 = vsel %vm2212_vm13, 1.0, %v13933_v19  ;;  %vm2217_vm13 = vcmp.eq.s32.totalorder %v11170_v27, %v2202_v62 }
 0x20f   : > { %2308 = vmatprep.subr.bf16.mxu0 %v13932_v10 }
 0x211   : > { %8472 = vmatmul.mubr.msk.bf16.gmra.mrb[16].mxu0 %vm8471_vm2, %v10800_v17  ;;  %8434 = vmatmul.mubr.msk.bf16.gmra.mrb[36].mxu1 %vm8433_vm6, %v10800_v17  ;;  %vm2222_vm2 = vcmp.eq.s32.totalorder %v11185_v59, %v2204_v22  ;;  %vm2215_vm6 = vcmp.eq.s32.totalorder %v11170_v27, %v11856_v60  ;;  %v10210_v60 = vld [vmem:[%s10840_s25 + $0x20] sm:$0xff]  }
 0x212   : > { %2309 = vmatpush1.bf16.msra.mxu0 %v11654_v46  ;;  %8514 = vmatprep.mubr.msk.bf16.mxu0 %vm1706_vm7, %v2268_v12  ;;  %v2270_v46 = vpack.c.bf16 %v8498_v56, %v8496_v52  ;;  %v8506_v4 = vsel %vm2222_vm2, 1.0, %v13933_v19  ;;  %vm8521_vm14 = vmpackc.low %vm2217_vm13, %vm2215_vm6  ;;  %vm10801_vm2 = vmmov 0   ;;  %vm13939_vm13 = vcmask 523264  }
 0x213   : > { %2310 = vmatprep.subr.bf16.mxu0 %v13932_v10  ;;  %v2274_v16 = vpack.c.bf16 %v8506_v4, %v8504_v36  ;;  %9290 = vmatprep.mubr.msk.bf16.mxu1 %vm10801_vm2, %v13933_v19  ;;  %v8499_v1 = vsel %vm2215_vm6, 1.0, %v13933_v19 }
 0x216   : > { %8513 = vmatpush1.bf16.msk.msra.mxu0 %vm11672_vm4, %v11685_v18  ;;  %vm13938_vm4 = vcmp.eq.s32.totalorder %v11170_v27, %v11607_v45  ;;  %v2272_v18 = vpack.c.bf16 %v8502_v25, %v8500_v30  ;;  %v2205_v45 = vadd.s32 2, %v11759_v58 }
 0x217   : > { %9366 = vmatprep.subr.bf16.mxu0 %v13933_v19  ;;  %vm8518_vm10 = vmpackc.low %vm13938_vm4, %vm13937_vm3 }
 0x218   : > { %vm2224_vm8 = vcmp.eq.s32.totalorder %v11185_v59, %v2205_v45  ;;  %vm8524_vm3 = vmpackc.low %vm2221_vm9, %vm2219_vm12  ;;  %vm2223_vm4 = vcmp.eq.s32.totalorder %v11170_v27, %v2205_v45 }
 0x219   : > { %8516 = vmatmul.mubr.msk.bf16.vlgmr.msra.gmra.mrb[20].mxu0 %vm8515_vm11, %v10800_v17  ;;  %vm2226_vm11 = vcmp.eq.s32.totalorder %v11185_v59, %v2206_v55  ;;  %v8508_v44 = vsel %vm2224_vm8, 1.0, %v13933_v19  ;;  %v10201_v59 = vld [vmem:[%s10835_s21 + $0x38] sm:$0xff]   ;;  %vm13941_vm8 = vmmov %vm13939_vm13 }
 0x21a   : > { %8517 = vmatprep.mubr.msk.bf16.mxu0 %vm1706_vm7, %v2270_v46  ;;  %v8510_v54 = vsel %vm2226_vm11, 1.0, %v13933_v19  ;;  %9289 = vmatpush3.bf16.msra.mxu1 %v10201_v59  ;;  %vm13942_vm11 = vmmov %vm13941_vm8 }
 0x21b   : > { %v2276_v13 = vpack.c.bf16 %v8510_v54, %v8508_v44  ;;  %9310 = vmatprep.subr.bf16.mxu1 %v13933_v19  ;;  %vm13943_vm12 = vmmov %vm13941_vm8 }
 0x21c   : > { %vm13944_vm9 = vmmov %vm13941_vm8 }
 0x221   : > { %8519 = vmatmul.mubr.msk.bf16.gmra.mrb[24].mxu0 %vm8518_vm10, %v10800_v17  ;;  %vm2225_vm10 = vcmp.eq.s32.totalorder %v11170_v27, %v2206_v55 }
 0x222   : > { %8520 = vmatprep.mubr.msk.bf16.mxu0 %vm1706_vm7, %v2272_v18  ;;  %vm8527_vm15 = vmpackc.low %vm2225_vm10, %vm2223_vm4 }
 0x229   : > { %8522 = vmatmul.mubr.msk.bf16.gmra.mrb[28].mxu0 %vm8521_vm14, %v10800_v17  ;;  %vm13940_vm14 = vmmov %vm13939_vm13 }
 0x22a   : > { %8523 = vmatprep.mubr.msk.bf16.mxu0 %vm1706_vm7, %v2274_v16 }
 0x231   : > { %8525 = vmatmul.mubr.msk.bf16.gmra.mrb[32].mxu0 %vm8524_vm3, %v10800_v17  ;;  %vm13945_vm3 = vmmov %vm13941_vm8 }
 0x232   : > { %8526 = vmatprep.mubr.msk.bf16.mxu0 %vm1706_vm7, %v2276_v13  ;;  %vm13946_vm4 = vmmov %vm13945_vm3 }
 0x233   : > { %vm13947_vm10 = vmmov %vm13945_vm3 }
 0x239   : > { %8528 = vmatmul.mubr.msk.bf16.gmra.mrb[36].mxu0 %vm8527_vm15, %v10800_v17  ;;  %vm13948_vm15 = vmmov %vm13945_vm3 }
 0x23a   : > { %9376 = vmatprep.mubr.msk.bf16.mxu0 %vm10801_vm2, %v13933_v19 }
 0x2c4   : > { %v1929_v43 = vpop.f32.mrb[0].mxu0  ;;  %v11917_v24 = vpop.f32.mrb[20].mxu1 }
 0x2c5   : > { %v1931_v50 = vpop.f32.mrb[1].mxu0  ;;  %v1758_v5 = vpop.f32.mrb[21].mxu1 }
 0x2c6   : > { %v1932_v32 = vpop.f32.mrb[2].mxu0  ;;  %v11920_v17 = vpop.f32.mrb[22].mxu1 }
 0x2c7   : > { %v1968_v58 = vpack.c.bf16 %v1932_v32, %v1929_v43  ;;  %v1934_v0 = vpop.f32.mrb[3].mxu0  ;;  %v1795_v28 = vpack.c.bf16 %v11920_v17, %v11917_v24  ;;  %v1761_v35 = vpop.f32.mrb[23].mxu1  ;;  %v10209_v24 = vld [vmem:[%s10835_s21 + $0x58] sm:$0xff]  }
 0x2c9   : > { %9291 = vmatmul.mubr.msk.bf16.vlgmr.msra.gmra.mrb[40].mxu1 %vm13939_vm13, %v1968_v58  ;;  %vm13949_vm13 = vmmov %vm13945_vm3 }
 0x2ca   : > { %9294 = vmatprep.mubr.msk.bf16.mxu1 %vm10801_vm2, %v13933_v19  ;;  %9311 = vmatpush3.bf16.msra.mxu1 %v10202_v37 }
 0x2cb   : > { %9312 = vmatprep.subr.bf16.mxu1 %v13933_v19 }
 0x2cc   : > { %v1937_v41 = vpop.f32.mrb[4].mxu0  ;;  %v11929_v34 = vpop.f32.mrb[24].mxu1 }
 0x2cd   : > { %v1939_v57 = vpop.f32.mrb[5].mxu0  ;;  %v1766_v42 = vpop.f32.mrb[25].mxu1 }
 0x2ce   : > { %v1940_v11 = vpop.f32.mrb[6].mxu0  ;;  %9313 = vmatpush3.bf16.msra.mxu1 %v10203_v51  ;;  %v11932_v33 = vpop.f32.mrb[26].mxu1  ;;  %v10206_v42 = vld [vmem:[%s10835_s21 + $0x40] sm:$0xff]  }
 0x2cf   : > { %v1969_v6 = vpack.c.bf16 %v1940_v11, %v1937_v41  ;;  %v1942_v38 = vpop.f32.mrb[7].mxu0  ;;  %9314 = vmatprep.subr.bf16.mxu1 %v13933_v19  ;;  %v1796_v14 = vpack.c.bf16 %v11932_v33, %v11929_v34  ;;  %v1769_v63 = vpop.f32.mrb[27].mxu1 }
 0x2d0   : > { %v10207_v38 = vld [vmem:[%s10835_s21 + $0x48] sm:$0xff]  }
 0x2d1   : > { %9295 = vmatmul.mubr.msk.bf16.gmra.mrb[44].mxu1 %vm13940_vm14, %v1969_v6  ;;  %vm13950_vm14 = vmmov %vm13945_vm3 }
 0x2d2   : > { %9298 = vmatprep.mubr.msk.bf16.mxu1 %vm10801_vm2, %v13933_v19  ;;  %9315 = vmatpush3.bf16.msra.mxu1 %v10204_v7 }
 0x2d3   : > { %9316 = vmatprep.subr.bf16.mxu1 %v13933_v19 }
 0x2d4   : > { %v1945_v47 = vpop.f32.mrb[8].mxu0  ;;  %v11942_v21 = vpop.f32.mrb[28].mxu1 }
 0x2d5   : > { %v1947_v12 = vpop.f32.mrb[9].mxu0  ;;  %v1774_v52 = vpop.f32.mrb[29].mxu1 }
 0x2d6   : > { %v1948_v56 = vpop.f32.mrb[10].mxu0  ;;  %9317 = vmatpush3.bf16.msra.mxu1 %v10205_v31  ;;  %v11944_v62 = vpop.f32.mrb[30].mxu1 }
 0x2d7   : > { %v1970_v46 = vpack.c.bf16 %v1948_v56, %v1945_v47  ;;  %v1950_v30 = vpop.f32.mrb[11].mxu0  ;;  %v1797_v25 = vpack.c.bf16 %v11944_v62, %v11942_v21  ;;  %v1777_v49 = vpop.f32.mrb[31].mxu1  ;;  %9338 = vmatprep.subr.bf16.mxu1 %v13933_v19  ;;  %v10208_v47 = vld [vmem:[%s10835_s21 + $0x50] sm:$0xff]  }
 0x2d9   : > { %9299 = vmatmul.mubr.msk.bf16.gmra.mrb[48].mxu1 %vm13941_vm8, %v1970_v46  ;;  %vm13951_vm8 = vmmov %vm13945_vm3 }
 0x2da   : > { %9302 = vmatprep.mubr.msk.bf16.mxu1 %vm10801_vm2, %v13933_v19  ;;  %vm13961_vm0 = vmmov %vm13951_vm8 }
 0x2db   : > { %vm13963_vm6 = vmmov %vm13961_vm0 }
 0x2dc   : > { %v1953_v22 = vpop.f32.mrb[12].mxu0  ;;  %v1780_v18 = vpop.f32.mrb[32].mxu1 }
 0x2dd   : > { %v1955_v36 = vpop.f32.mrb[13].mxu0  ;;  %v1782_v4 = vpop.f32.mrb[33].mxu1 }
 0x2de   : > { %v1956_v45 = vpop.f32.mrb[14].mxu0  ;;  %v1783_v55 = vpop.f32.mrb[34].mxu1 }
 0x2df   : > { %v1971_v16 = vpack.c.bf16 %v1956_v45, %v1953_v22  ;;  %v1958_v44 = vpop.f32.mrb[15].mxu0  ;;  %v1798_v54 = vpack.c.bf16 %v1783_v55, %v1780_v18  ;;  %v1785_v13 = vpop.f32.mrb[35].mxu1 }
 0x2e1   : > { %9303 = vmatmul.mubr.msk.bf16.gmra.mrb[52].mxu1 %vm13942_vm11, %v1971_v16  ;;  %vm13952_vm11 = vmmov %vm13945_vm3 }
 0x2e2   : > { %9306 = vmatprep.mubr.msk.bf16.mxu1 %vm10801_vm2, %v13933_v19 }
 0x2e4   : > { %v1961_v59 = vpop.f32.mrb[16].mxu0  ;;  %v1788_v43 = vpop.f32.mrb[36].mxu1 }
 0x2e5   : > { %v1963_v50 = vpop.f32.mrb[17].mxu0  ;;  %v1790_v5 = vpop.f32.mrb[37].mxu1 }
 0x2e6   : > { %v1964_v32 = vpop.f32.mrb[18].mxu0  ;;  %v1791_v37 = vpop.f32.mrb[38].mxu1 }
 0x2e7   : > { %v1972_v58 = vpack.c.bf16 %v1964_v32, %v1961_v59  ;;  %v1966_v0 = vpop.f32.mrb[19].mxu0  ;;  %v1799_v35 = vpack.c.bf16 %v1791_v37, %v1788_v43  ;;  %v1793_v51 = vpop.f32.mrb[39].mxu1 }
 0x2e9   : > { %9307 = vmatmul.mubr.msk.bf16.gmra.mrb[56].mxu1 %vm13943_vm12, %v1972_v58  ;;  %vm13953_vm12 = vmmov %vm13945_vm3 }
 0x2ea   : > { %9318 = vmatprep.mubr.msk.bf16.mxu1 %vm10801_vm2, %v13933_v19 }
 0x2ec   : > { %v2326_v41 = vpop.f32.mrb[20].mxu0 }
 0x2ed   : > { %v2328_v57 = vpop.f32.mrb[21].mxu0 }
 0x2ee   : > { %v2329_v11 = vpop.f32.mrb[22].mxu0 }
 0x2ef   : > { %v2365_v7 = vpack.c.bf16 %v2329_v11, %v2326_v41  ;;  %v2331_v6 = vpop.f32.mrb[23].mxu0 }
 0x2f1   : > { %9319 = vmatmul.mubr.msk.bf16.vlgmr.msra.gmra.mrb[40].mxu1 %vm13944_vm9, %v1795_v28  ;;  %vm2622_vm9 = vcmask 1046528  }
 0x2f2   : > { %9322 = vmatprep.mubr.msk.bf16.mxu1 %vm10801_vm2, %v13933_v19  ;;  %9339 = vmatpush3.bf16.msra.mxu1 %v10206_v42 }
 0x2f3   : > { %9340 = vmatprep.subr.bf16.mxu1 %v13933_v19 }
 0x2f4   : > { %v2334_v63 = vpop.f32.mrb[24].mxu0 }
 0x2f5   : > { %v2336_v31 = vpop.f32.mrb[25].mxu0 }
 0x2f6   : > { %9341 = vmatpush3.bf16.msra.mxu1 %v10207_v38  ;;  %v2337_v21 = vpop.f32.mrb[26].mxu0 }
 0x2f7   : > { %9342 = vmatprep.subr.bf16.mxu1 %v13933_v19  ;;  %v2366_v12 = vpack.c.bf16 %v2337_v21, %v2334_v63  ;;  %v2339_v52 = vpop.f32.mrb[27].mxu0 }
 0x2f9   : > { %9323 = vmatmul.mubr.msk.bf16.gmra.mrb[44].mxu1 %vm13945_vm3, %v1796_v14  ;;  %vm2623_vm3 = vcmask 1047552  }
 0x2fa   : > { %9326 = vmatprep.mubr.msk.bf16.mxu1 %vm10801_vm2, %v13933_v19  ;;  %9343 = vmatpush3.bf16.msra.mxu1 %v10208_v47 }
 0x2fb   : > { %9344 = vmatprep.subr.bf16.mxu1 %v13933_v19 }
 0x2fc   : > { %v2342_v17 = vpop.f32.mrb[28].mxu0 }
 0x2fd   : > { %v2344_v28 = vpop.f32.mrb[29].mxu0 }
 0x2fe   : > { %9345 = vmatpush3.bf16.msra.mxu1 %v10209_v24  ;;  %v2345_v56 = vpop.f32.mrb[30].mxu0 }
 0x2ff   : > { %v2367_v62 = vpack.c.bf16 %v2345_v56, %v2342_v17  ;;  %v2347_v46 = vpop.f32.mrb[31].mxu0  ;;  %9450 = vmatprep.subr.bf16.mxu1 %v13933_v19 }
 0x301   : > { %9327 = vmatmul.mubr.msk.bf16.gmra.mrb[48].mxu1 %vm13946_vm4, %v1797_v25  ;;  %vm2612_vm4 = vcmask 646144  }
 0x302   : > { %9330 = vmatprep.mubr.msk.bf16.mxu1 %vm10801_vm2, %v13933_v19 }
 0x304   : > { %v2350_v34 = vpop.f32.mrb[32].mxu0 }
 0x305   : > { %v2352_v33 = vpop.f32.mrb[33].mxu0 }
 0x306   : > { %v2353_v14 = vpop.f32.mrb[34].mxu0 }
 0x307   : > { %v2368_v30 = vpack.c.bf16 %v2353_v14, %v2350_v34  ;;  %v2355_v49 = vpop.f32.mrb[35].mxu0 }
 0x309   : > { %9331 = vmatmul.mubr.msk.bf16.gmra.mrb[52].mxu1 %vm13947_vm10, %v1798_v54  ;;  %vm13964_vm10 = vmmov %vm13961_vm0 }
 0x30a   : > { %9334 = vmatprep.mubr.msk.bf16.mxu1 %vm10801_vm2, %v13933_v19 }
 0x30c   : > { %v2358_v22 = vpop.f32.mrb[36].mxu0 }
 0x30d   : > { %v2360_v18 = vpop.f32.mrb[37].mxu0 }
 0x30e   : > { %v2361_v36 = vpop.f32.mrb[38].mxu0 }
 0x30f   : > { %v2369_v4 = vpack.c.bf16 %v2361_v36, %v2358_v22  ;;  %v2363_v45 = vpop.f32.mrb[39].mxu0 }
 0x311   : > { %9335 = vmatmul.mubr.msk.bf16.gmra.mrb[56].mxu1 %vm13948_vm15, %v1799_v35  ;;  %vm13965_vm15 = vmmov %vm13961_vm0 }
 0x312   : > { %9346 = vmatprep.mubr.msk.bf16.mxu1 %vm10801_vm2, %v13933_v19 }
 0x319   : > { %9347 = vmatmul.mubr.msk.bf16.vlgmr.msra.gmra.mrb[40].mxu1 %vm13949_vm13, %v2365_v7  ;;  %vm13966_vm13 = vmmov %vm13961_vm0 }
 0x31a   : > { %9350 = vmatprep.mubr.msk.bf16.mxu1 %vm10801_vm2, %v13933_v19 }
 0x321   : > { %9351 = vmatmul.mubr.msk.bf16.gmra.mrb[44].mxu1 %vm13950_vm14, %v2366_v12  ;;  %vm13967_vm14 = vmmov %vm13961_vm0 }
 0x322   : > { %9354 = vmatprep.mubr.msk.bf16.mxu1 %vm10801_vm2, %v13933_v19 }
 0x329   : > { %9355 = vmatmul.mubr.msk.bf16.gmra.mrb[48].mxu1 %vm13951_vm8, %v2367_v62  ;;  %vm13968_vm8 = vmmov %vm13961_vm0 }
 0x32a   : > { %9358 = vmatprep.mubr.msk.bf16.mxu1 %vm10801_vm2, %v13933_v19 }
 0x331   : > { %9359 = vmatmul.mubr.msk.bf16.gmra.mrb[52].mxu1 %vm13952_vm11, %v2368_v30  ;;  %vm13969_vm11 = vmmov %vm13961_vm0 }
 0x332   : > { %9362 = vmatprep.mubr.msk.bf16.mxu1 %vm10801_vm2, %v13933_v19 }
 0x339   : > { %9363 = vmatmul.mubr.msk.bf16.gmra.mrb[56].mxu1 %vm13953_vm12, %v2369_v4  ;;  %vm13970_vm12 = vmmov %vm13961_vm0 }
 0x33a   : > { %9460 = vmatprep.mubr.msk.bf16.mxu1 %vm10801_vm2, %v13933_v19 }
 0x3ec   : > { %v2443_v25 = vpop.f32.mrb[40].mxu1 }
 0x3ed   : > { %v2492_v55 = vmul.f32 %v2443_v25, %v2443_v25  ;;  %v9348_v16 = vpop.f32.mrb[41].mxu1 }
 0x3ee   : > { %v2446_v44 = vpop.f32.mrb[42].mxu1 }
 0x3ef   : > { %v2502_v54 = vmul.f32 %v2492_v55, %v2443_v25  ;;  %v2493_v13 = vmul.f32 %v2446_v44, %v2446_v44  ;;  %v9349_v59 = vpop.f32.mrb[43].mxu1 }
 0x3f1   : > { %v2512_v43 = vmul.f32 0.044715, %v2502_v54  ;;  %v2503_v50 = vmul.f32 %v2493_v13, %v2446_v44 }
 0x3f3   : > { %v2522_v5 = vadd.f32 %v2512_v43, %v2443_v25  ;;  %v2513_v32 = vmul.f32 0.044715, %v2503_v50 }
 0x3f4   : > { %v12002_v37 = vpop.f32.mrb[44].mxu1 }
 0x3f5   : > { %v2532_v58 = vmul.f32 0.7978846, %v2522_v5  ;;  %v2523_v0 = vadd.f32 %v2513_v32, %v2446_v44  ;;  %v2494_v35 = vmul.f32 %v12002_v37, %v12002_v37  ;;  %v9352_v51 = vpop.f32.mrb[45].mxu1 }
 0x3f6   : > { %v12006_v41 = vpop.f32.mrb[46].mxu1 }
 0x3f7   : > { %10460 = vtanh.f32 %v2532_v58  ;;  %v2533_v57 = vmul.f32 0.7978846, %v2523_v0  ;;  %v2504_v42 = vmul.f32 %v2494_v35, %v12002_v37  ;;  %v2495_v11 = vmul.f32 %v12006_v41, %v12006_v41  ;;  %v9353_v7 = vpop.f32.mrb[47].mxu1 }
 0x3f9   : > { %10462 = vtanh.f32 %v2533_v57  ;;  %v2514_v6 = vmul.f32 0.044715, %v2504_v42  ;;  %v2505_v38 = vmul.f32 %v2495_v11, %v12006_v41 }
 0x3fb   : > { %v2524_v63 = vadd.f32 %v2514_v6, %v12002_v37  ;;  %v2515_v31 = vmul.f32 0.044715, %v2505_v38 }
 0x3fc   : > { %v12013_v47 = vpop.f32.mrb[48].mxu1 }
 0x3fd   : > { %v2534_v21 = vmul.f32 0.7978846, %v2524_v63  ;;  %v2525_v12 = vadd.f32 %v2515_v31, %v12006_v41  ;;  %v2496_v52 = vmul.f32 %v12013_v47, %v12013_v47  ;;  %v9356_v24 = vpop.f32.mrb[49].mxu1 }
 0x3fe   : > { %v12018_v17 = vpop.f32.mrb[50].mxu1 }
 0x3ff   : > { %10464 = vtanh.f32 %v2534_v21  ;;  %v2535_v28 = vmul.f32 0.7978846, %v2525_v12  ;;  %v2506_v56 = vmul.f32 %v2496_v52, %v12013_v47  ;;  %v2497_v62 = vmul.f32 %v12018_v17, %v12018_v17  ;;  %v9357_v46 = vpop.f32.mrb[51].mxu1 }
 0x401   : > { %v10461_v34 = vpop.eup %10460  ;;  %10466 = vtanh.f32 %v2535_v28  ;;  %v2516_v33 = vmul.f32 0.044715, %v2506_v56  ;;  %v2507_v14 = vmul.f32 %v2497_v62, %v12018_v17 }
 0x402   : > { %v2552_v30 = vadd.f32 1.0, %v10461_v34 }
 0x403   : > { %v10463_v49 = vpop.eup %10462  ;;  %v2526_v22 = vadd.f32 %v2516_v33, %v12013_v47  ;;  %v2517_v18 = vmul.f32 0.044715, %v2507_v14 }
 0x404   : > { %v2562_v36 = vmul.f32 0.5, %v2552_v30  ;;  %v2553_v4 = vadd.f32 1.0, %v10463_v49  ;;  %v12025_v45 = vpop.f32.mrb[52].mxu1 }
 0x405   : > { %v2536_v55 = vmul.f32 0.7978846, %v2526_v22  ;;  %v2527_v16 = vadd.f32 %v2517_v18, %v12018_v17  ;;  %v2498_v54 = vmul.f32 %v12025_v45, %v12025_v45  ;;  %v9360_v13 = vpop.f32.mrb[53].mxu1 }
 0x406   : > { %v2563_v59 = vmul.f32 0.5, %v2553_v4  ;;  %v12030_v43 = vpop.f32.mrb[54].mxu1  ;;  %v2572_v0 = vmul.f32 %v2562_v36, %v2443_v25 }
 0x407   : > { %10468 = vtanh.f32 %v2536_v55  ;;  %v2537_v50 = vmul.f32 0.7978846, %v2527_v16  ;;  %v2508_v5 = vmul.f32 %v2498_v54, %v12025_v45  ;;  %v2499_v32 = vmul.f32 %v12030_v43, %v12030_v43  ;;  %v9361_v58 = vpop.f32.mrb[55].mxu1 }
 0x408   : > { %v2573_v35 = vmul.f32 %v2563_v59, %v2446_v44 }
 0x409   : > { %v10465_v51 = vpop.eup %10464  ;;  %10470 = vtanh.f32 %v2537_v50  ;;  %v2518_v57 = vmul.f32 0.044715, %v2508_v5  ;;  %v2509_v42 = vmul.f32 %v2499_v32, %v12030_v43 }
 0x40a   : > { %v2554_v11 = vadd.f32 1.0, %v10465_v51  ;;  %v12036_v7 = vpack.c.bf16 %v2573_v35, %v2572_v0 }
 0x40b   : > { %v10467_v6 = vpop.eup %10466  ;;  %v2528_v38 = vadd.f32 %v2518_v57, %v12025_v45  ;;  %v2519_v63 = vmul.f32 0.044715, %v2509_v42 }
 0x40c   : > { %v2564_v31 = vmul.f32 0.5, %v2554_v11  ;;  %v2555_v21 = vadd.f32 1.0, %v10467_v6  ;;  %v12039_v12 = vpop.f32.mrb[56].mxu1  ;;  %9367 = vmatpush3.bf16.msra.mxu0 %v12036_v7  ;;  %9451 = vmatpush3.bf16.msra.mxu1 %v12036_v7 }
 0x40d   : > { %v2538_v25 = vmul.f32 0.7978846, %v2528_v38  ;;  %v2529_v44 = vadd.f32 %v2519_v63, %v12030_v43  ;;  %v2500_v52 = vmul.f32 %v12039_v12, %v12039_v12  ;;  %v9364_v24 = vpop.f32.mrb[57].mxu1  ;;  %9368 = vmatprep.subr.bf16.mxu0 %v13933_v19  ;;  %9452 = vmatprep.subr.bf16.mxu1 %v13933_v19 }
 0x40e   : > { %v2565_v28 = vmul.f32 0.5, %v2555_v21  ;;  %v2478_v56 = vpop.f32.mrb[58].mxu1  ;;  %v2574_v14 = vmul.f32 %v2564_v31, %v12002_v37  ;;  %v10802_v24 = vmov 65535  }
 0x40f   : > { %10472 = vtanh.f32 %v2538_v25  ;;  %v2539_v62 = vmul.f32 0.7978846, %v2529_v44  ;;  %v2510_v46 = vmul.f32 %v2500_v52, %v12039_v12  ;;  %v2501_v34 = vmul.f32 %v2478_v56, %v2478_v56  ;;  %v9365_v33 = vpop.f32.mrb[59].mxu1 }
 0x410   : > { %v2575_v30 = vmul.f32 %v2565_v28, %v12006_v41  ;;  %v13954_v33 = vpack.c.bf16 %v11284_v23, %v11278_v20  ;;  %v13955_v20 = vpack.c.bf16 %v11303_v29, %v11297_v26  ;;  %v8405_v23 = vsel %vm1634_vm1, 1.0, %v13933_v19  ;;  %vm13962_vm1 = vmmov %vm13961_vm0 }
 0x411   : > { %v10469_v49 = vpop.eup %10468  ;;  %10474 = vtanh.f32 %v2539_v62  ;;  %v2520_v22 = vmul.f32 0.044715, %v2510_v46  ;;  %v2511_v18 = vmul.f32 %v2501_v34, %v2478_v56  ;;  %v2606_v26 = vpack.c.bf16 %v8405_v23, %v8405_v23 }
 0x412   : > { %v2556_v36 = vadd.f32 1.0, %v10469_v49  ;;  %v2608_v4 = vpack.c.bf16 %v2575_v30, %v2574_v14  ;;  %v2935_v29 = vpack.c.bf16 %v8499_v1, %v8499_v1 }
 0x413   : > { %v10471_v55 = vpop.eup %10470  ;;  %v2530_v16 = vadd.f32 %v2520_v22, %v12039_v12  ;;  %v2521_v54 = vmul.f32 0.044715, %v2511_v18 }
 0x414   : > { %v2566_v13 = vmul.f32 0.5, %v2556_v36  ;;  %v2557_v59 = vadd.f32 1.0, %v10471_v55  ;;  %9369 = vmatpush3.bf16.msra.mxu0 %v2608_v4  ;;  %9453 = vmatpush3.bf16.msra.mxu1 %v2608_v4 }
 0x415   : > { %v2540_v50 = vmul.f32 0.7978846, %v2530_v16  ;;  %v2531_v5 = vadd.f32 %v2521_v54, %v2478_v56  ;;  %9370 = vmatprep.subr.bf16.mxu0 %v13933_v19  ;;  %9454 = vmatprep.subr.bf16.mxu1 %v13933_v19 }
 0x416   : > { %v2567_v37 = vmul.f32 0.5, %v2557_v59  ;;  %v2576_v32 = vmul.f32 %v2566_v13, %v12013_v47 }
 0x417   : > { %10476 = vtanh.f32 %v2540_v50  ;;  %v2541_v41 = vmul.f32 0.7978846, %v2531_v5 }
 0x418   : > { %v2577_v58 = vmul.f32 %v2567_v37, %v12018_v17 }
 0x419   : > { %v10473_v0 = vpop.eup %10472  ;;  %10478 = vtanh.f32 %v2541_v41 }
 0x41a   : > { %v2558_v35 = vadd.f32 1.0, %v10473_v0  ;;  %v2609_v51 = vpack.c.bf16 %v2577_v58, %v2576_v32 }
 0x41b   : > { %v10475_v57 = vpop.eup %10474 }
 0x41c   : > { %v2568_v42 = vmul.f32 0.5, %v2558_v35  ;;  %v2559_v11 = vadd.f32 1.0, %v10475_v57  ;;  %9371 = vmatpush3.bf16.msra.mxu0 %v2609_v51  ;;  %9455 = vmatpush3.bf16.msra.mxu1 %v2609_v51 }
 0x41d   : > { %9372 = vmatprep.subr.bf16.mxu0 %v13933_v19  ;;  %9456 = vmatprep.subr.bf16.mxu1 %v13933_v19 }
 0x41e   : > { %v2569_v6 = vmul.f32 0.5, %v2559_v11  ;;  %v2578_v38 = vmul.f32 %v2568_v42, %v12025_v45  ;;  %v2624_v45 = vsel %vm2622_vm9, 4294967295, %v10802_v24 }
 0x41f   : > { %v2625_v62 = vsel %vm2623_vm3, %v2624_v45, 0  ;;  %vm13971_vm3 = vmmov %vm13961_vm0 }
 0x420   : > { %v2579_v47 = vmul.f32 %v2569_v6, %v12030_v43 }
 0x421   : > { %v10477_v63 = vpop.eup %10476 }
 0x422   : > { %v2560_v17 = vadd.f32 1.0, %v10477_v63  ;;  %v2610_v31 = vpack.c.bf16 %v2579_v47, %v2578_v38 }
 0x423   : > { %v10479_v21 = vpop.eup %10478 }
 0x424   : > { %v2570_v25 = vmul.f32 0.5, %v2560_v17  ;;  %v2561_v44 = vadd.f32 1.0, %v10479_v21  ;;  %9373 = vmatpush3.bf16.msra.mxu0 %v2610_v31  ;;  %9457 = vmatpush3.bf16.msra.mxu1 %v2610_v31  ;;  %v10214_v21 = vld [vmem:[%s10840_s25] sm:$0xff]  }
 0x425   : > { %9374 = vmatprep.subr.bf16.mxu0 %v13933_v19  ;;  %9458 = vmatprep.subr.bf16.mxu1 %v13933_v19 }
 0x426   : > { %v2571_v52 = vmul.f32 0.5, %v2561_v44  ;;  %v2580_v43 = vmul.f32 %v2570_v25, %v12039_v12  ;;  %v10212_v12 = vld [vmem:[%s10840_s25 + $0x30] sm:$0xff]  }
 0x428   : > { %v2581_v28 = vmul.f32 %v2571_v52, %v2478_v56  ;;  %v10215_v52 = vld [vmem:[%s10840_s25 + $0x8] sm:$0xff]  }
 0x42a   : > { %v2611_v46 = vpack.c.bf16 %v2581_v28, %v2580_v43  ;;  %v10216_v28 = vld [vmem:[%s10840_s25 + $0x10] sm:$0xff]  }
 0x42c   : > { %v2627_v34 = vand.u32 %v2625_v62, %v2611_v46 }
 0x42e   : > { %9375 = vmatpush3.bf16.msra.mxu0 %v2627_v34  ;;  %9459 = vmatpush3.bf16.msra.mxu1 %v2627_v34 }
 0x42f   : > { %9388 = vmatprep.subr.bf16.mxu0 %v13933_v19  ;;  %9492 = vmatprep.subr.bf16.mxu1 %v13933_v19 }
 0x431   : > { %9377 = vmatmul.mubr.msk.bf16.vlgmr.msra.gmra.mrb[40].mxu0 %vm2612_vm4, %v13954_v33  ;;  %9461 = vmatmul.mubr.msk.bf16.vlgmr.msra.gmra.mrb[60].mxu1 %vm2612_vm4, %v2267_v39  ;;  %v13957_v39 = vpack.c.bf16 %v11211_v15, %v13956_v9  ;;  %v2688_v15 = vpack.c.bf16 %v8443_v53, %v8443_v53  ;;  %v10219_v9 = vld [vmem:[%s10840_s25 + $0x48] sm:$0xff]  }
 0x432   : > { %9389 = vmatpush3.bf16.msra.mxu0 %v12036_v7  ;;  %9380 = vmatprep.mubr.msk.bf16.mxu0 %vm10801_vm2, %v13933_v19  ;;  %v10211_v7 = vld [vmem:[%s10840_s25 + $0x28] sm:$0xff]  }
 0x433   : > { %9390 = vmatprep.subr.bf16.mxu0 %v13933_v19  ;;  %9464 = vmatprep.mubr.msk.bf16.mxu1 %vm10801_vm2, %v13933_v19 }
 0x436   : > { %9391 = vmatpush3.bf16.msra.mxu0 %v2608_v4 }
 0x437   : > { %9392 = vmatprep.subr.bf16.mxu0 %v13933_v19 }
 0x439   : > { %9381 = vmatmul.mubr.msk.bf16.gmra.mrb[44].mxu0 %vm2612_vm4, %v13955_v20  ;;  %9465 = vmatmul.mubr.msk.bf16.gmra.mrb[64].mxu1 %vm2612_vm4, %v2269_v3  ;;  %v13960_v3 = vpack.c.bf16 %v13958_v40, %v13959_v2  ;;  %v10221_v40 = vld [vmem:[%s10840_s25 + $0x58] sm:$0xff]  }
 0x43a   : > { %9393 = vmatpush3.bf16.msra.mxu0 %v2609_v51  ;;  %9384 = vmatprep.mubr.msk.bf16.mxu0 %vm10801_vm2, %v13933_v19 }
 0x43b   : > { %9394 = vmatprep.subr.bf16.mxu0 %v13933_v19  ;;  %9468 = vmatprep.mubr.msk.bf16.mxu1 %vm10801_vm2, %v13933_v19 }
 0x43e   : > { %9395 = vmatpush3.bf16.msra.mxu0 %v2610_v31 }
 0x43f   : > { %9396 = vmatprep.subr.bf16.mxu0 %v13933_v19 }
 0x441   : > { %9385 = vmatmul.mubr.msk.bf16.gmra.mrb[48].mxu0 %vm2612_vm4, %v2606_v26  ;;  %9469 = vmatmul.mubr.msk.bf16.gmra.mrb[68].mxu1 %vm2612_vm4, %v2935_v29  ;;  %v10218_v29 = vld [vmem:[%s10840_s25 + $0x40] sm:$0xff]  }
 0x442   : > { %9397 = vmatpush3.bf16.msra.mxu0 %v2627_v34  ;;  %9398 = vmatprep.mubr.msk.bf16.mxu0 %vm10801_vm2, %v13933_v19  ;;  %v10217_v34 = vld [vmem:[%s10840_s25 + $0x18] sm:$0xff]  }
 0x443   : > { %9410 = vmatprep.subr.bf16.mxu0 %v13933_v19  ;;  %9500 = vmatprep.mubr.msk.bf16.mxu1 %vm10801_vm2, %v13933_v19 }
 0x449   : > { %9399 = vmatmul.mubr.msk.bf16.vlgmr.msra.gmra.mrb[52].mxu0 %vm2612_vm4, %v13957_v39  ;;  %v10220_v39 = vld [vmem:[%s10840_s25 + $0x50] sm:$0xff]  }
 0x44a   : > { %9402 = vmatprep.mubr.msk.bf16.mxu0 %vm10801_vm2, %v13933_v19  ;;  %9411 = vmatpush3.bf16.msra.mxu0 %v10210_v60 }
 0x44b   : > { %9412 = vmatprep.subr.bf16.mxu0 %v13933_v19 }
 0x44e   : > { %9413 = vmatpush3.bf16.msra.mxu0 %v10211_v7 }
 0x44f   : > { %9414 = vmatprep.subr.bf16.mxu0 %v13933_v19 }
 0x451   : > { %9403 = vmatmul.mubr.msk.bf16.gmra.mrb[56].mxu0 %vm2612_vm4, %v13960_v3 }
 0x452   : > { %9406 = vmatprep.mubr.msk.bf16.mxu0 %vm10801_vm2, %v13933_v19  ;;  %9415 = vmatpush3.bf16.msra.mxu0 %v10212_v12 }
 0x453   : > { %9416 = vmatprep.subr.bf16.mxu0 %v13933_v19 }
 0x456   : > { %9417 = vmatpush3.bf16.msra.mxu0 %v10213_v48 }
 0x457   : > { %9430 = vmatprep.subr.bf16.mxu0 %v13933_v19 }
 0x459   : > { %9407 = vmatmul.mubr.msk.bf16.gmra.mrb[60].mxu0 %vm2612_vm4, %v2688_v15  ;;  %vm13972_vm4 = vmmov %vm13961_vm0 }
 0x45a   : > { %9418 = vmatprep.mubr.msk.bf16.mxu0 %vm10801_vm2, %v13933_v19 }
 0x504   : > { %v12137_v56 = vpop.f32.mrb[40].mxu0  ;;  %v12139_v14 = vpop.f32.mrb[60].mxu1 }
 0x505   : > { %v9378_v30 = vpop.f32.mrb[41].mxu0  ;;  %v9462_v49 = vpop.f32.mrb[61].mxu1 }
 0x506   : > { %v2666_v22 = vpop.f32.mrb[42].mxu0  ;;  %v12141_v18 = vpop.f32.mrb[62].mxu1 }
 0x507   : > { %v2685_v36 = vpack.c.bf16 %v2666_v22, %v12137_v56  ;;  %v9379_v4 = vpop.f32.mrb[43].mxu0  ;;  %v3001_v55 = vpack.c.bf16 %v12141_v18, %v12139_v14  ;;  %v9463_v16 = vpop.f32.mrb[63].mxu1 }
 0x50c   : > { %v2671_v54 = vpop.f32.mrb[44].mxu0  ;;  %v12146_v13 = vpop.f32.mrb[64].mxu1 }
 0x50d   : > { %v9382_v59 = vpop.f32.mrb[45].mxu0  ;;  %v9466_v50 = vpop.f32.mrb[65].mxu1 }
 0x50e   : > { %v2674_v5 = vpop.f32.mrb[46].mxu0  ;;  %v12148_v37 = vpop.f32.mrb[66].mxu1 }
 0x50f   : > { %v2686_v41 = vpack.c.bf16 %v2674_v5, %v2671_v54  ;;  %v9383_v32 = vpop.f32.mrb[47].mxu0  ;;  %v3002_v58 = vpack.c.bf16 %v12148_v37, %v12146_v13  ;;  %v9467_v0 = vpop.f32.mrb[67].mxu1 }
 0x514   : > { %v2679_v35 = vpop.f32.mrb[48].mxu0  ;;  %v12152_v51 = vpop.f32.mrb[68].mxu1 }
 0x515   : > { %v9386_v57 = vpop.f32.mrb[49].mxu0  ;;  %v9470_v42 = vpop.f32.mrb[69].mxu1  ;;  %v2687_v2 = vpack.c.bf16 %v2679_v35, %v2679_v35  ;;  %v3003_v3 = vpack.c.bf16 %v12152_v51, %v12152_v51 }
 0x516   : > { %v2682_v11 = vpop.f32.mrb[50].mxu0  ;;  %v2998_v6 = vpop.f32.mrb[70].mxu1 }
 0x517   : > { %v9387_v38 = vpop.f32.mrb[51].mxu0  ;;  %v9471_v47 = vpop.f32.mrb[71].mxu1 }
 0x51c   : > { %v2732_v63 = vpop.f32.mrb[52].mxu0 }
 0x51d   : > { %v9400_v17 = vpop.f32.mrb[53].mxu0 }
 0x51e   : > { %v2735_v31 = vpop.f32.mrb[54].mxu0 }
 0x51f   : > { %v2754_v25 = vpack.c.bf16 %v2735_v31, %v2732_v63  ;;  %v9401_v44 = vpop.f32.mrb[55].mxu0 }
 0x521   : > { %9419 = vmatmul.mubr.msk.bf16.vlgmr.msra.gmra.mrb[64].mxu0 %vm13961_vm0, %v2754_v25 }
 0x522   : > { %9422 = vmatprep.mubr.msk.bf16.mxu0 %vm10801_vm2, %v13933_v19  ;;  %9431 = vmatpush3.bf16.msra.mxu0 %v10214_v21 }
 0x523   : > { %9432 = vmatprep.subr.bf16.mxu0 %v13933_v19 }
 0x524   : > { %v2740_v24 = vpop.f32.mrb[56].mxu0 }
 0x525   : > { %v9404_v45 = vpop.f32.mrb[57].mxu0 }
 0x526   : > { %v2743_v43 = vpop.f32.mrb[58].mxu0  ;;  %9433 = vmatpush3.bf16.msra.mxu0 %v10215_v52 }
 0x527   : > { %v2755_v62 = vpack.c.bf16 %v2743_v43, %v2740_v24  ;;  %v9405_v46 = vpop.f32.mrb[59].mxu0  ;;  %9434 = vmatprep.subr.bf16.mxu0 %v13933_v19 }
 0x529   : > { %9423 = vmatmul.mubr.msk.bf16.gmra.mrb[68].mxu0 %vm13962_vm1, %v2755_v62  ;;  %vm3102_vm1 = vcmp.lt.s32.totalorder %v11636_v61, 39  ;;  %v10248_v61 = vld [vmem:[%s10865_s19 + $0xb0] sm:$0xff]  }
 0x52a   : > { %9426 = vmatprep.mubr.msk.bf16.mxu0 %vm10801_vm2, %v13933_v19  ;;  %9435 = vmatpush3.bf16.msra.mxu0 %v10216_v28 }
 0x52b   : > { %9436 = vmatprep.subr.bf16.mxu0 %v13933_v19 }
 0x52c   : > { %v2748_v33 = vpop.f32.mrb[60].mxu0 }
 0x52d   : > { %v2756_v20 = vpack.c.bf16 %v2748_v33, %v2748_v33  ;;  %v9408_v23 = vpop.f32.mrb[61].mxu0 }
 0x52e   : > { %v2751_v1 = vpop.f32.mrb[62].mxu0  ;;  %9437 = vmatpush3.bf16.msra.mxu0 %v10217_v34 }
 0x52f   : > { %v9409_v26 = vpop.f32.mrb[63].mxu0  ;;  %9472 = vmatprep.subr.bf16.mxu0 %v13933_v19 }
 0x531   : > { %9427 = vmatmul.mubr.msk.bf16.gmra.mrb[72].mxu0 %vm13963_vm6, %v2756_v20  ;;  %vm13973_vm6 = vmmov %vm13961_vm0 }
 0x532   : > { %9438 = vmatprep.mubr.msk.bf16.mxu0 %vm10801_vm2, %v13933_v19 }
 0x539   : > { %9439 = vmatmul.mubr.msk.bf16.vlgmr.msra.gmra.mrb[64].mxu0 %vm13964_vm10, %v2685_v36  ;;  %vm13974_vm10 = vmmov %vm13961_vm0 }
 0x53a   : > { %9442 = vmatprep.mubr.msk.bf16.mxu0 %vm10801_vm2, %v13933_v19  ;;  %9473 = vmatpush3.bf16.msra.mxu0 %v10218_v29 }
 0x53b   : > { %9474 = vmatprep.subr.bf16.mxu0 %v13933_v19 }
 0x53e   : > { %9475 = vmatpush3.bf16.msra.mxu0 %v10219_v9 }
 0x53f   : > { %9476 = vmatprep.subr.bf16.mxu0 %v13933_v19 }
 0x541   : > { %9443 = vmatmul.mubr.msk.bf16.gmra.mrb[68].mxu0 %vm13965_vm15, %v2686_v41  ;;  %vm13975_vm15 = vmmov %vm13961_vm0 }
 0x542   : > { %9446 = vmatprep.mubr.msk.bf16.mxu0 %vm10801_vm2, %v13933_v19  ;;  %9477 = vmatpush3.bf16.msra.mxu0 %v10220_v39 }
 0x543   : > { %9478 = vmatprep.subr.bf16.mxu0 %v13933_v19 }
 0x546   : > { %9479 = vmatpush3.bf16.msra.mxu0 %v10221_v40 }
 0x547   : > { %9512 = vmatprep.subr.bf16.mxu0 %v13933_v19 }
 0x549   : > { %9447 = vmatmul.mubr.msk.bf16.gmra.mrb[72].mxu0 %vm13966_vm13, %v2687_v2  ;;  %vm13976_vm13 = vmmov %vm13961_vm0 }
 0x54a   : > { %9480 = vmatprep.mubr.msk.bf16.mxu0 %vm10801_vm2, %v13933_v19 }
 0x551   : > { %9481 = vmatmul.mubr.msk.bf16.vlgmr.msra.gmra.mrb[64].mxu0 %vm13967_vm14, %v3001_v55  ;;  %vm13977_vm14 = vmmov %vm13961_vm0 }
 0x552   : > { %9484 = vmatprep.mubr.msk.bf16.mxu0 %vm10801_vm2, %v13933_v19 }
 0x559   : > { %9485 = vmatmul.mubr.msk.bf16.gmra.mrb[68].mxu0 %vm13968_vm8, %v3002_v58  ;;  %vm13978_vm8 = vmmov %vm13961_vm0 }
 0x55a   : > { %9488 = vmatprep.mubr.msk.bf16.mxu0 %vm10801_vm2, %v13933_v19 }
 0x561   : > { %9489 = vmatmul.mubr.msk.bf16.gmra.mrb[72].mxu0 %vm13969_vm11, %v3003_v3  ;;  %vm13980_vm11 = vmmov %vm13961_vm0 }
 0x562   : > { %9528 = vmatprep.mubr.msk.bf16.mxu0 %vm10801_vm2, %v13933_v19 }
 0x624   : > { %v3071_v53 = vpop.f32.mrb[64].mxu0 }
 0x625   : > { %v3103_v15 = vmul.f32 %v3071_v53, %v3071_v53  ;;  %v9482_v60 = vpop.f32.mrb[65].mxu0 }
 0x626   : > { %v3074_v7 = vpop.f32.mrb[66].mxu0 }
 0x627   : > { %v3108_v12 = vmul.f32 %v3103_v15, %v3071_v53  ;;  %v3104_v48 = vmul.f32 %v3074_v7, %v3074_v7  ;;  %v9483_v56 = vpop.f32.mrb[67].mxu0 }
 0x629   : > { %v3113_v14 = vmul.f32 0.044715, %v3108_v12  ;;  %v3109_v30 = vmul.f32 %v3104_v48, %v3074_v7 }
 0x62b   : > { %v3118_v49 = vadd.f32 %v3113_v14, %v3071_v53  ;;  %v3114_v22 = vmul.f32 0.044715, %v3109_v30 }
 0x62c   : > { %v3079_v18 = vpop.f32.mrb[68].mxu0 }
 0x62d   : > { %v3123_v36 = vmul.f32 0.7978846, %v3118_v49  ;;  %v3119_v4 = vadd.f32 %v3114_v22, %v3074_v7  ;;  %v3105_v55 = vmul.f32 %v3079_v18, %v3079_v18  ;;  %v9486_v16 = vpop.f32.mrb[69].mxu0 }
 0x62e   : > { %v3082_v54 = vpop.f32.mrb[70].mxu0 }
 0x62f   : > { %10480 = vtanh.f32 %v3123_v36  ;;  %v3124_v13 = vmul.f32 0.7978846, %v3119_v4  ;;  %v3110_v59 = vmul.f32 %v3105_v55, %v3079_v18  ;;  %v3106_v50 = vmul.f32 %v3082_v54, %v3082_v54  ;;  %v9487_v5 = vpop.f32.mrb[71].mxu0 }
 0x631   : > { %10482 = vtanh.f32 %v3124_v13  ;;  %v3115_v37 = vmul.f32 0.044715, %v3110_v59  ;;  %v3111_v41 = vmul.f32 %v3106_v50, %v3082_v54 }
 0x633   : > { %v3120_v32 = vadd.f32 %v3115_v37, %v3079_v18  ;;  %v3116_v58 = vmul.f32 0.044715, %v3111_v41 }
 0x634   : > { %v3087_v0 = vpop.f32.mrb[72].mxu0 }
 0x635   : > { %v3125_v35 = vmul.f32 0.7978846, %v3120_v32  ;;  %v3121_v51 = vadd.f32 %v3116_v58, %v3082_v54  ;;  %v3107_v57 = vmul.f32 %v3087_v0, %v3087_v0  ;;  %v9490_v42 = vpop.f32.mrb[73].mxu0 }
 0x636   : > { %v3090_v11 = vpop.f32.mrb[74].mxu0  ;;  %v10222_v42 = vld [vmem:[%s13925_s8] sm:$0xff]  }
 0x637   : > { %10484 = vtanh.f32 %v3125_v35  ;;  %v3126_v6 = vmul.f32 0.7978846, %v3121_v51  ;;  %v3112_v38 = vmul.f32 %v3107_v57, %v3087_v0  ;;  %v9491_v47 = vpop.f32.mrb[75].mxu0  ;;  %9493 = vmatpush3.bf16.msra.mxu1 %v10222_v42  ;;  %v10223_v11 = vld [vmem:[%s13925_s8 + $0x8] sm:$0xff]   ;;  %v10241_v42 = vld [vmem:[%s10865_s19 + $0x38] sm:$0xff]  }
 0x638   : > { %9494 = vmatprep.subr.bf16.mxu1 %v13933_v19  ;;  %v10226_v47 = vld [vmem:[%s10865_s19 + $0x40] sm:$0xff]  }
 0x639   : > { %v10481_v63 = vpop.eup %10480  ;;  %10486 = vtanh.f32 %v3126_v6  ;;  %v3117_v17 = vmul.f32 0.044715, %v3112_v38  ;;  %v10224_v6 = vld [vmem:[%s13925_s8 + $0x10] sm:$0xff]   ;;  %v10225_v38 = vld [vmem:[%s13925_s8 + $0x18] sm:$0xff]   ;;  %9513 = vmatpush3.bf16.msra.mxu0 %v10226_v47  ;;  %s14001_s8 = smov 32  }
 0x63a   : > { %v3133_v31 = vadd.f32 1.0, %v10481_v63  ;;  %v10227_v63 = vld [vmem:[%s10865_s19 + $0x48] sm:$0xff]   ;;  %9514 = vmatprep.subr.bf16.mxu0 %v13933_v19 }
 0x63b   : > { %v10483_v21 = vpop.eup %10482  ;;  %v3122_v25 = vadd.f32 %v3117_v17, %v3087_v0  ;;  %9495 = vmatpush3.bf16.msra.mxu1 %v10223_v11  ;;  %v10229_v17 = vld [vmem:[%s10865_s19 + $0x50] sm:$0xff]   ;;  %v8570_v11 = vld [vmem:[%s10860_s14] ss:$0 sm:$0xff] }
 0x63c   : > { %v3138_v44 = vmul.f32 0.5, %v3133_v31  ;;  %v3134_v52 = vadd.f32 1.0, %v10483_v21  ;;  %9496 = vmatprep.subr.bf16.mxu1 %v13933_v19  ;;  %v10231_v31 = vld [vmem:[%s10865_s19 + $0x58] sm:$0xff]   ;;  %v10233_v21 = vld [vmem:[%s10865_s19 + $0x60] sm:$0xff]  }
 0x63d   : > { %v3127_v24 = vmul.f32 0.7978846, %v3122_v25  ;;  %9515 = vmatpush3.bf16.msra.mxu0 %v10227_v63  ;;  %v10235_v25 = vld [vmem:[%s10865_s19 + $0x68] sm:$0xff]  }
 0x63e   : > { %v3143_v45 = vmul.f32 %v3138_v44, %v3071_v53  ;;  %v3139_v43 = vmul.f32 0.5, %v3134_v52  ;;  %9516 = vmatprep.subr.bf16.mxu0 %v13933_v19  ;;  %v10237_v44 = vld [vmem:[%s10865_s19 + $0x70] sm:$0xff]  }
 0x63f   : > { %10488 = vtanh.f32 %v3127_v24  ;;  %9497 = vmatpush3.bf16.msra.mxu1 %v10224_v6 }
 0x640   : > { %v3155_v28 = vsel %vm13970_vm12, %v3143_v45, 0.0  ;;  %v3144_v62 = vmul.f32 %v3139_v43, %v3074_v7  ;;  %9498 = vmatprep.subr.bf16.mxu1 %v13933_v19  ;;  %vm13981_vm12 = vmmov %vm13961_vm0 }
 0x641   : > { %v10485_v46 = vpop.eup %10484  ;;  %3156 = vadd.xlane.f32.xlu0 %v3155_v28  ;;  %9517 = vmatpush3.bf16.msra.mxu0 %v10229_v17 }
 0x642   : > { %v3135_v34 = vadd.f32 1.0, %v10485_v46  ;;  %v3158_v20 = vsel %vm13971_vm3, %v3144_v62, 0.0  ;;  %9518 = vmatprep.subr.bf16.mxu0 %v13933_v19  ;;  %vm13982_vm3 = vmmov %vm13961_vm0 }
 0x643   : > { %v10487_v33 = vpop.eup %10486  ;;  %9499 = vmatpush3.bf16.msra.mxu1 %v10225_v38 }
 0x644   : > { %v3140_v23 = vmul.f32 0.5, %v3135_v34  ;;  %v3136_v1 = vadd.f32 1.0, %v10487_v33  ;;  %9540 = vmatprep.subr.bf16.mxu1 %v13933_v19 }
 0x645   : > { %3159 = vadd.xlane.f32.xlu0 %v3158_v20  ;;  %9519 = vmatpush3.bf16.msra.mxu0 %v10231_v31 }
 0x646   : > { %v3145_v26 = vmul.f32 %v3140_v23, %v3079_v18  ;;  %v3141_v29 = vmul.f32 0.5, %v3136_v1  ;;  %9520 = vmatprep.subr.bf16.mxu0 %v13933_v19 }
 0x648   : > { %v3161_v9 = vsel %vm13972_vm4, %v3145_v26, 0.0  ;;  %v3146_v39 = vmul.f32 %v3141_v29, %v3082_v54  ;;  %vm3408_vm4 = vcmask 1040384  }
 0x649   : > { %v10489_v40 = vpop.eup %10488  ;;  %3162 = vadd.xlane.f32.xlu1 %v3161_v9  ;;  %9521 = vmatpush3.bf16.msra.mxu0 %v10233_v21  ;;  %v8568_v9 = vld [vmem:[%s10845_s29] ss:$0 sm:$0xff] }
 0x64a   : > { %v3137_v2 = vadd.f32 1.0, %v10489_v40  ;;  %v3164_v3 = vsel %vm13961_vm0, %v3146_v39, 0.0  ;;  %9522 = vmatprep.subr.bf16.mxu0 %v13933_v19  ;;  %vm8597_vm0 = vmneg %vm3408_vm4  ;;  %v10242_v21 = vld [vmem:[%s10865_s19 + $0x80] sm:$0xff]  }
 0x64c   : > { %v3142_v53 = vmul.f32 0.5, %v3137_v2 }
 0x64d   : > { %3165 = vadd.xlane.f32.xlu1 %v3164_v3  ;;  %9523 = vmatpush3.bf16.msra.mxu0 %v10235_v25 }
 0x64e   : > { %v3147_v15 = vmul.f32 %v3142_v53, %v3087_v0  ;;  %9524 = vmatprep.subr.bf16.mxu0 %v13933_v19 }
 0x650   : > { %v3152_v60 = vsel %vm3102_vm1, %v3147_v15, 0.0 }
 0x651   : > { %v3167_v7 = vsel %vm13973_vm6, %v3152_v60, 0.0  ;;  %9525 = vmatpush3.bf16.msra.mxu0 %v10237_v44  ;;  %vm8598_vm6 = vmpackc.low %vm10799_vm5, %vm8597_vm0 }
 0x652   : > { %3168 = vadd.xlane.f32.xlu0 %v3167_v7  ;;  %9526 = vmatprep.subr.bf16.mxu0 %v13933_v19  ;;  %vm8586_vm5 = vmpackc.low %vm3102_vm1, %vm3102_vm1 }
 0x653   : > { %vm14003_vm0 = vmmov %vm13982_vm3 }
 0x6ce   : > { %v3157_v12 = vpop.xlane.xlu0 %3156 }
 0x6cf   : > { %v3171_v48 = vmul.f32 0.015625, %v3157_v12 }
 0x6d1   : > { %v12213_v56 = vsub.f32 %v3143_v45, %v3171_v48 }
 0x6d2   : > { %v3160_v14 = vpop.xlane.xlu0 %3159 }
 0x6d3   : > { %v3172_v30 = vmul.f32 0.015625, %v3160_v14  ;;  %v3181_v49 = vmul.f32 %v12213_v56, %v12213_v56 }
 0x6d5   : > { %v12217_v22 = vsub.f32 %v3144_v62, %v3172_v30  ;;  %v3186_v18 = vsel %vm13974_vm10, %v3181_v49, 0.0  ;;  %vm3907_vm10 = vcmp.lt.s32.totalorder %v11170_v27, 39 }
 0x6d6   : > { %v3163_v36 = vpop.xlane.xlu1 %3162  ;;  %3187 = vadd.xlane.f32.xlu1 %v3186_v18 }
 0x6d7   : > { %v3173_v4 = vmul.f32 0.015625, %v3163_v36  ;;  %v3182_v55 = vmul.f32 %v12217_v22, %v12217_v22 }
 0x6d9   : > { %v12222_v16 = vsub.f32 %v3145_v26, %v3173_v4  ;;  %v3189_v54 = vsel %vm13975_vm15, %v3182_v55, 0.0  ;;  %vm4296_vm15 = vcmask 326656  }
 0x6da   : > { %v3166_v13 = vpop.xlane.xlu1 %3165  ;;  %3190 = vadd.xlane.f32.xlu0 %v3189_v54 }
 0x6db   : > { %v3174_v59 = vmul.f32 0.015625, %v3166_v13  ;;  %v3183_v50 = vmul.f32 %v12222_v16, %v12222_v16 }
 0x6dd   : > { %v12227_v5 = vsub.f32 %v3146_v39, %v3174_v59  ;;  %v3192_v37 = vsel %vm13976_vm13, %v3183_v50, 0.0  ;;  %v10232_v50 = vld [vmem:[%s10865_s19 + $0x10] sm:$0xff]   ;;  %vm5196_vm13 = vcmask 785408  }
 0x6de   : > { %3193 = vadd.xlane.f32.xlu1 %v3192_v37 }
 0x6df   : > { %v3169_v41 = vpop.xlane.xlu0 %3168  ;;  %v3184_v32 = vmul.f32 %v12227_v5, %v12227_v5 }
 0x6e0   : > { %v3175_v58 = vmul.f32 0.015625, %v3169_v41  ;;  %v10234_v41 = vld [vmem:[%s10865_s19 + $0x18] sm:$0xff]  }
 0x6e1   : > { %v3195_v0 = vsel %vm13977_vm14, %v3184_v32, 0.0  ;;  %vm13986_vm14 = vmmov %vm13982_vm3 }
 0x6e2   : > { %v12233_v35 = vsub.f32 %v3152_v60, %v3175_v58  ;;  %3196 = vadd.xlane.f32.xlu0 %v3195_v0  ;;  %v8569_v60 = vld [vmem:[%s13979_s3] ss:$0 sm:$0xff]  ;;  %s13999_s3 = smov 96  }
 0x6e3   : > { %v10236_v58 = vld [vmem:[%s10865_s19 + $0x20] sm:$0xff]  }
 0x6e4   : > { %v3185_v51 = vmul.f32 %v12233_v35, %v12233_v35 }
 0x6e6   : > { %v3198_v57 = vsel %vm13978_vm8, %v3185_v51, 0.0  ;;  %v10239_v51 = vld [vmem:[%s10865_s19 + $0x78] sm:$0xff]   ;;  %vm13987_vm8 = vmmov %vm13982_vm3 }
 0x6e7   : > { %3199 = vadd.xlane.f32.xlu1 %v3198_v57  ;;  %v10240_v57 = vld [vmem:[%s10865_s19 + $0x30] sm:$0xff]   ;;  %9527 = vmatpush3.bf16.msra.mxu0 %v10239_v51 }
 0x6e8   : > { %9568 = vmatprep.subr.bf16.mxu0 %v13933_v19 }
 0x763   : > { %v3188_v52 = vpop.xlane.xlu1 %3187 }
 0x764   : > { %v3201_v24 = vmul.f32 0.015625, %v3188_v52 }
 0x766   : > { %v3206_v45 = vadd.f32 1e-05, %v3201_v24 }
 0x767   : > { %v3191_v43 = vpop.xlane.xlu0 %3190 }
 0x768   : > { %10490 = vrsqrt.f32 %v3206_v45  ;;  %v3202_v28 = vmul.f32 0.015625, %v3191_v43 }
 0x76a   : > { %v3207_v62 = vadd.f32 1e-05, %v3202_v28  ;;  %v10243_v28 = vld [vmem:[%s10865_s19 + $0x88] sm:$0xff]  }
 0x76b   : > { %v3194_v46 = vpop.xlane.xlu1 %3193 }
 0x76c   : > { %10492 = vrsqrt.f32 %v3207_v62  ;;  %v3203_v34 = vmul.f32 0.015625, %v3194_v46 }
 0x76e   : > { %v3208_v33 = vadd.f32 1e-05, %v3203_v34 }
 0x76f   : > { %v3197_v20 = vpop.xlane.xlu0 %3196 }
 0x770   : > { %10494 = vrsqrt.f32 %v3208_v33  ;;  %v3204_v23 = vmul.f32 0.015625, %v3197_v20 }
 0x772   : > { %v10491_v1 = vpop.eup %10490  ;;  %v3209_v26 = vadd.f32 1e-05, %v3204_v23 }
 0x773   : > { %v3216_v29 = vmul.f32 %v10491_v1, %v12213_v56  ;;  %v10228_v56 = vld [vmem:[%s10865_s19] sm:$0xff]   ;;  %v10244_v1 = vld [vmem:[%s10865_s19 + $0x90] sm:$0xff]  }
 0x774   : > { %10496 = vrsqrt.f32 %v3209_v26  ;;  %v3200_v39 = vpop.xlane.xlu1 %3199 }
 0x775   : > { %v3205_v40 = vmul.f32 0.015625, %v3200_v39  ;;  %v3227_v3 = vmul.f32 %v8568_v9, %v3216_v29 }
 0x776   : > { %v10493_v2 = vpop.eup %10492 }
 0x777   : > { %v3217_v53 = vmul.f32 %v10493_v2, %v12217_v22  ;;  %v3210_v15 = vadd.f32 1e-05, %v3205_v40  ;;  %v3238_v48 = vadd.f32 %v8569_v60, %v3227_v3  ;;  %v10230_v22 = vld [vmem:[%s10865_s19 + $0x8] sm:$0xff]   ;;  %v10245_v3 = vld [vmem:[%s10865_s19 + $0x98] sm:$0xff]  }
 0x779   : > { %v3228_v7 = vmul.f32 %v8568_v9, %v3217_v53  ;;  %10498 = vrsqrt.f32 %v3210_v15 }
 0x77a   : > { %v10495_v12 = vpop.eup %10494 }
 0x77b   : > { %v3239_v14 = vadd.f32 %v8569_v60, %v3228_v7  ;;  %v3218_v30 = vmul.f32 %v10495_v12, %v12222_v16 }
 0x77d   : > { %v3251_v49 = vpack.c.bf16 %v3239_v14, %v3238_v48  ;;  %v3229_v4 = vmul.f32 %v8568_v9, %v3218_v30  ;;  %v10246_v14 = vld [vmem:[%s10865_s19 + $0xa0] sm:$0xff]  }
 0x77e   : > { %v10497_v18 = vpop.eup %10496 }
 0x77f   : > { %9501 = vmatmul.mubr.msk.bf16.vlgmr.msra.gmra.mrb[72].mxu1 %vm13980_vm11, %v3251_v49  ;;  %v3219_v36 = vmul.f32 %v10497_v18, %v12227_v5  ;;  %v3240_v16 = vadd.f32 %v8569_v60, %v3229_v4  ;;  %v10247_v18 = vld [vmem:[%s10865_s19 + $0xa8] sm:$0xff]   ;;  %vm13988_vm11 = vmmov %vm13982_vm3 }
 0x780   : > { %9504 = vmatprep.mubr.msk.bf16.mxu1 %vm10801_vm2, %v13933_v19  ;;  %9541 = vmatpush3.bf16.msra.mxu1 %v10228_v56 }
 0x781   : > { %v3230_v55 = vmul.f32 %v8568_v9, %v3219_v36  ;;  %9542 = vmatprep.subr.bf16.mxu1 %v13933_v19 }
 0x783   : > { %v10499_v54 = vpop.eup %10498  ;;  %v3241_v13 = vadd.f32 %v8569_v60, %v3230_v55 }
 0x784   : > { %v3220_v59 = vmul.f32 %v10499_v54, %v12233_v35  ;;  %9543 = vmatpush3.bf16.msra.mxu1 %v10230_v22  ;;  %v10238_v35 = vld [vmem:[%s10865_s19 + $0x28] sm:$0xff]   ;;  %v10249_v22 = vld [vmem:[%s10865_s19 + $0xb8] sm:$0xff]  }
 0x785   : > { %v3252_v5 = vpack.c.bf16 %v3241_v13, %v3240_v16  ;;  %9544 = vmatprep.subr.bf16.mxu1 %v13933_v19 }
 0x786   : > { %v3231_v37 = vmul.f32 %v8568_v9, %v3220_v59 }
 0x787   : > { %9505 = vmatmul.mubr.msk.bf16.gmra.mrb[76].mxu1 %vm13981_vm12, %v3252_v5  ;;  %vm13990_vm12 = vmmov %vm13982_vm3 }
 0x788   : > { %9508 = vmatprep.mubr.msk.bf16.mxu1 %vm10801_vm2, %v13933_v19  ;;  %9545 = vmatpush3.bf16.msra.mxu1 %v10232_v50  ;;  %v3242_v32 = vadd.f32 %v8569_v60, %v3231_v37 }
 0x789   : > { %9546 = vmatprep.subr.bf16.mxu1 %v13933_v19 }
 0x78a   : > { %v3253_v0 = vpack.c.bf16 %v3242_v32, %v3242_v32 }
 0x78c   : > { %9547 = vmatpush3.bf16.msra.mxu1 %v10234_v41 }
 0x78d   : > { %9548 = vmatprep.subr.bf16.mxu1 %v13933_v19 }
 0x78f   : > { %9509 = vmatmul.mubr.msk.bf16.gmra.mrb[80].mxu1 %vm13982_vm3, %v3253_v0 }
 0x790   : > { %9549 = vmatpush3.bf16.msra.mxu1 %v10236_v58  ;;  %9556 = vmatprep.mubr.msk.bf16.mxu1 %vm10801_vm2, %v13933_v19 }
 0x791   : > { %9550 = vmatprep.subr.bf16.mxu1 %v13933_v19 }
 0x794   : > { %9551 = vmatpush3.bf16.msra.mxu1 %v10238_v35 }
 0x795   : > { %9552 = vmatprep.subr.bf16.mxu1 %v13933_v19 }
 0x798   : > { %9553 = vmatpush3.bf16.msra.mxu1 %v10240_v57 }
 0x799   : > { %9554 = vmatprep.subr.bf16.mxu1 %v13933_v19 }
 0x79c   : > { %9555 = vmatpush3.bf16.msra.mxu1 %v10241_v42 }
 0x852   : > { %v3328_v6 = vpop.f32.mrb[72].mxu1 }
 0x853   : > { %v12294_v38 = vadd.f32 %v8570_v11, %v3328_v6  ;;  %v9502_v47 = vpop.f32.mrb[73].mxu1 }
 0x854   : > { %v3331_v63 = vpop.f32.mrb[74].mxu1 }
 0x855   : > { %v12296_v17 = vadd.f32 %v8570_v11, %v3331_v63  ;;  %v9503_v31 = vpop.f32.mrb[75].mxu1  ;;  %v3409_v25 = vrot.slane %v12294_v38, 7  ;;  %v3424_v55 = vrot.slane %v12294_v38, 1 }
 0x857   : > { %v3410_v44 = vrot.slane %v12296_v17, 7  ;;  %v3442_v52 = vpack.c.bf16 %v12296_v17, %v12294_v38  ;;  %v3425_v4 = vrot.slane %v12296_v17, 1 }
 0x859   : > { %v3411_v24 = vsel %vm3408_vm4, %v3409_v25, %v3410_v44  ;;  %9529 = vmatmul.mubr.bf16.vlgmr.msra.gmra.mrb[76].mxu0 %v3442_v52  ;;  %v3426_v16 = vsel %vm2622_vm9, %v3424_v55, %v3425_v4 }
 0x85a   : > { %v8599_v45 = vpack.c.bf16 %v3411_v24, %v3409_v25  ;;  %9569 = vmatpush3.bf16.msra.mxu0 %v10242_v21  ;;  %v3336_v43 = vpop.f32.mrb[76].mxu1  ;;  %9532 = vmatprep.mubr.msk.bf16.mxu0 %vm10801_vm2, %v13933_v19 }
 0x85b   : > { %v12309_v62 = vadd.f32 %v8570_v11, %v3336_v43  ;;  %v9506_v46 = vpop.f32.mrb[77].mxu1  ;;  %9570 = vmatprep.subr.bf16.mxu0 %v13933_v19 }
 0x85c   : > { %v3339_v34 = vpop.f32.mrb[78].mxu1  ;;  %9557 = vmatmul.mubr.msk.bf16.vlgmr.msra.gmra.mrb[84].mxu1 %vm8598_vm6, %v8599_v45  ;;  %vm14004_vm6 = vmmov %vm14003_vm0 }
 0x85d   : > { %v3412_v33 = vrot.slane %v12309_v62, 7  ;;  %v12313_v20 = vadd.f32 %v8570_v11, %v3339_v34  ;;  %v9507_v23 = vpop.f32.mrb[79].mxu1  ;;  %9560 = vmatprep.mubr.msk.bf16.mxu1 %vm10801_vm2, %v13933_v19  ;;  %v3427_v36 = vrot.slane %v12309_v62, 1 }
 0x85e   : > { %9571 = vmatpush3.bf16.msra.mxu0 %v10243_v28 }
 0x85f   : > { %v3414_v26 = vrot.slane %v12313_v20, 7  ;;  %9572 = vmatprep.subr.bf16.mxu0 %v13933_v19  ;;  %v3443_v29 = vpack.c.bf16 %v12313_v20, %v12309_v62  ;;  %v3413_v9 = vsel %vm3408_vm4, %v3410_v44, %v3412_v33  ;;  %v3428_v54 = vsel %vm2622_vm9, %v3425_v4, %v3427_v36 }
 0x860   : > { %v3653_v13 = vpack.c.bf16 %v3428_v54, %v3426_v16  ;;  %v3429_v50 = vrot.slane %v12313_v20, 1 }
 0x861   : > { %9533 = vmatmul.mubr.bf16.gmra.mrb[80].mxu0 %v3443_v29  ;;  %v3415_v39 = vsel %vm3408_vm4, %v3412_v33, %v3414_v26 }
 0x862   : > { %9573 = vmatpush3.bf16.msra.mxu0 %v10244_v1  ;;  %v3344_v40 = vpop.f32.mrb[80].mxu1  ;;  %v3440_v2 = vpack.c.bf16 %v3415_v39, %v3413_v9  ;;  %9536 = vmatprep.mubr.msk.bf16.mxu0 %vm10801_vm2, %v13933_v19  ;;  %v3430_v37 = vsel %vm2622_vm9, %v3427_v36, %v3429_v50 }
 0x863   : > { %v3345_v53 = vadd.f32 %v8570_v11, %v3344_v40  ;;  %v9510_v15 = vpop.f32.mrb[81].mxu1  ;;  %9574 = vmatprep.subr.bf16.mxu0 %v13933_v19 }
 0x864   : > { %v3347_v60 = vpop.f32.mrb[82].mxu1  ;;  %9561 = vmatmul.mubr.bf16.gmra.mrb[88].mxu1 %v3440_v2 }
 0x865   : > { %v12330_v7 = vsel %vm3102_vm1, %v3345_v53, 0.0  ;;  %v9511_v12 = vpop.f32.mrb[83].mxu1  ;;  %9564 = vmatprep.mubr.msk.bf16.mxu1 %vm10801_vm2, %v13933_v19  ;;  %v8587_v30 = vpack.c.bf16 %v3345_v53, %v3345_v53  ;;  %vm8609_vm1 = vmpackc.low %vm2622_vm9, %vm2622_vm9 }
 0x866   : > { %v3416_v48 = vrot.slane %v12330_v7, 7  ;;  %9575 = vmatpush3.bf16.msra.mxu0 %v10245_v3  ;;  %v3431_v59 = vrot.slane %v12330_v7, 1  ;;  %v8612_v3 = vld [vmem:[%s10870_s24] ss:$0 sm:$0xff] }
 0x867   : > { %9576 = vmatprep.subr.bf16.mxu0 %v13933_v19 }
 0x868   : > { %v3417_v56 = vsel %vm3408_vm4, %v3414_v26, %v3416_v48  ;;  %v3432_v5 = vsel %vm2622_vm9, %v3429_v50, %v3431_v59  ;;  %v8610_v32 = vpack.c.bf16 %v3431_v59, %v3431_v59  ;;  %vm4367_vm9 = vcmask 1043456   ;;  %vm14002_vm4 = vmmov %vm13982_vm3 }
 0x869   : > { %9537 = vmatmul.mubr.msk.bf16.gmra.mrb[84].mxu0 %vm8586_vm5, %v8587_v30  ;;  %v3441_v49 = vpack.c.bf16 %v3417_v56, %v3417_v56  ;;  %v3654_v41 = vpack.c.bf16 %v3432_v5, %v3430_v37  ;;  %vm14005_vm5 = vmmov %vm14003_vm0 }
 0x86a   : > { %9577 = vmatpush3.bf16.msra.mxu0 %v10246_v14  ;;  %9584 = vmatprep.mubr.msk.bf16.mxu0 %vm10801_vm2, %v13933_v19 }
 0x86b   : > { %9578 = vmatprep.subr.bf16.mxu0 %v13933_v19 }
 0x86c   : > { %9565 = vmatmul.mubr.bf16.gmra.mrb[92].mxu1 %v3441_v49 }
 0x86d   : > { %4121 = vmatprep.mubr.bf16.mxu1 %v13932_v10 }
 0x86e   : > { %9579 = vmatpush3.bf16.msra.mxu0 %v10247_v18 }
 0x86f   : > { %9580 = vmatprep.subr.bf16.mxu0 %v13933_v19 }
 0x872   : > { %9581 = vmatpush3.bf16.msra.mxu0 %v10248_v61 }
 0x873   : > { %9582 = vmatprep.subr.bf16.mxu0 %v13933_v19 }
 0x876   : > { %9583 = vmatpush3.bf16.msra.mxu0 %v10249_v22 }
 0x877   : > { %9596 = vmatprep.subr.bf16.mxu0 %v13933_v19 }
 0x879   : > { %9585 = vmatmul.mubr.bf16.vlgmr.msra.gmra.mrb[88].mxu0 %v3653_v13 }
 0x87a   : > { %9588 = vmatprep.mubr.msk.bf16.mxu0 %vm10801_vm2, %v13933_v19 }
 0x881   : > { %9589 = vmatmul.mubr.bf16.gmra.mrb[92].mxu0 %v3654_v41 }
 0x882   : > { %9592 = vmatprep.mubr.msk.bf16.mxu0 %vm10801_vm2, %v13933_v19 }
 0x889   : > { %9593 = vmatmul.mubr.msk.bf16.gmra.mrb[96].mxu0 %vm8609_vm1, %v8610_v32  ;;  %vm14006_vm1 = vmmov %vm14003_vm0 }
 0x88a   : > { %9612 = vmatprep.mubr.msk.bf16.mxu0 %vm10801_vm2, %v13933_v19 }
 0x92c   : > { %v3527_v58 = vpop.f32.mrb[76].mxu0 }
 0x92d   : > { %v9530_v0 = vpop.f32.mrb[77].mxu0 }
 0x92e   : > { %v3530_v35 = vpop.f32.mrb[78].mxu0 }
 0x92f   : > { %v9531_v51 = vpop.f32.mrb[79].mxu0  ;;  %v3631_v57 = vpop.f32.mrb[84].mxu1 }
 0x930   : > { %v3632_v42 = vadd.f32 %v3631_v57, %v3527_v58  ;;  %v9558_v11 = vpop.f32.mrb[85].mxu1 }
 0x931   : > { %v3634_v6 = vpop.f32.mrb[86].mxu1 }
 0x932   : > { %v3635_v47 = vadd.f32 %v3634_v6, %v3530_v35  ;;  %v9559_v63 = vpop.f32.mrb[87].mxu1 }
 0x934   : > { %v3535_v31 = vpop.f32.mrb[80].mxu0 }
 0x935   : > { %v9534_v21 = vpop.f32.mrb[81].mxu0 }
 0x936   : > { %v3538_v25 = vpop.f32.mrb[82].mxu0 }
 0x937   : > { %v9535_v44 = vpop.f32.mrb[83].mxu0  ;;  %v3639_v52 = vpop.f32.mrb[88].mxu1 }
 0x938   : > { %v3640_v24 = vadd.f32 %v3639_v52, %v3535_v31  ;;  %v9562_v45 = vpop.f32.mrb[89].mxu1 }
 0x939   : > { %v3642_v43 = vpop.f32.mrb[90].mxu1 }
 0x93a   : > { %v3643_v28 = vadd.f32 %v3642_v43, %v3538_v25  ;;  %v9563_v46 = vpop.f32.mrb[91].mxu1 }
 0x93c   : > { %v3543_v34 = vpop.f32.mrb[84].mxu0 }
 0x93d   : > { %v9538_v33 = vpop.f32.mrb[85].mxu0 }
 0x93e   : > { %v3546_v23 = vpop.f32.mrb[86].mxu0 }
 0x93f   : > { %v9539_v1 = vpop.f32.mrb[87].mxu0  ;;  %v3647_v26 = vpop.f32.mrb[92].mxu1 }
 0x940   : > { %v3648_v29 = vadd.f32 %v3647_v26, %v3543_v34  ;;  %v9566_v9 = vpop.f32.mrb[93].mxu1 }
 0x941   : > { %v3650_v39 = vpop.f32.mrb[94].mxu1 }
 0x942   : > { %v9567_v40 = vpop.f32.mrb[95].mxu1 }
 0x94c   : > { %v3738_v2 = vpop.f32.mrb[88].mxu0 }
 0x94d   : > { %v3760_v53 = vadd.f32 %v3738_v2, %v3632_v42  ;;  %v9586_v15 = vpop.f32.mrb[89].mxu0 }
 0x94e   : > { %v3741_v60 = vpop.f32.mrb[90].mxu0 }
 0x94f   : > { %v3772_v12 = vadd.f32 %v8612_v3, %v3760_v53  ;;  %v3761_v48 = vadd.f32 %v3741_v60, %v3635_v47  ;;  %v9587_v14 = vpop.f32.mrb[91].mxu0 }
 0x951   : > { %v3777_v30 = vmul.f32 %v3772_v12, %v3772_v12  ;;  %v3773_v56 = vadd.f32 %v8612_v3, %v3761_v48 }
 0x953   : > { %v3782_v49 = vmul.f32 %v3777_v30, %v3772_v12  ;;  %v3778_v18 = vmul.f32 %v3773_v56, %v3773_v56 }
 0x954   : > { %v3746_v61 = vpop.f32.mrb[92].mxu0 }
 0x955   : > { %v3787_v36 = vmul.f32 0.044715, %v3782_v49  ;;  %v3783_v4 = vmul.f32 %v3778_v18, %v3773_v56  ;;  %v3762_v22 = vadd.f32 %v3746_v61, %v3640_v24  ;;  %v9590_v55 = vpop.f32.mrb[93].mxu0 }
 0x956   : > { %v3749_v54 = vpop.f32.mrb[94].mxu0  ;;  %v10250_v55 = vld [vmem:[%s10885_s12] ss:$12 sps:$4 sm:$0xff]  }
 0x957   : > { %v3788_v16 = vmul.f32 0.044715, %v3783_v4  ;;  %v3774_v13 = vadd.f32 %v8612_v3, %v3762_v22  ;;  %v3763_v59 = vadd.f32 %v3749_v54, %v3643_v28  ;;  %v9591_v50 = vpop.f32.mrb[95].mxu0  ;;  %v3792_v5 = vadd.f32 %v3787_v36, %v3772_v12  ;;  %v10252_v54 = vld [vmem:[%s10885_s12 + $0x4] ss:$12 sps:$4 sm:$0xff]  }
 0x958   : > { %4089 = vmatprep.subr.bf16.mxu1 %v10252_v54 }
 0x959   : > { %v3779_v37 = vmul.f32 %v3774_v13, %v3774_v13  ;;  %v3775_v41 = vadd.f32 %v8612_v3, %v3763_v59  ;;  %v3797_v32 = vmul.f32 0.7978846, %v3792_v5  ;;  %v3793_v58 = vadd.f32 %v3788_v16, %v3773_v56  ;;  %v10253_v16 = vld [vmem:[%s10885_s12 + $0x8] ss:$12 sps:$4 sm:$0xff]   ;;  %4090 = vmatpush1.bf16.msra.mxu1 %v10250_v55  ;;  %v10254_v59 = vld [vmem:[%s10885_s12 + $0x18] ss:$12 sps:$4 sm:$0xff]  }
 0x95a   : > { %9597 = vmatpush3.bf16.msra.mxu0 %v10253_v16 }
 0x95b   : > { %v3784_v0 = vmul.f32 %v3779_v37, %v3774_v13  ;;  %v3780_v35 = vmul.f32 %v3775_v41, %v3775_v41  ;;  %10500 = vtanh.f32 %v3797_v32  ;;  %v3798_v51 = vmul.f32 0.7978846, %v3793_v58  ;;  %9598 = vmatprep.subr.bf16.mxu0 %v13933_v19 }
 0x95c   : > { %v3754_v57 = vpop.f32.mrb[96].mxu0 }
 0x95d   : > { %v3789_v42 = vmul.f32 0.044715, %v3784_v0  ;;  %v3785_v11 = vmul.f32 %v3780_v35, %v3775_v41  ;;  %v3764_v6 = vadd.f32 %v3754_v57, %v3648_v29  ;;  %v9594_v47 = vpop.f32.mrb[97].mxu0  ;;  %10502 = vtanh.f32 %v3798_v51 }
 0x95e   : > { %v3757_v63 = vpop.f32.mrb[98].mxu0 }
 0x95f   : > { %v3790_v31 = vmul.f32 0.044715, %v3785_v11  ;;  %v3776_v21 = vadd.f32 %v8612_v3, %v3764_v6  ;;  %v9595_v25 = vpop.f32.mrb[99].mxu0  ;;  %v3794_v44 = vadd.f32 %v3789_v42, %v3774_v13 }
 0x961   : > { %v3781_v52 = vmul.f32 %v3776_v21, %v3776_v21  ;;  %v3799_v24 = vmul.f32 0.7978846, %v3794_v44  ;;  %v3795_v45 = vadd.f32 %v3790_v31, %v3775_v41  ;;  %v10258_v44 = vld [vmem:[%s10885_s12 + $0x30] ss:$12 sps:$4 sm:$0xff]  }
 0x963   : > { %v3786_v43 = vmul.f32 %v3781_v52, %v3776_v21  ;;  %10504 = vtanh.f32 %v3799_v24  ;;  %v3800_v28 = vmul.f32 0.7978846, %v3795_v45  ;;  %v10260_v52 = vld [vmem:[%s10885_s12 + $0x34] ss:$12 sps:$4 sm:$0xff]   ;;  %v10261_v24 = vld [vmem:[%s10885_s12 + $0x38] ss:$12 sps:$4 sm:$0xff]  }
 0x964   : > { %v10264_v45 = vld [vmem:[%s10885_s12 + $0x4c] ss:$12 sps:$4 sm:$0xff]  }
 0x965   : > { %v10501_v46 = vpop.eup %10500  ;;  %v3791_v34 = vmul.f32 0.044715, %v3786_v43  ;;  %10506 = vtanh.f32 %v3800_v28  ;;  %v10262_v43 = vld [vmem:[%s10885_s12 + $0x48] ss:$12 sps:$4 sm:$0xff]   ;;  %v10265_v28 = vld [vmem:[%s10885_s12 + $0x50] ss:$12 sps:$4 sm:$0xff]  }
 0x966   : > { %v3807_v33 = vadd.f32 1.0, %v10501_v46  ;;  %v10268_v46 = vld [vmem:[%s10885_s12 + $0x64] ss:$12 sps:$4 sm:$0xff]  }
 0x967   : > { %v10503_v23 = vpop.eup %10502  ;;  %v3796_v1 = vadd.f32 %v3791_v34, %v3776_v21  ;;  %v10266_v34 = vld [vmem:[%s10885_s12 + $0x60] ss:$12 sps:$4 sm:$0xff]  }
 0x968   : > { %v3812_v26 = vmul.f32 0.5, %v3807_v33  ;;  %v3808_v29 = vadd.f32 1.0, %v10503_v23  ;;  %v10269_v33 = vld [vmem:[%s10885_s12 + $0x68] ss:$12 sps:$4 sm:$0xff]  }
 0x969   : > { %v3801_v9 = vmul.f32 0.7978846, %v3796_v1  ;;  %v10272_v23 = vld [vmem:[%s10885_s12 + $0x7c] ss:$12 sps:$4 sm:$0xff]   ;;  %v10270_v1 = vld [vmem:[%s10885_s12 + $0x78] ss:$12 sps:$4 sm:$0xff]  }
 0x96a   : > { %v3817_v39 = vmul.f32 %v3812_v26, %v3772_v12  ;;  %v3813_v40 = vmul.f32 0.5, %v3808_v29  ;;  %v10273_v26 = vld [vmem:[%s10885_s12 + $0x80] ss:$12 sps:$4 sm:$0xff]  }
 0x96b   : > { %10508 = vtanh.f32 %v3801_v9  ;;  %v10276_v29 = vld [vmem:[%s10885_s12 + $0x94] ss:$12 sps:$4 sm:$0xff]   ;;  %v10274_v9 = vld [vmem:[%s10885_s12 + $0x90] ss:$12 sps:$4 sm:$0xff]  }
 0x96c   : > { %v3822_v2 = vadd.f32 %v3817_v39, %v12294_v38  ;;  %v3818_v3 = vmul.f32 %v3813_v40, %v3773_v56  ;;  %v10277_v39 = vld [vmem:[%s10885_s12 + $0x98] ss:$12 sps:$4 sm:$0xff]  }
 0x96d   : > { %v10505_v53 = vpop.eup %10504  ;;  %v10280_v40 = vld [vmem:[%s10885_s12 + $0xac] ss:$12 sps:$4 sm:$0xff]  }
 0x96e   : > { %3829 = vadd.xlane.f32.xlu0 %v3822_v2  ;;  %v3823_v15 = vadd.f32 %v3818_v3, %v12296_v17  ;;  %v3809_v60 = vadd.f32 1.0, %v10505_v53  ;;  %v10281_v3 = vld [vmem:[%s10885_s12 + $0xb0] ss:$12 sps:$4 sm:$0xff]  }
 0x96f   : > { %v10507_v48 = vpop.eup %10506 }
 0x970   : > { %3831 = vadd.xlane.f32.xlu1 %v3823_v15  ;;  %v3814_v14 = vmul.f32 0.5, %v3809_v60  ;;  %v3810_v30 = vadd.f32 1.0, %v10507_v48 }
 0x972   : > { %v3819_v49 = vmul.f32 %v3814_v14, %v3774_v13  ;;  %v3815_v12 = vmul.f32 0.5, %v3810_v30  ;;  %v10256_v13 = vld [vmem:[%s10885_s12 + $0x1c] ss:$12 sps:$4 sm:$0xff]  }
 0x973   : > { %4091 = vmatprep.subr.bf16.mxu1 %v10256_v13 }
 0x974   : > { %v3824_v18 = vadd.f32 %v3819_v49, %v12309_v62  ;;  %v3820_v61 = vmul.f32 %v3815_v12, %v3775_v41  ;;  %v10257_v62 = vld [vmem:[%s10885_s12 + $0x20] ss:$12 sps:$4 sm:$0xff]   ;;  %4092 = vmatpush1.bf16.msra.mxu1 %v10254_v59 }
 0x975   : > { %v10509_v38 = vpop.eup %10508  ;;  %9599 = vmatpush3.bf16.msra.mxu0 %v10257_v62  ;;  %4093 = vmatprep.subr.bf16.mxu1 %v10260_v52  ;;  %v8614_v59 = vld [vmem:[%s13983_s15] ss:$0 sm:$0xff]  ;;  %v12466_v52 = vsub.s32 1, %v11050_v8  ;;  %s13995_s15 = sld [smem:[#allocation12_spill]] }
 0x976   : > { %3833 = vadd.xlane.f32.xlu0 %v3824_v18  ;;  %v3825_v17 = vadd.f32 %v3820_v61, %v12313_v20  ;;  %v3811_v56 = vadd.f32 1.0, %v10509_v38  ;;  %9600 = vmatprep.subr.bf16.mxu0 %v13933_v19 }
 0x978   : > { %3835 = vadd.xlane.f32.xlu1 %v3825_v17  ;;  %v3816_v36 = vmul.f32 0.5, %v3811_v56  ;;  %4094 = vmatpush1.bf16.msra.mxu1 %v10258_v44  ;;  %v3944_v44 = vld [vmem:[%s13984_s16] sm:$0x7] }
 0x979   : > { %9601 = vmatpush3.bf16.msra.mxu0 %v10261_v24  ;;  %4095 = vmatprep.subr.bf16.mxu1 %v10264_v45 }
 0x97a   : > { %v3821_v4 = vmul.f32 %v3816_v36, %v3776_v21  ;;  %9602 = vmatprep.subr.bf16.mxu0 %v13933_v19  ;;  %v8613_v36 = vld [vmem:[%s10875_s30] ss:$0 sm:$0xff] }
 0x97c   : > { %v3826_v22 = vadd.f32 %v3821_v4, %v12330_v7  ;;  %4096 = vmatpush1.bf16.msra.mxu1 %v10262_v43 }
 0x97d   : > { %9603 = vmatpush3.bf16.msra.mxu0 %v10265_v28  ;;  %4097 = vmatprep.subr.bf16.mxu1 %v10268_v46  ;;  %v3953_v46 = vrot.slane %v3944_v44, %v12466_v52 }
 0x97e   : > { %3837 = vadd.xlane.f32.xlu0 %v3826_v22  ;;  %9604 = vmatprep.subr.bf16.mxu0 %v13933_v19 }
 0x980   : > { %4098 = vmatpush1.bf16.msra.mxu1 %v10266_v34 }
 0x981   : > { %9605 = vmatpush3.bf16.msra.mxu0 %v10269_v33  ;;  %4099 = vmatprep.subr.bf16.mxu1 %v10272_v23 }
 0x982   : > { %9606 = vmatprep.subr.bf16.mxu0 %v13933_v19 }
 0x984   : > { %4100 = vmatpush1.bf16.msra.mxu1 %v10270_v1 }
 0x985   : > { %9607 = vmatpush3.bf16.msra.mxu0 %v10273_v26  ;;  %4101 = vmatprep.subr.bf16.mxu1 %v10276_v29 }
 0x986   : > { %9608 = vmatprep.subr.bf16.mxu0 %v13933_v19 }
 0x988   : > { %4102 = vmatpush1.bf16.msra.mxu1 %v10274_v9 }
 0x989   : > { %9609 = vmatpush3.bf16.msra.mxu0 %v10277_v39  ;;  %4103 = vmatprep.subr.bf16.mxu1 %v10280_v40 }
 0x98a   : > { %9610 = vmatprep.subr.bf16.mxu0 %v13933_v19 }
 0x98d   : > { %9611 = vmatpush3.bf16.msra.mxu0 %v10281_v3 }
 0x98e   : > { %9660 = vmatprep.subr.bf16.mxu0 %v13933_v19 }
 0x9fb   : > { %v3830_v20 = vpop.xlane.xlu0 %3829 }
 0x9fc   : > { %v3840_v50 = vmul.f32 0.0078125, %v3830_v20 }
 0x9fd   : > { %v3832_v7 = vpop.xlane.xlu1 %3831 }
 0x9fe   : > { %v3841_v5 = vmul.f32 0.0078125, %v3832_v7  ;;  %v12382_v37 = vsub.f32 %v3822_v2, %v3840_v50  ;;  %v10278_v2 = vld [vmem:[%s10885_s12 + $0xa8] ss:$12 sps:$4 sm:$0xff]  }
 0x9ff   : > { %4104 = vmatpush1.bf16.msra.mxu1 %v10278_v2 }
 0xa00   : > { %v3850_v41 = vmul.f32 %v12382_v37, %v12382_v37  ;;  %v12386_v32 = vsub.f32 %v3823_v15, %v3841_v5  ;;  %9624 = vmatprep.subr.bf16.mxu1 %v13933_v19 }
 0xa02   : > { %3855 = vadd.xlane.f32.xlu1 %v3850_v41  ;;  %v3851_v58 = vmul.f32 %v12386_v32, %v12386_v32 }
 0xa03   : > { %v3834_v0 = vpop.xlane.xlu0 %3833 }
 0xa04   : > { %v3842_v35 = vmul.f32 0.0078125, %v3834_v0  ;;  %3857 = vadd.xlane.f32.xlu0 %v3851_v58 }
 0xa05   : > { %v3836_v51 = vpop.xlane.xlu1 %3835 }
 0xa06   : > { %v3843_v57 = vmul.f32 0.0078125, %v3836_v51  ;;  %v12390_v42 = vsub.f32 %v3824_v18, %v3842_v35 }
 0xa08   : > { %v3852_v11 = vmul.f32 %v12390_v42, %v12390_v42  ;;  %v12394_v6 = vsub.f32 %v3825_v17, %v3843_v57 }
 0xa0a   : > { %3859 = vadd.xlane.f32.xlu1 %v3852_v11  ;;  %v3853_v47 = vmul.f32 %v12394_v6, %v12394_v6 }
 0xa0b   : > { %v3838_v63 = vpop.xlane.xlu0 %3837 }
 0xa0c   : > { %v3844_v31 = vmul.f32 0.0078125, %v3838_v63  ;;  %3861 = vadd.xlane.f32.xlu0 %v3853_v47 }
 0xa0e   : > { %v12398_v21 = vsub.f32 %v3826_v22, %v3844_v31 }
 0xa10   : > { %v3854_v25 = vmul.f32 %v12398_v21, %v12398_v21 }
 0xa12   : > { %3863 = vadd.xlane.f32.xlu1 %v3854_v25  ;;  %v3956_v25 = vsub.s32 2, %v11050_v8 }
 0xa14   : > { %v12473_v45 = vrot.slane %v3944_v44, %v3956_v25 }
 0xa8f   : > { %v3856_v53 = vpop.xlane.xlu1 %3855 }
 0xa90   : > { %v3865_v15 = vmul.f32 0.0078125, %v3856_v53 }
 0xa91   : > { %v3858_v60 = vpop.xlane.xlu0 %3857 }
 0xa92   : > { %v3870_v48 = vadd.f32 1e-05, %v3865_v15  ;;  %v3866_v14 = vmul.f32 0.0078125, %v3858_v60 }
 0xa94   : > { %10510 = vrsqrt.f32 %v3870_v48  ;;  %v3871_v30 = vadd.f32 1e-05, %v3866_v14 }
 0xa96   : > { %10512 = vrsqrt.f32 %v3871_v30 }
 0xa97   : > { %v3860_v49 = vpop.xlane.xlu1 %3859 }
 0xa98   : > { %v3867_v12 = vmul.f32 0.0078125, %v3860_v49 }
 0xa99   : > { %v3862_v18 = vpop.xlane.xlu0 %3861 }
 0xa9a   : > { %v3872_v61 = vadd.f32 1e-05, %v3867_v12  ;;  %v3868_v38 = vmul.f32 0.0078125, %v3862_v18 }
 0xa9c   : > { %10514 = vrsqrt.f32 %v3872_v61  ;;  %v3873_v17 = vadd.f32 1e-05, %v3868_v38 }
 0xa9e   : > { %v10511_v56 = vpop.eup %10510  ;;  %10516 = vrsqrt.f32 %v3873_v17 }
 0xa9f   : > { %v3880_v4 = vmul.f32 %v10511_v56, %v12382_v37  ;;  %v3864_v22 = vpop.xlane.xlu1 %3863 }
 0xaa0   : > { %v10513_v55 = vpop.eup %10512  ;;  %v3869_v54 = vmul.f32 0.0078125, %v3864_v22 }
 0xaa1   : > { %v3891_v16 = vmul.f32 %v8613_v36, %v3880_v4  ;;  %v3881_v13 = vmul.f32 %v10513_v55, %v12386_v32 }
 0xaa2   : > { %v3874_v62 = vadd.f32 1e-05, %v3869_v54 }
 0xaa3   : > { %v3892_v20 = vmul.f32 %v8613_v36, %v3881_v13  ;;  %v12431_v50 = vadd.f32 %v8614_v59, %v3891_v16 }
 0xaa4   : > { %10518 = vrsqrt.f32 %v3874_v62 }
 0xaa5   : > { %v12433_v7 = vadd.f32 %v8614_v59, %v3892_v20 }
 0xaa6   : > { %v10515_v5 = vpop.eup %10514 }
 0xaa7   : > { %v3941_v41 = vpack.c.bf16 %v12433_v7, %v12431_v50  ;;  %v3882_v37 = vmul.f32 %v10515_v5, %v12390_v42 }
 0xaa8   : > { %v10517_v58 = vpop.eup %10516 }
 0xaa9   : > { %4122 = vmatmul.mubr.bf16.vlgmr.msra.gmra.mrb[96].mxu1 %v3941_v41  ;;  %9613 = vmatmul.mubr.bf16.vlgmr.msra.gmra.mrb[100].mxu0 %v3941_v41  ;;  %v3883_v0 = vmul.f32 %v10517_v58, %v12394_v6  ;;  %v3893_v32 = vmul.f32 %v8613_v36, %v3882_v37 }
 0xaaa   : > { %4131 = vmatprep.mubr.bf16.mxu1 %v13932_v10  ;;  %9616 = vmatprep.mubr.msk.bf16.mxu0 %vm10801_vm2, %v13933_v19 }
 0xaab   : > { %v3894_v35 = vmul.f32 %v8613_v36, %v3883_v0  ;;  %v12442_v51 = vadd.f32 %v8614_v59, %v3893_v32 }
 0xaad   : > { %v12444_v57 = vadd.f32 %v8614_v59, %v3894_v35 }
 0xaae   : > { %v10519_v11 = vpop.eup %10518 }
 0xaaf   : > { %v3942_v42 = vpack.c.bf16 %v12444_v57, %v12442_v51  ;;  %v3884_v47 = vmul.f32 %v10519_v11, %v12398_v21  ;;  %v12461_v21 = vsub.s32 0, %v11050_v8 }
 0xab1   : > { %4132 = vmatmul.mubr.bf16.gmra.mrb[100].mxu1 %v3942_v42  ;;  %9617 = vmatmul.mubr.bf16.gmra.mrb[104].mxu0 %v3942_v42  ;;  %v3895_v6 = vmul.f32 %v8613_v36, %v3884_v47  ;;  %v12469_v24 = vrot.slane %v3944_v44, %v12461_v21 }
 0xab2   : > { %4141 = vmatprep.mubr.bf16.mxu1 %v13932_v10  ;;  %9620 = vmatprep.mubr.msk.bf16.mxu0 %vm10801_vm2, %v13933_v19 }
 0xab3   : > { %v12452_v63 = vadd.f32 %v8614_v59, %v3895_v6 }
 0xab5   : > { %v3943_v31 = vpack.c.bf16 %v12452_v63, %v12452_v63 }
 0xab9   : > { %4142 = vmatmul.mubr.bf16.gmra.mrb[104].mxu1 %v3943_v31  ;;  %9621 = vmatmul.mubr.bf16.gmra.mrb[108].mxu0 %v3943_v31 }
 0xaba   : > { %9630 = vmatprep.mubr.msk.bf16.mxu1 %vm10801_vm2, %v13933_v19  ;;  %9666 = vmatprep.mubr.msk.bf16.mxu0 %vm10801_vm2, %v13933_v19 }
 0xb7c   : > { %v4123_v43 = vpop.f32.mrb[96].mxu1  ;;  %v4184_v28 = vpop.f32.mrb[100].mxu0 }
 0xb7d   : > { %v4125_v34 = vpop.f32.mrb[97].mxu1  ;;  %v9614_v33 = vpop.f32.mrb[101].mxu0  ;;  %v4124_v26 = vadd.f32 %v4123_v43, %v12469_v24  ;;  %v4185_v29 = vadd.f32 %v4184_v28, %v12473_v45 }
 0xb7e   : > { %v4127_v23 = vpop.f32.mrb[98].mxu1  ;;  %v4187_v1 = vpop.f32.mrb[102].mxu0  ;;  %v4126_v3 = vadd.f32 %v4125_v34, %v3953_v46 }
 0xb7f   : > { %v4128_v9 = vadd.f32 %v4127_v23, %v12469_v24  ;;  %v4188_v39 = vadd.f32 %v4187_v1, %v12473_v45  ;;  %v4129_v40 = vpop.f32.mrb[99].mxu1  ;;  %v9615_v2 = vpop.f32.mrb[103].mxu0 }
 0xb80   : > { %v4130_v53 = vadd.f32 %v4129_v40, %v3953_v46 }
 0xb81   : > { %v12480_v15 = vpack.c.bf16 %v4128_v9, %v4124_v26  ;;  %v12482_v60 = vpack.c.bf16 %v4188_v39, %v4185_v29 }
 0xb82   : > { %v4209_v48 = vpack.c.bf16 %v4130_v53, %v4126_v3 }
 0xb84   : > { %v4133_v14 = vpop.f32.mrb[100].mxu1  ;;  %v4192_v30 = vpop.f32.mrb[104].mxu0  ;;  %4439 = vrot.lane.b32.xlu0 %v4209_v48, %s13907_s18  ;;  %v4222_v49 = vsel %vm1706_vm7, %v4209_v48, 0 }
 0xb85   : > { %v4135_v12 = vpop.f32.mrb[101].mxu1  ;;  %v9618_v18 = vpop.f32.mrb[105].mxu0  ;;  %9625 = vmatpush3.bf16.xpose.msra.mxu1 %v4222_v49  ;;  %v4134_v17 = vadd.f32 %v4133_v14, %v12469_v24  ;;  %v4193_v56 = vadd.f32 %v4192_v30, %v12473_v45 }
 0xb86   : > { %v4137_v61 = vpop.f32.mrb[102].mxu1  ;;  %v4195_v38 = vpop.f32.mrb[106].mxu0  ;;  %9626 = vmatprep.subr.bf16.mxu1 %v13933_v19  ;;  %v4136_v54 = vadd.f32 %v4135_v12, %v3953_v46 }
 0xb87   : > { %v4138_v36 = vadd.f32 %v4137_v61, %v12469_v24  ;;  %v4196_v4 = vadd.f32 %v4195_v38, %v12473_v45  ;;  %v4139_v22 = vpop.f32.mrb[103].mxu1  ;;  %v9619_v55 = vpop.f32.mrb[107].mxu0 }
 0xb88   : > { %v4140_v16 = vadd.f32 %v4139_v22, %v3953_v46  ;;  %4672 = vrot.lane.b32.xlu0 %v4209_v48, %s13905_s22  ;;  %v10806_v55 = vmov -1e+30  }
 0xb89   : > { %v4207_v13 = vpack.c.bf16 %v4138_v36, %v4134_v17  ;;  %v12492_v62 = vpack.c.bf16 %v4196_v4, %v4193_v56 }
 0xb8a   : > { %v4210_v59 = vpack.c.bf16 %v4140_v16, %v4136_v54  ;;  %v12586_v54 = vsel %vm3907_vm10, 0.0, %v10806_v55 }
 0xb8c   : > { %v4143_v20 = vpop.f32.mrb[104].mxu1  ;;  %v4200_v5 = vpop.f32.mrb[108].mxu0  ;;  %4441 = vrot.lane.b32.xlu1 %v4210_v59, %s13907_s18  ;;  %4674 = vrot.lane.b32.xlu0 %v4210_v59, %s13905_s22  ;;  %v4225_v41 = vsel %vm1706_vm7, %v4210_v59, 0 }
 0xb8d   : > { %v4145_v37 = vpop.f32.mrb[105].mxu1  ;;  %v9622_v58 = vpop.f32.mrb[109].mxu0  ;;  %9627 = vmatpush3.bf16.xpose.msra.mxu1 %v4225_v41  ;;  %v4144_v31 = vadd.f32 %v4143_v20, %v12469_v24  ;;  %v4201_v43 = vadd.f32 %v4200_v5, %v12473_v45 }
 0xb8e   : > { %v4146_v0 = vadd.f32 %v4145_v37, %v3953_v46  ;;  %v4147_v32 = vpop.f32.mrb[106].mxu1  ;;  %v4203_v35 = vpop.f32.mrb[110].mxu0  ;;  %9628 = vmatprep.subr.bf16.mxu1 %v13933_v19 }
 0xb8f   : > { %v4148_v11 = vpop.f32.mrb[107].mxu1  ;;  %v9623_v42 = vpop.f32.mrb[111].mxu0  ;;  %v4208_v44 = vpack.c.bf16 %v4144_v31, %v4144_v31  ;;  %v12517_v24 = vpack.c.bf16 %v4201_v43, %v4201_v43 }
 0xb90   : > { %v4211_v47 = vpack.c.bf16 %v4146_v0, %v4146_v0 }
 0xb91   : > { %v4369_v45 = vsel %vm4367_vm9, %v12517_v24, 0 }
 0xb92   : > { %4443 = vrot.lane.b32.xlu1 %v4211_v47, %s13907_s18  ;;  %4676 = vrot.lane.b32.xlu0 %v4211_v47, %s13905_s22  ;;  %v4228_v6 = vsel %vm1706_vm7, %v4211_v47, 0 }
 0xb95   : > { %9629 = vmatpush3.bf16.xpose.msra.mxu1 %v4228_v6 }
 0xb96   : > { %4902 = vrot.lane.b32.xlu0 %v4209_v48, %s13903_s23  ;;  %4430 = vrot.lane.b32.xlu1 %v12480_v15, %s13907_s18 }
 0xb97   : > { %9642 = vmatprep.subr.bf16.mxu1 %v13933_v19 }
 0xb9a   : > { %4904 = vrot.lane.b32.xlu0 %v4210_v59, %s13903_s23  ;;  %4432 = vrot.lane.b32.xlu1 %v4207_v13, %s13907_s18 }
 0xb9c   : > { %9631 = vmatmul.mubr.msk.bf16.vlgmr.msra.gmra.mrb[108].mxu1 %vm1706_vm7, %v12480_v15 }
 0xb9d   : > { %9643 = vmatpush3.bf16.msra.mxu1 %v12482_v60  ;;  %9634 = vmatprep.mubr.msk.bf16.mxu1 %vm10801_vm2, %v13933_v19 }
 0xb9e   : > { %4906 = vrot.lane.b32.xlu0 %v4211_v47, %s13903_s23  ;;  %4434 = vrot.lane.b32.xlu1 %v4208_v44, %s13907_s18 }
 0xb9f   : > { %9644 = vmatprep.subr.bf16.mxu1 %v13933_v19 }
 0xba1   : > { %9645 = vmatpush3.bf16.msra.mxu1 %v12492_v62 }
 0xba2   : > { %4898 = vrot.lane.b32.xlu0 %v4207_v13, %s13903_s23  ;;  %4666 = vrot.lane.b32.xlu1 %v12480_v15, %s13905_s22 }
 0xba3   : > { %9646 = vmatprep.subr.bf16.mxu1 %v13933_v19 }
 0xba4   : > { %9635 = vmatmul.mubr.msk.bf16.gmra.mrb[112].mxu1 %vm1706_vm7, %v4207_v13 }
 0xba5   : > { %9647 = vmatpush3.bf16.msra.mxu1 %v4369_v45  ;;  %9638 = vmatprep.mubr.msk.bf16.mxu1 %vm10801_vm2, %v13933_v19 }
 0xba6   : > { %4590 = vrot.lane.b32.xlu0 %v12482_v60, %s13907_s18  ;;  %4668 = vrot.lane.b32.xlu1 %v4207_v13, %s13905_s22 }
 0xba7   : > { %9678 = vmatprep.subr.bf16.mxu1 %v13933_v19 }
 0xbaa   : > { %4670 = vrot.lane.b32.xlu1 %v4208_v44, %s13905_s22 }
 0xbac   : > { %9639 = vmatmul.mubr.msk.bf16.gmra.mrb[116].mxu1 %vm1706_vm7, %v4208_v44 }
 0xbad   : > { %9648 = vmatprep.mubr.msk.bf16.mxu1 %vm10801_vm2, %v13933_v19 }
 0xbae   : > { %4896 = vrot.lane.b32.xlu1 %v12480_v15, %s13903_s23 }
 0xbb2   : > { %4900 = vrot.lane.b32.xlu1 %v4208_v44, %s13903_s23 }
 0xbf6   : > { %v4440_v28 = vpop.permute.xlu0 %4439 }
 0xbf7   : > { %v4455_v46 = vsel %vm1706_vm7, %v4440_v28, 0 }
 0xbf8   : > { %9661 = vmatpush3.bf16.xpose.msra.mxu0 %v4455_v46 }
 0xbf9   : > { %9662 = vmatprep.subr.bf16.mxu0 %v13933_v19 }
 0xbfa   : > { %v4673_v26 = vpop.permute.xlu0 %4672 }
 0xbfb   : > { %v4688_v9 = vsel %vm1706_vm7, %v4673_v26, 0 }
 0xbfe   : > { %v4442_v34 = vpop.permute.xlu1 %4441  ;;  %v4675_v39 = vpop.permute.xlu0 %4674 }
 0xbff   : > { %v4458_v33 = vsel %vm1706_vm7, %v4442_v34, 0  ;;  %v4691_v2 = vsel %vm1706_vm7, %v4675_v39, 0 }
 0xc00   : > { %9663 = vmatpush3.bf16.xpose.msra.mxu0 %v4458_v33 }
 0xc01   : > { %9664 = vmatprep.subr.bf16.mxu0 %v13933_v19 }
 0xc04   : > { %v4444_v23 = vpop.permute.xlu1 %4443  ;;  %v4677_v3 = vpop.permute.xlu0 %4676 }
 0xc05   : > { %v4461_v1 = vsel %vm1706_vm7, %v4444_v23, 0  ;;  %v4694_v15 = vsel %vm1706_vm7, %v4677_v3, 0 }
 0xc08   : > { %9665 = vmatpush3.bf16.xpose.msra.mxu0 %v4461_v1  ;;  %v4431_v29 = vpop.permute.xlu1 %4430  ;;  %v4903_v48 = vpop.permute.xlu0 %4902 }
 0xc09   : > { %9696 = vmatprep.subr.bf16.mxu0 %v13933_v19  ;;  %v4918_v30 = vsel %vm1706_vm7, %v4903_v48, 0 }
 0xc0c   : > { %v4433_v40 = vpop.permute.xlu1 %4432  ;;  %v4905_v49 = vpop.permute.xlu0 %4904 }
 0xc0d   : > { %v4921_v18 = vsel %vm1706_vm7, %v4905_v49, 0 }
 0xc0f   : > { %9667 = vmatmul.mubr.msk.bf16.vlgmr.msra.gmra.mrb[112].mxu0 %vm1706_vm7, %v4431_v29 }
 0xc10   : > { %9697 = vmatpush3.bf16.xpose.msra.mxu0 %v4688_v9  ;;  %9670 = vmatprep.mubr.msk.bf16.mxu0 %vm10801_vm2, %v13933_v19  ;;  %v4435_v53 = vpop.permute.xlu1 %4434  ;;  %v4907_v61 = vpop.permute.xlu0 %4906 }
 0xc11   : > { %9698 = vmatprep.subr.bf16.mxu0 %v13933_v19  ;;  %v4924_v17 = vsel %vm1706_vm7, %v4907_v61, 0 }
 0xc14   : > { %v4667_v14 = vpop.permute.xlu1 %4666  ;;  %v4899_v36 = vpop.permute.xlu0 %4898 }
 0xc17   : > { %9671 = vmatmul.mubr.msk.bf16.gmra.mrb[116].mxu0 %vm1706_vm7, %v4433_v40 }
 0xc18   : > { %9699 = vmatpush3.bf16.xpose.msra.mxu0 %v4691_v2  ;;  %9674 = vmatprep.mubr.msk.bf16.mxu0 %vm10801_vm2, %v13933_v19  ;;  %v4669_v12 = vpop.permute.xlu1 %4668 }
 0xc19   : > { %9700 = vmatprep.subr.bf16.mxu0 %v13933_v19 }
 0xc1c   : > { %v4671_v38 = vpop.permute.xlu1 %4670 }
 0xc1f   : > { %9675 = vmatmul.mubr.msk.bf16.gmra.mrb[120].mxu0 %vm1706_vm7, %v4435_v53 }
 0xc20   : > { %9701 = vmatpush3.bf16.xpose.msra.mxu0 %v4694_v15  ;;  %9702 = vmatprep.mubr.msk.bf16.mxu0 %vm10801_vm2, %v13933_v19  ;;  %v4897_v56 = vpop.permute.xlu1 %4896 }
 0xc21   : > { %9732 = vmatprep.subr.bf16.mxu0 %v13933_v19 }
 0xc24   : > { %v4901_v4 = vpop.permute.xlu1 %4900 }
 0xc27   : > { %9703 = vmatmul.mubr.msk.bf16.vlgmr.msra.gmra.mrb[124].mxu0 %vm1706_vm7, %v4667_v14 }
 0xc28   : > { %9733 = vmatpush3.bf16.xpose.msra.mxu0 %v4918_v30  ;;  %9706 = vmatprep.mubr.msk.bf16.mxu0 %vm10801_vm2, %v13933_v19 }
 0xc29   : > { %9734 = vmatprep.subr.bf16.mxu0 %v13933_v19 }
 0xc2f   : > { %9707 = vmatmul.mubr.msk.bf16.gmra.mrb[128].mxu0 %vm1706_vm7, %v4669_v12 }
 0xc30   : > { %9735 = vmatpush3.bf16.xpose.msra.mxu0 %v4921_v18  ;;  %9710 = vmatprep.mubr.msk.bf16.mxu0 %vm10801_vm2, %v13933_v19 }
 0xc31   : > { %9736 = vmatprep.subr.bf16.mxu0 %v13933_v19 }
 0xc37   : > { %9711 = vmatmul.mubr.msk.bf16.gmra.mrb[132].mxu0 %vm1706_vm7, %v4671_v38 }
 0xc38   : > { %9737 = vmatpush3.bf16.xpose.msra.mxu0 %v4924_v17  ;;  %9738 = vmatprep.mubr.msk.bf16.mxu0 %vm10801_vm2, %v13933_v19 }
 0xc39   : > { %9768 = vmatprep.subr.bf16.mxu0 %v13933_v19 }
 0xc3f   : > { %9739 = vmatmul.mubr.msk.bf16.vlgmr.msra.gmra.mrb[136].mxu0 %vm1706_vm7, %v4897_v56 }
 0xc40   : > { %9742 = vmatprep.mubr.msk.bf16.mxu0 %vm10801_vm2, %v13933_v19 }
 0xc47   : > { %9743 = vmatmul.mubr.msk.bf16.gmra.mrb[140].mxu0 %vm1706_vm7, %v4899_v36 }
 0xc48   : > { %9746 = vmatprep.mubr.msk.bf16.mxu0 %vm10801_vm2, %v13933_v19 }
 0xc4f   : > { %9747 = vmatmul.mubr.msk.bf16.gmra.mrb[144].mxu0 %vm1706_vm7, %v4901_v4 }
 0xc50   : > { %9784 = vmatprep.mubr.msk.bf16.mxu0 %vm10801_vm2, %v13933_v19 }
 0xc6f   : > { %v4264_v22 = vpop.f32.mrb[108].mxu1 }
 0xc70   : > { %v4286_v16 = vmul.f32 0.17677669, %v4264_v22  ;;  %v9632_v13 = vpop.f32.mrb[109].mxu1 }
 0xc71   : > { %v4267_v59 = vpop.f32.mrb[110].mxu1 }
 0xc72   : > { %v4287_v20 = vmul.f32 0.17677669, %v4267_v59  ;;  %v9633_v5 = vpop.f32.mrb[111].mxu1  ;;  %v12589_v41 = vadd.f32 %v4286_v16, %v12586_v54 }
 0xc74   : > { %v4297_v37 = vsel %vm4296_vm15, %v12589_v41, -inf  ;;  %v12594_v58 = vadd.f32 %v4287_v20, %v12586_v54 }
 0xc75   : > { %4298 = vmax.xlane.f32.xlu0 %v4297_v37 }
 0xc76   : > { %v4300_v0 = vsel %vm4296_vm15, %v12594_v58, -inf }
 0xc77   : > { %4301 = vmax.xlane.f32.xlu1 %v4300_v0  ;;  %v4272_v32 = vpop.f32.mrb[112].mxu1 }
 0xc78   : > { %v9636_v35 = vpop.f32.mrb[113].mxu1  ;;  %v4288_v43 = vmul.f32 0.17677669, %v4272_v32 }
 0xc79   : > { %v4275_v11 = vpop.f32.mrb[114].mxu1 }
 0xc7a   : > { %v9637_v42 = vpop.f32.mrb[115].mxu1  ;;  %v4289_v45 = vmul.f32 0.17677669, %v4275_v11  ;;  %v12603_v28 = vadd.f32 %v4288_v43, %v12586_v54 }
 0xc7c   : > { %v4303_v34 = vsel %vm4296_vm15, %v12603_v28, -inf  ;;  %v12608_v33 = vadd.f32 %v4289_v45, %v12586_v54 }
 0xc7e   : > { %v4306_v23 = vsel %vm4296_vm15, %v12608_v33, -inf }
 0xc7f   : > { %v4280_v47 = vpop.f32.mrb[116].mxu1 }
 0xc80   : > { %v9640_v6 = vpop.f32.mrb[117].mxu1  ;;  %v4290_v46 = vmul.f32 0.17677669, %v4280_v47 }
 0xc81   : > { %v4283_v31 = vpop.f32.mrb[118].mxu1  ;;  %v12645_v6 = vpop.permute.xlu0 %4590 }
 0xc82   : > { %v9641_v44 = vpop.f32.mrb[119].mxu1  ;;  %v12613_v1 = vadd.f32 %v4290_v46, %v12586_v54 }
 0xc84   : > { %v4309_v26 = vsel %vm4296_vm15, %v12613_v1, -inf }
 0xc88   : > { %4592 = vrot.lane.b32.xlu1 %v12492_v62, %s13907_s18 }
 0xc8b   : > { %4594 = vrot.lane.b32.xlu0 %v12517_v24, %s13907_s18 }
 0xcaa   : > { %4304 = vmax.xlane.f32.xlu0 %v4303_v34 }
 0xcae   : > { %4307 = vmax.xlane.f32.xlu0 %v4306_v23 }
 0xcb2   : > { %4310 = vmax.xlane.f32.xlu0 %v4309_v26 }
 0xce2   : > { %v4497_v29 = vpop.f32.mrb[112].mxu0 }
 0xce3   : > { %v4519_v9 = vmul.f32 0.17677669, %v4497_v29  ;;  %v9668_v39 = vpop.f32.mrb[113].mxu0 }
 0xce4   : > { %v4500_v40 = vpop.f32.mrb[114].mxu0 }
 0xce5   : > { %v4520_v2 = vmul.f32 0.17677669, %v4500_v40  ;;  %v9669_v3 = vpop.f32.mrb[115].mxu0  ;;  %v12618_v53 = vadd.f32 %v4519_v9, %v12586_v54 }
 0xce7   : > { %v4529_v15 = vsel %vm4296_vm15, %v12618_v53, -inf  ;;  %v12623_v48 = vadd.f32 %v4520_v2, %v12586_v54 }
 0xce8   : > { %4530 = vmax.xlane.f32.xlu1 %v4529_v15 }
 0xce9   : > { %v4532_v14 = vsel %vm4296_vm15, %v12623_v48, -inf }
 0xcea   : > { %v4505_v30 = vpop.f32.mrb[116].mxu0  ;;  %4533 = vmax.xlane.f32.xlu0 %v4532_v14 }
 0xceb   : > { %v4521_v49 = vmul.f32 0.17677669, %v4505_v30  ;;  %v9672_v12 = vpop.f32.mrb[117].mxu0 }
 0xcec   : > { %v4508_v18 = vpop.f32.mrb[118].mxu0 }
 0xced   : > { %v4522_v61 = vmul.f32 0.17677669, %v4508_v18  ;;  %v9673_v38 = vpop.f32.mrb[119].mxu0  ;;  %v12628_v17 = vadd.f32 %v4521_v49, %v12586_v54 }
 0xcef   : > { %v4535_v56 = vsel %vm4296_vm15, %v12628_v17, -inf  ;;  %v12633_v36 = vadd.f32 %v4522_v61, %v12586_v54 }
 0xcf0   : > { %4536 = vmax.xlane.f32.xlu1 %v4535_v56 }
 0xcf1   : > { %v4538_v4 = vsel %vm4296_vm15, %v12633_v36, -inf }
 0xcf2   : > { %v4513_v22 = vpop.f32.mrb[120].mxu0  ;;  %4539 = vmax.xlane.f32.xlu0 %v4538_v4 }
 0xcf3   : > { %v4523_v55 = vmul.f32 0.17677669, %v4513_v22  ;;  %v9676_v16 = vpop.f32.mrb[121].mxu0 }
 0xcf4   : > { %v4516_v13 = vpop.f32.mrb[122].mxu0 }
 0xcf5   : > { %v9677_v59 = vpop.f32.mrb[123].mxu0  ;;  %v12638_v20 = vadd.f32 %v4523_v55, %v12586_v54 }
 0xcf7   : > { %v4541_v5 = vsel %vm4296_vm15, %v12638_v20, -inf }
 0xcf8   : > { %4542 = vmax.xlane.f32.xlu1 %v4541_v5 }
 0xcfa   : > { %v4730_v37 = vpop.f32.mrb[124].mxu0 }
 0xcfb   : > { %v4752_v0 = vmul.f32 0.17677669, %v4730_v37  ;;  %v9704_v32 = vpop.f32.mrb[125].mxu0 }
 0xcfc   : > { %v4733_v35 = vpop.f32.mrb[126].mxu0 }
 0xcfd   : > { %v4753_v11 = vmul.f32 0.17677669, %v4733_v35  ;;  %v9705_v42 = vpop.f32.mrb[127].mxu0  ;;  %v12643_v47 = vadd.f32 %v4752_v0, %v12586_v54 }
 0xcff   : > { %v4762_v31 = vsel %vm4296_vm15, %v12643_v47, -inf  ;;  %v12650_v44 = vadd.f32 %v4753_v11, %v12586_v54 }
 0xd00   : > { %4763 = vmax.xlane.f32.xlu0 %v4762_v31 }
 0xd01   : > { %v4765_v43 = vsel %vm4296_vm15, %v12650_v44, -inf }
 0xd02   : > { %v4738_v45 = vpop.f32.mrb[128].mxu0  ;;  %v4299_v46 = vpop.xlane.xlu0 %4298  ;;  %4766 = vmax.xlane.f32.xlu1 %v4765_v43 }
 0xd03   : > { %v4754_v34 = vmul.f32 0.17677669, %v4738_v45  ;;  %v4312_v23 = vsub.f32 %v12589_v41, %v4299_v46  ;;  %v9708_v26 = vpop.f32.mrb[129].mxu0 }
 0xd04   : > { %v4741_v29 = vpop.f32.mrb[130].mxu0  ;;  %v4302_v9 = vpop.xlane.xlu1 %4301 }
 0xd05   : > { %v4317_v39 = vmul.f32 1.442695, %v4312_v23  ;;  %v4755_v40 = vmul.f32 0.17677669, %v4741_v29  ;;  %v4313_v2 = vsub.f32 %v12594_v58, %v4302_v9  ;;  %v9709_v3 = vpop.f32.mrb[131].mxu0  ;;  %v12657_v15 = vadd.f32 %v4754_v34, %v12586_v54 }
 0xd07   : > { %10520 = vpow2.f32 %v4317_v39  ;;  %v4319_v14 = vmul.f32 1.442695, %v4313_v2  ;;  %v4768_v30 = vsel %vm4296_vm15, %v12657_v15, -inf  ;;  %v12662_v49 = vadd.f32 %v4755_v40, %v12586_v54  ;;  %v12689_v40 = vpop.permute.xlu0 %4594 }
 0xd08   : > { %4769 = vmax.xlane.f32.xlu0 %v4768_v30 }
 0xd09   : > { %10522 = vpow2.f32 %v4319_v14  ;;  %v4771_v12 = vsel %vm4296_vm15, %v12662_v49, -inf }
 0xd0a   : > { %v4746_v41 = vpop.f32.mrb[132].mxu0  ;;  %4772 = vmax.xlane.f32.xlu1 %v4771_v12 }
 0xd0b   : > { %v4756_v18 = vmul.f32 0.17677669, %v4746_v41  ;;  %v9712_v58 = vpop.f32.mrb[133].mxu0 }
 0xd0c   : > { %v4749_v61 = vpop.f32.mrb[134].mxu0 }
 0xd0d   : > { %v9713_v38 = vpop.f32.mrb[135].mxu0  ;;  %v12667_v56 = vadd.f32 %v4756_v18, %v12586_v54 }
 0xd0f   : > { %v4774_v4 = vsel %vm4296_vm15, %v12667_v56, -inf }
 0xd10   : > { %4775 = vmax.xlane.f32.xlu0 %v4774_v4 }
 0xd11   : > { %v12671_v22 = vpop.eup %10520 }
 0xd12   : > { %v4960_v55 = vpop.f32.mrb[136].mxu0  ;;  %v4327_v16 = vsel %vm4296_vm15, %v12671_v22, 0.0 }
 0xd13   : > { %v12675_v13 = vpop.eup %10522  ;;  %v4982_v59 = vmul.f32 0.17677669, %v4960_v55  ;;  %v9740_v5 = vpop.f32.mrb[137].mxu0  ;;  %4328 = vadd.xlane.f32.xlu1 %v4327_v16 }
 0xd14   : > { %v4963_v37 = vpop.f32.mrb[138].mxu0  ;;  %v4330_v0 = vsel %vm4296_vm15, %v12675_v13, 0.0 }
 0xd15   : > { %v4983_v32 = vmul.f32 0.17677669, %v4963_v37  ;;  %v9741_v35 = vpop.f32.mrb[139].mxu0  ;;  %4331 = vadd.xlane.f32.xlu0 %v4330_v0  ;;  %v12680_v11 = vadd.f32 %v4982_v59, %v12586_v54 }
 0xd17   : > { %v4992_v42 = vsel %vm4296_vm15, %v12680_v11, -inf  ;;  %v12685_v31 = vadd.f32 %v4983_v32, %v12586_v54 }
 0xd18   : > { %4993 = vmax.xlane.f32.xlu1 %v4992_v42 }
 0xd19   : > { %v4995_v43 = vsel %vm4296_vm15, %v12685_v31, -inf }
 0xd1a   : > { %v4968_v45 = vpop.f32.mrb[140].mxu0  ;;  %4996 = vmax.xlane.f32.xlu0 %v4995_v43 }
 0xd1b   : > { %v9744_v46 = vpop.f32.mrb[141].mxu0  ;;  %v4984_v38 = vmul.f32 0.17677669, %v4968_v45  ;;  %v12725_v45 = vpop.permute.xlu1 %4592 }
 0xd1c   : > { %v4971_v34 = vpop.f32.mrb[142].mxu0 }
 0xd1d   : > { %v9745_v23 = vpop.f32.mrb[143].mxu0  ;;  %v4985_v55 = vmul.f32 0.17677669, %v4971_v34  ;;  %v12699_v59 = vadd.f32 %v4984_v38, %v12586_v54 }
 0xd1f   : > { %v4998_v5 = vsel %vm4296_vm15, %v12699_v59, -inf  ;;  %v12711_v0 = vadd.f32 %v4985_v55, %v12586_v54 }
 0xd21   : > { %v5001_v35 = vsel %vm4296_vm15, %v12711_v0, -inf }
 0xd22   : > { %v4976_v26 = vpop.f32.mrb[144].mxu0 }
 0xd23   : > { %v9748_v29 = vpop.f32.mrb[145].mxu0  ;;  %v4986_v16 = vmul.f32 0.17677669, %v4976_v26 }
 0xd24   : > { %v4979_v9 = vpop.f32.mrb[146].mxu0 }
 0xd25   : > { %v9749_v39 = vpop.f32.mrb[147].mxu0  ;;  %v12708_v37 = vadd.f32 %v4986_v16, %v12586_v54 }
 0xd27   : > { %v5004_v32 = vsel %vm4296_vm15, %v12708_v37, -inf }
 0xd37   : > { %v4305_v2 = vpop.xlane.xlu0 %4304 }
 0xd38   : > { %v4314_v3 = vsub.f32 %v12603_v28, %v4305_v2 }
 0xd3a   : > { %v4321_v14 = vmul.f32 1.442695, %v4314_v3 }
 0xd3b   : > { %v4308_v30 = vpop.xlane.xlu0 %4307 }
 0xd3c   : > { %10524 = vpow2.f32 %v4321_v14  ;;  %v4315_v41 = vsub.f32 %v12608_v33, %v4308_v30 }
 0xd3e   : > { %v4323_v12 = vmul.f32 1.442695, %v4315_v41 }
 0xd3f   : > { %v4311_v18 = vpop.xlane.xlu0 %4310 }
 0xd40   : > { %10526 = vpow2.f32 %v4323_v12  ;;  %v4316_v58 = vsub.f32 %v12613_v1, %v4311_v18 }
 0xd42   : > { %v4325_v61 = vmul.f32 1.442695, %v4316_v58 }
 0xd44   : > { %10528 = vpow2.f32 %v4325_v61 }
 0xd46   : > { %v12694_v4 = vpop.eup %10524 }
 0xd47   : > { %v4333_v28 = vsel %vm4296_vm15, %v12694_v4, 0.0 }
 0xd48   : > { %4334 = vadd.xlane.f32.xlu1 %v4333_v28 }
 0xd4a   : > { %v12701_v33 = vpop.eup %10526 }
 0xd4b   : > { %v4336_v1 = vsel %vm4296_vm15, %v12701_v33, 0.0 }
 0xd4c   : > { %4999 = vmax.xlane.f32.xlu1 %v4998_v5  ;;  %4337 = vadd.xlane.f32.xlu0 %v4336_v1 }
 0xd4e   : > { %v12717_v42 = vpop.eup %10528 }
 0xd4f   : > { %v4339_v43 = vsel %vm4296_vm15, %v12717_v42, 0.0 }
 0xd50   : > { %5005 = vmax.xlane.f32.xlu1 %v5004_v32  ;;  %5002 = vmax.xlane.f32.xlu0 %v5001_v35 }
 0xd54   : > { %4340 = vadd.xlane.f32.xlu0 %v4339_v43 }
 0xd61   : > { %4820 = vrot.lane.b32.xlu1 %v12482_v60, %s13905_s22 }
 0xd6a   : > { %4822 = vrot.lane.b32.xlu0 %v12492_v62, %s13905_s22 }
 0xd75   : > { %v4531_v46 = vpop.xlane.xlu1 %4530 }
 0xd76   : > { %v4544_v34 = vsub.f32 %v12618_v53, %v4531_v46 }
 0xd77   : > { %v4534_v23 = vpop.xlane.xlu0 %4533 }
 0xd78   : > { %v4549_v26 = vmul.f32 1.442695, %v4544_v34  ;;  %v4545_v29 = vsub.f32 %v12623_v48, %v4534_v23 }
 0xd7a   : > { %10530 = vpow2.f32 %v4549_v26  ;;  %v4551_v9 = vmul.f32 1.442695, %v4545_v29 }
 0xd7c   : > { %10532 = vpow2.f32 %v4551_v9 }
 0xd7d   : > { %v4537_v39 = vpop.xlane.xlu1 %4536 }
 0xd7e   : > { %v4546_v2 = vsub.f32 %v12628_v17, %v4537_v39 }
 0xd7f   : > { %v4540_v3 = vpop.xlane.xlu0 %4539 }
 0xd80   : > { %v4553_v14 = vmul.f32 1.442695, %v4546_v2  ;;  %v4547_v30 = vsub.f32 %v12633_v36, %v4540_v3 }
 0xd82   : > { %10534 = vpow2.f32 %v4553_v14  ;;  %v4555_v41 = vmul.f32 1.442695, %v4547_v30 }
 0xd84   : > { %v12731_v12 = vpop.eup %10530  ;;  %10536 = vpow2.f32 %v4555_v41 }
 0xd85   : > { %v4543_v53 = vpop.xlane.xlu1 %4542  ;;  %v4559_v18 = vsel %vm4296_vm15, %v12731_v12, 0.0 }
 0xd86   : > { %v12735_v48 = vpop.eup %10532  ;;  %v4548_v58 = vsub.f32 %v12638_v20, %v4543_v53  ;;  %4560 = vadd.xlane.f32.xlu1 %v4559_v18 }
 0xd87   : > { %v4562_v17 = vsel %vm4296_vm15, %v12735_v48, 0.0 }
 0xd88   : > { %v4557_v61 = vmul.f32 1.442695, %v4548_v58 }
 0xd89   : > { %4563 = vadd.xlane.f32.xlu0 %v4562_v17 }
 0xd8a   : > { %10538 = vpow2.f32 %v4557_v61 }
 0xd8c   : > { %v12740_v36 = vpop.eup %10534 }
 0xd8d   : > { %v4764_v38 = vpop.xlane.xlu0 %4763  ;;  %v4565_v55 = vsel %vm4296_vm15, %v12740_v36, 0.0 }
 0xd8e   : > { %v12744_v16 = vpop.eup %10536  ;;  %v4777_v28 = vsub.f32 %v12643_v47, %v4764_v38  ;;  %4566 = vadd.xlane.f32.xlu1 %v4565_v55 }
 0xd8f   : > { %v4568_v20 = vsel %vm4296_vm15, %v12744_v16, 0.0  ;;  %v4767_v32 = vpop.xlane.xlu1 %4766 }
 0xd90   : > { %v4782_v5 = vmul.f32 1.442695, %v4777_v28  ;;  %4569 = vadd.xlane.f32.xlu0 %v4568_v20 }
 0xd92   : > { %10540 = vpow2.f32 %v4782_v5 }
 0xd94   : > { %v12749_v1 = vpop.eup %10538 }
 0xd95   : > { %v4770_v35 = vpop.xlane.xlu0 %4769  ;;  %v4571_v43 = vsel %vm4296_vm15, %v12749_v1, 0.0 }
 0xd96   : > { %v4779_v46 = vsub.f32 %v12657_v15, %v4770_v35  ;;  %4572 = vadd.xlane.f32.xlu1 %v4571_v43 }
 0xd97   : > { %v4773_v23 = vpop.xlane.xlu1 %4772 }
 0xd98   : > { %v4786_v34 = vmul.f32 1.442695, %v4779_v46  ;;  %v4780_v47 = vsub.f32 %v12662_v49, %v4773_v23 }
 0xd9a   : > { %10542 = vpow2.f32 %v4786_v34  ;;  %v4788_v26 = vmul.f32 1.442695, %v4780_v47 }
 0xd9c   : > { %v12755_v29 = vpop.eup %10540  ;;  %10544 = vpow2.f32 %v4788_v26 }
 0xd9d   : > { %v4776_v9 = vpop.xlane.xlu0 %4775  ;;  %v4792_v39 = vsel %vm4296_vm15, %v12755_v29, 0.0 }
 0xd9e   : > { %v4781_v2 = vsub.f32 %v12667_v56, %v4776_v9  ;;  %4793 = vadd.xlane.f32.xlu1 %v4792_v39 }
 0xda0   : > { %v4790_v3 = vmul.f32 1.442695, %v4781_v2  ;;  %v4329_v14 = vpop.xlane.xlu1 %4328 }
 0xda1   : > { %10546 = vrcp.f32 %v4329_v14 }
 0xda2   : > { %10548 = vpow2.f32 %v4790_v3  ;;  %v4332_v15 = vpop.xlane.xlu0 %4331 }
 0xda3   : > { %10550 = vrcp.f32 %v4332_v15 }
 0xda4   : > { %v12760_v30 = vpop.eup %10542 }
 0xda5   : > { %v4798_v49 = vsel %vm4296_vm15, %v12760_v30, 0.0  ;;  %v4994_v35 = vpop.xlane.xlu1 %4993 }
 0xda6   : > { %4824 = vrot.lane.b32.xlu0 %v12517_v24, %s13905_s22  ;;  %4799 = vadd.xlane.f32.xlu1 %v4798_v49  ;;  %v12766_v41 = vpop.eup %10544  ;;  %v5007_v46 = vsub.f32 %v12680_v11, %v4994_v35 }
 0xda7   : > { %v4997_v53 = vpop.xlane.xlu0 %4996  ;;  %v4801_v18 = vsel %vm4296_vm15, %v12766_v41, 0.0 }
 0xda8   : > { %v5008_v56 = vsub.f32 %v12685_v31, %v4997_v53  ;;  %v4778_v31 = vsub.f32 %v12650_v44, %v4767_v32 }
 0xdaa   : > { %v5014_v58 = vmul.f32 1.442695, %v5008_v56  ;;  %4802 = vadd.xlane.f32.xlu1 %v4801_v18  ;;  %v4784_v43 = vmul.f32 1.442695, %v4778_v31 }
 0xdab   : > { %v10547_v17 = vpop.eup %10546 }
 0xdac   : > { %v12771_v61 = vpop.eup %10548  ;;  %10552 = vpow2.f32 %v5014_v58  ;;  %v4347_v28 = vmul.f32 %v10547_v17, %v12671_v22 }
 0xdad   : > { %v10551_v38 = vpop.eup %10550  ;;  %v4804_v55 = vsel %vm4296_vm15, %v12771_v61, 0.0  ;;  %10554 = vpow2.f32 %v4784_v43 }
 0xdae   : > { %v4348_v20 = vmul.f32 %v10551_v38, %v12675_v13  ;;  %4805 = vadd.xlane.f32.xlu1 %v4804_v55  ;;  %v5012_v13 = vmul.f32 1.442695, %v5007_v46 }
 0xdb0   : > { %v4352_v5 = vpack.c.bf16 %v4348_v20, %v4347_v28  ;;  %10556 = vpow2.f32 %v5012_v13 }
 0xdb2   : > { %9649 = vmatmul.mubr.msk.bf16.vlgmr.msra.gmra.mrb[120].mxu1 %vm4296_vm15, %v4352_v5 }
 0xdb3   : > { %9679 = vmatpush3.bf16.msra.mxu1 %v12645_v6  ;;  %9652 = vmatprep.mubr.msk.bf16.mxu1 %vm10801_vm2, %v13933_v19  ;;  %v4608_v6 = vsel %vm4367_vm9, %v12689_v40, 0 }
 0xdb4   : > { %9680 = vmatprep.subr.bf16.mxu1 %v13933_v19 }
 0xdb6   : > { %v12784_v22 = vpop.eup %10552 }
 0xdb7   : > { %9681 = vmatpush3.bf16.msra.mxu1 %v12725_v45  ;;  %v5025_v44 = vsel %vm4296_vm15, %v12784_v22, 0.0  ;;  %v12793_v11 = vpop.eup %10554 }
 0xdb8   : > { %5026 = vadd.xlane.f32.xlu1 %v5025_v44  ;;  %9682 = vmatprep.subr.bf16.mxu1 %v13933_v19  ;;  %v4795_v32 = vsel %vm4296_vm15, %v12793_v11, 0.0 }
 0xdba   : > { %v12797_v34 = vpop.eup %10556 }
 0xdbb   : > { %9683 = vmatpush3.bf16.msra.mxu1 %v4608_v6  ;;  %v5022_v45 = vsel %vm4296_vm15, %v12797_v34, 0.0 }
 0xdbc   : > { %9714 = vmatprep.subr.bf16.mxu1 %v13933_v19 }
 0xdc5   : > { %4796 = vadd.xlane.f32.xlu0 %v4795_v32 }
 0xdc9   : > { %5023 = vadd.xlane.f32.xlu0 %v5022_v45 }
 0xdd5   : > { %v4335_v23 = vpop.xlane.xlu1 %4334 }
 0xdd6   : > { %10558 = vrcp.f32 %v4335_v23 }
 0xdd9   : > { %v5000_v47 = vpop.xlane.xlu1 %4999  ;;  %v4338_v40 = vpop.xlane.xlu0 %4337 }
 0xdda   : > { %v5009_v26 = vsub.f32 %v12699_v59, %v5000_v47  ;;  %10560 = vrcp.f32 %v4338_v40 }
 0xddc   : > { %v5016_v9 = vmul.f32 1.442695, %v5009_v26 }
 0xddd   : > { %v5003_v39 = vpop.xlane.xlu0 %5002 }
 0xdde   : > { %10562 = vpow2.f32 %v5016_v9  ;;  %v5010_v2 = vsub.f32 %v12711_v0, %v5003_v39  ;;  %v5006_v0 = vpop.xlane.xlu1 %5005 }
 0xddf   : > { %5052 = vrot.lane.b32.xlu0 %v12492_v62, %s13903_s23 }
 0xde0   : > { %v5018_v3 = vmul.f32 1.442695, %v5010_v2  ;;  %v10559_v15 = vpop.eup %10558 }
 0xde1   : > { %v4341_v14 = vpop.xlane.xlu0 %4340  ;;  %v4349_v59 = vmul.f32 %v10559_v15, %v12694_v4 }
 0xde2   : > { %10564 = vpow2.f32 %v5018_v3  ;;  %v4821_v20 = vpop.permute.xlu1 %4820 }
 0xde3   : > { %5054 = vrot.lane.b32.xlu0 %v12517_v24, %s13903_s23  ;;  %10566 = vrcp.f32 %v4341_v14  ;;  %v5011_v24 = vsub.f32 %v12708_v37, %v5006_v0 }
 0xde4   : > { %v10561_v49 = vpop.eup %10560 }
 0xde5   : > { %v4350_v53 = vmul.f32 %v10561_v49, %v12701_v33  ;;  %v5020_v38 = vmul.f32 1.442695, %v5011_v24  ;;  %v4823_v31 = vpop.permute.xlu0 %4822 }
 0xde7   : > { %v4353_v56 = vpack.c.bf16 %v4350_v53, %v4349_v59  ;;  %10568 = vpow2.f32 %v5020_v38 }
 0xde8   : > { %v12809_v18 = vpop.eup %10562 }
 0xde9   : > { %9653 = vmatmul.mubr.msk.bf16.gmra.mrb[124].mxu1 %vm4296_vm15, %v4353_v56  ;;  %v5028_v62 = vsel %vm4296_vm15, %v12809_v18, 0.0 }
 0xdea   : > { %5029 = vadd.xlane.f32.xlu1 %v5028_v62  ;;  %9656 = vmatprep.mubr.msk.bf16.mxu1 %vm10801_vm2, %v13933_v19 }
 0xdec   : > { %v12817_v58 = vpop.eup %10564 }
 0xded   : > { %v10567_v4 = vpop.eup %10566  ;;  %v5031_v33 = vsel %vm4296_vm15, %v12817_v58, 0.0 }
 0xdee   : > { %5032 = vadd.xlane.f32.xlu1 %v5031_v33  ;;  %v4351_v17 = vmul.f32 %v10567_v4, %v12717_v42 }
 0xdf0   : > { %v4354_v55 = vpack.c.bf16 %v4351_v17, %v4351_v17 }
 0xdf1   : > { %v12825_v28 = vpop.eup %10568 }
 0xdf2   : > { %9657 = vmatmul.mubr.msk.bf16.gmra.mrb[128].mxu1 %vm4296_vm15, %v4354_v55  ;;  %v5034_v37 = vsel %vm4296_vm15, %v12825_v28, 0.0 }
 0xdf3   : > { %9684 = vmatprep.mubr.msk.bf16.mxu1 %vm10801_vm2, %v13933_v19 }
 0xdff   : > { %5050 = vrot.lane.b32.xlu1 %v12482_v60, %s13903_s23 }
 0xe02   : > { %5035 = vadd.xlane.f32.xlu0 %v5034_v37 }
 0xe13   : > { %v4561_v42 = vpop.xlane.xlu1 %4560 }
 0xe14   : > { %10570 = vrcp.f32 %v4561_v42 }
 0xe16   : > { %v4564_v5 = vpop.xlane.xlu0 %4563 }
 0xe17   : > { %10572 = vrcp.f32 %v4564_v5 }
 0xe1b   : > { %v4567_v35 = vpop.xlane.xlu1 %4566 }
 0xe1c   : > { %10574 = vrcp.f32 %v4567_v35 }
 0xe1d   : > { %v4570_v43 = vpop.xlane.xlu0 %4569 }
 0xe1e   : > { %10576 = vrcp.f32 %v4570_v43  ;;  %v10571_v46 = vpop.eup %10570 }
 0xe1f   : > { %v4579_v44 = vmul.f32 %v10571_v46, %v12731_v12 }
 0xe21   : > { %v10573_v13 = vpop.eup %10572  ;;  %v4825_v12 = vpop.permute.xlu0 %4824 }
 0xe22   : > { %v4580_v60 = vmul.f32 %v10573_v13, %v12735_v48  ;;  %v4838_v9 = vsel %vm4367_vm9, %v4825_v12, 0 }
 0xe23   : > { %v4573_v6 = vpop.xlane.xlu1 %4572 }
 0xe24   : > { %v4584_v32 = vpack.c.bf16 %v4580_v60, %v4579_v44  ;;  %10578 = vrcp.f32 %v4573_v6 }
 0xe26   : > { %v10575_v45 = vpop.eup %10574  ;;  %9685 = vmatmul.mubr.msk.bf16.vlgmr.msra.gmra.mrb[132].mxu1 %vm4296_vm15, %v4584_v32 }
 0xe27   : > { %9715 = vmatpush3.bf16.msra.mxu1 %v4821_v20  ;;  %9688 = vmatprep.mubr.msk.bf16.mxu1 %vm10801_vm2, %v13933_v19  ;;  %v4581_v47 = vmul.f32 %v10575_v45, %v12740_v36 }
 0xe28   : > { %v10577_v23 = vpop.eup %10576  ;;  %9716 = vmatprep.subr.bf16.mxu1 %v13933_v19 }
 0xe29   : > { %v4582_v40 = vmul.f32 %v10577_v23, %v12744_v16 }
 0xe2b   : > { %9717 = vmatpush3.bf16.msra.mxu1 %v4823_v31  ;;  %v4585_v48 = vpack.c.bf16 %v4582_v40, %v4581_v47  ;;  %v4794_v16 = vpop.xlane.xlu1 %4793 }
 0xe2c   : > { %9718 = vmatprep.subr.bf16.mxu1 %v13933_v19  ;;  %10580 = vrcp.f32 %v4794_v16 }
 0xe2e   : > { %v10579_v26 = vpop.eup %10578  ;;  %9689 = vmatmul.mubr.msk.bf16.gmra.mrb[136].mxu1 %vm4296_vm15, %v4585_v48 }
 0xe2f   : > { %9719 = vmatpush3.bf16.msra.mxu1 %v4838_v9  ;;  %9692 = vmatprep.mubr.msk.bf16.mxu1 %vm10801_vm2, %v13933_v19  ;;  %v4583_v39 = vmul.f32 %v10579_v26, %v12749_v1 }
 0xe30   : > { %9750 = vmatprep.subr.bf16.mxu1 %v13933_v19 }
 0xe31   : > { %v4586_v36 = vpack.c.bf16 %v4583_v39, %v4583_v39 }
 0xe33   : > { %v4800_v2 = vpop.xlane.xlu1 %4799 }
 0xe36   : > { %9693 = vmatmul.mubr.msk.bf16.gmra.mrb[140].mxu1 %vm4296_vm15, %v4586_v36  ;;  %v10581_v15 = vpop.eup %10580 }
 0xe37   : > { %9720 = vmatprep.mubr.msk.bf16.mxu1 %vm10801_vm2, %v13933_v19  ;;  %v4803_v14 = vpop.xlane.xlu1 %4802  ;;  %v4812_v1 = vmul.f32 %v10581_v15, %v12755_v29 }
 0xe3b   : > { %v4806_v49 = vpop.xlane.xlu1 %4805 }
 0xe45   : > { %v5027_v38 = vpop.xlane.xlu1 %5026 }
 0xe52   : > { %v4797_v3 = vpop.xlane.xlu0 %4796 }
 0xe53   : > { %10582 = vrcp.f32 %v4797_v3 }
 0xe54   : > { %10584 = vrcp.f32 %v4803_v14 }
 0xe55   : > { %10586 = vrcp.f32 %v4800_v2 }
 0xe56   : > { %10588 = vrcp.f32 %v4806_v49  ;;  %v5024_v55 = vpop.xlane.xlu0 %5023 }
 0xe57   : > { %10590 = vrcp.f32 %v5024_v55 }
 0xe58   : > { %10592 = vrcp.f32 %v5027_v38 }
 0xe5a   : > { %v5053_v37 = vpop.permute.xlu0 %5052 }
 0xe5d   : > { %v10583_v59 = vpop.eup %10582 }
 0xe5e   : > { %v4813_v53 = vmul.f32 %v10583_v59, %v12793_v11  ;;  %v10585_v0 = vpop.eup %10584  ;;  %v5055_v42 = vpop.permute.xlu0 %5054 }
 0xe5f   : > { %v10587_v62 = vpop.eup %10586  ;;  %v4815_v24 = vmul.f32 %v10585_v0, %v12766_v41  ;;  %v5068_v44 = vsel %vm4367_vm9, %v5055_v42, 0 }
 0xe60   : > { %v4817_v56 = vpack.c.bf16 %v4813_v53, %v4812_v1  ;;  %v4814_v4 = vmul.f32 %v10587_v62, %v12760_v30  ;;  %v10589_v17 = vpop.eup %10588 }
 0xe61   : > { %v4816_v29 = vmul.f32 %v10589_v17, %v12771_v61  ;;  %v10591_v31 = vpop.eup %10590 }
 0xe62   : > { %9721 = vmatmul.mubr.msk.bf16.vlgmr.msra.gmra.mrb[144].mxu1 %vm4296_vm15, %v4817_v56  ;;  %v4818_v33 = vpack.c.bf16 %v4815_v24, %v4814_v4  ;;  %v10593_v61 = vpop.eup %10592  ;;  %v5042_v35 = vmul.f32 %v10591_v31, %v12797_v34  ;;  %v10284_v31 = vld [vmem:[%s13985_s26 + $0x10] sm:$0xff]  }
 0xe63   : > { %9724 = vmatprep.mubr.msk.bf16.mxu1 %vm10801_vm2, %v13933_v19  ;;  %v4819_v11 = vpack.c.bf16 %v4816_v29, %v4816_v29  ;;  %v5043_v13 = vmul.f32 %v10593_v61, %v12784_v22 }
 0xe65   : > { %v5047_v6 = vpack.c.bf16 %v5043_v13, %v5042_v35 }
 0xe6a   : > { %9725 = vmatmul.mubr.msk.bf16.gmra.mrb[148].mxu1 %vm4296_vm15, %v4818_v33 }
 0xe6b   : > { %9728 = vmatprep.mubr.msk.bf16.mxu1 %vm10801_vm2, %v13933_v19 }
 0xe72   : > { %9729 = vmatmul.mubr.msk.bf16.gmra.mrb[152].mxu1 %vm4296_vm15, %v4819_v11 }
 0xe73   : > { %9756 = vmatprep.mubr.msk.bf16.mxu1 %vm10801_vm2, %v13933_v19 }
 0xe77   : > { %v5030_v41 = vpop.xlane.xlu1 %5029 }
 0xe7b   : > { %v5033_v30 = vpop.xlane.xlu1 %5032 }
 0xe7c   : > { %10594 = vrcp.f32 %v5033_v30  ;;  %v10283_v30 = vld [vmem:[%s13985_s26 + $0x8] sm:$0xff]  }
 0xe7d   : > { %10596 = vrcp.f32 %v5030_v41  ;;  %v10282_v41 = vld [vmem:[%s13985_s26] sm:$0xff]  }
 0xe7e   : > { %9769 = vmatpush3.bf16.msra.mxu0 %v10282_v41 }
 0xe7f   : > { %v5051_v20 = vpop.permute.xlu1 %5050  ;;  %9770 = vmatprep.subr.bf16.mxu0 %v13933_v19 }
 0xe80   : > { %9751 = vmatpush3.bf16.msra.mxu1 %v5051_v20 }
 0xe81   : > { %9752 = vmatprep.subr.bf16.mxu1 %v13933_v19 }
 0xe82   : > { %9771 = vmatpush3.bf16.msra.mxu0 %v10283_v30 }
 0xe83   : > { %9772 = vmatprep.subr.bf16.mxu0 %v13933_v19 }
 0xe84   : > { %9753 = vmatpush3.bf16.msra.mxu1 %v5053_v37 }
 0xe85   : > { %v12864_v5 = vpop.f32.mrb[120].mxu1  ;;  %9754 = vmatprep.subr.bf16.mxu1 %v13933_v19 }
 0xe86   : > { %v9650_v43 = vpop.f32.mrb[121].mxu1  ;;  %v10595_v32 = vpop.eup %10594  ;;  %9773 = vmatpush3.bf16.msra.mxu0 %v10284_v31 }
 0xe87   : > { %v12868_v46 = vpop.f32.mrb[122].mxu1  ;;  %v10597_v45 = vpop.eup %10596  ;;  %v5045_v34 = vmul.f32 %v10595_v32, %v12817_v58  ;;  %v10285_v43 = vld [vmem:[%s13985_s26 + $0x18] sm:$0xff]   ;;  %9774 = vmatprep.subr.bf16.mxu0 %v13933_v19 }
 0xe88   : > { %v9651_v60 = vpop.f32.mrb[123].mxu1  ;;  %9755 = vmatpush3.bf16.msra.mxu1 %v5068_v44  ;;  %v5044_v47 = vmul.f32 %v10597_v45, %v12809_v18  ;;  %v10287_v45 = vld [vmem:[%s13985_s26 + $0x28] sm:$0xff]  }
 0xe89   : > { %v10286_v60 = vld [vmem:[%s13985_s26 + $0x20] sm:$0xff]  }
 0xe8a   : > { %v5048_v40 = vpack.c.bf16 %v5045_v34, %v5044_v47  ;;  %9775 = vmatpush3.bf16.msra.mxu0 %v10285_v43  ;;  %v10288_v34 = vld [vmem:[%s13985_s26 + $0x30] sm:$0xff]  }
 0xe8b   : > { %9757 = vmatmul.mubr.msk.bf16.vlgmr.msra.gmra.mrb[156].mxu1 %vm4296_vm15, %v5047_v6  ;;  %9776 = vmatprep.subr.bf16.mxu0 %v13933_v19 }
 0xe8c   : > { %9760 = vmatprep.mubr.msk.bf16.mxu1 %vm10801_vm2, %v13933_v19 }
 0xe8e   : > { %9777 = vmatpush3.bf16.msra.mxu0 %v10286_v60 }
 0xe8f   : > { %v5036_v23 = vpop.xlane.xlu0 %5035  ;;  %9778 = vmatprep.subr.bf16.mxu0 %v13933_v19 }
 0xe90   : > { %10598 = vrcp.f32 %v5036_v23  ;;  %v10289_v23 = vld [vmem:[%s13985_s26 + $0x38] sm:$0xff]  }
 0xe92   : > { %9779 = vmatpush3.bf16.msra.mxu0 %v10287_v45 }
 0xe93   : > { %9761 = vmatmul.mubr.msk.bf16.gmra.mrb[160].mxu1 %vm4296_vm15, %v5048_v40  ;;  %9780 = vmatprep.subr.bf16.mxu0 %v13933_v19 }
 0xe94   : > { %9764 = vmatprep.mubr.msk.bf16.mxu1 %vm10801_vm2, %v13933_v19 }
 0xe96   : > { %9781 = vmatpush3.bf16.msra.mxu0 %v10288_v34 }
 0xe97   : > { %9782 = vmatprep.subr.bf16.mxu0 %v13933_v19 }
 0xe9a   : > { %v10599_v22 = vpop.eup %10598  ;;  %9783 = vmatpush3.bf16.msra.mxu0 %v10289_v23 }
 0xe9b   : > { %v5046_v12 = vmul.f32 %v10599_v22, %v12825_v28 }
 0xe9d   : > { %v5049_v48 = vpack.c.bf16 %v5046_v12, %v5046_v12 }
 0xe9f   : > { %9765 = vmatmul.mubr.msk.bf16.gmra.mrb[164].mxu1 %vm4296_vm15, %v5049_v48 }
 0xea0   : > { %5559 = vmatprep.mubr.bf16.mxu1 %v13932_v10 }
 0xebc   : > { %v12883_v26 = vpop.f32.mrb[124].mxu1 }
 0xebd   : > { %v9654_v58 = vpop.f32.mrb[125].mxu1 }
 0xebe   : > { %v12885_v9 = vpop.f32.mrb[126].mxu1 }
 0xebf   : > { %v9655_v18 = vpop.f32.mrb[127].mxu1 }
 0xec5   : > { %v12887_v39 = vpop.f32.mrb[128].mxu1 }
 0xec6   : > { %v9658_v36 = vpop.f32.mrb[129].mxu1 }
 0xec7   : > { %v4424_v16 = vpop.f32.mrb[130].mxu1 }
 0xec8   : > { %v9659_v2 = vpop.f32.mrb[131].mxu1 }
 0xef9   : > { %v4644_v3 = vpop.f32.mrb[132].mxu1 }
 0xefa   : > { %v9686_v14 = vpop.f32.mrb[133].mxu1 }
 0xefb   : > { %v4647_v15 = vpop.f32.mrb[134].mxu1 }
 0xefc   : > { %v10137_v28 = vpack.i.bf16 %v4647_v15, %v4644_v3  ;;  %v9687_v49 = vpop.f32.mrb[135].mxu1 }
 0xefe   : > { %10138 = vrot.lane.b32.xlu1 %v10137_v28, %s13903_s23 }
 0xf01   : > { %v4652_v59 = vpop.f32.mrb[136].mxu1 }
 0xf02   : > { %v9690_v1 = vpop.f32.mrb[137].mxu1 }
 0xf03   : > { %v4655_v53 = vpop.f32.mrb[138].mxu1 }
 0xf04   : > { %v10142_v56 = vpack.i.bf16 %v4655_v53, %v4652_v59  ;;  %v9691_v0 = vpop.f32.mrb[139].mxu1 }
 0xf06   : > { %10143 = vrot.lane.b32.xlu1 %v10142_v56, %s13903_s23 }
 0xf09   : > { %v4660_v62 = vpop.f32.mrb[140].mxu1 }
 0xf0a   : > { %v9694_v24 = vpop.f32.mrb[141].mxu1 }
 0xf0b   : > { %v4663_v4 = vpop.f32.mrb[142].mxu1 }
 0xf0c   : > { %v9695_v33 = vpop.f32.mrb[143].mxu1 }
 0xf35   : > { %v4874_v17 = vpop.f32.mrb[144].mxu1 }
 0xf36   : > { %v9722_v29 = vpop.f32.mrb[145].mxu1 }
 0xf37   : > { %v4877_v11 = vpop.f32.mrb[146].mxu1 }
 0xf38   : > { %v10147_v38 = vpack.i.bf16 %v4877_v11, %v4874_v17  ;;  %v9723_v55 = vpop.f32.mrb[147].mxu1 }
 0xf3a   : > { %10148 = vrot.lane.b32.xlu1 %v10147_v38, %s13905_s22 }
 0xf3d   : > { %v4882_v37 = vpop.f32.mrb[148].mxu1 }
 0xf3e   : > { %v9726_v20 = vpop.f32.mrb[149].mxu1 }
 0xf3f   : > { %v4885_v61 = vpop.f32.mrb[150].mxu1 }
 0xf40   : > { %v10157_v42 = vpack.i.bf16 %v4885_v61, %v4882_v37  ;;  %v9727_v35 = vpop.f32.mrb[151].mxu1 }
 0xf45   : > { %v4890_v13 = vpop.f32.mrb[152].mxu1 }
 0xf46   : > { %5159 = vrot.lane.b32.xlu0 %v4890_v13, %s13905_s22  ;;  %v9730_v44 = vpop.f32.mrb[153].mxu1 }
 0xf47   : > { %v4893_v6 = vpop.f32.mrb[154].mxu1 }
 0xf48   : > { %v9731_v32 = vpop.f32.mrb[155].mxu1 }
 0xf5e   : > { %v5104_v47 = vpop.f32.mrb[156].mxu1 }
 0xf5f   : > { %v9758_v40 = vpop.f32.mrb[157].mxu1 }
 0xf60   : > { %v5107_v22 = vpop.f32.mrb[158].mxu1 }
 0xf61   : > { %v10152_v12 = vpack.i.bf16 %v5107_v22, %v5104_v47  ;;  %v9759_v48 = vpop.f32.mrb[159].mxu1 }
 0xf63   : > { %10153 = vrot.lane.b32.xlu1 %v10152_v12, %s13907_s18  ;;  %v8663_v12 = vld [vmem:[%s13989_s28] ss:$0 sm:$0xff] }
 0xf66   : > { %v5112_v58 = vpop.f32.mrb[160].mxu1 }
 0xf67   : > { %10158 = vrot.lane.b32.xlu1 %v10157_v42, %s13905_s22  ;;  %v9762_v18 = vpop.f32.mrb[161].mxu1  ;;  %s13997_s22 = sld [smem:[#allocation15_spill]] }
 0xf68   : > { %v5115_v36 = vpop.f32.mrb[162].mxu1 }
 0xf69   : > { %v10162_v16 = vpack.i.bf16 %v5115_v36, %v5112_v58  ;;  %v9763_v2 = vpop.f32.mrb[163].mxu1 }
 0xf6b   : > { %10163 = vrot.lane.b32.xlu1 %v10162_v16, %s13907_s18 }
 0xf6f   : > { %5139 = vrot.lane.b32.xlu1 %v4660_v62, %s13903_s23  ;;  %s13996_s23 = sld [smem:[#allocation14_spill]] }
 0xf70   : > { %v10139_v49 = vpop.permute.xlu1 %10138 }
 0xf71   : > { %v10141_v53 = vunpack.i.h.bf16 %v10139_v49  ;;  %v10140_v56 = vunpack.i.l.bf16 %v10139_v49 }
 0xf72   : > { %v5120_v3 = vpop.f32.mrb[164].mxu1 }
 0xf73   : > { %v9766_v14 = vpop.f32.mrb[165].mxu1  ;;  %5179 = vrot.lane.b32.xlu1 %v5120_v3, %s13907_s18  ;;  %v5187_v33 = vsel %vm1706_vm7, %v12868_v46, %v10141_v53  ;;  %v5186_v62 = vsel %vm1706_vm7, %v12864_v5, %v10140_v56  ;;  %s13998_s18 = sld [smem:[#allocation16_spill]] }
 0xf74   : > { %v5123_v15 = vpop.f32.mrb[166].mxu1 }
 0xf75   : > { %v9767_v28 = vpop.f32.mrb[167].mxu1 }
 0xf78   : > { %v10144_v59 = vpop.permute.xlu1 %10143 }
 0xf79   : > { %v10146_v20 = vunpack.i.h.bf16 %v10144_v59  ;;  %v10145_v31 = vunpack.i.l.bf16 %v10144_v59 }
 0xf7b   : > { %v5189_v46 = vsel %vm1706_vm7, %v12885_v9, %v10146_v20  ;;  %v5188_v35 = vsel %vm1706_vm7, %v12883_v26, %v10145_v31 }
 0xfac   : > { %v10149_v1 = vpop.permute.xlu1 %10148 }
 0xfad   : > { %v10151_v0 = vunpack.i.h.bf16 %v10149_v1  ;;  %v10150_v24 = vunpack.i.l.bf16 %v10149_v1 }
 0xfaf   : > { %v5192_v11 = vsel %vm13986_vm14, %v5187_v33, %v10151_v0  ;;  %v5191_v38 = vsel %vm13987_vm8, %v5186_v62, %v10150_v24  ;;  %v10290_v62 = vld [vmem:[%s13991_s1] ss:$8 sps:$4 sm:$0xff]  }
 0xfb8   : > { %v5160_v9 = vpop.permute.xlu0 %5159 }
 0xfd5   : > { %v10154_v4 = vpop.permute.xlu1 %10153 }
 0xfd6   : > { %v10156_v17 = vunpack.i.h.bf16 %v10154_v4  ;;  %v10155_v29 = vunpack.i.l.bf16 %v10154_v4 }
 0xfd8   : > { %v5198_v55 = vsel %vm5196_vm13, %v5192_v11, %v10156_v17  ;;  %v5197_v41 = vsel %vm5196_vm13, %v5191_v38, %v10155_v29  ;;  %v10292_v17 = vld [vmem:[%s13991_s1 + $0x4] ss:$8 sps:$4 sm:$0xff]   ;;  %v10295_v29 = vld [vmem:[%s13991_s1 + $0x14] ss:$8 sps:$4 sm:$0xff]  }
 0xfd9   : > { %v5218_v30 = vpack.c.bf16 %v5198_v55, %v5197_v41  ;;  %v10159_v37 = vpop.permute.xlu1 %10158  ;;  %5527 = vmatprep.subr.bf16.mxu1 %v10292_v17  ;;  %v8673_v17 = vld [vmem:[%s13993_s0] ss:$0 sm:$0xff] }
 0xfda   : > { %v10161_v61 = vunpack.i.h.bf16 %v10159_v37  ;;  %v10160_v42 = vunpack.i.l.bf16 %v10159_v37  ;;  %5528 = vmatpush1.bf16.msra.mxu1 %v10290_v62 }
 0xfdb   : > { %9785 = vmatmul.mubr.bf16.vlgmr.msra.gmra.mrb[148].mxu0 %v5218_v30  ;;  %5529 = vmatprep.subr.bf16.mxu1 %v10295_v29 }
 0xfdc   : > { %9788 = vmatprep.mubr.msk.bf16.mxu0 %vm10801_vm2, %v13933_v19  ;;  %v5193_v44 = vsel %vm13988_vm11, %v5188_v35, %v10160_v42  ;;  %v5194_v60 = vsel %vm13990_vm12, %v5189_v46, %v10161_v61 }
 0xfdd   : > { %v10164_v5 = vpop.permute.xlu1 %10163 }
 0xfde   : > { %v10166_v43 = vunpack.i.h.bf16 %v10164_v5  ;;  %v10165_v13 = vunpack.i.l.bf16 %v10164_v5 }
 0xfe0   : > { %v5199_v6 = vsel %vm5196_vm13, %v5193_v44, %v10165_v13  ;;  %v5200_v32 = vsel %vm5196_vm13, %v5194_v60, %v10166_v43 }
 0xfe1   : > { %v5140_v45 = vpop.permute.xlu1 %5139  ;;  %v5219_v34 = vpack.c.bf16 %v5200_v32, %v5199_v6  ;;  %v10296_v32 = vld [vmem:[%s13991_s1 + $0x20] ss:$8 sps:$4 sm:$0xff]  }
 0xfe2   : > { %v5190_v23 = vsel %vm1706_vm7, %v12887_v39, %v5140_v45  ;;  %v10298_v45 = vld [vmem:[%s13991_s1 + $0x24] ss:$8 sps:$4 sm:$0xff]  }
 0xfe3   : > { %9789 = vmatmul.mubr.bf16.gmra.mrb[152].mxu0 %v5219_v34  ;;  %v5195_v26 = vsel %vm13982_vm3, %v5190_v23, %v5160_v9  ;;  %v10301_v34 = vld [vmem:[%s13991_s1 + $0x34] ss:$8 sps:$4 sm:$0xff]   ;;  %v10299_v23 = vld [vmem:[%s13991_s1 + $0x30] ss:$8 sps:$4 sm:$0xff]   ;;  %v10304_v9 = vld [vmem:[%s13991_s1 + $0x44] ss:$8 sps:$4 sm:$0xff]  }
 0xfe4   : > { %9792 = vmatprep.mubr.msk.bf16.mxu0 %vm10801_vm2, %v13933_v19  ;;  %vm8248_vm3 = vcmask 7168  }
 0xfe5   : > { %v5180_v47 = vpop.permute.xlu1 %5179 }
 0xfe6   : > { %v5201_v40 = vsel %vm5196_vm13, %v5195_v26, %v5180_v47  ;;  %v10302_v26 = vld [vmem:[%s13991_s1 + $0x40] ss:$8 sps:$4 sm:$0xff]   ;;  %v10307_v47 = vld [vmem:[%s13991_s1 + $0x54] ss:$8 sps:$4 sm:$0xff]  }
 0xfe7   : > { %v5220_v22 = vpack.c.bf16 %v5201_v40, %v5201_v40  ;;  %v10305_v40 = vld [vmem:[%s13991_s1 + $0x50] ss:$8 sps:$4 sm:$0xff]  }
 0xfeb   : > { %9793 = vmatmul.mubr.bf16.gmra.mrb[156].mxu0 %v5220_v22  ;;  %v10310_v22 = vld [vmem:[%s13991_s1 + $0x64] ss:$8 sps:$4 sm:$0xff]  }
0x10ae   : > { %v5310_v48 = vpop.f32.mrb[148].mxu0 }
0x10af   : > { %v5311_v58 = vadd.f32 %v8663_v12, %v5310_v48  ;;  %v9786_v18 = vpop.f32.mrb[149].mxu0  ;;  %v10313_v48 = vld [vmem:[%s13991_s1 + $0x74] ss:$8 sps:$4 sm:$0xff]  }
0x10b0   : > { %v5313_v36 = vpop.f32.mrb[150].mxu0 }
0x10b1   : > { %v5332_v16 = vadd.f32 %v5311_v58, %v12431_v50  ;;  %v5314_v39 = vadd.f32 %v8663_v12, %v5313_v36  ;;  %v9787_v2 = vpop.f32.mrb[151].mxu0  ;;  %v10311_v58 = vld [vmem:[%s13991_s1 + $0x70] ss:$8 sps:$4 sm:$0xff]  }
0x10b3   : > { %5339 = vadd.xlane.f32.xlu1 %v5332_v16  ;;  %v5333_v3 = vadd.f32 %v5314_v39, %v12433_v7 }
0x10b5   : > { %5341 = vadd.xlane.f32.xlu0 %v5333_v3 }
0x10b6   : > { %v5318_v14 = vpop.f32.mrb[152].mxu0 }
0x10b7   : > { %v5319_v15 = vadd.f32 %v8663_v12, %v5318_v14  ;;  %v9790_v28 = vpop.f32.mrb[153].mxu0 }
0x10b8   : > { %v5321_v49 = vpop.f32.mrb[154].mxu0 }
0x10b9   : > { %v5334_v59 = vadd.f32 %v5319_v15, %v12442_v51  ;;  %v5322_v1 = vadd.f32 %v8663_v12, %v5321_v49  ;;  %v9791_v53 = vpop.f32.mrb[155].mxu0  ;;  %v10293_v51 = vld [vmem:[%s13991_s1 + $0x10] ss:$8 sps:$4 sm:$0xff]  }
0x10ba   : > { %5530 = vmatpush1.bf16.msra.mxu1 %v10293_v51  ;;  %v8672_v53 = vld [vmem:[%s13992_s2] ss:$0 sm:$0xff] }
0x10bb   : > { %5343 = vadd.xlane.f32.xlu1 %v5334_v59  ;;  %v5335_v50 = vadd.f32 %v5322_v1, %v12444_v57  ;;  %5531 = vmatprep.subr.bf16.mxu1 %v10298_v45  ;;  %v10319_v45 = vld [vmem:[%s13994_s11 + $0x10] sm:$0xff]  }
0x10be   : > { %v5326_v56 = vpop.f32.mrb[156].mxu0  ;;  %5532 = vmatpush1.bf16.msra.mxu1 %v10296_v32  ;;  %v10318_v32 = vld [vmem:[%s13994_s11 + $0x50] sm:$0xff]  }
0x10bf   : > { %v5327_v0 = vadd.f32 %v8663_v12, %v5326_v56  ;;  %5345 = vadd.xlane.f32.xlu1 %v5335_v50  ;;  %v9794_v7 = vpop.f32.mrb[157].mxu0  ;;  %5533 = vmatprep.subr.bf16.mxu1 %v10301_v34  ;;  %v10308_v12 = vld [vmem:[%s13991_s1 + $0x60] ss:$8 sps:$4 sm:$0xff]   ;;  %v10320_v34 = vld [vmem:[%s13994_s11 + $0x58] sm:$0xff]  }
0x10c0   : > { %v5329_v24 = vpop.f32.mrb[158].mxu0 }
0x10c1   : > { %v5336_v4 = vadd.f32 %v5327_v0, %v12452_v63  ;;  %v9795_v33 = vpop.f32.mrb[159].mxu0 }
0x10c2   : > { %5534 = vmatpush1.bf16.msra.mxu1 %v10299_v23  ;;  %v10321_v23 = vld [vmem:[%s13994_s11 + $0x18] sm:$0xff]  }
0x10c3   : > { %5347 = vadd.xlane.f32.xlu1 %v5336_v4  ;;  %5535 = vmatprep.subr.bf16.mxu1 %v10304_v9  ;;  %v10322_v9 = vld [vmem:[%s13994_s11 + $0x60] sm:$0xff]  }
0x10c6   : > { %5536 = vmatpush1.bf16.msra.mxu1 %v10302_v26  ;;  %v10323_v26 = vld [vmem:[%s13994_s11 + $0x20] sm:$0xff]  }
0x10c7   : > { %5537 = vmatprep.subr.bf16.mxu1 %v10307_v47  ;;  %v10324_v47 = vld [vmem:[%s13994_s11 + $0x68] sm:$0xff]  }
0x10ca   : > { %5538 = vmatpush1.bf16.msra.mxu1 %v10305_v40  ;;  %v10325_v40 = vld [vmem:[%s13994_s11 + $0x28] sm:$0xff]  }
0x10cb   : > { %5539 = vmatprep.subr.bf16.mxu1 %v10310_v22  ;;  %v10326_v22 = vld [vmem:[%s13994_s11 + $0x70] sm:$0xff]  }
0x10ce   : > { %5540 = vmatpush1.bf16.msra.mxu1 %v10308_v12  ;;  %v10327_v12 = vld [vmem:[%s13994_s11 + $0x30] sm:$0xff]  }
0x10cf   : > { %5541 = vmatprep.subr.bf16.mxu1 %v10313_v48  ;;  %v10328_v48 = vld [vmem:[%s13994_s11 + $0x78] sm:$0xff]  }
0x10d2   : > { %5542 = vmatpush1.bf16.msra.mxu1 %v10311_v58  ;;  %v10329_v58 = vld [vmem:[%s13994_s11 + $0x38] sm:$0xff]  }
0x1140   : > { %v5340_v11 = vpop.xlane.xlu1 %5339 }
0x1141   : > { %v5349_v38 = vmul.f32 0.0078125, %v5340_v11 }
0x1142   : > { %v5342_v57 = vpop.xlane.xlu0 %5341 }
0x1143   : > { %v12947_v55 = vsub.f32 %v5332_v16, %v5349_v38  ;;  %v5350_v41 = vmul.f32 0.0078125, %v5342_v57 }
0x1145   : > { %v5359_v30 = vmul.f32 %v12947_v55, %v12947_v55  ;;  %v12951_v63 = vsub.f32 %v5333_v3, %v5350_v41 }
0x1147   : > { %5364 = vadd.xlane.f32.xlu1 %v5359_v30  ;;  %v5360_v37 = vmul.f32 %v12951_v63, %v12951_v63 }
0x1148   : > { %v5344_v20 = vpop.xlane.xlu1 %5343 }
0x1149   : > { %v5351_v31 = vmul.f32 0.0078125, %v5344_v20  ;;  %5366 = vadd.xlane.f32.xlu0 %v5360_v37 }
0x114b   : > { %v12955_v61 = vsub.f32 %v5334_v59, %v5351_v31 }
0x114c   : > { %v5346_v42 = vpop.xlane.xlu1 %5345 }
0x114d   : > { %v5352_v5 = vmul.f32 0.0078125, %v5346_v42  ;;  %v5361_v46 = vmul.f32 %v12955_v61, %v12955_v61 }
0x114f   : > { %5368 = vadd.xlane.f32.xlu1 %v5361_v46  ;;  %v12959_v35 = vsub.f32 %v5335_v50, %v5352_v5 }
0x1150   : > { %v5348_v43 = vpop.xlane.xlu1 %5347 }
0x1151   : > { %v5353_v13 = vmul.f32 0.0078125, %v5348_v43  ;;  %v5362_v44 = vmul.f32 %v12959_v35, %v12959_v35 }
0x1153   : > { %v12963_v60 = vsub.f32 %v5336_v4, %v5353_v13  ;;  %5370 = vadd.xlane.f32.xlu0 %v5362_v44  ;;  %v10314_v13 = vld [vmem:[%s13994_s11 + $0x40] sm:$0xff]  }
0x1154   : > { %v10315_v44 = vld [vmem:[%s13994_s11] sm:$0xff]   ;;  %9111 = vmatprep.subr.bf16.mxu0 %v10314_v13 }
0x1155   : > { %v5363_v6 = vmul.f32 %v12963_v60, %v12963_v60  ;;  %9112 = vmatpush3.bf16.msra.mxu0 %v10315_v44 }
0x1157   : > { %5372 = vadd.xlane.f32.xlu1 %v5363_v6  ;;  %v10317_v6 = vld [vmem:[%s13994_s11 + $0x8] sm:$0xff]  }
0x11d4   : > { %v5365_v18 = vpop.xlane.xlu1 %5364 }
0x11d5   : > { %v5374_v36 = vmul.f32 0.0078125, %v5365_v18  ;;  %v5435_v18 = vld [vmem:[%s13995_s15] sm:$0x3] }
0x11d6   : > { %v5367_v16 = vpop.xlane.xlu0 %5366 }
0x11d7   : > { %v5379_v39 = vadd.f32 1e-05, %v5374_v36  ;;  %v5375_v2 = vmul.f32 0.0078125, %v5367_v16  ;;  %v5440_v36 = vrot.slane %v5435_v18, %v12461_v21  ;;  %v5444_v16 = vrot.slane %v5435_v18, %v12466_v52 }
0x11d9   : > { %10600 = vrsqrt.f32 %v5379_v39  ;;  %v5380_v3 = vadd.f32 1e-05, %v5375_v2 }
0x11db   : > { %10602 = vrsqrt.f32 %v5380_v3 }
0x11dc   : > { %v5369_v14 = vpop.xlane.xlu1 %5368 }
0x11dd   : > { %v5376_v15 = vmul.f32 0.0078125, %v5369_v14 }
0x11df   : > { %v5381_v28 = vadd.f32 1e-05, %v5376_v15 }
0x11e0   : > { %v5371_v49 = vpop.xlane.xlu0 %5370 }
0x11e1   : > { %10604 = vrsqrt.f32 %v5381_v28  ;;  %v5377_v59 = vmul.f32 0.0078125, %v5371_v49 }
0x11e3   : > { %v10601_v1 = vpop.eup %10600  ;;  %v5382_v50 = vadd.f32 1e-05, %v5377_v59 }
0x11e4   : > { %v5389_v56 = vmul.f32 %v10601_v1, %v12947_v55  ;;  %v5373_v0 = vpop.xlane.xlu1 %5372 }
0x11e5   : > { %v10603_v7 = vpop.eup %10602  ;;  %10606 = vrsqrt.f32 %v5382_v50  ;;  %v5378_v24 = vmul.f32 0.0078125, %v5373_v0 }
0x11e6   : > { %v5400_v4 = vmul.f32 %v8672_v53, %v5389_v56  ;;  %v5390_v33 = vmul.f32 %v10603_v7, %v12951_v63 }
0x11e7   : > { %v5383_v62 = vadd.f32 1e-05, %v5378_v24 }
0x11e8   : > { %v5401_v29 = vmul.f32 %v8672_v53, %v5390_v33  ;;  %v12983_v51 = vadd.f32 %v8673_v17, %v5400_v4 }
0x11e9   : > { %10608 = vrsqrt.f32 %v5383_v62 }
0x11ea   : > { %v12985_v11 = vadd.f32 %v8673_v17, %v5401_v29 }
0x11eb   : > { %v10605_v38 = vpop.eup %10604 }
0x11ec   : > { %v5432_v57 = vpack.c.bf16 %v12985_v11, %v12983_v51  ;;  %v5391_v55 = vmul.f32 %v10605_v38, %v12955_v61 }
0x11ee   : > { %5560 = vmatmul.mubr.bf16.vlgmr.msra.gmra.mrb[168].mxu1 %v5432_v57  ;;  %v5402_v63 = vmul.f32 %v8672_v53, %v5391_v55 }
0x11ef   : > { %v10607_v41 = vpop.eup %10606  ;;  %5569 = vmatprep.mubr.bf16.mxu1 %v13932_v10 }
0x11f0   : > { %v5392_v30 = vmul.f32 %v10607_v41, %v12959_v35  ;;  %v12992_v31 = vadd.f32 %v8673_v17, %v5402_v63 }
0x11f2   : > { %v5403_v37 = vmul.f32 %v8672_v53, %v5392_v30 }
0x11f3   : > { %v10609_v20 = vpop.eup %10608 }
0x11f4   : > { %v12994_v42 = vadd.f32 %v8673_v17, %v5403_v37  ;;  %v5393_v5 = vmul.f32 %v10609_v20, %v12963_v60  ;;  %v10316_v60 = vld [vmem:[%s13994_s11 + $0x48] sm:$0xff]  }
0x11f5   : > { %9113 = vmatprep.subr.bf16.mxu0 %v10316_v60 }
0x11f6   : > { %v5433_v61 = vpack.c.bf16 %v12994_v42, %v12992_v31  ;;  %v5404_v46 = vmul.f32 %v8672_v53, %v5393_v5  ;;  %9114 = vmatpush3.bf16.msra.mxu0 %v10317_v6 }
0x11f7   : > { %9115 = vmatprep.subr.bf16.mxu0 %v10318_v32 }
0x11f8   : > { %5570 = vmatmul.mubr.bf16.gmra.mrb[172].mxu1 %v5433_v61  ;;  %v13000_v35 = vadd.f32 %v8673_v17, %v5404_v46 }
0x11f9   : > { %5579 = vmatprep.mubr.bf16.mxu1 %v13932_v10 }
0x11fa   : > { %v5434_v43 = vpack.c.bf16 %v13000_v35, %v13000_v35  ;;  %9116 = vmatpush3.bf16.msra.mxu0 %v10319_v45 }
0x11fb   : > { %9117 = vmatprep.subr.bf16.mxu0 %v10320_v34 }
0x11fe   : > { %9118 = vmatpush3.bf16.msra.mxu0 %v10321_v23 }
0x11ff   : > { %9119 = vmatprep.subr.bf16.mxu0 %v10322_v9 }
0x1200   : > { %5580 = vmatmul.mubr.bf16.gmra.mrb[176].mxu1 %v5434_v43 }
0x1201   : > { %6173 = vmatprep.mubr.bf16.mxu1 %v13932_v10 }
0x1202   : > { %9120 = vmatpush3.bf16.msra.mxu0 %v10323_v26 }
0x1203   : > { %9121 = vmatprep.subr.bf16.mxu0 %v10324_v47 }
0x1206   : > { %9122 = vmatpush3.bf16.msra.mxu0 %v10325_v40 }
0x1207   : > { %9123 = vmatprep.subr.bf16.mxu0 %v10326_v22 }
0x120a   : > { %9124 = vmatpush3.bf16.msra.mxu0 %v10327_v12 }
0x120b   : > { %9125 = vmatprep.subr.bf16.mxu0 %v10328_v48 }
0x120e   : > { %9126 = vmatpush3.bf16.msra.mxu0 %v10329_v58 }
0x120f   : > { %9796 = vmatprep.subr.bf16.mxu0 %v13933_v19 }
0x12c1   : > { %v5561_v39 = vpop.f32.mrb[168].mxu1 }
0x12c2   : > { %v13025_v2 = vadd.f32 %v5561_v39, %v5440_v36  ;;  %v5563_v3 = vpop.f32.mrb[169].mxu1 }
0x12c3   : > { %v13027_v14 = vadd.f32 %v5563_v3, %v5444_v16  ;;  %v5565_v15 = vpop.f32.mrb[170].mxu1 }
0x12c4   : > { %v5588_v28 = vmul.f32 %v13025_v2, %v13025_v2  ;;  %v13031_v49 = vadd.f32 %v5565_v15, %v5440_v36  ;;  %v5567_v59 = vpop.f32.mrb[171].mxu1 }
0x12c5   : > { %v5589_v1 = vmul.f32 %v13027_v14, %v13027_v14  ;;  %v13035_v53 = vadd.f32 %v5567_v59, %v5444_v16 }
0x12c6   : > { %v5598_v50 = vmul.f32 %v5588_v28, %v13025_v2  ;;  %v5590_v56 = vmul.f32 %v13031_v49, %v13031_v49 }
0x12c7   : > { %v5599_v0 = vmul.f32 %v5589_v1, %v13027_v14  ;;  %v5591_v7 = vmul.f32 %v13035_v53, %v13035_v53 }
0x12c8   : > { %v5608_v24 = vmul.f32 0.044715, %v5598_v50  ;;  %v5600_v4 = vmul.f32 %v5590_v56, %v13031_v49 }
0x12c9   : > { %v5609_v33 = vmul.f32 0.044715, %v5599_v0  ;;  %v5601_v62 = vmul.f32 %v5591_v7, %v13035_v53 }
0x12ca   : > { %v5618_v17 = vadd.f32 %v5608_v24, %v13025_v2  ;;  %v5610_v29 = vmul.f32 0.044715, %v5600_v4 }
0x12cb   : > { %v5619_v38 = vadd.f32 %v5609_v33, %v13027_v14  ;;  %v5611_v57 = vmul.f32 0.044715, %v5601_v62  ;;  %v5571_v55 = vpop.f32.mrb[172].mxu1 }
0x12cc   : > { %v5628_v41 = vmul.f32 0.7978846, %v5618_v17  ;;  %v5620_v30 = vadd.f32 %v5610_v29, %v13031_v49  ;;  %v13048_v63 = vadd.f32 %v5571_v55, %v5440_v36  ;;  %v5573_v37 = vpop.f32.mrb[173].mxu1 }
0x12cd   : > { %v5629_v20 = vmul.f32 0.7978846, %v5619_v38  ;;  %v5621_v5 = vadd.f32 %v5611_v57, %v13035_v53  ;;  %v13051_v61 = vadd.f32 %v5573_v37, %v5444_v16  ;;  %v5575_v46 = vpop.f32.mrb[174].mxu1 }
0x12ce   : > { %10610 = vtanh.f32 %v5628_v41  ;;  %v5630_v43 = vmul.f32 0.7978846, %v5620_v30  ;;  %v5592_v13 = vmul.f32 %v13048_v63, %v13048_v63  ;;  %v13055_v44 = vadd.f32 %v5575_v46, %v5440_v36  ;;  %v5577_v60 = vpop.f32.mrb[175].mxu1 }
0x12cf   : > { %10612 = vtanh.f32 %v5629_v20  ;;  %v5631_v6 = vmul.f32 0.7978846, %v5621_v5  ;;  %v5593_v32 = vmul.f32 %v13051_v61, %v13051_v61  ;;  %v13059_v45 = vadd.f32 %v5577_v60, %v5444_v16 }
0x12d0   : > { %10614 = vtanh.f32 %v5630_v43  ;;  %v5602_v34 = vmul.f32 %v5592_v13, %v13048_v63  ;;  %v5594_v23 = vmul.f32 %v13055_v44, %v13055_v44 }
0x12d1   : > { %10616 = vtanh.f32 %v5631_v6  ;;  %v5603_v9 = vmul.f32 %v5593_v32, %v13051_v61  ;;  %v5595_v26 = vmul.f32 %v13059_v45, %v13059_v45 }
0x12d2   : > { %v5612_v47 = vmul.f32 0.044715, %v5602_v34  ;;  %v5604_v40 = vmul.f32 %v5594_v23, %v13055_v44 }
0x12d3   : > { %v5613_v22 = vmul.f32 0.044715, %v5603_v9  ;;  %v5605_v12 = vmul.f32 %v5595_v26, %v13059_v45  ;;  %v5581_v48 = vpop.f32.mrb[176].mxu1 }
0x12d4   : > { %v5622_v58 = vadd.f32 %v5612_v47, %v13048_v63  ;;  %v5614_v18 = vmul.f32 0.044715, %v5604_v40  ;;  %v13070_v39 = vadd.f32 %v5581_v48, %v5440_v36  ;;  %v5583_v3 = vpop.f32.mrb[177].mxu1 }
0x12d5   : > { %v5623_v15 = vadd.f32 %v5613_v22, %v13051_v61  ;;  %v5615_v28 = vmul.f32 0.044715, %v5605_v12  ;;  %v13073_v59 = vadd.f32 %v5583_v3, %v5444_v16  ;;  %v5585_v1 = vpop.f32.mrb[178].mxu1 }
0x12d6   : > { %v5632_v50 = vmul.f32 0.7978846, %v5622_v58  ;;  %v5624_v56 = vadd.f32 %v5614_v18, %v13055_v44  ;;  %v5596_v0 = vmul.f32 %v13070_v39, %v13070_v39  ;;  %v5586_v7 = vpop.f32.mrb[179].mxu1 }
0x12d7   : > { %v5633_v24 = vmul.f32 0.7978846, %v5623_v15  ;;  %v5625_v4 = vadd.f32 %v5615_v28, %v13059_v45  ;;  %v5597_v36 = vmul.f32 %v13073_v59, %v13073_v59 }
0x12d8   : > { %v10611_v33 = vpop.eup %10610  ;;  %10618 = vtanh.f32 %v5632_v50  ;;  %v5634_v62 = vmul.f32 0.7978846, %v5624_v56  ;;  %v5606_v16 = vmul.f32 %v5596_v0, %v13070_v39 }
0x12d9   : > { %v10613_v17 = vpop.eup %10612  ;;  %v5648_v29 = vadd.f32 1.0, %v10611_v33  ;;  %10620 = vtanh.f32 %v5633_v24  ;;  %v5635_v38 = vmul.f32 0.7978846, %v5625_v4  ;;  %v5607_v57 = vmul.f32 %v5597_v36, %v13073_v59 }
0x12da   : > { %v10615_v55 = vpop.eup %10614  ;;  %10622 = vtanh.f32 %v5634_v62  ;;  %v5616_v41 = vmul.f32 0.044715, %v5606_v16  ;;  %v5649_v30 = vadd.f32 1.0, %v10613_v17 }
0x12db   : > { %v10617_v37 = vpop.eup %10616  ;;  %v5658_v20 = vmul.f32 0.5, %v5648_v29  ;;  %v5650_v5 = vadd.f32 1.0, %v10615_v55  ;;  %10624 = vtanh.f32 %v5635_v38  ;;  %v5617_v46 = vmul.f32 0.044715, %v5607_v57 }
0x12dc   : > { %v5626_v43 = vadd.f32 %v5616_v41, %v13070_v39  ;;  %v5651_v13 = vadd.f32 1.0, %v10617_v37  ;;  %v5659_v60 = vmul.f32 0.5, %v5649_v30 }
0x12dd   : > { %v5660_v6 = vmul.f32 0.5, %v5650_v5  ;;  %v5627_v32 = vadd.f32 %v5617_v46, %v13073_v59  ;;  %v5668_v9 = vmul.f32 %v5658_v20, %v13025_v2 }
0x12de   : > { %v5636_v34 = vmul.f32 0.7978846, %v5626_v43  ;;  %v5661_v23 = vmul.f32 0.5, %v5651_v13  ;;  %v5669_v40 = vmul.f32 %v5659_v60, %v13027_v14 }
0x12df   : > { %v5670_v26 = vmul.f32 %v5660_v6, %v13031_v49  ;;  %v5637_v47 = vmul.f32 0.7978846, %v5627_v32 }
0x12e0   : > { %10626 = vtanh.f32 %v5636_v34  ;;  %v5671_v22 = vmul.f32 %v5661_v23, %v13035_v53 }
0x12e1   : > { %v5710_v12 = vpack.c.bf16 %v5670_v26, %v5668_v9  ;;  %10628 = vtanh.f32 %v5637_v47 }
0x12e2   : > { %v10619_v48 = vpop.eup %10618  ;;  %v5711_v58 = vpack.c.bf16 %v5671_v22, %v5669_v40 }
0x12e3   : > { %v10621_v18 = vpop.eup %10620  ;;  %v5652_v3 = vadd.f32 1.0, %v10619_v48 }
0x12e4   : > { %v10623_v15 = vpop.eup %10622  ;;  %5851 = vmatprep.mubr.bf16.mxu0 %v5711_v58  ;;  %v5653_v28 = vadd.f32 1.0, %v10621_v18 }
0x12e5   : > { %v10625_v1 = vpop.eup %10624  ;;  %5852 = vmatmul.mubr.bf16.vlgmr.msra.gmra.mrb[160].mxu0 %v5710_v12  ;;  %v5654_v2 = vadd.f32 1.0, %v10623_v15  ;;  %v5662_v50 = vmul.f32 0.5, %v5652_v3  ;;  %v10330_v15 = vld [vmem:[%s10885_s12 + $0xc0] ss:$12 sps:$4 sm:$0xff]  }
0x12e6   : > { %v5655_v49 = vadd.f32 1.0, %v10625_v1  ;;  %v5663_v56 = vmul.f32 0.5, %v5653_v28  ;;  %v10332_v28 = vld [vmem:[%s10885_s12 + $0xc4] ss:$12 sps:$4 sm:$0xff]   ;;  %v10333_v1 = vld [vmem:[%s10885_s12 + $0xc8] ss:$12 sps:$4 sm:$0xff]  }
0x12e7   : > { %v5664_v0 = vmul.f32 0.5, %v5654_v2  ;;  %v5672_v14 = vmul.f32 %v5662_v50, %v13048_v63  ;;  %v10336_v2 = vld [vmem:[%s10885_s12 + $0xdc] ss:$12 sps:$4 sm:$0xff]   ;;  %6141 = vmatprep.subr.bf16.mxu1 %v10332_v28  ;;  %9797 = vmatpush3.bf16.msra.mxu0 %v10333_v1  ;;  %v10334_v50 = vld [vmem:[%s10885_s12 + $0xd8] ss:$12 sps:$4 sm:$0xff]  }
0x12e8   : > { %v5665_v7 = vmul.f32 0.5, %v5655_v49  ;;  %v5673_v4 = vmul.f32 %v5663_v56, %v13051_v61  ;;  %6142 = vmatpush1.bf16.msra.mxu1 %v10330_v15  ;;  %9798 = vmatprep.subr.bf16.mxu0 %v13933_v19  ;;  %v8707_v15 = vld [vmem:[%s13997_s22] ss:$0 sm:$0xff] }
0x12e9   : > { %v5674_v53 = vmul.f32 %v5664_v0, %v13055_v44  ;;  %6143 = vmatprep.subr.bf16.mxu1 %v10336_v2 }
0x12ea   : > { %v10627_v24 = vpop.eup %10626  ;;  %v5675_v36 = vmul.f32 %v5665_v7, %v13059_v45  ;;  %v8690_v45 = vld [vmem:[%s13996_s23] ss:$0 sm:$0xff] }
0x12eb   : > { %v10629_v33 = vpop.eup %10628  ;;  %v5712_v62 = vpack.c.bf16 %v5674_v53, %v5672_v14  ;;  %v5656_v16 = vadd.f32 1.0, %v10627_v24 }
0x12ec   : > { %v5713_v17 = vpack.c.bf16 %v5675_v36, %v5673_v4  ;;  %v5657_v29 = vadd.f32 1.0, %v10629_v33  ;;  %6144 = vmatpush1.bf16.msra.mxu1 %v10334_v50 }
0x12ed   : > { %v5666_v38 = vmul.f32 0.5, %v5656_v16 }
0x12ee   : > { %5859 = vmatprep.mubr.bf16.mxu0 %v5713_v17  ;;  %v5667_v57 = vmul.f32 0.5, %v5657_v29 }
0x12ef   : > { %5860 = vmatmul.mubr.bf16.gmra.mrb[164].mxu0 %v5712_v62  ;;  %v5676_v63 = vmul.f32 %v5666_v38, %v13070_v39 }
0x12f0   : > { %v5677_v55 = vmul.f32 %v5667_v57, %v13073_v59 }
0x12f1   : > { %v5714_v41 = vpack.c.bf16 %v5676_v63, %v5676_v63 }
0x12f2   : > { %v5715_v44 = vpack.c.bf16 %v5677_v55, %v5677_v55 }
0x12f4   : > { %5867 = vmatprep.mubr.bf16.mxu0 %v5715_v44  ;;  %v10338_v44 = vld [vmem:[%s10885_s12 + $0xf0] ss:$12 sps:$4 sm:$0xff]  }
0x12f7   : > { %5868 = vmatmul.mubr.bf16.gmra.mrb[168].mxu0 %v5714_v41  ;;  %v10340_v41 = vld [vmem:[%s10885_s12 + $0xf4] ss:$12 sps:$4 sm:$0xff]  }
0x12f8   : > { %9812 = vmatprep.mubr.msk.bf16.mxu0 %vm10801_vm2, %v13933_v19  ;;  %6145 = vmatprep.subr.bf16.mxu1 %v10340_v41 }
0x12f9   : > { %6146 = vmatpush1.bf16.msra.mxu1 %v10338_v44 }
0x13b8   : > { %v9127_v61 = vpop.f32.mrb[160].mxu0 }
0x13b9   : > { %v9128_v30 = vpop.f32.mrb[161].mxu0 }
0x13ba   : > { %v9129_v37 = vadd.f32 %v9128_v30, %v9127_v61  ;;  %v9130_v20 = vpop.f32.mrb[162].mxu0  ;;  %v10341_v61 = vld [vmem:[%s10885_s12 + $0xf8] ss:$12 sps:$4 sm:$0xff]   ;;  %v10342_v30 = vld [vmem:[%s10885_s12 + $0x108] ss:$12 sps:$4 sm:$0xff]  }
0x13bb   : > { %v9131_v5 = vpop.f32.mrb[163].mxu0 }
0x13bc   : > { %v5854_v46 = vadd.f32 %v9129_v37, %v8690_v45  ;;  %v9132_v43 = vadd.f32 %v9131_v5, %v9130_v20  ;;  %v10345_v37 = vld [vmem:[%s10885_s12 + $0x110] ss:$12 sps:$4 sm:$0xff]   ;;  %v10346_v5 = vld [vmem:[%s10885_s12 + $0x120] ss:$12 sps:$4 sm:$0xff]  }
0x13bd   : > { %v10348_v20 = vld [vmem:[%s10885_s12 + $0x124] ss:$12 sps:$4 sm:$0xff]  }
0x13be   : > { %v5857_v13 = vadd.f32 %v9132_v43, %v8690_v45  ;;  %v5875_v59 = vadd.f32 %v5854_v46, %v12983_v51  ;;  %v10349_v46 = vld [vmem:[%s10885_s12 + $0x128] ss:$12 sps:$4 sm:$0xff]  }
0x13bf   : > { %v10352_v43 = vld [vmem:[%s10885_s12 + $0x13c] ss:$12 sps:$4 sm:$0xff]  }
0x13c0   : > { %5882 = vadd.xlane.f32.xlu0 %v5875_v59  ;;  %v5876_v39 = vadd.f32 %v5857_v13, %v12985_v11  ;;  %v10350_v13 = vld [vmem:[%s10885_s12 + $0x138] ss:$12 sps:$4 sm:$0xff]  }
0x13c2   : > { %v9133_v60 = vpop.f32.mrb[164].mxu0  ;;  %5884 = vadd.xlane.f32.xlu1 %v5876_v39 }
0x13c3   : > { %v9134_v6 = vpop.f32.mrb[165].mxu0 }
0x13c4   : > { %v9135_v32 = vadd.f32 %v9134_v6, %v9133_v60  ;;  %v9136_v34 = vpop.f32.mrb[166].mxu0  ;;  %v10354_v60 = vld [vmem:[%s10885_s12 + $0x150] ss:$12 sps:$4 sm:$0xff]   ;;  %v10357_v6 = vld [vmem:[%s10885_s12 + $0x158] ss:$12 sps:$4 sm:$0xff]  }
0x13c5   : > { %v9137_v23 = vpop.f32.mrb[167].mxu0 }
0x13c6   : > { %v5862_v9 = vadd.f32 %v9135_v32, %v8690_v45  ;;  %v9138_v26 = vadd.f32 %v9137_v23, %v9136_v34  ;;  %v10360_v32 = vld [vmem:[%s10885_s12 + $0x16c] ss:$12 sps:$4 sm:$0xff]   ;;  %v10358_v34 = vld [vmem:[%s10885_s12 + $0x168] ss:$12 sps:$4 sm:$0xff]   ;;  %v10361_v23 = vld [vmem:[%s10885_s12 + $0x170] ss:$12 sps:$4 sm:$0xff]  }
0x13c8   : > { %v5865_v47 = vadd.f32 %v9138_v26, %v8690_v45  ;;  %v5877_v40 = vadd.f32 %v5862_v9, %v12992_v31  ;;  %v10337_v31 = vld [vmem:[%s10885_s12 + $0xe0] ss:$12 sps:$4 sm:$0xff]  }
0x13c9   : > { %9799 = vmatpush3.bf16.msra.mxu0 %v10337_v31 }
0x13ca   : > { %v9139_v22 = vpop.f32.mrb[168].mxu0  ;;  %5886 = vadd.xlane.f32.xlu0 %v5877_v40  ;;  %v5878_v51 = vadd.f32 %v5865_v47, %v12994_v42  ;;  %9800 = vmatprep.subr.bf16.mxu0 %v13933_v19 }
0x13cb   : > { %v9140_v11 = vpop.f32.mrb[169].mxu0 }
0x13cc   : > { %v9141_v12 = vadd.f32 %v9140_v11, %v9139_v22  ;;  %v9142_v48 = vpop.f32.mrb[170].mxu0  ;;  %5888 = vadd.xlane.f32.xlu1 %v5878_v51 }
0x13cd   : > { %v9143_v58 = vpop.f32.mrb[171].mxu0  ;;  %9801 = vmatpush3.bf16.msra.mxu0 %v10341_v61 }
0x13ce   : > { %v5870_v18 = vadd.f32 %v9141_v12, %v8690_v45  ;;  %v10344_v45 = vld [vmem:[%s10885_s12 + $0x10c] ss:$12 sps:$4 sm:$0xff]   ;;  %9802 = vmatprep.subr.bf16.mxu0 %v13933_v19 }
0x13cf   : > { %6147 = vmatprep.subr.bf16.mxu1 %v10344_v45 }
0x13d0   : > { %v5879_v3 = vadd.f32 %v5870_v18, %v13000_v35  ;;  %6148 = vmatpush1.bf16.msra.mxu1 %v10342_v30 }
0x13d1   : > { %9803 = vmatpush3.bf16.msra.mxu0 %v10345_v37  ;;  %6149 = vmatprep.subr.bf16.mxu1 %v10348_v20 }
0x13d2   : > { %5890 = vadd.xlane.f32.xlu0 %v5879_v3  ;;  %9804 = vmatprep.subr.bf16.mxu0 %v13933_v19 }
0x13d4   : > { %6150 = vmatpush1.bf16.msra.mxu1 %v10346_v5 }
0x13d5   : > { %9805 = vmatpush3.bf16.msra.mxu0 %v10349_v46  ;;  %6151 = vmatprep.subr.bf16.mxu1 %v10352_v43 }
0x13d6   : > { %9806 = vmatprep.subr.bf16.mxu0 %v13933_v19 }
0x13d8   : > { %6152 = vmatpush1.bf16.msra.mxu1 %v10350_v13 }
0x144d   : > { %v5883_v42 = vpop.xlane.xlu0 %5882 }
0x144e   : > { %v5892_v49 = vmul.f32 0.0078125, %v5883_v42 }
0x144f   : > { %v5885_v35 = vpop.xlane.xlu1 %5884 }
0x1450   : > { %v13111_v56 = vsub.f32 %v5875_v59, %v5892_v49  ;;  %v5893_v0 = vmul.f32 0.0078125, %v5885_v35  ;;  %v10353_v59 = vld [vmem:[%s10885_s12 + $0x140] ss:$12 sps:$4 sm:$0xff]  }
0x1451   : > { %9807 = vmatpush3.bf16.msra.mxu0 %v10353_v59  ;;  %v8708_v35 = vld [vmem:[%s13998_s18] ss:$0 sm:$0xff] }
0x1452   : > { %v13113_v7 = vsub.f32 %v5876_v39, %v5893_v0  ;;  %v5902_v14 = vmul.f32 %v13111_v56, %v13111_v56  ;;  %v10356_v39 = vld [vmem:[%s10885_s12 + $0x154] ss:$12 sps:$4 sm:$0xff]   ;;  %9808 = vmatprep.subr.bf16.mxu0 %v13933_v19 }
0x1453   : > { %6153 = vmatprep.subr.bf16.mxu1 %v10356_v39 }
0x1454   : > { %5907 = vadd.xlane.f32.xlu1 %v5902_v14  ;;  %v5903_v53 = vmul.f32 %v13113_v7, %v13113_v7  ;;  %6154 = vmatpush1.bf16.msra.mxu1 %v10354_v60 }
0x1455   : > { %9809 = vmatpush3.bf16.msra.mxu0 %v10357_v6  ;;  %6155 = vmatprep.subr.bf16.mxu1 %v10360_v32 }
0x1456   : > { %5909 = vadd.xlane.f32.xlu0 %v5903_v53  ;;  %9810 = vmatprep.subr.bf16.mxu0 %v13933_v19 }
0x1457   : > { %v5887_v24 = vpop.xlane.xlu0 %5886 }
0x1458   : > { %v5894_v4 = vmul.f32 0.0078125, %v5887_v24  ;;  %6156 = vmatpush1.bf16.msra.mxu1 %v10358_v34 }
0x1459   : > { %v5889_v36 = vpop.xlane.xlu1 %5888  ;;  %9811 = vmatpush3.bf16.msra.mxu0 %v10361_v23  ;;  %9824 = vmatprep.subr.bf16.mxu1 %v13933_v19 }
0x145a   : > { %v13119_v33 = vsub.f32 %v5877_v40, %v5894_v4  ;;  %v5895_v62 = vmul.f32 0.0078125, %v5889_v36  ;;  %9842 = vmatprep.subr.bf16.mxu0 %v13933_v19 }
0x145c   : > { %v13121_v16 = vsub.f32 %v5878_v51, %v5895_v62  ;;  %v5904_v17 = vmul.f32 %v13119_v33, %v13119_v33 }
0x145e   : > { %5911 = vadd.xlane.f32.xlu1 %v5904_v17  ;;  %v5905_v29 = vmul.f32 %v13121_v16, %v13121_v16 }
0x145f   : > { %v5891_v38 = vpop.xlane.xlu0 %5890 }
0x1460   : > { %v5896_v57 = vmul.f32 0.0078125, %v5891_v38  ;;  %5913 = vadd.xlane.f32.xlu0 %v5905_v29 }
0x1462   : > { %v13127_v55 = vsub.f32 %v5879_v3, %v5896_v57 }
0x1464   : > { %v5906_v63 = vmul.f32 %v13127_v55, %v13127_v55 }
0x1466   : > { %5915 = vadd.xlane.f32.xlu1 %v5906_v63 }
0x14e1   : > { %v5908_v9 = vpop.xlane.xlu1 %5907 }
0x14e2   : > { %v5917_v26 = vmul.f32 0.0078125, %v5908_v9 }
0x14e3   : > { %v5910_v47 = vpop.xlane.xlu0 %5909 }
0x14e4   : > { %v5922_v40 = vadd.f32 1e-05, %v5917_v26  ;;  %v5918_v22 = vmul.f32 0.0078125, %v5910_v47 }
0x14e6   : > { %10630 = vrsqrt.f32 %v5922_v40  ;;  %v5923_v51 = vadd.f32 1e-05, %v5918_v22 }
0x14e8   : > { %10632 = vrsqrt.f32 %v5923_v51 }
0x14eb   : > { %v5912_v11 = vpop.xlane.xlu1 %5911 }
0x14ec   : > { %v5919_v12 = vmul.f32 0.0078125, %v5912_v11 }
0x14ed   : > { %v5914_v48 = vpop.xlane.xlu0 %5913 }
0x14ee   : > { %v5924_v58 = vadd.f32 1e-05, %v5919_v12  ;;  %v5920_v18 = vmul.f32 0.0078125, %v5914_v48 }
0x14f0   : > { %v10631_v3 = vpop.eup %10630  ;;  %10634 = vrsqrt.f32 %v5924_v58  ;;  %v5925_v28 = vadd.f32 1e-05, %v5920_v18 }
0x14f1   : > { %v5932_v1 = vmul.f32 %v10631_v3, %v13111_v56 }
0x14f2   : > { %v10633_v2 = vpop.eup %10632  ;;  %10636 = vrsqrt.f32 %v5925_v28 }
0x14f3   : > { %v5943_v31 = vmul.f32 %v8707_v15, %v5932_v1  ;;  %v5933_v50 = vmul.f32 %v10633_v2, %v13113_v7  ;;  %v5916_v42 = vpop.xlane.xlu1 %5915 }
0x14f4   : > { %v5921_v49 = vmul.f32 0.0078125, %v5916_v42 }
0x14f5   : > { %v5944_v0 = vmul.f32 %v8707_v15, %v5933_v50  ;;  %v13160_v53 = vadd.f32 %v8708_v35, %v5943_v31 }
0x14f6   : > { %v5926_v14 = vadd.f32 1e-05, %v5921_v49 }
0x14f7   : > { %v13162_v24 = vadd.f32 %v8708_v35, %v5944_v0 }
0x14f8   : > { %10638 = vrsqrt.f32 %v5926_v14 }
0x14f9   : > { %v5992_v4 = vpack.c.bf16 %v13162_v24, %v13160_v53 }
0x14fa   : > { %v10635_v36 = vpop.eup %10634 }
0x14fb   : > { %6174 = vmatmul.mubr.bf16.vlgmr.msra.gmra.mrb[180].mxu1 %v5992_v4  ;;  %9813 = vmatmul.mubr.bf16.vlgmr.msra.gmra.mrb[172].mxu0 %v5992_v4  ;;  %v5934_v56 = vmul.f32 %v10635_v36, %v13119_v33 }
0x14fc   : > { %v10637_v62 = vpop.eup %10636  ;;  %6183 = vmatprep.mubr.bf16.mxu1 %v13932_v10  ;;  %9816 = vmatprep.mubr.msk.bf16.mxu0 %vm10801_vm2, %v13933_v19 }
0x14fd   : > { %v5935_v7 = vmul.f32 %v10637_v62, %v13121_v16  ;;  %v5945_v17 = vmul.f32 %v8707_v15, %v5934_v56 }
0x14ff   : > { %v5946_v29 = vmul.f32 %v8707_v15, %v5935_v7  ;;  %v13171_v38 = vadd.f32 %v8708_v35, %v5945_v17 }
0x1501   : > { %v13173_v57 = vadd.f32 %v8708_v35, %v5946_v29 }
0x1502   : > { %v10639_v63 = vpop.eup %10638 }
0x1503   : > { %v5993_v44 = vpack.c.bf16 %v13173_v57, %v13171_v38  ;;  %v5936_v33 = vmul.f32 %v10639_v63, %v13127_v55  ;;  %v8741_v55 = vld [vmem:[%s13984_s16 + $0x3] sm:$0x7] }
0x1504   : > { %v6001_v45 = vrot.slane %v8741_v55, %v12461_v21  ;;  %v6009_v30 = vrot.slane %v8741_v55, %v3956_v25  ;;  %v6005_v5 = vrot.slane %v8741_v55, %v12466_v52 }
0x1505   : > { %6184 = vmatmul.mubr.bf16.gmra.mrb[184].mxu1 %v5993_v44  ;;  %9817 = vmatmul.mubr.bf16.gmra.mrb[176].mxu0 %v5993_v44  ;;  %v5947_v41 = vmul.f32 %v8707_v15, %v5936_v33 }
0x1506   : > { %6193 = vmatprep.mubr.bf16.mxu1 %v13932_v10  ;;  %9820 = vmatprep.mubr.msk.bf16.mxu0 %vm10801_vm2, %v13933_v19 }
0x1507   : > { %v13181_v16 = vadd.f32 %v8708_v35, %v5947_v41 }
0x1509   : > { %v5994_v61 = vpack.c.bf16 %v13181_v16, %v13181_v16 }
0x150d   : > { %6194 = vmatmul.mubr.bf16.gmra.mrb[188].mxu1 %v5994_v61  ;;  %9821 = vmatmul.mubr.bf16.gmra.mrb[180].mxu0 %v5994_v61 }
0x150e   : > { %9830 = vmatprep.mubr.msk.bf16.mxu1 %vm10801_vm2, %v13933_v19  ;;  %9848 = vmatprep.mubr.msk.bf16.mxu0 %vm10801_vm2, %v13933_v19 }
0x15ce   : > { %v6175_v37 = vpop.f32.mrb[180].mxu1  ;;  %v6236_v20 = vpop.f32.mrb[172].mxu0 }
0x15cf   : > { %v6177_v46 = vpop.f32.mrb[181].mxu1  ;;  %v9814_v43 = vpop.f32.mrb[173].mxu0  ;;  %v6176_v39 = vadd.f32 %v6175_v37, %v6001_v45  ;;  %v6237_v60 = vadd.f32 %v6236_v20, %v6009_v30 }
0x15d0   : > { %v6179_v13 = vpop.f32.mrb[182].mxu1  ;;  %v6239_v59 = vpop.f32.mrb[174].mxu0  ;;  %v6178_v9 = vadd.f32 %v6177_v46, %v6005_v5 }
0x15d1   : > { %v6180_v6 = vadd.f32 %v6179_v13, %v6001_v45  ;;  %v6240_v32 = vadd.f32 %v6239_v59, %v6009_v30  ;;  %v6181_v34 = vpop.f32.mrb[183].mxu1  ;;  %v9815_v23 = vpop.f32.mrb[175].mxu0 }
0x15d2   : > { %v6182_v26 = vadd.f32 %v6181_v34, %v6005_v5 }
0x15d3   : > { %v13194_v47 = vpack.c.bf16 %v6180_v6, %v6176_v39  ;;  %v13196_v8 = vpack.c.bf16 %v6240_v32, %v6237_v60 }
0x15d4   : > { %v6261_v25 = vpack.c.bf16 %v6182_v26, %v6178_v9 }
0x15d5   : > { %9843 = vmatpush3.bf16.msra.mxu0 %v13196_v8 }
0x15d6   : > { %6489 = vrot.lane.b32.xlu0 %v6261_v25, %s13999_s3  ;;  %v6274_v40 = vsel %vm1706_vm7, %v6261_v25, 0  ;;  %9844 = vmatprep.subr.bf16.mxu0 %v13933_v19 }
0x15d7   : > { %9825 = vmatpush3.bf16.xpose.msra.mxu1 %v6274_v40 }
0x15d8   : > { %v6185_v22 = vpop.f32.mrb[184].mxu1  ;;  %v6244_v51 = vpop.f32.mrb[176].mxu0  ;;  %9826 = vmatprep.subr.bf16.mxu1 %v13933_v19 }
0x15d9   : > { %v6187_v11 = vpop.f32.mrb[185].mxu1  ;;  %v9818_v12 = vpop.f32.mrb[177].mxu0  ;;  %v6186_v18 = vadd.f32 %v6185_v22, %v6001_v45  ;;  %v6245_v3 = vadd.f32 %v6244_v51, %v6009_v30 }
0x15da   : > { %6480 = vrot.lane.b32.xlu0 %v13194_v47, %s13999_s3  ;;  %v6189_v48 = vpop.f32.mrb[186].mxu1  ;;  %v6247_v58 = vpop.f32.mrb[178].mxu0  ;;  %v6188_v31 = vadd.f32 %v6187_v11, %v6005_v5 }
0x15db   : > { %v6190_v15 = vadd.f32 %v6189_v48, %v6001_v45  ;;  %v6248_v28 = vadd.f32 %v6247_v58, %v6009_v30  ;;  %v6191_v1 = vpop.f32.mrb[187].mxu1  ;;  %v9819_v2 = vpop.f32.mrb[179].mxu0 }
0x15dc   : > { %v6192_v50 = vadd.f32 %v6191_v1, %v6005_v5 }
0x15dd   : > { %v6259_v42 = vpack.c.bf16 %v6190_v15, %v6186_v18  ;;  %v13205_v49 = vpack.c.bf16 %v6248_v28, %v6245_v3 }
0x15de   : > { %v6262_v35 = vpack.c.bf16 %v6192_v50, %v6188_v31 }
0x15df   : > { %9845 = vmatpush3.bf16.msra.mxu0 %v13205_v49  ;;  %6482 = vrot.lane.b32.xlu0 %v6259_v42, %s13999_s3 }
0x15e0   : > { %v6195_v0 = vpop.f32.mrb[188].mxu1  ;;  %v6252_v14 = vpop.f32.mrb[180].mxu0  ;;  %6491 = vrot.lane.b32.xlu1 %v6262_v35, %s13999_s3  ;;  %v6277_v4 = vsel %vm1706_vm7, %v6262_v35, 0  ;;  %9846 = vmatprep.subr.bf16.mxu0 %v13933_v19 }
0x15e1   : > { %v6196_v36 = vadd.f32 %v6195_v0, %v6001_v45  ;;  %v6253_v56 = vadd.f32 %v6252_v14, %v6009_v30  ;;  %v6197_v62 = vpop.f32.mrb[189].mxu1  ;;  %v9822_v7 = vpop.f32.mrb[181].mxu0  ;;  %9827 = vmatpush3.bf16.xpose.msra.mxu1 %v6277_v4 }
0x15e2   : > { %v6198_v17 = vadd.f32 %v6197_v62, %v6005_v5  ;;  %v6199_v29 = vpop.f32.mrb[190].mxu1  ;;  %v6255_v63 = vpop.f32.mrb[182].mxu0  ;;  %9828 = vmatprep.subr.bf16.mxu1 %v13933_v19 }
0x15e3   : > { %v6260_v44 = vpack.c.bf16 %v6196_v36, %v6196_v36  ;;  %v13213_v33 = vpack.c.bf16 %v6253_v56, %v6253_v56  ;;  %v6200_v41 = vpop.f32.mrb[191].mxu1  ;;  %v9823_v61 = vpop.f32.mrb[183].mxu0 }
0x15e4   : > { %v6263_v55 = vpack.c.bf16 %v6198_v17, %v6198_v17 }
0x15e5   : > { %6484 = vrot.lane.b32.xlu0 %v6260_v44, %s13999_s3  ;;  %v6419_v45 = vsel %vm4367_vm9, %v13213_v33, 0 }
0x15e6   : > { %9847 = vmatpush3.bf16.msra.mxu0 %v6419_v45  ;;  %6493 = vrot.lane.b32.xlu1 %v6263_v55, %s13999_s3  ;;  %v6280_v30 = vsel %vm1706_vm7, %v6263_v55, 0 }
0x15e7   : > { %9878 = vmatprep.subr.bf16.mxu0 %v13933_v19 }
0x15e9   : > { %9829 = vmatpush3.bf16.xpose.msra.mxu1 %v6280_v30  ;;  %6716 = vrot.lane.b32.xlu0 %v13194_v47, %s14000_s5 }
0x15ea   : > { %6722 = vrot.lane.b32.xlu1 %v6261_v25, %s14000_s5  ;;  %9860 = vmatprep.subr.bf16.mxu1 %v13933_v19 }
0x15ed   : > { %6718 = vrot.lane.b32.xlu0 %v6259_v42, %s14000_s5 }
0x15ee   : > { %6724 = vrot.lane.b32.xlu1 %v6262_v35, %s14000_s5 }
0x15f0   : > { %9831 = vmatmul.mubr.msk.bf16.vlgmr.msra.gmra.mrb[192].mxu1 %vm1706_vm7, %v13194_v47 }
0x15f1   : > { %6720 = vrot.lane.b32.xlu0 %v6260_v44, %s14000_s5  ;;  %9834 = vmatprep.mubr.msk.bf16.mxu1 %vm10801_vm2, %v13933_v19 }
0x15f2   : > { %6726 = vrot.lane.b32.xlu1 %v6263_v55, %s14000_s5 }
0x15f5   : > { %6946 = vrot.lane.b32.xlu0 %v13194_v47, %s14001_s8 }
0x15f6   : > { %6952 = vrot.lane.b32.xlu1 %v6261_v25, %s14001_s8 }
0x15f8   : > { %9835 = vmatmul.mubr.msk.bf16.gmra.mrb[196].mxu1 %vm1706_vm7, %v6259_v42 }
0x15f9   : > { %6950 = vrot.lane.b32.xlu0 %v6260_v44, %s14001_s8  ;;  %9838 = vmatprep.mubr.msk.bf16.mxu1 %vm10801_vm2, %v13933_v19 }
0x15fa   : > { %6954 = vrot.lane.b32.xlu1 %v6262_v35, %s14001_s8 }
0x15fd   : > { %6640 = vrot.lane.b32.xlu0 %v13196_v8, %s13999_s3 }
0x15fe   : > { %6956 = vrot.lane.b32.xlu1 %v6263_v55, %s14001_s8 }
0x1600   : > { %9839 = vmatmul.mubr.msk.bf16.gmra.mrb[200].mxu1 %vm1706_vm7, %v6260_v44 }
0x1601   : > { %6644 = vrot.lane.b32.xlu0 %v13213_v33, %s13999_s3  ;;  %9866 = vmatprep.mubr.msk.bf16.mxu1 %vm10801_vm2, %v13933_v19 }
0x1602   : > { %6948 = vrot.lane.b32.xlu1 %v6259_v42, %s14001_s8 }
0x1606   : > { %6642 = vrot.lane.b32.xlu1 %v13205_v49, %s13999_s3 }
0x1648   : > { %v6490_v37 = vpop.permute.xlu0 %6489 }
0x1649   : > { %v6505_v20 = vsel %vm1706_vm7, %v6490_v37, 0 }
0x164a   : > { %9861 = vmatpush3.bf16.xpose.msra.mxu1 %v6505_v20 }
0x164b   : > { %9862 = vmatprep.subr.bf16.mxu1 %v13933_v19 }
0x164c   : > { %v6481_v39 = vpop.permute.xlu0 %6480 }
0x1651   : > { %v6483_v32 = vpop.permute.xlu0 %6482 }
0x1652   : > { %v6492_v5 = vpop.permute.xlu1 %6491 }
0x1653   : > { %v6508_v46 = vsel %vm1706_vm7, %v6492_v5, 0 }
0x1654   : > { %9863 = vmatpush3.bf16.xpose.msra.mxu1 %v6508_v46 }
0x1655   : > { %9864 = vmatprep.subr.bf16.mxu1 %v13933_v19 }
0x1657   : > { %v6485_v9 = vpop.permute.xlu0 %6484 }
0x1658   : > { %v6494_v43 = vpop.permute.xlu1 %6493 }
0x1659   : > { %v6511_v13 = vsel %vm1706_vm7, %v6494_v43, 0 }
0x165b   : > { %v6717_v25 = vpop.permute.xlu0 %6716 }
0x165c   : > { %9865 = vmatpush3.bf16.xpose.msra.mxu1 %v6511_v13  ;;  %v6723_v59 = vpop.permute.xlu1 %6722 }
0x165d   : > { %9896 = vmatprep.subr.bf16.mxu1 %v13933_v19  ;;  %v6738_v60 = vsel %vm1706_vm7, %v6723_v59, 0 }
0x165f   : > { %v6719_v51 = vpop.permute.xlu0 %6718 }
0x1660   : > { %v6725_v6 = vpop.permute.xlu1 %6724 }
0x1661   : > { %v6741_v34 = vsel %vm1706_vm7, %v6725_v6, 0 }
0x1663   : > { %9867 = vmatmul.mubr.msk.bf16.vlgmr.msra.gmra.mrb[204].mxu1 %vm1706_vm7, %v6481_v39  ;;  %v6721_v48 = vpop.permute.xlu0 %6720 }
0x1664   : > { %9897 = vmatpush3.bf16.xpose.msra.mxu1 %v6738_v60  ;;  %9870 = vmatprep.mubr.msk.bf16.mxu1 %vm10801_vm2, %v13933_v19  ;;  %v6727_v23 = vpop.permute.xlu1 %6726 }
0x1665   : > { %9898 = vmatprep.subr.bf16.mxu1 %v13933_v19  ;;  %v6744_v26 = vsel %vm1706_vm7, %v6727_v23, 0 }
0x1667   : > { %v6947_v18 = vpop.permute.xlu0 %6946 }
0x1668   : > { %v6953_v47 = vpop.permute.xlu1 %6952 }
0x1669   : > { %v6968_v40 = vsel %vm1706_vm7, %v6953_v47, 0 }
0x166b   : > { %9871 = vmatmul.mubr.msk.bf16.gmra.mrb[208].mxu1 %vm1706_vm7, %v6483_v32  ;;  %v6951_v15 = vpop.permute.xlu0 %6950 }
0x166c   : > { %9899 = vmatpush3.bf16.xpose.msra.mxu1 %v6741_v34  ;;  %9874 = vmatprep.mubr.msk.bf16.mxu1 %vm10801_vm2, %v13933_v19  ;;  %v6955_v22 = vpop.permute.xlu1 %6954 }
0x166d   : > { %9900 = vmatprep.subr.bf16.mxu1 %v13933_v19  ;;  %v6971_v11 = vsel %vm1706_vm7, %v6955_v22, 0 }
0x1670   : > { %v6957_v12 = vpop.permute.xlu1 %6956 }
0x1671   : > { %v6974_v58 = vsel %vm1706_vm7, %v6957_v12, 0 }
0x1673   : > { %9875 = vmatmul.mubr.msk.bf16.gmra.mrb[212].mxu1 %vm1706_vm7, %v6485_v9 }
0x1674   : > { %9901 = vmatpush3.bf16.xpose.msra.mxu1 %v6744_v26  ;;  %9902 = vmatprep.mubr.msk.bf16.mxu1 %vm10801_vm2, %v13933_v19  ;;  %v6949_v3 = vpop.permute.xlu1 %6948 }
0x1675   : > { %9932 = vmatprep.subr.bf16.mxu1 %v13933_v19 }
0x167b   : > { %9903 = vmatmul.mubr.msk.bf16.vlgmr.msra.gmra.mrb[216].mxu1 %vm1706_vm7, %v6717_v25 }
0x167c   : > { %9933 = vmatpush3.bf16.xpose.msra.mxu1 %v6968_v40  ;;  %9906 = vmatprep.mubr.msk.bf16.mxu1 %vm10801_vm2, %v13933_v19 }
0x167d   : > { %9934 = vmatprep.subr.bf16.mxu1 %v13933_v19 }
0x1683   : > { %9907 = vmatmul.mubr.msk.bf16.gmra.mrb[220].mxu1 %vm1706_vm7, %v6719_v51 }
0x1684   : > { %9935 = vmatpush3.bf16.xpose.msra.mxu1 %v6971_v11  ;;  %9910 = vmatprep.mubr.msk.bf16.mxu1 %vm10801_vm2, %v13933_v19 }
0x1685   : > { %9936 = vmatprep.subr.bf16.mxu1 %v13933_v19 }
0x168b   : > { %9911 = vmatmul.mubr.msk.bf16.gmra.mrb[224].mxu1 %vm1706_vm7, %v6721_v48 }
0x168c   : > { %9937 = vmatpush3.bf16.xpose.msra.mxu1 %v6974_v58  ;;  %9938 = vmatprep.mubr.msk.bf16.mxu1 %vm10801_vm2, %v13933_v19 }
0x168d   : > { %9968 = vmatprep.subr.bf16.mxu1 %v13933_v19 }
0x1693   : > { %9939 = vmatmul.mubr.msk.bf16.vlgmr.msra.gmra.mrb[228].mxu1 %vm1706_vm7, %v6947_v18 }
0x1694   : > { %9942 = vmatprep.mubr.msk.bf16.mxu1 %vm10801_vm2, %v13933_v19 }
0x169b   : > { %9943 = vmatmul.mubr.msk.bf16.gmra.mrb[232].mxu1 %vm1706_vm7, %v6949_v3 }
0x169c   : > { %9946 = vmatprep.mubr.msk.bf16.mxu1 %vm10801_vm2, %v13933_v19 }
0x16a3   : > { %9947 = vmatmul.mubr.msk.bf16.gmra.mrb[236].mxu1 %vm1706_vm7, %v6951_v15 }
0x16a4   : > { %9984 = vmatprep.mubr.msk.bf16.mxu1 %vm10801_vm2, %v13933_v19 }
0x16c3   : > { %v6316_v28 = vpop.f32.mrb[192].mxu1 }
0x16c4   : > { %v6338_v1 = vmul.f32 0.17677669, %v6316_v28  ;;  %v9832_v2 = vpop.f32.mrb[193].mxu1 }
0x16c5   : > { %v6319_v31 = vpop.f32.mrb[194].mxu1 }
0x16c6   : > { %v13298_v50 = vadd.f32 %v6338_v1, %v12586_v54  ;;  %v6339_v42 = vmul.f32 0.17677669, %v6319_v31  ;;  %v9833_v35 = vpop.f32.mrb[195].mxu1 }
0x16c7   : > { %v13349_v35 = vpop.permute.xlu0 %6640 }
0x16c8   : > { %v13301_v0 = vadd.f32 %v6339_v42, %v12586_v54  ;;  %v6348_v14 = vsel %vm4296_vm15, %v13298_v50, -inf }
0x16c9   : > { %6349 = vmax.xlane.f32.xlu1 %v6348_v14 }
0x16ca   : > { %v6351_v4 = vsel %vm4296_vm15, %v13301_v0, -inf }
0x16cb   : > { %6352 = vmax.xlane.f32.xlu0 %v6351_v4  ;;  %v6324_v36 = vpop.f32.mrb[196].mxu1 }
0x16cc   : > { %v6340_v56 = vmul.f32 0.17677669, %v6324_v36  ;;  %v9836_v62 = vpop.f32.mrb[197].mxu1 }
0x16cd   : > { %v6327_v7 = vpop.f32.mrb[198].mxu1  ;;  %v13351_v62 = vpop.permute.xlu1 %6642 }
0x16ce   : > { %v13308_v17 = vadd.f32 %v6340_v56, %v12586_v54  ;;  %v6341_v29 = vmul.f32 0.17677669, %v6327_v7  ;;  %v9837_v63 = vpop.f32.mrb[199].mxu1 }
0x16d0   : > { %v13311_v44 = vadd.f32 %v6341_v29, %v12586_v54  ;;  %v6354_v41 = vsel %vm4296_vm15, %v13308_v17, -inf  ;;  %v13356_v29 = vpop.permute.xlu0 %6644 }
0x16d1   : > { %6355 = vmax.xlane.f32.xlu0 %v6354_v41 }
0x16d2   : > { %v6357_v61 = vsel %vm4296_vm15, %v13311_v44, -inf }
0x16d3   : > { %6358 = vmax.xlane.f32.xlu1 %v6357_v61  ;;  %v6332_v55 = vpop.f32.mrb[200].mxu1 }
0x16d4   : > { %v6342_v45 = vmul.f32 0.17677669, %v6332_v55  ;;  %v9840_v30 = vpop.f32.mrb[201].mxu1 }
0x16d5   : > { %v6335_v37 = vpop.f32.mrb[202].mxu1 }
0x16d6   : > { %v13318_v20 = vadd.f32 %v6342_v45, %v12586_v54  ;;  %v9841_v5 = vpop.f32.mrb[203].mxu1 }
0x16d8   : > { %v6360_v46 = vsel %vm4296_vm15, %v13318_v20, -inf }
0x16d9   : > { %6361 = vmax.xlane.f32.xlu0 %v6360_v46 }
0x16e4   : > { %6870 = vrot.lane.b32.xlu1 %v13196_v8, %s14000_s5 }
0x1736   : > { %v6547_v43 = vpop.f32.mrb[204].mxu1 }
0x1737   : > { %v6569_v13 = vmul.f32 0.17677669, %v6547_v43  ;;  %v9868_v59 = vpop.f32.mrb[205].mxu1 }
0x1738   : > { %v6550_v39 = vpop.f32.mrb[206].mxu1 }
0x1739   : > { %v13325_v60 = vadd.f32 %v6569_v13, %v12586_v54  ;;  %v6570_v6 = vmul.f32 0.17677669, %v6550_v39  ;;  %v9869_v32 = vpop.f32.mrb[207].mxu1 }
0x173b   : > { %v13328_v34 = vadd.f32 %v6570_v6, %v12586_v54  ;;  %v6579_v23 = vsel %vm4296_vm15, %v13325_v60, -inf }
0x173c   : > { %6580 = vmax.xlane.f32.xlu1 %v6579_v23 }
0x173d   : > { %v6582_v9 = vsel %vm4296_vm15, %v13328_v34, -inf }
0x173e   : > { %6583 = vmax.xlane.f32.xlu0 %v6582_v9  ;;  %v6555_v26 = vpop.f32.mrb[208].mxu1 }
0x173f   : > { %v6571_v47 = vmul.f32 0.17677669, %v6555_v26  ;;  %v9872_v25 = vpop.f32.mrb[209].mxu1 }
0x1740   : > { %v6558_v40 = vpop.f32.mrb[210].mxu1 }
0x1741   : > { %v13335_v22 = vadd.f32 %v6571_v47, %v12586_v54  ;;  %v6572_v51 = vmul.f32 0.17677669, %v6558_v40  ;;  %v9873_v11 = vpop.f32.mrb[211].mxu1 }
0x1743   : > { %v13338_v12 = vadd.f32 %v6572_v51, %v12586_v54  ;;  %v6585_v48 = vsel %vm4296_vm15, %v13335_v22, -inf }
0x1744   : > { %6586 = vmax.xlane.f32.xlu1 %v6585_v48 }
0x1745   : > { %v6588_v58 = vsel %vm4296_vm15, %v13338_v12, -inf }
0x1746   : > { %6589 = vmax.xlane.f32.xlu0 %v6588_v58  ;;  %v6563_v18 = vpop.f32.mrb[212].mxu1 }
0x1747   : > { %v6573_v3 = vmul.f32 0.17677669, %v6563_v18  ;;  %v9876_v15 = vpop.f32.mrb[213].mxu1 }
0x1748   : > { %v6566_v28 = vpop.f32.mrb[214].mxu1 }
0x1749   : > { %v13345_v1 = vadd.f32 %v6573_v3, %v12586_v54  ;;  %v9877_v2 = vpop.f32.mrb[215].mxu1 }
0x174b   : > { %v6591_v31 = vsel %vm4296_vm15, %v13345_v1, -inf }
0x174c   : > { %6592 = vmax.xlane.f32.xlu1 %v6591_v31 }
0x174e   : > { %v6780_v42 = vpop.f32.mrb[216].mxu1 }
0x174f   : > { %v9904_v14 = vpop.f32.mrb[217].mxu1 }
0x1750   : > { %v6783_v4 = vpop.f32.mrb[218].mxu1 }
0x1751   : > { %v6803_v36 = vmul.f32 0.17677669, %v6783_v4  ;;  %v9905_v56 = vpop.f32.mrb[219].mxu1 }
0x1753   : > { %v13354_v7 = vadd.f32 %v6803_v36, %v12586_v54 }
0x1755   : > { %v6815_v63 = vsel %vm4296_vm15, %v13354_v7, -inf }
0x1756   : > { %v6350_v41 = vpop.xlane.xlu1 %6349  ;;  %6816 = vmax.xlane.f32.xlu1 %v6815_v63  ;;  %v6788_v61 = vpop.f32.mrb[220].mxu1  ;;  %v6802_v63 = vmul.f32 0.17677669, %v6780_v42 }
0x1757   : > { %v6363_v55 = vsub.f32 %v13298_v50, %v6350_v41  ;;  %v9908_v45 = vpop.f32.mrb[221].mxu1 }
0x1758   : > { %v6791_v30 = vpop.f32.mrb[222].mxu1  ;;  %v6353_v43 = vpop.xlane.xlu0 %6352  ;;  %v13389_v45 = vadd.f32 %v6802_v63, %v12586_v54 }
0x1759   : > { %v6368_v37 = vmul.f32 1.442695, %v6363_v55  ;;  %v6805_v5 = vmul.f32 0.17677669, %v6791_v30  ;;  %v9909_v46 = vpop.f32.mrb[223].mxu1  ;;  %v6364_v4 = vsub.f32 %v13301_v0, %v6353_v43 }
0x175a   : > { %v6804_v30 = vmul.f32 0.17677669, %v6788_v61 }
0x175b   : > { %10640 = vpow2.f32 %v6368_v37  ;;  %v13362_v13 = vadd.f32 %v6805_v5, %v12586_v54  ;;  %v6370_v55 = vmul.f32 1.442695, %v6364_v4 }
0x175c   : > { %6872 = vrot.lane.b32.xlu0 %v13205_v49, %s14000_s5 }
0x175d   : > { %v6821_v59 = vsel %vm4296_vm15, %v13362_v13, -inf }
0x175e   : > { %6822 = vmax.xlane.f32.xlu1 %v6821_v59  ;;  %v6796_v39 = vpop.f32.mrb[224].mxu1  ;;  %v6356_v6 = vpop.xlane.xlu0 %6355 }
0x175f   : > { %v6365_v50 = vsub.f32 %v13308_v17, %v6356_v6  ;;  %v9912_v32 = vpop.f32.mrb[225].mxu1 }
0x1760   : > { %v6799_v23 = vpop.f32.mrb[226].mxu1  ;;  %v6359_v37 = vpop.xlane.xlu1 %6358  ;;  %v6806_v32 = vmul.f32 0.17677669, %v6796_v39 }
0x1761   : > { %v6372_v9 = vmul.f32 1.442695, %v6365_v50  ;;  %v9913_v26 = vpop.f32.mrb[227].mxu1  ;;  %v6366_v0 = vsub.f32 %v13311_v44, %v6359_v37  ;;  %v13396_v50 = vadd.f32 %v6804_v30, %v12586_v54  ;;  %v6812_v23 = vsel %vm4296_vm15, %v13389_v45, -inf }
0x1762   : > { %v13403_v26 = vadd.f32 %v6806_v32, %v12586_v54 }
0x1763   : > { %10642 = vpow2.f32 %v6372_v9  ;;  %v6374_v9 = vmul.f32 1.442695, %v6366_v0 }
0x1764   : > { %10644 = vpow2.f32 %v6370_v55  ;;  %v13432_v63 = vpop.permute.xlu1 %6870 }
0x1765   : > { %v13369_v47 = vpop.eup %10640  ;;  %10646 = vpow2.f32 %v6374_v9 }
0x1766   : > { %v7010_v25 = vpop.f32.mrb[228].mxu1  ;;  %v6378_v40 = vsel %vm4296_vm15, %v13369_v47, 0.0  ;;  %v6362_v44 = vpop.xlane.xlu0 %6361 }
0x1767   : > { %v7032_v51 = vmul.f32 0.17677669, %v7010_v25  ;;  %6379 = vadd.xlane.f32.xlu1 %v6378_v40  ;;  %v9940_v11 = vpop.f32.mrb[229].mxu1  ;;  %v6818_v25 = vsel %vm4296_vm15, %v13396_v50, -inf  ;;  %v6367_v39 = vsub.f32 %v13318_v20, %v6362_v44 }
0x1768   : > { %v7013_v48 = vpop.f32.mrb[230].mxu1 }
0x1769   : > { %v13374_v58 = vadd.f32 %v7032_v51, %v12586_v54  ;;  %v9941_v18 = vpop.f32.mrb[231].mxu1  ;;  %v7033_v40 = vmul.f32 0.17677669, %v7013_v48  ;;  %v6824_v51 = vsel %vm4296_vm15, %v13403_v26, -inf }
0x176a   : > { %v6376_v18 = vmul.f32 1.442695, %v6367_v39 }
0x176b   : > { %v7042_v17 = vsel %vm4296_vm15, %v13374_v58, -inf }
0x176c   : > { %7043 = vmax.xlane.f32.xlu1 %v7042_v17  ;;  %v13413_v17 = vadd.f32 %v7033_v40, %v12586_v54  ;;  %10648 = vpow2.f32 %v6376_v18 }
0x176d   : > { %v13378_v3 = vpop.eup %10642 }
0x176e   : > { %v7018_v15 = vpop.f32.mrb[232].mxu1  ;;  %v6384_v28 = vsel %vm4296_vm15, %v13378_v3, 0.0  ;;  %v13410_v11 = vpop.eup %10644  ;;  %v7045_v20 = vsel %vm4296_vm15, %v13413_v17, -inf }
0x176f   : > { %v7034_v2 = vmul.f32 0.17677669, %v7018_v15  ;;  %v9944_v31 = vpop.f32.mrb[233].mxu1  ;;  %v6381_v15 = vsel %vm4296_vm15, %v13410_v11, 0.0  ;;  %v13419_v48 = vpop.eup %10646 }
0x1770   : > { %v7021_v14 = vpop.f32.mrb[234].mxu1  ;;  %6385 = vadd.xlane.f32.xlu1 %v6384_v28  ;;  %v6387_v31 = vsel %vm4296_vm15, %v13419_v48, 0.0 }
0x1771   : > { %v13384_v36 = vadd.f32 %v7034_v2, %v12586_v54  ;;  %v9945_v56 = vpop.f32.mrb[235].mxu1  ;;  %v7035_v28 = vmul.f32 0.17677669, %v7021_v14 }
0x1773   : > { %v7048_v41 = vsel %vm4296_vm15, %v13384_v36, -inf  ;;  %v13422_v2 = vadd.f32 %v7035_v28, %v12586_v54 }
0x1774   : > { %7049 = vmax.xlane.f32.xlu1 %v7048_v41 }
0x1775   : > { %v7051_v4 = vsel %vm4296_vm15, %v13422_v2, -inf }
0x1776   : > { %v7026_v5 = vpop.f32.mrb[236].mxu1  ;;  %v13428_v56 = vpop.eup %10648 }
0x1777   : > { %v7036_v46 = vmul.f32 0.17677669, %v7026_v5  ;;  %v9948_v59 = vpop.f32.mrb[237].mxu1  ;;  %v6390_v14 = vsel %vm4296_vm15, %v13428_v56, 0.0 }
0x1778   : > { %v7029_v6 = vpop.f32.mrb[238].mxu1 }
0x1779   : > { %v13393_v43 = vadd.f32 %v7036_v46, %v12586_v54  ;;  %v9949_v42 = vpop.f32.mrb[239].mxu1 }
0x177b   : > { %6813 = vmax.xlane.f32.xlu0 %v6812_v23  ;;  %v7054_v61 = vsel %vm4296_vm15, %v13393_v43, -inf }
0x177c   : > { %7055 = vmax.xlane.f32.xlu1 %v7054_v61 }
0x177f   : > { %6819 = vmax.xlane.f32.xlu0 %v6818_v25 }
0x1783   : > { %6825 = vmax.xlane.f32.xlu0 %v6824_v51 }
0x1787   : > { %6382 = vadd.xlane.f32.xlu0 %v6381_v15 }
0x178b   : > { %7046 = vmax.xlane.f32.xlu0 %v7045_v20 }
0x178f   : > { %6388 = vadd.xlane.f32.xlu0 %v6387_v31 }
0x1793   : > { %7052 = vmax.xlane.f32.xlu0 %v7051_v4 }
0x1797   : > { %6391 = vadd.xlane.f32.xlu0 %v6390_v14 }
0x17c9   : > { %v6581_v41 = vpop.xlane.xlu1 %6580 }
0x17ca   : > { %v6594_v54 = vsub.f32 %v13325_v60, %v6581_v41 }
0x17cb   : > { %v6584_v55 = vpop.xlane.xlu0 %6583 }
0x17cc   : > { %v6599_v30 = vmul.f32 1.442695, %v6594_v54  ;;  %v6595_v37 = vsub.f32 %v13328_v34, %v6584_v55 }
0x17ce   : > { %10650 = vpow2.f32 %v6599_v30  ;;  %v6601_v5 = vmul.f32 1.442695, %v6595_v37 }
0x17d0   : > { %10652 = vpow2.f32 %v6601_v5 }
0x17d1   : > { %v6587_v46 = vpop.xlane.xlu1 %6586 }
0x17d2   : > { %v6596_v59 = vsub.f32 %v13335_v22, %v6587_v46 }
0x17d3   : > { %v6590_v6 = vpop.xlane.xlu0 %6589 }
0x17d4   : > { %v6603_v0 = vmul.f32 1.442695, %v6596_v59  ;;  %v6597_v42 = vsub.f32 %v13338_v12, %v6590_v6 }
0x17d6   : > { %10654 = vpow2.f32 %v6603_v0  ;;  %v6605_v32 = vmul.f32 1.442695, %v6597_v42 }
0x17d7   : > { %v13460_v28 = vpop.permute.xlu0 %6872 }
0x17d8   : > { %v13438_v23 = vpop.eup %10650  ;;  %10656 = vpow2.f32 %v6605_v32 }
0x17d9   : > { %v6609_v60 = vsel %vm4296_vm15, %v13438_v23, 0.0  ;;  %v6593_v25 = vpop.xlane.xlu1 %6592 }
0x17da   : > { %v13442_v61 = vpop.eup %10652  ;;  %6610 = vadd.xlane.f32.xlu1 %v6609_v60  ;;  %v6598_v18 = vsub.f32 %v13345_v1, %v6593_v25 }
0x17db   : > { %v6612_v34 = vsel %vm4296_vm15, %v13442_v61, 0.0 }
0x17dc   : > { %6613 = vadd.xlane.f32.xlu0 %v6612_v34  ;;  %v6607_v31 = vmul.f32 1.442695, %v6598_v18 }
0x17de   : > { %10658 = vpow2.f32 %v6607_v31 }
0x17e0   : > { %v13446_v22 = vpop.eup %10654 }
0x17e1   : > { %v6615_v12 = vsel %vm4296_vm15, %v13446_v22, 0.0 }
0x17e2   : > { %v13450_v9 = vpop.eup %10656  ;;  %6616 = vadd.xlane.f32.xlu1 %v6615_v12 }
0x17e3   : > { %v6618_v44 = vsel %vm4296_vm15, %v13450_v9, 0.0  ;;  %v6817_v39 = vpop.xlane.xlu1 %6816 }
0x17e4   : > { %6619 = vadd.xlane.f32.xlu0 %v6618_v44  ;;  %v6828_v15 = vsub.f32 %v13354_v7, %v6817_v39 }
0x17e6   : > { %v6834_v4 = vmul.f32 1.442695, %v6828_v15 }
0x17e8   : > { %10660 = vpow2.f32 %v6834_v4  ;;  %v13467_v6 = vpop.eup %10658 }
0x17eb   : > { %v6823_v40 = vpop.xlane.xlu1 %6822 }
0x17ec   : > { %v6830_v37 = vsub.f32 %v13362_v13, %v6823_v40 }
0x17ee   : > { %v6838_v59 = vmul.f32 1.442695, %v6830_v37 }
0x17f2   : > { %v13469_v0 = vpop.eup %10660 }
0x17f3   : > { %7100 = vrot.lane.b32.xlu1 %v13196_v8, %s14001_s8 }
0x17f4   : > { %v6380_v51 = vpop.xlane.xlu1 %6379 }
0x17f9   : > { %v7044_v20 = vpop.xlane.xlu1 %7043 }
0x17fa   : > { %6874 = vrot.lane.b32.xlu0 %v13213_v33, %s14000_s5  ;;  %v7057_v14 = vsub.f32 %v13374_v58, %v7044_v20 }
0x17fc   : > { %v7062_v54 = vmul.f32 1.442695, %v7057_v14 }
0x17fd   : > { %v6386_v5 = vpop.xlane.xlu1 %6385 }
0x1801   : > { %v7050_v13 = vpop.xlane.xlu1 %7049 }
0x1802   : > { %v7059_v12 = vsub.f32 %v13384_v36, %v7050_v13 }
0x1804   : > { %v7066_v15 = vmul.f32 1.442695, %v7059_v12 }
0x1808   : > { %v6814_v41 = vpop.xlane.xlu0 %6813 }
0x1809   : > { %v6827_v8 = vsub.f32 %v13389_v45, %v6814_v41 }
0x180b   : > { %v6832_v55 = vmul.f32 1.442695, %v6827_v8 }
0x180c   : > { %v6820_v30 = vpop.xlane.xlu0 %6819 }
0x180d   : > { %10662 = vpow2.f32 %v6832_v55  ;;  %v6829_v1 = vsub.f32 %v13396_v50, %v6820_v30  ;;  %v6621_v50 = vsel %vm4296_vm15, %v13467_v6, 0.0 }
0x180e   : > { %10664 = vpow2.f32 %v7062_v54 }
0x180f   : > { %v6836_v7 = vmul.f32 1.442695, %v6829_v1 }
0x1810   : > { %v6826_v46 = vpop.xlane.xlu0 %6825 }
0x1811   : > { %10666 = vpow2.f32 %v6836_v7  ;;  %v6831_v58 = vsub.f32 %v13403_v26, %v6826_v46  ;;  %v6845_v26 = vsel %vm4296_vm15, %v13469_v0, 0.0 }
0x1812   : > { %10668 = vrcp.f32 %v6380_v51 }
0x1813   : > { %10670 = vpow2.f32 %v6838_v59  ;;  %v6840_v42 = vmul.f32 1.442695, %v6831_v58 }
0x1814   : > { %v6383_v45 = vpop.xlane.xlu0 %6382 }
0x1815   : > { %10672 = vrcp.f32 %v6383_v45  ;;  %v6658_v45 = vsel %vm4367_vm9, %v13356_v29, 0 }
0x1816   : > { %10674 = vpow2.f32 %v6840_v42 }
0x1817   : > { %v13473_v32 = vpop.eup %10662  ;;  %6622 = vadd.xlane.f32.xlu1 %v6621_v50  ;;  %10676 = vrcp.f32 %v6386_v5  ;;  %v7056_v50 = vpop.xlane.xlu1 %7055 }
0x1818   : > { %v7047_v60 = vpop.xlane.xlu0 %7046  ;;  %v13477_v34 = vpop.eup %10664  ;;  %v6842_v25 = vsel %vm4296_vm15, %v13473_v32, 0.0 }
0x1819   : > { %v7058_v44 = vsub.f32 %v13413_v17, %v7047_v60  ;;  %6846 = vadd.xlane.f32.xlu0 %v6845_v26  ;;  %v7072_v18 = vsel %vm4296_vm15, %v13477_v34, 0.0  ;;  %v7061_v60 = vsub.f32 %v13393_v43, %v7056_v50 }
0x181b   : > { %v13483_v39 = vpop.eup %10666  ;;  %v7064_v40 = vmul.f32 1.442695, %v7058_v44  ;;  %6843 = vadd.xlane.f32.xlu1 %v6842_v25  ;;  %v7070_v26 = vmul.f32 1.442695, %v7061_v60 }
0x181c   : > { %v6389_v51 = vpop.xlane.xlu0 %6388  ;;  %v10669_v36 = vpop.eup %10668  ;;  %v6848_v17 = vsel %vm4296_vm15, %v13483_v39, 0.0 }
0x181d   : > { %10678 = vpow2.f32 %v7064_v40  ;;  %7073 = vadd.xlane.f32.xlu0 %v7072_v18  ;;  %v13489_v20 = vpop.eup %10670  ;;  %v6398_v14 = vmul.f32 %v10669_v36, %v13369_v47 }
0x181e   : > { %10680 = vrcp.f32 %v6389_v51  ;;  %v6851_v54 = vsel %vm4296_vm15, %v13489_v20, 0.0 }
0x181f   : > { %6849 = vadd.xlane.f32.xlu1 %v6848_v17  ;;  %v10673_v31 = vpop.eup %10672  ;;  %10682 = vpow2.f32 %v7066_v15 }
0x1820   : > { %v7053_v4 = vpop.xlane.xlu0 %7052  ;;  %v6399_v41 = vmul.f32 %v10673_v31, %v13410_v11  ;;  %v13496_v55 = vpop.eup %10674 }
0x1821   : > { %v7060_v8 = vsub.f32 %v13422_v2, %v7053_v4  ;;  %v10677_v7 = vpop.eup %10676  ;;  %v6854_v47 = vsel %vm4296_vm15, %v13496_v55, 0.0 }
0x1822   : > { %v6403_v30 = vpack.c.bf16 %v6399_v41, %v6398_v14  ;;  %v6400_v5 = vmul.f32 %v10677_v7, %v13378_v3 }
0x1823   : > { %v7068_v37 = vmul.f32 1.442695, %v7060_v8  ;;  %6852 = vadd.xlane.f32.xlu1 %v6851_v54 }
0x1824   : > { %v6392_v1 = vpop.xlane.xlu0 %6391  ;;  %9849 = vmatmul.mubr.msk.bf16.vlgmr.msra.gmra.mrb[184].mxu0 %vm4296_vm15, %v6403_v30 }
0x1825   : > { %10684 = vpow2.f32 %v7068_v37  ;;  %9879 = vmatpush3.bf16.msra.mxu0 %v13349_v35  ;;  %9852 = vmatprep.mubr.msk.bf16.mxu0 %vm10801_vm2, %v13933_v19 }
0x1826   : > { %10686 = vrcp.f32 %v6392_v1  ;;  %9880 = vmatprep.subr.bf16.mxu0 %v13933_v19 }
0x1827   : > { %v13504_v11 = vpop.eup %10678  ;;  %6855 = vadd.xlane.f32.xlu1 %v6854_v47  ;;  %10688 = vpow2.f32 %v7070_v26 }
0x1828   : > { %v10681_v2 = vpop.eup %10680  ;;  %v7075_v35 = vsel %vm4296_vm15, %v13504_v11, 0.0 }
0x1829   : > { %v6401_v46 = vmul.f32 %v10681_v2, %v13419_v48  ;;  %9881 = vmatpush3.bf16.msra.mxu0 %v13351_v62  ;;  %v13512_v59 = vpop.eup %10682 }
0x182a   : > { %9882 = vmatprep.subr.bf16.mxu0 %v13933_v19  ;;  %v7078_v3 = vsel %vm4296_vm15, %v13512_v59, 0.0 }
0x182b   : > { %7076 = vadd.xlane.f32.xlu1 %v7075_v35  ;;  %v6404_v58 = vpack.c.bf16 %v6401_v46, %v6400_v5 }
0x182d   : > { %9853 = vmatmul.mubr.msk.bf16.gmra.mrb[188].mxu0 %vm4296_vm15, %v6404_v58 }
0x182e   : > { %9883 = vmatpush3.bf16.msra.mxu0 %v6658_v45  ;;  %9856 = vmatprep.mubr.msk.bf16.mxu0 %vm10801_vm2, %v13933_v19 }
0x182f   : > { %v13522_v62 = vpop.eup %10684  ;;  %7079 = vadd.xlane.f32.xlu1 %v7078_v3  ;;  %9914 = vmatprep.subr.bf16.mxu0 %v13933_v19 }
0x1830   : > { %v10687_v48 = vpop.eup %10686  ;;  %v7081_v29 = vsel %vm4296_vm15, %v13522_v62, 0.0 }
0x1831   : > { %v6402_v42 = vmul.f32 %v10687_v48, %v13428_v56  ;;  %v13536_v56 = vpop.eup %10688 }
0x1833   : > { %7102 = vrot.lane.b32.xlu0 %v13205_v49, %s14001_s8  ;;  %7082 = vadd.xlane.f32.xlu1 %v7081_v29  ;;  %v6405_v13 = vpack.c.bf16 %v6402_v42, %v6402_v42  ;;  %v7084_v49 = vsel %vm4296_vm15, %v13536_v56, 0.0 }
0x1835   : > { %9857 = vmatmul.mubr.msk.bf16.gmra.mrb[192].mxu0 %vm4296_vm15, %v6405_v13 }
0x1836   : > { %9884 = vmatprep.mubr.msk.bf16.mxu0 %vm10801_vm2, %v13933_v19 }
0x1844   : > { %7104 = vrot.lane.b32.xlu1 %v13213_v33, %s14001_s8 }
0x1852   : > { %7085 = vadd.xlane.f32.xlu0 %v7084_v49 }
0x1867   : > { %v6611_v12 = vpop.xlane.xlu1 %6610 }
0x1868   : > { %10690 = vrcp.f32 %v6611_v12 }
0x1869   : > { %v6614_v44 = vpop.xlane.xlu0 %6613 }
0x186a   : > { %10692 = vrcp.f32 %v6614_v44 }
0x186f   : > { %v6617_v25 = vpop.xlane.xlu1 %6616 }
0x1870   : > { %10694 = vrcp.f32 %v6617_v25 }
0x1871   : > { %v6620_v40 = vpop.xlane.xlu0 %6619 }
0x1872   : > { %v10691_v51 = vpop.eup %10690  ;;  %10696 = vrcp.f32 %v6620_v40 }
0x1873   : > { %v6629_v18 = vmul.f32 %v10691_v51, %v13438_v23 }
0x1874   : > { %v10693_v43 = vpop.eup %10692 }
0x1875   : > { %v6630_v33 = vmul.f32 %v10693_v43, %v13442_v61  ;;  %v6875_v14 = vpop.permute.xlu0 %6874 }
0x1876   : > { %v6888_v61 = vsel %vm4367_vm9, %v6875_v14, 0 }
0x1877   : > { %v6634_v15 = vpack.c.bf16 %v6630_v33, %v6629_v18 }
0x1879   : > { %9885 = vmatmul.mubr.msk.bf16.vlgmr.msra.gmra.mrb[196].mxu0 %vm4296_vm15, %v6634_v15 }
0x187a   : > { %v10695_v36 = vpop.eup %10694  ;;  %9915 = vmatpush3.bf16.msra.mxu0 %v13432_v63  ;;  %9888 = vmatprep.mubr.msk.bf16.mxu0 %vm10801_vm2, %v13933_v19  ;;  %v7101_v63 = vpop.permute.xlu1 %7100 }
0x187b   : > { %9916 = vmatprep.subr.bf16.mxu0 %v13933_v19  ;;  %v6631_v31 = vmul.f32 %v10695_v36, %v13446_v22 }
0x187c   : > { %v10697_v17 = vpop.eup %10696 }
0x187d   : > { %v6632_v4 = vmul.f32 %v10697_v17, %v13450_v9 }
0x187e   : > { %9917 = vmatpush3.bf16.msra.mxu0 %v13460_v28 }
0x187f   : > { %9918 = vmatprep.subr.bf16.mxu0 %v13933_v19  ;;  %v6635_v23 = vpack.c.bf16 %v6632_v4, %v6631_v31 }
0x1881   : > { %9889 = vmatmul.mubr.msk.bf16.gmra.mrb[200].mxu0 %vm4296_vm15, %v6635_v23 }
0x1882   : > { %9919 = vmatpush3.bf16.msra.mxu0 %v6888_v61  ;;  %9892 = vmatprep.mubr.msk.bf16.mxu0 %vm10801_vm2, %v13933_v19 }
0x1883   : > { %9950 = vmatprep.subr.bf16.mxu0 %v13933_v19 }
0x18a4   : > { %v6623_v22 = vpop.xlane.xlu1 %6622 }
0x18a5   : > { %10698 = vrcp.f32 %v6623_v22 }
0x18a6   : > { %v6847_v9 = vpop.xlane.xlu0 %6846 }
0x18a8   : > { %v6844_v41 = vpop.xlane.xlu1 %6843 }
0x18a9   : > { %10700 = vrcp.f32 %v6844_v41 }
0x18aa   : > { %10702 = vrcp.f32 %v6847_v9  ;;  %v7074_v58 = vpop.xlane.xlu0 %7073  ;;  %v10362_v9 = vld [vmem:[%s13985_s26 + $0x40] sm:$0xff]  }
0x18ab   : > { %9969 = vmatpush3.bf16.msra.mxu1 %v10362_v9 }
0x18ac   : > { %v6850_v28 = vpop.xlane.xlu1 %6849  ;;  %9970 = vmatprep.subr.bf16.mxu1 %v13933_v19 }
0x18af   : > { %v10699_v8 = vpop.eup %10698 }
0x18b0   : > { %v6853_v54 = vpop.xlane.xlu1 %6852  ;;  %v6633_v30 = vmul.f32 %v10699_v8, %v13467_v6 }
0x18b1   : > { %10704 = vrcp.f32 %v6853_v54 }
0x18b2   : > { %v6636_v37 = vpack.c.bf16 %v6633_v30, %v6633_v30  ;;  %10706 = vrcp.f32 %v6850_v28 }
0x18b3   : > { %v10701_v1 = vpop.eup %10700 }
0x18b4   : > { %v6856_v7 = vpop.xlane.xlu1 %6855  ;;  %9893 = vmatmul.mubr.msk.bf16.gmra.mrb[204].mxu0 %vm4296_vm15, %v6636_v37  ;;  %v10703_v47 = vpop.eup %10702  ;;  %v6862_v2 = vmul.f32 %v10701_v1, %v13473_v32 }
0x18b5   : > { %9920 = vmatprep.mubr.msk.bf16.mxu0 %vm10801_vm2, %v13933_v19  ;;  %v6863_v5 = vmul.f32 %v10703_v47, %v13469_v0  ;;  %10708 = vrcp.f32 %v6856_v7  ;;  %v7103_v32 = vpop.permute.xlu0 %7102 }
0x18b7   : > { %v6867_v35 = vpack.c.bf16 %v6863_v5, %v6862_v2 }
0x18b8   : > { %v7077_v46 = vpop.xlane.xlu1 %7076 }
0x18b9   : > { %10710 = vrcp.f32 %v7077_v46 }
0x18ba   : > { %10712 = vrcp.f32 %v7074_v58  ;;  %v10363_v58 = vld [vmem:[%s13985_s26 + $0x48] sm:$0xff]  }
0x18bb   : > { %v10705_v6 = vpop.eup %10704  ;;  %9971 = vmatpush3.bf16.msra.mxu1 %v10363_v58 }
0x18bc   : > { %v7080_v45 = vpop.xlane.xlu1 %7079  ;;  %9921 = vmatmul.mubr.msk.bf16.vlgmr.msra.gmra.mrb[208].mxu0 %vm4296_vm15, %v6867_v35  ;;  %v10707_v3 = vpop.eup %10706  ;;  %v6865_v48 = vmul.f32 %v10705_v6, %v13489_v20  ;;  %9972 = vmatprep.subr.bf16.mxu1 %v13933_v19 }
0x18bd   : > { %9951 = vmatpush3.bf16.msra.mxu0 %v7101_v63  ;;  %9924 = vmatprep.mubr.msk.bf16.mxu0 %vm10801_vm2, %v13933_v19  ;;  %v6864_v0 = vmul.f32 %v10707_v3, %v13483_v39 }
0x18be   : > { %9952 = vmatprep.subr.bf16.mxu0 %v13933_v19 }
0x18bf   : > { %v6868_v29 = vpack.c.bf16 %v6865_v48, %v6864_v0  ;;  %v10709_v13 = vpop.eup %10708  ;;  %v10365_v48 = vld [vmem:[%s13985_s26 + $0x58] sm:$0xff]  }
0x18c0   : > { %v7083_v42 = vpop.xlane.xlu1 %7082  ;;  %v6866_v20 = vmul.f32 %v10709_v13, %v13496_v55  ;;  %v10366_v13 = vld [vmem:[%s13985_s26 + $0x60] sm:$0xff]  }
0x18c1   : > { %9953 = vmatpush3.bf16.msra.mxu0 %v7103_v32  ;;  %10714 = vrcp.f32 %v7083_v42 }
0x18c2   : > { %9954 = vmatprep.subr.bf16.mxu0 %v13933_v19  ;;  %v6869_v39 = vpack.c.bf16 %v6866_v20, %v6866_v20  ;;  %10716 = vrcp.f32 %v7080_v45  ;;  %v10364_v45 = vld [vmem:[%s13985_s26 + $0x50] sm:$0xff]  }
0x18c3   : > { %v10711_v26 = vpop.eup %10710  ;;  %9973 = vmatpush3.bf16.msra.mxu1 %v10364_v45 }
0x18c4   : > { %v7105_v50 = vpop.permute.xlu1 %7104  ;;  %9925 = vmatmul.mubr.msk.bf16.gmra.mrb[212].mxu0 %vm4296_vm15, %v6868_v29  ;;  %v10713_v49 = vpop.eup %10712  ;;  %v7093_v12 = vmul.f32 %v10711_v26, %v13504_v11  ;;  %9974 = vmatprep.subr.bf16.mxu1 %v13933_v19 }
0x18c5   : > { %v7118_v60 = vsel %vm4367_vm9, %v7105_v50, 0  ;;  %9928 = vmatprep.mubr.msk.bf16.mxu0 %vm10801_vm2, %v13933_v19  ;;  %v7092_v44 = vmul.f32 %v10713_v49, %v13477_v34 }
0x18c6   : > { %9955 = vmatpush3.bf16.msra.mxu0 %v7118_v60  ;;  %v10367_v60 = vld [vmem:[%s13985_s26 + $0x68] sm:$0xff]  }
0x18c7   : > { %v7097_v25 = vpack.c.bf16 %v7093_v12, %v7092_v44  ;;  %9975 = vmatpush3.bf16.msra.mxu1 %v10365_v48  ;;  %v10368_v12 = vld [vmem:[%s13985_s26 + $0x70] sm:$0xff]  }
0x18c8   : > { %9976 = vmatprep.subr.bf16.mxu1 %v13933_v19 }
0x18cb   : > { %v10715_v40 = vpop.eup %10714  ;;  %9977 = vmatpush3.bf16.msra.mxu1 %v10366_v13 }
0x18cc   : > { %9929 = vmatmul.mubr.msk.bf16.gmra.mrb[216].mxu0 %vm4296_vm15, %v6869_v39  ;;  %v10717_v51 = vpop.eup %10716  ;;  %v7095_v55 = vmul.f32 %v10715_v40, %v13522_v62  ;;  %9978 = vmatprep.subr.bf16.mxu1 %v13933_v19 }
0x18cd   : > { %9956 = vmatprep.mubr.msk.bf16.mxu0 %vm10801_vm2, %v13933_v19  ;;  %v7094_v43 = vmul.f32 %v10717_v51, %v13512_v59 }
0x18cf   : > { %v7098_v18 = vpack.c.bf16 %v7095_v55, %v7094_v43  ;;  %9979 = vmatpush3.bf16.msra.mxu1 %v10367_v60  ;;  %v10369_v55 = vld [vmem:[%s13985_s26 + $0x78] sm:$0xff]  }
0x18d0   : > { %9980 = vmatprep.subr.bf16.mxu1 %v13933_v19 }
0x18d3   : > { %9981 = vmatpush3.bf16.msra.mxu1 %v10368_v12 }
0x18d4   : > { %9957 = vmatmul.mubr.msk.bf16.vlgmr.msra.gmra.mrb[220].mxu0 %vm4296_vm15, %v7097_v25  ;;  %9982 = vmatprep.subr.bf16.mxu1 %v13933_v19 }
0x18d5   : > { %9960 = vmatprep.mubr.msk.bf16.mxu0 %vm10801_vm2, %v13933_v19 }
0x18d7   : > { %9983 = vmatpush3.bf16.msra.mxu1 %v10369_v55 }
0x18dc   : > { %9961 = vmatmul.mubr.msk.bf16.gmra.mrb[224].mxu0 %vm4296_vm15, %v7098_v18 }
0x18dd   : > { %9964 = vmatprep.mubr.msk.bf16.mxu0 %vm10801_vm2, %v13933_v19 }
0x18df   : > { %v7086_v11 = vpop.xlane.xlu0 %7085 }
0x18e0   : > { %10718 = vrcp.f32 %v7086_v11 }
0x18ea   : > { %v10719_v34 = vpop.eup %10718 }
0x18eb   : > { %v7096_v33 = vmul.f32 %v10719_v34, %v13536_v56 }
0x18ed   : > { %v7099_v15 = vpack.c.bf16 %v7096_v33, %v7096_v33 }
0x18ef   : > { %9965 = vmatmul.mubr.msk.bf16.gmra.mrb[228].mxu0 %vm4296_vm15, %v7099_v15 }
0x18f0   : > { %7614 = vmatprep.mubr.bf16.mxu0 %v13932_v10 }
0x18f7   : > { %v13590_v62 = vpop.f32.mrb[184].mxu0 }
0x18f8   : > { %v9850_v59 = vpop.f32.mrb[185].mxu0 }
0x18f9   : > { %v13592_v36 = vpop.f32.mrb[186].mxu0 }
0x18fa   : > { %v9851_v17 = vpop.f32.mrb[187].mxu0 }
0x1900   : > { %v13594_v31 = vpop.f32.mrb[188].mxu0 }
0x1901   : > { %v9854_v4 = vpop.f32.mrb[189].mxu0 }
0x1902   : > { %v13596_v14 = vpop.f32.mrb[190].mxu0 }
0x1903   : > { %v9855_v23 = vpop.f32.mrb[191].mxu0 }
0x1908   : > { %v13598_v61 = vpop.f32.mrb[192].mxu0 }
0x1909   : > { %v9858_v56 = vpop.f32.mrb[193].mxu0 }
0x190a   : > { %v6474_v63 = vpop.f32.mrb[194].mxu0 }
0x190b   : > { %v9859_v22 = vpop.f32.mrb[195].mxu0 }
0x194c   : > { %v6694_v41 = vpop.f32.mrb[196].mxu0 }
0x194d   : > { %v9886_v28 = vpop.f32.mrb[197].mxu0 }
0x194e   : > { %v6697_v8 = vpop.f32.mrb[198].mxu0 }
0x194f   : > { %v10167_v54 = vpack.i.bf16 %v6697_v8, %v6694_v41  ;;  %v9887_v30 = vpop.f32.mrb[199].mxu0 }
0x1951   : > { %10168 = vrot.lane.b32.xlu1 %v10167_v54, %s14001_s8 }
0x1954   : > { %v6702_v37 = vpop.f32.mrb[200].mxu0 }
0x1955   : > { %v9890_v1 = vpop.f32.mrb[201].mxu0 }
0x1956   : > { %v6705_v7 = vpop.f32.mrb[202].mxu0 }
0x1957   : > { %v10182_v47 = vpack.i.bf16 %v6705_v7, %v6702_v37  ;;  %v9891_v2 = vpop.f32.mrb[203].mxu0 }
0x1987   : > { %v6710_v5 = vpop.f32.mrb[204].mxu0 }
0x1988   : > { %v9894_v46 = vpop.f32.mrb[205].mxu0 }
0x1989   : > { %v6713_v35 = vpop.f32.mrb[206].mxu0 }
0x198a   : > { %v9895_v6 = vpop.f32.mrb[207].mxu0 }
0x198f   : > { %v6924_v3 = vpop.f32.mrb[208].mxu0 }
0x1990   : > { %v9922_v32 = vpop.f32.mrb[209].mxu0 }
0x1991   : > { %v6927_v42 = vpop.f32.mrb[210].mxu0 }
0x1992   : > { %v10172_v0 = vpack.i.bf16 %v6927_v42, %v6924_v3  ;;  %v9923_v29 = vpop.f32.mrb[211].mxu0 }
0x1994   : > { %10173 = vrot.lane.b32.xlu1 %v10172_v0, %s14000_s5 }
0x1997   : > { %v6932_v50 = vpop.f32.mrb[212].mxu0 }
0x1998   : > { %v9926_v20 = vpop.f32.mrb[213].mxu0 }
0x1999   : > { %v6935_v39 = vpop.f32.mrb[214].mxu0 }
0x199a   : > { %v10187_v26 = vpack.i.bf16 %v6935_v39, %v6932_v50  ;;  %v9927_v49 = vpop.f32.mrb[215].mxu0 }
0x199f   : > { %v6940_v44 = vpop.f32.mrb[216].mxu0 }
0x19a0   : > { %v9930_v25 = vpop.f32.mrb[217].mxu0 }
0x19a1   : > { %v6943_v40 = vpop.f32.mrb[218].mxu0 }
0x19a2   : > { %v9931_v51 = vpop.f32.mrb[219].mxu0 }
0x19a7   : > { %v7154_v43 = vpop.f32.mrb[220].mxu0 }
0x19a8   : > { %v9958_v18 = vpop.f32.mrb[221].mxu0 }
0x19a9   : > { %v7157_v11 = vpop.f32.mrb[222].mxu0 }
0x19aa   : > { %v10177_v34 = vpack.i.bf16 %v7157_v11, %v7154_v43  ;;  %v9959_v33 = vpop.f32.mrb[223].mxu0  ;;  %v8807_v43 = vld [vmem:[%s13989_s28 + $0x1] ss:$0 sm:$0xff] }
0x19ac   : > { %10178 = vrot.lane.b32.xlu1 %v10177_v34, %s13999_s3 }
0x19af   : > { %v7162_v15 = vpop.f32.mrb[224].mxu0 }
0x19b0   : > { %10183 = vrot.lane.b32.xlu1 %v10182_v47, %s14001_s8  ;;  %v9962_v59 = vpop.f32.mrb[225].mxu0 }
0x19b1   : > { %v7165_v17 = vpop.f32.mrb[226].mxu0 }
0x19b2   : > { %v10192_v4 = vpack.i.bf16 %v7165_v17, %v7162_v15  ;;  %v9963_v23 = vpop.f32.mrb[227].mxu0 }
0x19b4   : > { %10188 = vrot.lane.b32.xlu1 %v10187_v26, %s14000_s5  ;;  %10193 = vrot.lane.b32.xlu0 %v10192_v4, %s13999_s3 }
0x19b8   : > { %7189 = vrot.lane.b32.xlu1 %v6710_v5, %s14001_s8 }
0x19bc   : > { %7209 = vrot.lane.b32.xlu1 %v6940_v44, %s14000_s5  ;;  %s10089_s5 = smul.u32 40, %s14008_s10 }
0x19be   : > { %s915_s8 = scalar_lea.vmem %s10960_s4, %s10089_s5 }
0x19c2   : > { %v7170_v56 = vpop.f32.mrb[228].mxu0 }
0x19c3   : > { %7229 = vrot.lane.b32.xlu1 %v7170_v56, %s13999_s3  ;;  %v9966_v63 = vpop.f32.mrb[229].mxu0  ;;  %v10169_v41 = vpop.permute.xlu1 %10168  ;;  %s910_s3 = scalar_lea.vmem %s10955_s27, %s10089_s5 }
0x19c4   : > { %v7173_v22 = vpop.f32.mrb[230].mxu0  ;;  %v10171_v8 = vunpack.i.h.bf16 %v10169_v41  ;;  %v10170_v54 = vunpack.i.l.bf16 %v10169_v41 }
0x19c5   : > { %v9967_v9 = vpop.f32.mrb[231].mxu0 }
0x19c6   : > { %v7237_v7 = vsel %vm1706_vm7, %v13592_v36, %v10171_v8  ;;  %v7236_v47 = vsel %vm1706_vm7, %v13590_v62, %v10170_v54 }
0x1a06   : > { %v10174_v28 = vpop.permute.xlu1 %10173 }
0x1a07   : > { %v10176_v30 = vunpack.i.h.bf16 %v10174_v28  ;;  %v10175_v37 = vunpack.i.l.bf16 %v10174_v28 }
0x1a09   : > { %v7242_v46 = vsel %vm14002_vm4, %v7237_v7, %v10176_v30  ;;  %v7241_v35 = vsel %vm14003_vm0, %v7236_v47, %v10175_v37  ;;  %v10372_v7 = vld [vmem:[%s13991_s1 + $0x84] ss:$8 sps:$4 sm:$0xff]   ;;  %v10375_v47 = vld [vmem:[%s13991_s1 + $0x94] ss:$8 sps:$4 sm:$0xff]  }
0x1a0a   : > { %7582 = vmatprep.subr.bf16.mxu0 %v10372_v7 }
0x1a1e   : > { %v10179_v1 = vpop.permute.xlu1 %10178 }
0x1a1f   : > { %v10181_v2 = vunpack.i.h.bf16 %v10179_v1  ;;  %v10180_v5 = vunpack.i.l.bf16 %v10179_v1  ;;  %v10370_v1 = vld [vmem:[%s13991_s1 + $0x80] ss:$8 sps:$4 sm:$0xff]  }
0x1a20   : > { %7583 = vmatpush1.bf16.msra.mxu0 %v10370_v1 }
0x1a21   : > { %v7247_v58 = vsel %vm5196_vm13, %v7242_v46, %v10181_v2  ;;  %v7246_v6 = vsel %vm5196_vm13, %v7241_v35, %v10180_v5  ;;  %7584 = vmatprep.subr.bf16.mxu0 %v10375_v47 }
0x1a22   : > { %v7268_v45 = vpack.c.bf16 %v7247_v58, %v7246_v6  ;;  %v10184_v3 = vpop.permute.xlu1 %10183 }
0x1a23   : > { %v10186_v48 = vunpack.i.h.bf16 %v10184_v3  ;;  %v10185_v32 = vunpack.i.l.bf16 %v10184_v3 }
0x1a24   : > { %9985 = vmatmul.mubr.bf16.vlgmr.msra.gmra.mrb[240].mxu1 %v7268_v45 }
0x1a25   : > { %9988 = vmatprep.mubr.msk.bf16.mxu1 %vm10801_vm2, %v13933_v19  ;;  %v7239_v50 = vsel %vm1706_vm7, %v13596_v14, %v10186_v48  ;;  %v7238_v60 = vsel %vm1706_vm7, %v13594_v31, %v10185_v32 }
0x1a26   : > { %v10189_v36 = vpop.permute.xlu1 %10188  ;;  %v10194_v62 = vpop.permute.xlu0 %10193 }
0x1a27   : > { %v10191_v42 = vunpack.i.h.bf16 %v10189_v36  ;;  %v10190_v0 = vunpack.i.l.bf16 %v10189_v36  ;;  %v10196_v29 = vunpack.i.h.bf16 %v10194_v62  ;;  %v10195_v13 = vunpack.i.l.bf16 %v10194_v62 }
0x1a29   : > { %v7243_v20 = vsel %vm14004_vm6, %v7238_v60, %v10190_v0  ;;  %v7244_v39 = vsel %vm14005_vm5, %v7239_v50, %v10191_v42 }
0x1a2a   : > { %v7248_v26 = vsel %vm5196_vm13, %v7243_v20, %v10195_v13  ;;  %v7249_v49 = vsel %vm5196_vm13, %v7244_v39, %v10196_v29  ;;  %v7190_v12 = vpop.permute.xlu1 %7189  ;;  %v10376_v20 = vld [vmem:[%s13991_s1 + $0xa0] ss:$8 sps:$4 sm:$0xff]   ;;  %v10378_v39 = vld [vmem:[%s13991_s1 + $0xa4] ss:$8 sps:$4 sm:$0xff]  }
0x1a2b   : > { %v7269_v44 = vpack.c.bf16 %v7249_v49, %v7248_v26  ;;  %v7240_v14 = vsel %vm1706_vm7, %v13598_v61, %v7190_v12  ;;  %v10381_v26 = vld [vmem:[%s13991_s1 + $0xb4] ss:$8 sps:$4 sm:$0xff]   ;;  %v10379_v49 = vld [vmem:[%s13991_s1 + $0xb0] ss:$8 sps:$4 sm:$0xff]   ;;  %v10384_v12 = vld [vmem:[%s13991_s1 + $0xc4] ss:$8 sps:$4 sm:$0xff]  }
0x1a2d   : > { %9989 = vmatmul.mubr.bf16.gmra.mrb[244].mxu1 %v7269_v44  ;;  %v10382_v44 = vld [vmem:[%s13991_s1 + $0xc0] ss:$8 sps:$4 sm:$0xff]  }
0x1a2e   : > { %9992 = vmatprep.mubr.msk.bf16.mxu1 %vm10801_vm2, %v13933_v19  ;;  %v7210_v25 = vpop.permute.xlu1 %7209 }
0x1a2f   : > { %v7245_v31 = vsel %vm14006_vm1, %v7240_v14, %v7210_v25  ;;  %v10387_v25 = vld [vmem:[%s13991_s1 + $0xd4] ss:$8 sps:$4 sm:$0xff]   ;;  %v10385_v14 = vld [vmem:[%s13991_s1 + $0xd0] ss:$8 sps:$4 sm:$0xff]  }
0x1a35   : > { %v7230_v40 = vpop.permute.xlu1 %7229 }
0x1a36   : > { %v7250_v51 = vsel %vm5196_vm13, %v7245_v31, %v7230_v40  ;;  %v10390_v31 = vld [vmem:[%s13991_s1 + $0xe4] ss:$8 sps:$4 sm:$0xff]   ;;  %v10388_v40 = vld [vmem:[%s13991_s1 + $0xe0] ss:$8 sps:$4 sm:$0xff]  }
0x1a37   : > { %v7270_v55 = vpack.c.bf16 %v7250_v51, %v7250_v51  ;;  %v10393_v51 = vld [vmem:[%s13991_s1 + $0xf4] ss:$8 sps:$4 sm:$0xff]  }
0x1a39   : > { %9993 = vmatmul.mubr.bf16.gmra.mrb[248].mxu1 %v7270_v55  ;;  %v10391_v55 = vld [vmem:[%s13991_s1 + $0xf0] ss:$8 sps:$4 sm:$0xff]  }
0x1af7   : > { %v7361_v18 = vpop.f32.mrb[240].mxu1 }
0x1af8   : > { %v7362_v11 = vadd.f32 %v8807_v43, %v7361_v18  ;;  %v9986_v34 = vpop.f32.mrb[241].mxu1 }
0x1af9   : > { %v7364_v33 = vpop.f32.mrb[242].mxu1 }
0x1afa   : > { %v7383_v15 = vadd.f32 %v7362_v11, %v13160_v53  ;;  %v7365_v59 = vadd.f32 %v8807_v43, %v7364_v33  ;;  %v9987_v17 = vpop.f32.mrb[243].mxu1 }
0x1afc   : > { %v7384_v4 = vadd.f32 %v7365_v59, %v13162_v24  ;;  %7392 = vadd.xlane.f32.xlu1 %v7383_v15 }
0x1afe   : > { %7394 = vadd.xlane.f32.xlu0 %v7384_v4 }
0x1b00   : > { %v7369_v61 = vpop.f32.mrb[244].mxu1 }
0x1b01   : > { %v7370_v23 = vadd.f32 %v8807_v43, %v7369_v61  ;;  %v9990_v56 = vpop.f32.mrb[245].mxu1 }
0x1b02   : > { %v7372_v63 = vpop.f32.mrb[246].mxu1 }
0x1b03   : > { %v7385_v22 = vadd.f32 %v7370_v23, %v13171_v38  ;;  %v7373_v9 = vadd.f32 %v8807_v43, %v7372_v63  ;;  %v9991_v41 = vpop.f32.mrb[247].mxu1  ;;  %v10373_v38 = vld [vmem:[%s13991_s1 + $0x90] ss:$8 sps:$4 sm:$0xff]  }
0x1b04   : > { %7585 = vmatpush1.bf16.msra.mxu0 %v10373_v38 }
0x1b05   : > { %v7386_v53 = vadd.f32 %v7373_v9, %v13173_v57  ;;  %7396 = vadd.xlane.f32.xlu1 %v7385_v22  ;;  %7586 = vmatprep.subr.bf16.mxu0 %v10378_v39  ;;  %v10403_v39 = vld [vmem:[%s13994_s11 + $0xa0] sm:$0xff]  }
0x1b07   : > { %7398 = vadd.xlane.f32.xlu0 %v7386_v53 }
0x1b08   : > { %7587 = vmatpush1.bf16.msra.mxu0 %v10376_v20  ;;  %v10402_v20 = vld [vmem:[%s13994_s11 + $0xe0] sm:$0xff]  }
0x1b09   : > { %7588 = vmatprep.subr.bf16.mxu0 %v10381_v26  ;;  %v10404_v26 = vld [vmem:[%s13994_s11 + $0xe8] sm:$0xff]  }
0x1b0c   : > { %v7377_v28 = vpop.f32.mrb[248].mxu1  ;;  %7589 = vmatpush1.bf16.msra.mxu0 %v10379_v49  ;;  %v10405_v49 = vld [vmem:[%s13994_s11 + $0xa8] sm:$0xff]  }
0x1b0d   : > { %v7378_v24 = vadd.f32 %v8807_v43, %v7377_v28  ;;  %v9994_v8 = vpop.f32.mrb[249].mxu1  ;;  %7590 = vmatprep.subr.bf16.mxu0 %v10384_v12  ;;  %v10406_v12 = vld [vmem:[%s13994_s11 + $0xf0] sm:$0xff]  }
0x1b0e   : > { %v7380_v54 = vpop.f32.mrb[250].mxu1 }
0x1b0f   : > { %v7387_v30 = vadd.f32 %v7378_v24, %v13181_v16  ;;  %v9995_v37 = vpop.f32.mrb[251].mxu1  ;;  %v8819_v24 = vld [vmem:[%s13993_s0 + $0x1] ss:$0 sm:$0xff] }
0x1b10   : > { %7591 = vmatpush1.bf16.msra.mxu0 %v10382_v44  ;;  %v10407_v44 = vld [vmem:[%s13994_s11 + $0xb0] sm:$0xff]  }
0x1b11   : > { %7400 = vadd.xlane.f32.xlu1 %v7387_v30  ;;  %7592 = vmatprep.subr.bf16.mxu0 %v10387_v25  ;;  %v10408_v25 = vld [vmem:[%s13994_s11 + $0xf8] sm:$0xff]  }
0x1b14   : > { %7593 = vmatpush1.bf16.msra.mxu0 %v10385_v14  ;;  %v10409_v14 = vld [vmem:[%s13994_s11 + $0xb8] sm:$0xff]  }
0x1b15   : > { %7594 = vmatprep.subr.bf16.mxu0 %v10390_v31  ;;  %v8836_v31 = vld [vmem:[%s13995_s15 + $0x2] sm:$0x3] }
0x1b18   : > { %7595 = vmatpush1.bf16.msra.mxu0 %v10388_v40  ;;  %v7495_v40 = vrot.slane %v8836_v31, %v12461_v21 }
0x1b19   : > { %7596 = vmatprep.subr.bf16.mxu0 %v10393_v51  ;;  %v7499_v51 = vrot.slane %v8836_v31, %v12466_v52 }
0x1b1c   : > { %7597 = vmatpush1.bf16.msra.mxu0 %v10391_v55 }
0x1b1d   : > { %9996 = vmatprep.subr.bf16.mxu0 %v13933_v19 }
0x1b89   : > { %v7393_v2 = vpop.xlane.xlu1 %7392 }
0x1b8a   : > { %v7402_v57 = vmul.f32 0.0078125, %v7393_v2 }
0x1b8b   : > { %v7395_v5 = vpop.xlane.xlu0 %7394 }
0x1b8c   : > { %v13658_v46 = vsub.f32 %v7383_v15, %v7402_v57  ;;  %v7403_v35 = vmul.f32 0.0078125, %v7395_v5 }
0x1b8e   : > { %v13660_v58 = vsub.f32 %v7384_v4, %v7403_v35  ;;  %v7412_v16 = vmul.f32 %v13658_v46, %v13658_v46 }
0x1b90   : > { %7417 = vadd.xlane.f32.xlu0 %v7412_v16  ;;  %v7413_v6 = vmul.f32 %v13660_v58, %v13660_v58 }
0x1b92   : > { %v7397_v45 = vpop.xlane.xlu1 %7396  ;;  %7419 = vadd.xlane.f32.xlu1 %v7413_v6 }
0x1b93   : > { %v7404_v3 = vmul.f32 0.0078125, %v7397_v45 }
0x1b94   : > { %v7399_v48 = vpop.xlane.xlu0 %7398 }
0x1b95   : > { %v13666_v32 = vsub.f32 %v7385_v22, %v7404_v3  ;;  %v7405_v36 = vmul.f32 0.0078125, %v7399_v48  ;;  %v8818_v22 = vld [vmem:[%s13992_s2 + $0x1] ss:$0 sm:$0xff] }
0x1b97   : > { %v13668_v62 = vsub.f32 %v7386_v53, %v7405_v36  ;;  %v7414_v42 = vmul.f32 %v13666_v32, %v13666_v32 }
0x1b99   : > { %7421 = vadd.xlane.f32.xlu0 %v7414_v42  ;;  %v7415_v0 = vmul.f32 %v13668_v62, %v13668_v62  ;;  %v10395_v42 = vld [vmem:[%s13994_s11 + $0x80] sm:$0xff]  }
0x1b9b   : > { %7423 = vadd.xlane.f32.xlu1 %v7415_v0  ;;  %v10397_v0 = vld [vmem:[%s13994_s11 + $0x88] sm:$0xff]  }
0x1b9e   : > { %v7401_v29 = vpop.xlane.xlu1 %7400 }
0x1b9f   : > { %v7406_v13 = vmul.f32 0.0078125, %v7401_v29  ;;  %v10398_v29 = vld [vmem:[%s13994_s11 + $0xd0] sm:$0xff]  }
0x1ba1   : > { %v13674_v50 = vsub.f32 %v7387_v30, %v7406_v13  ;;  %v10399_v13 = vld [vmem:[%s13994_s11 + $0x90] sm:$0xff]  }
0x1ba3   : > { %v7416_v60 = vmul.f32 %v13674_v50, %v13674_v50 }
0x1ba5   : > { %7425 = vadd.xlane.f32.xlu0 %v7416_v60  ;;  %v10401_v60 = vld [vmem:[%s13994_s11 + $0x98] sm:$0xff]  }
0x1c1d   : > { %v7418_v43 = vpop.xlane.xlu0 %7417 }
0x1c1e   : > { %v7427_v18 = vmul.f32 0.0078125, %v7418_v43 }
0x1c1f   : > { %v7420_v11 = vpop.xlane.xlu1 %7419 }
0x1c20   : > { %v7432_v34 = vadd.f32 1e-05, %v7427_v18  ;;  %v7428_v33 = vmul.f32 0.0078125, %v7420_v11 }
0x1c22   : > { %10720 = vrsqrt.f32 %v7432_v34  ;;  %v7433_v15 = vadd.f32 1e-05, %v7428_v33 }
0x1c24   : > { %10722 = vrsqrt.f32 %v7433_v15 }
0x1c26   : > { %v7422_v59 = vpop.xlane.xlu0 %7421 }
0x1c27   : > { %v7429_v17 = vmul.f32 0.0078125, %v7422_v59 }
0x1c28   : > { %v7424_v4 = vpop.xlane.xlu1 %7423 }
0x1c29   : > { %v7434_v61 = vadd.f32 1e-05, %v7429_v17  ;;  %v7430_v23 = vmul.f32 0.0078125, %v7424_v4 }
0x1c2b   : > { %10724 = vrsqrt.f32 %v7434_v61  ;;  %v7435_v56 = vadd.f32 1e-05, %v7430_v23 }
0x1c2c   : > { %v10721_v63 = vpop.eup %10720 }
0x1c2d   : > { %v7442_v9 = vmul.f32 %v10721_v63, %v13658_v46  ;;  %10726 = vrsqrt.f32 %v7435_v56 }
0x1c2e   : > { %v10723_v41 = vpop.eup %10722 }
0x1c2f   : > { %v7453_v53 = vmul.f32 %v8818_v22, %v7442_v9  ;;  %v7443_v28 = vmul.f32 %v10723_v41, %v13660_v58 }
0x1c31   : > { %v7454_v8 = vmul.f32 %v8818_v22, %v7443_v28  ;;  %v13695_v37 = vadd.f32 %v8819_v24, %v7453_v53 }
0x1c32   : > { %v7426_v54 = vpop.xlane.xlu0 %7425 }
0x1c33   : > { %v7431_v30 = vmul.f32 0.0078125, %v7426_v54  ;;  %v13697_v1 = vadd.f32 %v8819_v24, %v7454_v8 }
0x1c35   : > { %v10725_v7 = vpop.eup %10724  ;;  %v7436_v47 = vadd.f32 1e-05, %v7431_v30  ;;  %v7486_v38 = vpack.c.bf16 %v13697_v1, %v13695_v37 }
0x1c36   : > { %v7444_v2 = vmul.f32 %v10725_v7, %v13666_v32 }
0x1c37   : > { %v10727_v57 = vpop.eup %10726  ;;  %10728 = vrsqrt.f32 %v7436_v47  ;;  %7615 = vmatmul.mubr.bf16.vlgmr.msra.gmra.mrb[232].mxu0 %v7486_v38 }
0x1c38   : > { %7624 = vmatprep.mubr.bf16.mxu0 %v13932_v10  ;;  %v7445_v5 = vmul.f32 %v10727_v57, %v13668_v62  ;;  %v7455_v46 = vmul.f32 %v8818_v22, %v7444_v2  ;;  %v10394_v62 = vld [vmem:[%s13994_s11 + $0xc0] sm:$0xff]  }
0x1c39   : > { %9215 = vmatprep.subr.bf16.mxu1 %v10394_v62 }
0x1c3a   : > { %v7456_v35 = vmul.f32 %v8818_v22, %v7445_v5  ;;  %v13704_v58 = vadd.f32 %v8819_v24, %v7455_v46  ;;  %9216 = vmatpush3.bf16.msra.mxu1 %v10395_v42 }
0x1c3c   : > { %v13706_v16 = vadd.f32 %v8819_v24, %v7456_v35 }
0x1c3e   : > { %v7487_v6 = vpack.c.bf16 %v13706_v16, %v13704_v58 }
0x1c40   : > { %7625 = vmatmul.mubr.bf16.gmra.mrb[236].mxu0 %v7487_v6 }
0x1c41   : > { %v10729_v45 = vpop.eup %10728  ;;  %7634 = vmatprep.mubr.bf16.mxu0 %v13932_v10  ;;  %v10396_v10 = vld [vmem:[%s13994_s11 + $0xc8] sm:$0xff]  }
0x1c42   : > { %v7446_v3 = vmul.f32 %v10729_v45, %v13674_v50  ;;  %9217 = vmatprep.subr.bf16.mxu1 %v10396_v10  ;;  %v10400_v50 = vld [vmem:[%s13994_s11 + $0xd8] sm:$0xff]  }
0x1c43   : > { %9218 = vmatpush3.bf16.msra.mxu1 %v10397_v0 }
0x1c44   : > { %v7457_v48 = vmul.f32 %v8818_v22, %v7446_v3  ;;  %9219 = vmatprep.subr.bf16.mxu1 %v10398_v29 }
0x1c46   : > { %v13712_v32 = vadd.f32 %v8819_v24, %v7457_v48 }
0x1c47   : > { %9220 = vmatpush3.bf16.msra.mxu1 %v10399_v13 }
0x1c48   : > { %v7488_v36 = vpack.c.bf16 %v13712_v32, %v13712_v32  ;;  %9221 = vmatprep.subr.bf16.mxu1 %v10400_v50 }
0x1c4a   : > { %7635 = vmatmul.mubr.bf16.gmra.mrb[240].mxu0 %v7488_v36 }
0x1c4b   : > { %10012 = vmatprep.mubr.msk.bf16.mxu0 %vm10801_vm2, %v13933_v19  ;;  %9222 = vmatpush3.bf16.msra.mxu1 %v10401_v60 }
0x1c4c   : > { %9223 = vmatprep.subr.bf16.mxu1 %v10402_v20 }
0x1c4f   : > { %9224 = vmatpush3.bf16.msra.mxu1 %v10403_v39 }
0x1c50   : > { %9225 = vmatprep.subr.bf16.mxu1 %v10404_v26 }
0x1c53   : > { %9226 = vmatpush3.bf16.msra.mxu1 %v10405_v49 }
0x1c54   : > { %9227 = vmatprep.subr.bf16.mxu1 %v10406_v12 }
0x1c57   : > { %9228 = vmatpush3.bf16.msra.mxu1 %v10407_v44 }
0x1c58   : > { %9229 = vmatprep.subr.bf16.mxu1 %v10408_v25 }
0x1c5b   : > { %9230 = vmatpush3.bf16.msra.mxu1 %v10409_v14 }
0x1d0a   : > { %v7616_v55 = vpop.f32.mrb[232].mxu0 }
0x1d0b   : > { %v13737_v43 = vadd.f32 %v7616_v55, %v7495_v40  ;;  %v7618_v18 = vpop.f32.mrb[233].mxu0 }
0x1d0c   : > { %v13739_v11 = vadd.f32 %v7618_v18, %v7499_v51  ;;  %v7620_v34 = vpop.f32.mrb[234].mxu0 }
0x1d0d   : > { %v7643_v33 = vmul.f32 %v13737_v43, %v13737_v43  ;;  %v13743_v15 = vadd.f32 %v7620_v34, %v7495_v40  ;;  %v7622_v59 = vpop.f32.mrb[235].mxu0 }
0x1d0e   : > { %v7644_v17 = vmul.f32 %v13739_v11, %v13739_v11  ;;  %v13747_v4 = vadd.f32 %v7622_v59, %v7499_v51 }
0x1d0f   : > { %v7653_v21 = vmul.f32 %v7643_v33, %v13737_v43  ;;  %v7645_v52 = vmul.f32 %v13743_v15, %v13743_v15 }
0x1d10   : > { %v7654_v61 = vmul.f32 %v7644_v17, %v13739_v11  ;;  %v7646_v23 = vmul.f32 %v13747_v4, %v13747_v4 }
0x1d11   : > { %v7663_v56 = vmul.f32 0.044715, %v7653_v21  ;;  %v7655_v63 = vmul.f32 %v7645_v52, %v13743_v15 }
0x1d12   : > { %v7664_v22 = vmul.f32 0.044715, %v7654_v61  ;;  %v7656_v9 = vmul.f32 %v7646_v23, %v13747_v4 }
0x1d13   : > { %v7673_v41 = vadd.f32 %v7663_v56, %v13737_v43  ;;  %v7665_v53 = vmul.f32 0.044715, %v7655_v63  ;;  %v7626_v28 = vpop.f32.mrb[236].mxu0 }
0x1d14   : > { %v7674_v24 = vadd.f32 %v7664_v22, %v13739_v11  ;;  %v7666_v8 = vmul.f32 0.044715, %v7656_v9  ;;  %v13759_v54 = vadd.f32 %v7626_v28, %v7495_v40  ;;  %v7628_v30 = vpop.f32.mrb[237].mxu0 }
0x1d15   : > { %v7683_v7 = vmul.f32 0.7978846, %v7673_v41  ;;  %v7675_v47 = vadd.f32 %v7665_v53, %v13743_v15  ;;  %v13762_v38 = vadd.f32 %v7628_v30, %v7499_v51  ;;  %v7630_v2 = vpop.f32.mrb[238].mxu0 }
0x1d16   : > { %v7684_v57 = vmul.f32 0.7978846, %v7674_v24  ;;  %v7676_v5 = vadd.f32 %v7666_v8, %v13747_v4  ;;  %v7647_v46 = vmul.f32 %v13759_v54, %v13759_v54  ;;  %v13767_v35 = vadd.f32 %v7630_v2, %v7495_v40  ;;  %v7632_v6 = vpop.f32.mrb[239].mxu0 }
0x1d17   : > { %10730 = vtanh.f32 %v7683_v7  ;;  %v7685_v45 = vmul.f32 0.7978846, %v7675_v47  ;;  %v7648_v3 = vmul.f32 %v13762_v38, %v13762_v38  ;;  %v13771_v48 = vadd.f32 %v7632_v6, %v7499_v51 }
0x1d18   : > { %10732 = vtanh.f32 %v7684_v57  ;;  %v7686_v36 = vmul.f32 0.7978846, %v7676_v5  ;;  %v7657_v62 = vmul.f32 %v7647_v46, %v13759_v54  ;;  %v7649_v42 = vmul.f32 %v13767_v35, %v13767_v35 }
0x1d19   : > { %10734 = vtanh.f32 %v7685_v45  ;;  %v7658_v10 = vmul.f32 %v7648_v3, %v13762_v38  ;;  %v7650_v0 = vmul.f32 %v13771_v48, %v13771_v48 }
0x1d1a   : > { %10736 = vtanh.f32 %v7686_v36  ;;  %v7667_v29 = vmul.f32 0.044715, %v7657_v62  ;;  %v7659_v13 = vmul.f32 %v7649_v42, %v13767_v35 }
0x1d1b   : > { %v7668_v50 = vmul.f32 0.044715, %v7658_v10  ;;  %v7660_v60 = vmul.f32 %v7650_v0, %v13771_v48 }
0x1d1c   : > { %v7677_v20 = vadd.f32 %v7667_v29, %v13759_v54  ;;  %v7669_v39 = vmul.f32 0.044715, %v7659_v13 }
0x1d1d   : > { %v7678_v26 = vadd.f32 %v7668_v50, %v13762_v38  ;;  %v7670_v49 = vmul.f32 0.044715, %v7660_v60  ;;  %v7636_v12 = vpop.f32.mrb[240].mxu0 }
0x1d1e   : > { %v7687_v44 = vmul.f32 0.7978846, %v7677_v20  ;;  %v7679_v25 = vadd.f32 %v7669_v39, %v13767_v35  ;;  %v13784_v14 = vadd.f32 %v7636_v12, %v7495_v40  ;;  %v7638_v31 = vpop.f32.mrb[241].mxu0 }
0x1d1f   : > { %v7688_v55 = vmul.f32 0.7978846, %v7678_v26  ;;  %v7680_v18 = vadd.f32 %v7670_v49, %v13771_v48  ;;  %v13787_v34 = vadd.f32 %v7638_v31, %v7499_v51  ;;  %v7640_v33 = vpop.f32.mrb[242].mxu0 }
0x1d20   : > { %10738 = vtanh.f32 %v7687_v44  ;;  %v7689_v59 = vmul.f32 0.7978846, %v7679_v25  ;;  %v7651_v17 = vmul.f32 %v13784_v14, %v13784_v14  ;;  %v7641_v21 = vpop.f32.mrb[243].mxu0 }
0x1d21   : > { %v10731_v52 = vpop.eup %10730  ;;  %10740 = vtanh.f32 %v7688_v55  ;;  %v7690_v61 = vmul.f32 0.7978846, %v7680_v18  ;;  %v7652_v40 = vmul.f32 %v13787_v34, %v13787_v34 }
0x1d22   : > { %v10733_v23 = vpop.eup %10732  ;;  %v7703_v56 = vadd.f32 1.0, %v10731_v52  ;;  %10742 = vtanh.f32 %v7689_v59  ;;  %v7661_v63 = vmul.f32 %v7651_v17, %v13784_v14 }
0x1d23   : > { %v10735_v51 = vpop.eup %10734  ;;  %10744 = vtanh.f32 %v7690_v61  ;;  %v7662_v22 = vmul.f32 %v7652_v40, %v13787_v34  ;;  %v7704_v9 = vadd.f32 1.0, %v10733_v23 }
0x1d24   : > { %v10737_v41 = vpop.eup %10736  ;;  %v7713_v53 = vmul.f32 0.5, %v7703_v56  ;;  %v7705_v28 = vadd.f32 1.0, %v10735_v51  ;;  %v7671_v24 = vmul.f32 0.044715, %v7661_v63 }
0x1d25   : > { %v7672_v8 = vmul.f32 0.044715, %v7662_v22  ;;  %v7706_v30 = vadd.f32 1.0, %v10737_v41  ;;  %v7714_v7 = vmul.f32 0.5, %v7704_v9 }
0x1d26   : > { %v7715_v47 = vmul.f32 0.5, %v7705_v28  ;;  %v7681_v2 = vadd.f32 %v7671_v24, %v13784_v14  ;;  %v7723_v46 = vmul.f32 %v7713_v53, %v13737_v43 }
0x1d27   : > { %v7682_v57 = vadd.f32 %v7672_v8, %v13787_v34  ;;  %v7716_v5 = vmul.f32 0.5, %v7706_v30  ;;  %v7724_v36 = vmul.f32 %v7714_v7, %v13739_v11 }
0x1d28   : > { %v7725_v6 = vmul.f32 %v7715_v47, %v13743_v15  ;;  %v7691_v45 = vmul.f32 0.7978846, %v7681_v2 }
0x1d29   : > { %v7692_v3 = vmul.f32 0.7978846, %v7682_v57  ;;  %v7726_v62 = vmul.f32 %v7716_v5, %v13747_v4 }
0x1d2a   : > { %v10739_v42 = vpop.eup %10738  ;;  %v7766_v10 = vpack.c.bf16 %v7725_v6, %v7723_v46  ;;  %10746 = vtanh.f32 %v7691_v45 }
0x1d2b   : > { %v10741_v0 = vpop.eup %10740  ;;  %v7707_v29 = vadd.f32 1.0, %v10739_v42  ;;  %10748 = vtanh.f32 %v7692_v3  ;;  %v7767_v13 = vpack.c.bf16 %v7726_v62, %v7724_v36  ;;  %v10410_v62 = vld [vmem:[%s10945_s6] sm:$0xff]   ;;  %v10411_v42 = vld [vmem:[%s10945_s6 + $0x8] sm:$0xff]  }
0x1d2c   : > { %v10743_v50 = vpop.eup %10742  ;;  %v7708_v60 = vadd.f32 1.0, %v10741_v0  ;;  %9997 = vmatpush3.bf16.msra.mxu0 %v10410_v62 }
0x1d2d   : > { %v10745_v20 = vpop.eup %10744  ;;  %v7717_v39 = vmul.f32 0.5, %v7707_v29  ;;  %v7709_v43 = vadd.f32 1.0, %v10743_v50  ;;  %7908 = vmatprep.mubr.bf16.mxu1 %v7767_v13  ;;  %9998 = vmatprep.subr.bf16.mxu0 %v13933_v19 }
0x1d2e   : > { %7909 = vmatmul.mubr.bf16.vlgmr.msra.gmra.mrb[252].mxu1 %v7766_v10  ;;  %v7710_v15 = vadd.f32 1.0, %v10745_v20  ;;  %v7718_v26 = vmul.f32 0.5, %v7708_v60 }
0x1d2f   : > { %v7719_v49 = vmul.f32 0.5, %v7709_v43  ;;  %v7727_v4 = vmul.f32 %v7717_v39, %v13759_v54 }
0x1d30   : > { %v7720_v11 = vmul.f32 0.5, %v7710_v15  ;;  %v7728_v44 = vmul.f32 %v7718_v26, %v13762_v38  ;;  %9999 = vmatpush3.bf16.msra.mxu0 %v10411_v42 }
0x1d31   : > { %v7729_v12 = vmul.f32 %v7719_v49, %v13767_v35  ;;  %10000 = vmatprep.subr.bf16.mxu0 %v13933_v19 }
0x1d32   : > { %v7730_v25 = vmul.f32 %v7720_v11, %v13771_v48  ;;  %v8886_v48 = vld [vmem:[%s13996_s23 + $0x1] ss:$0 sm:$0xff] }
0x1d33   : > { %v7768_v31 = vpack.c.bf16 %v7729_v12, %v7727_v4 }
0x1d34   : > { %v10747_v55 = vpop.eup %10746  ;;  %v7769_v18 = vpack.c.bf16 %v7730_v25, %v7728_v44 }
0x1d35   : > { %v10749_v33 = vpop.eup %10748  ;;  %v7711_v59 = vadd.f32 1.0, %v10747_v55  ;;  %v10413_v55 = vld [vmem:[%s10945_s6 + $0x18] sm:$0xff]  }
0x1d36   : > { %7916 = vmatprep.mubr.bf16.mxu1 %v7769_v18  ;;  %v7712_v17 = vadd.f32 1.0, %v10749_v33  ;;  %v10414_v18 = vld [vmem:[%s10945_s6 + $0x20] sm:$0xff]   ;;  %v10415_v33 = vld [vmem:[%s10945_s6 + $0x28] sm:$0xff]  }
0x1d37   : > { %v7721_v21 = vmul.f32 0.5, %v7711_v59  ;;  %7917 = vmatmul.mubr.bf16.gmra.mrb[0].mxu1 %v7768_v31  ;;  %v10412_v31 = vld [vmem:[%s10945_s6 + $0x10] sm:$0xff]  }
0x1d38   : > { %v7722_v52 = vmul.f32 0.5, %v7712_v17  ;;  %10001 = vmatpush3.bf16.msra.mxu0 %v10412_v31  ;;  %v10416_v59 = vld [vmem:[%s10945_s6 + $0x30] sm:$0xff]   ;;  %v10417_v17 = vld [vmem:[%s10945_s6 + $0x38] sm:$0xff]  }
0x1d39   : > { %v7731_v61 = vmul.f32 %v7721_v21, %v13784_v14  ;;  %10002 = vmatprep.subr.bf16.mxu0 %v13933_v19 }
0x1d3a   : > { %v7732_v54 = vmul.f32 %v7722_v52, %v13787_v34 }
0x1d3b   : > { %v7770_v40 = vpack.c.bf16 %v7731_v61, %v7731_v61 }
0x1d3c   : > { %v7771_v35 = vpack.c.bf16 %v7732_v54, %v7732_v54  ;;  %10003 = vmatpush3.bf16.msra.mxu0 %v10413_v55 }
0x1d3d   : > { %10004 = vmatprep.subr.bf16.mxu0 %v13933_v19 }
0x1d3e   : > { %7924 = vmatprep.mubr.bf16.mxu1 %v7771_v35 }
0x1d3f   : > { %7925 = vmatmul.mubr.bf16.gmra.mrb[4].mxu1 %v7770_v40 }
0x1d40   : > { %10005 = vmatpush3.bf16.msra.mxu0 %v10414_v18 }
0x1d41   : > { %10006 = vmatprep.subr.bf16.mxu0 %v13933_v19 }
0x1d44   : > { %10007 = vmatpush3.bf16.msra.mxu0 %v10415_v33 }
0x1d45   : > { %10008 = vmatprep.subr.bf16.mxu0 %v13933_v19 }
0x1d48   : > { %10009 = vmatpush3.bf16.msra.mxu0 %v10416_v59 }
0x1d49   : > { %10010 = vmatprep.subr.bf16.mxu0 %v13933_v19 }
0x1d4c   : > { %10011 = vmatpush3.bf16.msra.mxu0 %v10417_v17 }
0x1e01   : > { %v9231_v38 = vpop.f32.mrb[252].mxu1 }
0x1e02   : > { %v9232_v23 = vpop.f32.mrb[253].mxu1 }
0x1e03   : > { %v9233_v56 = vadd.f32 %v9232_v23, %v9231_v38  ;;  %v9234_v63 = vpop.f32.mrb[254].mxu1 }
0x1e04   : > { %v9235_v51 = vpop.f32.mrb[255].mxu1 }
0x1e05   : > { %v7911_v22 = vadd.f32 %v9233_v56, %v8886_v48  ;;  %v9236_v9 = vadd.f32 %v9235_v51, %v9234_v63 }
0x1e07   : > { %v7914_v41 = vadd.f32 %v9236_v9, %v8886_v48  ;;  %v7932_v53 = vadd.f32 %v7911_v22, %v13695_v37  ;;  %v8905_v9 = vld [vmem:[%s13997_s22 + $0x1] ss:$0 sm:$0xff] }
0x1e09   : > { %7941 = vadd.xlane.f32.xlu1 %v7932_v53  ;;  %v7933_v14 = vadd.f32 %v7914_v41, %v13697_v1 }
0x1e0a   : > { %v9237_v28 = vpop.f32.mrb[0].mxu1 }
0x1e0b   : > { %v9238_v34 = vpop.f32.mrb[1].mxu1  ;;  %7943 = vadd.xlane.f32.xlu0 %v7933_v14 }
0x1e0c   : > { %v9239_v24 = vadd.f32 %v9238_v34, %v9237_v28  ;;  %v9240_v8 = vpop.f32.mrb[2].mxu1  ;;  %v8906_v28 = vld [vmem:[%s13998_s18 + $0x1] ss:$0 sm:$0xff] }
0x1e0d   : > { %v9241_v30 = vpop.f32.mrb[3].mxu1 }
0x1e0e   : > { %v7919_v7 = vadd.f32 %v9239_v24, %v8886_v48  ;;  %v9242_v47 = vadd.f32 %v9241_v30, %v9240_v8 }
0x1e10   : > { %v7922_v2 = vadd.f32 %v9242_v47, %v8886_v48  ;;  %v7934_v57 = vadd.f32 %v7919_v7, %v13704_v58 }
0x1e12   : > { %v9243_v5 = vpop.f32.mrb[4].mxu1  ;;  %7945 = vadd.xlane.f32.xlu1 %v7934_v57  ;;  %v7935_v37 = vadd.f32 %v7922_v2, %v13706_v16 }
0x1e13   : > { %v9244_v46 = vpop.f32.mrb[5].mxu1 }
0x1e14   : > { %v9245_v6 = vadd.f32 %v9244_v46, %v9243_v5  ;;  %v9246_v1 = vpop.f32.mrb[6].mxu1  ;;  %7947 = vadd.xlane.f32.xlu0 %v7935_v37 }
0x1e15   : > { %v9247_v45 = vpop.f32.mrb[7].mxu1 }
0x1e16   : > { %v7927_v3 = vadd.f32 %v9245_v6, %v8886_v48 }
0x1e18   : > { %v7936_v36 = vadd.f32 %v7927_v3, %v13712_v32 }
0x1e1a   : > { %7949 = vadd.xlane.f32.xlu1 %v7936_v36 }
0x1e96   : > { %v7942_v58 = vpop.xlane.xlu1 %7941 }
0x1e97   : > { %v7951_v10 = vmul.f32 0.0078125, %v7942_v58 }
0x1e98   : > { %v7944_v16 = vpop.xlane.xlu0 %7943 }
0x1e99   : > { %v7956_v0 = vsub.f32 %v7932_v53, %v7951_v10  ;;  %v7952_v29 = vmul.f32 0.0078125, %v7944_v16 }
0x1e9b   : > { %v7957_v13 = vsub.f32 %v7933_v14, %v7952_v29  ;;  %v7961_v50 = vmul.f32 %v7956_v0, %v7956_v0  ;;  %v8907_v29 = vld [vmem:[%s10950_s20] ss:$0 sm:$0xff] }
0x1e9d   : > { %7966 = vadd.xlane.f32.xlu0 %v7961_v50  ;;  %v7962_v60 = vmul.f32 %v7957_v13, %v7957_v13 }
0x1e9f   : > { %7968 = vadd.xlane.f32.xlu1 %v7962_v60  ;;  %v7946_v32 = vpop.xlane.xlu1 %7945 }
0x1ea0   : > { %v7953_v20 = vmul.f32 0.0078125, %v7946_v32 }
0x1ea1   : > { %v7948_v39 = vpop.xlane.xlu0 %7947 }
0x1ea2   : > { %v13817_v43 = vsub.f32 %v7934_v57, %v7953_v20  ;;  %v7954_v15 = vmul.f32 0.0078125, %v7948_v39 }
0x1ea4   : > { %v13819_v26 = vsub.f32 %v7935_v37, %v7954_v15  ;;  %v7963_v49 = vmul.f32 %v13817_v43, %v13817_v43 }
0x1ea6   : > { %7970 = vadd.xlane.f32.xlu0 %v7963_v49  ;;  %v7964_v11 = vmul.f32 %v13819_v26, %v13819_v26 }
0x1ea7   : > { %v7950_v4 = vpop.xlane.xlu1 %7949 }
0x1ea8   : > { %v7955_v12 = vmul.f32 0.0078125, %v7950_v4  ;;  %7972 = vadd.xlane.f32.xlu1 %v7964_v11 }
0x1eaa   : > { %v13825_v44 = vsub.f32 %v7936_v36, %v7955_v12 }
0x1eac   : > { %v7965_v25 = vmul.f32 %v13825_v44, %v13825_v44 }
0x1eae   : > { %7974 = vadd.xlane.f32.xlu0 %v7965_v25 }
0x1f2a   : > { %v7967_v21 = vpop.xlane.xlu0 %7966 }
0x1f2b   : > { %v7976_v52 = vmul.f32 0.0078125, %v7967_v21 }
0x1f2c   : > { %v7969_v61 = vpop.xlane.xlu1 %7968 }
0x1f2d   : > { %v7981_v54 = vadd.f32 1e-05, %v7976_v52  ;;  %v7977_v35 = vmul.f32 0.0078125, %v7969_v61 }
0x1f2f   : > { %10750 = vrsqrt.f32 %v7981_v54  ;;  %v7982_v40 = vadd.f32 1e-05, %v7977_v35 }
0x1f31   : > { %10752 = vrsqrt.f32 %v7982_v40 }
0x1f33   : > { %v7971_v38 = vpop.xlane.xlu0 %7970 }
0x1f34   : > { %v7978_v48 = vmul.f32 0.0078125, %v7971_v38 }
0x1f35   : > { %v7973_v23 = vpop.xlane.xlu1 %7972 }
0x1f36   : > { %v7983_v56 = vadd.f32 1e-05, %v7978_v48  ;;  %v7979_v63 = vmul.f32 0.0078125, %v7973_v23 }
0x1f38   : > { %10754 = vrsqrt.f32 %v7983_v56  ;;  %v7984_v51 = vadd.f32 1e-05, %v7979_v63 }
0x1f39   : > { %v10751_v22 = vpop.eup %10750 }
0x1f3a   : > { %v7991_v41 = vmul.f32 %v10751_v22, %v7956_v0  ;;  %10756 = vrsqrt.f32 %v7984_v51 }
0x1f3b   : > { %v10753_v53 = vpop.eup %10752  ;;  %v7975_v14 = vpop.xlane.xlu0 %7974 }
0x1f3c   : > { %v8002_v34 = vmul.f32 %v8905_v9, %v7991_v41  ;;  %v7992_v24 = vmul.f32 %v10753_v53, %v7957_v13  ;;  %v7980_v8 = vmul.f32 0.0078125, %v7975_v14 }
0x1f3e   : > { %v8003_v30 = vmul.f32 %v8905_v9, %v7992_v24  ;;  %v7985_v7 = vadd.f32 1e-05, %v7980_v8  ;;  %v8013_v47 = vadd.f32 %v8906_v28, %v8002_v34 }
0x1f40   : > { %10758 = vrsqrt.f32 %v7985_v7  ;;  %v8014_v2 = vadd.f32 %v8906_v28, %v8003_v30  ;;  %8254 = vst [vmem:[%s910_s3] sm:$0xff] %v8013_v47 }
0x1f42   : > { %v10755_v57 = vpop.eup %10754  ;;  %v8034_v5 = vpack.c.bf16 %v8014_v2, %v8013_v47  ;;  %8255 = vst [vmem:[%s910_s3 + $0x8] sm:$0xff] %v8014_v2 }
0x1f43   : > { %v7993_v37 = vmul.f32 %v10755_v57, %v13817_v43 }
0x1f44   : > { %v10757_v46 = vpop.eup %10756  ;;  %10013 = vmatmul.mubr.bf16.vlgmr.msra.gmra.mrb[244].mxu0 %v8034_v5 }
0x1f45   : > { %10016 = vmatprep.mubr.msk.bf16.mxu0 %vm10801_vm2, %v13933_v19  ;;  %v7994_v6 = vmul.f32 %v10757_v46, %v13819_v26  ;;  %v8004_v1 = vmul.f32 %v8905_v9, %v7993_v37 }
0x1f47   : > { %v8005_v45 = vmul.f32 %v8905_v9, %v7994_v6  ;;  %v8015_v3 = vadd.f32 %v8906_v28, %v8004_v1 }
0x1f49   : > { %v8016_v36 = vadd.f32 %v8906_v28, %v8005_v45  ;;  %8256 = vst [vmem:[%s910_s3 + $0x10] sm:$0xff] %v8015_v3 }
0x1f4a   : > { %v10759_v62 = vpop.eup %10758 }
0x1f4b   : > { %v8035_v42 = vpack.c.bf16 %v8016_v36, %v8015_v3  ;;  %8257 = vst [vmem:[%s910_s3 + $0x18] sm:$0xff] %v8016_v36  ;;  %v7995_v58 = vmul.f32 %v10759_v62, %v13825_v44 }
0x1f4d   : > { %10017 = vmatmul.mubr.bf16.gmra.mrb[248].mxu0 %v8035_v42  ;;  %v8006_v10 = vmul.f32 %v8905_v9, %v7995_v58 }
0x1f4e   : > { %10020 = vmatprep.mubr.msk.bf16.mxu0 %vm10801_vm2, %v13933_v19 }
0x1f4f   : > { %v8017_v16 = vadd.f32 %v8906_v28, %v8006_v10 }
0x1f51   : > { %8258 = vst [vmem:[%s910_s3 + $0x20] sm:$0xff] %v8017_v16  ;;  %v8036_v0 = vpack.c.bf16 %v8017_v16, %v8017_v16 }
0x1f55   : > { %10021 = vmatmul.mubr.bf16.gmra.mrb[252].mxu0 %v8036_v0 }
0x2017   : > { %v8126_v13 = vpop.f32.mrb[244].mxu0 }
0x2018   : > { %v8127_v50 = vadd.f32 %v8907_v29, %v8126_v13  ;;  %v10014_v60 = vpop.f32.mrb[245].mxu0 }
0x2019   : > { %v8129_v32 = vpop.f32.mrb[246].mxu0 }
0x201a   : > { %v8130_v20 = vadd.f32 %v8907_v29, %v8129_v32  ;;  %v10015_v39 = vpop.f32.mrb[247].mxu0  ;;  %v8148_v43 = vsel %vm1706_vm7, %v8127_v50, -inf }
0x201b   : > { %8149 = vmax.xlane.f32.xlu1 %v8148_v43 }
0x201c   : > { %v8151_v15 = vsel %vm1706_vm7, %v8130_v20, -inf }
0x201d   : > { %8152 = vmax.xlane.f32.xlu0 %v8151_v15 }
0x2020   : > { %v8134_v26 = vpop.f32.mrb[248].mxu0 }
0x2021   : > { %v8135_v49 = vadd.f32 %v8907_v29, %v8134_v26  ;;  %v10018_v19 = vpop.f32.mrb[249].mxu0 }
0x2022   : > { %v8137_v11 = vpop.f32.mrb[250].mxu0 }
0x2023   : > { %v8138_v4 = vadd.f32 %v8907_v29, %v8137_v11  ;;  %v10019_v12 = vpop.f32.mrb[251].mxu0  ;;  %v8154_v44 = vsel %vm1706_vm7, %v8135_v49, -inf }
0x2024   : > { %8155 = vmax.xlane.f32.xlu1 %v8154_v44 }
0x2025   : > { %v8157_v25 = vsel %vm1706_vm7, %v8138_v4, -inf }
0x2026   : > { %8158 = vmax.xlane.f32.xlu0 %v8157_v25 }
0x2028   : > { %v8142_v31 = vpop.f32.mrb[252].mxu0 }
0x2029   : > { %v8143_v55 = vadd.f32 %v8907_v29, %v8142_v31  ;;  %v10022_v18 = vpop.f32.mrb[253].mxu0 }
0x202a   : > { %v8145_v33 = vpop.f32.mrb[254].mxu0 }
0x202b   : > { %v10023_v59 = vpop.f32.mrb[255].mxu0  ;;  %v8160_v17 = vsel %vm1706_vm7, %v8143_v55, -inf }
0x202c   : > { %8161 = vmax.xlane.f32.xlu1 %v8160_v17 }
0x20a8   : > { %v8150_v21 = vpop.xlane.xlu1 %8149 }
0x20a9   : > { %vm8163_vm2 = vcmp.eq.f32.partialorder %v8127_v50, %v8150_v21 }
0x20aa   : > { %v8168_v52 = vsel %vm8163_vm2, %v11170_v27, 2147483647  ;;  %v8153_v61 = vpop.xlane.xlu0 %8152 }
0x20ab   : > { %v8173_v54 = vsel %vm1706_vm7, %v8168_v52, 2147483647  ;;  %vm8164_vm9 = vcmp.eq.f32.partialorder %v8130_v20, %v8153_v61 }
0x20ac   : > { %v8175_v35 = vshra.s32 %v8173_v54, 16  ;;  %v8169_v40 = vsel %vm8164_vm9, %v11170_v27, 2147483647  ;;  %v8174_v57 = vand.u32 65535, %v8173_v54 }
0x20ad   : > { %v8188_v38 = vsel %vm1706_vm7, %v8169_v40, 2147483647 }
0x20ae   : > { %v8190_v48 = vshra.s32 %v8188_v38, 16  ;;  %v8177_v23 = vcvt.s32.f32 %v8175_v35  ;;  %v8189_v5 = vand.u32 65535, %v8188_v38  ;;  %v8176_v46 = vcvt.s32.f32 %v8174_v57 }
0x20b0   : > { %8178 = vmin.xlane.f32.xlu0 %v8177_v23  ;;  %v8192_v56 = vcvt.s32.f32 %v8190_v48  ;;  %v8191_v45 = vcvt.s32.f32 %v8189_v5 }
0x20b1   : > { %v8156_v63 = vpop.xlane.xlu1 %8155 }
0x20b2   : > { %vm8165_vm10 = vcmp.eq.f32.partialorder %v8135_v49, %v8156_v63  ;;  %8193 = vmin.xlane.f32.xlu1 %v8192_v56 }
0x20b3   : > { %v8170_v51 = vsel %vm8165_vm10, %v11170_v27, 2147483647  ;;  %v8159_v22 = vpop.xlane.xlu0 %8158 }
0x20b4   : > { %v8203_v9 = vsel %vm1706_vm7, %v8170_v51, 2147483647  ;;  %vm8166_vm15 = vcmp.eq.f32.partialorder %v8138_v4, %v8159_v22 }
0x20b5   : > { %v8205_v41 = vshra.s32 %v8203_v9, 16  ;;  %v8171_v53 = vsel %vm8166_vm15, %v11170_v27, 2147483647  ;;  %v8204_v36 = vand.u32 65535, %v8203_v9 }
0x20b6   : > { %v8218_v14 = vsel %vm1706_vm7, %v8171_v53, 2147483647 }
0x20b7   : > { %v8220_v28 = vshra.s32 %v8218_v14, 16  ;;  %v8207_v34 = vcvt.s32.f32 %v8205_v41  ;;  %v8206_v42 = vcvt.s32.f32 %v8204_v36 }
0x20b9   : > { %8208 = vmin.xlane.f32.xlu0 %v8207_v34  ;;  %v8162_v24 = vpop.xlane.xlu1 %8161  ;;  %v8222_v8 = vcvt.s32.f32 %v8220_v28 }
0x20ba   : > { %vm8167_vm13 = vcmp.eq.f32.partialorder %v8143_v55, %v8162_v24 }
0x20bb   : > { %v8172_v30 = vsel %vm8167_vm13, %v11170_v27, 2147483647  ;;  %8223 = vmin.xlane.f32.xlu1 %v8222_v8  ;;  %v8219_v27 = vand.u32 65535, %v8218_v14 }
0x20bc   : > { %v8233_v7 = vsel %vm1706_vm7, %v8172_v30, 2147483647 }
0x20bd   : > { %v8235_v47 = vshra.s32 %v8233_v7, 16  ;;  %v8221_v16 = vcvt.s32.f32 %v8219_v27  ;;  %v8234_v0 = vand.u32 65535, %v8233_v7 }
0x20bf   : > { %v8237_v2 = vcvt.s32.f32 %v8235_v47  ;;  %v8236_v50 = vcvt.s32.f32 %v8234_v0 }
0x20c1   : > { %8238 = vmin.xlane.f32.xlu0 %v8237_v2 }
0x213d   : > { %v8179_v37 = vpop.xlane.xlu0 %8178 }
0x213e   : > { %vm8180_vm14 = vcmp.eq.f32.partialorder %v8177_v23, %v8179_v37  ;;  %v8185_v32 = vcvt.f32.s32 %v8179_v37 }
0x213f   : > { %v8194_v6 = vpop.xlane.xlu1 %8193  ;;  %v8181_v1 = vsel %vm8180_vm14, %v8176_v46, inf }
0x2140   : > { %vm8195_vm8 = vcmp.eq.f32.partialorder %v8192_v56, %v8194_v6  ;;  %8182 = vmin.xlane.f32.xlu1 %v8181_v1  ;;  %v8200_v20 = vcvt.f32.s32 %v8194_v6  ;;  %v8186_v43 = vshll.u32 %v8185_v32, 16 }
0x2141   : > { %v8196_v3 = vsel %vm8195_vm8, %v8191_v45, inf }
0x2142   : > { %8197 = vmin.xlane.f32.xlu0 %v8196_v3  ;;  %v8201_v49 = vshll.u32 %v8200_v20, 16 }
0x2146   : > { %v8209_v62 = vpop.xlane.xlu0 %8208 }
0x2147   : > { %vm8210_vm7 = vcmp.eq.f32.partialorder %v8207_v34, %v8209_v62  ;;  %v8215_v12 = vcvt.f32.s32 %v8209_v62 }
0x2148   : > { %v8224_v58 = vpop.xlane.xlu1 %8223  ;;  %v8211_v10 = vsel %vm8210_vm7, %v8206_v42, inf }
0x2149   : > { %vm8225_vm11 = vcmp.eq.f32.partialorder %v8222_v8, %v8224_v58  ;;  %8212 = vmin.xlane.f32.xlu1 %v8211_v10  ;;  %v8230_v44 = vcvt.f32.s32 %v8224_v58  ;;  %v8216_v31 = vshll.u32 %v8215_v12, 16 }
0x214a   : > { %v8226_v29 = vsel %vm8225_vm11, %v8221_v16, inf }
0x214b   : > { %8227 = vmin.xlane.f32.xlu0 %v8226_v29  ;;  %v8231_v33 = vshll.u32 %v8230_v44, 16 }
0x214e   : > { %v8239_v13 = vpop.xlane.xlu0 %8238 }
0x214f   : > { %vm8240_vm12 = vcmp.eq.f32.partialorder %v8237_v2, %v8239_v13  ;;  %v8245_v21 = vcvt.f32.s32 %v8239_v13 }
0x2150   : > { %v8241_v60 = vsel %vm8240_vm12, %v8236_v50, inf }
0x2151   : > { %8242 = vmin.xlane.f32.xlu1 %v8241_v60  ;;  %v8246_v54 = vshll.u32 %v8245_v21, 16 }
0x21cd   : > { %v8183_v39 = vpop.xlane.xlu1 %8182 }
0x21ce   : > { %v8184_v15 = vcvt.f32.s32 %v8183_v39 }
0x21cf   : > { %v8198_v26 = vpop.xlane.xlu0 %8197 }
0x21d0   : > { %v8187_v19 = vadd.s32 %v8186_v43, %v8184_v15  ;;  %v8199_v11 = vcvt.f32.s32 %v8198_v26 }
0x21d2   : > { %8249 = vst.msk [vmem:[%s915_s8] sm:$0xff] %vm8248_vm3, %v8187_v19  ;;  %v8202_v4 = vadd.s32 %v8201_v49, %v8199_v11 }
0x21d4   : > { %8250 = vst.msk [vmem:[%s915_s8 + $0x8] sm:$0xff] %vm8248_vm3, %v8202_v4 }
0x21d6   : > { %v8213_v25 = vpop.xlane.xlu1 %8212 }
0x21d7   : > { %v8214_v55 = vcvt.f32.s32 %v8213_v25 }
0x21d8   : > { %v8228_v18 = vpop.xlane.xlu0 %8227 }
0x21d9   : > { %v8217_v59 = vadd.s32 %v8216_v31, %v8214_v55  ;;  %v8229_v17 = vcvt.f32.s32 %v8228_v18 }
0x21db   : > { %8251 = vst.msk [vmem:[%s915_s8 + $0x10] sm:$0xff] %vm8248_vm3, %v8217_v59  ;;  %v8232_v52 = vadd.s32 %v8231_v33, %v8229_v17 }
0x21dd   : > { %8252 = vst.msk [vmem:[%s915_s8 + $0x18] sm:$0xff] %vm8248_vm3, %v8232_v52 }
0x21de   : > { %v8243_v61 = vpop.xlane.xlu1 %8242 }
0x21df   : > { %v8244_v35 = vcvt.f32.s32 %v8243_v61 }
0x21e1   : > { %v8247_v40 = vadd.s32 %v8246_v54, %v8244_v35 }
0x21e3   : > { %8253 = vst.msk [vmem:[%s915_s8 + $0x20] sm:$0xff] %vm8248_vm3, %v8247_v40 }
0x21e4 PF: > { %s70_s7 = sadd.s32 1, %s10766_s7  }
0x21e5   : > { %p67_p4 = scmp.ge.s32.totalorder %s70_s7, 4  }
0x21e7   :  { %69 = sbr.rel (!%p67_p4) target bundleno = 49 (0x31), region = 215 }

</bundles_post_ra>
